<compile_context>
chip_gen: v7x
topology: tpu7x:2x2x1
jax: 0.10.0
libtpu: 0.0.40
codegen_flags: <defaults>
</compile_context>

<pallas_src>
import math
from functools import partial

import jax
import jax.numpy as jnp
from jax.experimental import pallas as pl
from jax.experimental.pallas import tpu as pltpu

BF16 = jnp.bfloat16


def _pick_tile(m, max_tile=256):
    """Largest row tile <= max_tile that divides m (falls back to the whole extent)."""
    if m <= max_tile:
        return m
    for t in (256, 128, 64, 32, 16, 8):
        if m % t == 0:
            return t
    return m


# ----------------------------------------------------------------------------
# Pallas kernels
# ----------------------------------------------------------------------------
def _linear_kernel(x_ref, w_ref, b_ref, o_ref, *, activation):
    acc = jnp.dot(x_ref[...].astype(BF16), w_ref[...].astype(BF16),
                  preferred_element_type=jnp.float32) + b_ref[...]
    if activation == "relu":
        acc = jnp.maximum(acc, 0.0)
    elif activation == "sigmoid":
        acc = jax.nn.sigmoid(acc)
    o_ref[...] = acc.astype(o_ref.dtype)


def linear(x, w, b, activation="none"):
    """(..., K) @ (K, N) + (N,) with optional fused activation; M-tiled, bf16 MXU operands."""
    lead = x.shape[:-1]
    K = x.shape[-1]
    N = w.shape[-1]
    x2 = x.reshape(-1, K)
    M = x2.shape[0]
    TM = _pick_tile(M)
    out = pl.pallas_call(
        partial(_linear_kernel, activation=activation),
        out_shape=jax.ShapeDtypeStruct((M, N), jnp.float32),
        grid=(pl.cdiv(M, TM),),
        in_specs=[
            pl.BlockSpec((TM, K), lambda i: (i, 0)),
            pl.BlockSpec((K, N), lambda i: (0, 0)),
            pl.BlockSpec((1, N), lambda i: (0, 0)),
        ],
        out_specs=pl.BlockSpec((TM, N), lambda i: (i, 0)),
        compiler_params=pltpu.CompilerParams(dimension_semantics=("parallel",)),
    )(x2, w, b.reshape(1, N))
    return out.reshape(*lead, N)


def _ln_kernel(x_ref, g_ref, b_ref, o_ref):
    x = x_ref[...].astype(jnp.float32)
    mu = jnp.mean(x, axis=-1, keepdims=True)
    var = jnp.mean(jnp.square(x - mu), axis=-1, keepdims=True)
    y = (x - mu) * jax.lax.rsqrt(var + 1e-5)
    o_ref[...] = (y * g_ref[...] + b_ref[...]).astype(o_ref.dtype)


def layer_norm(x, g, b):
    lead = x.shape[:-1]
    D = x.shape[-1]
    x2 = x.reshape(-1, D)
    M = x2.shape[0]
    TM = _pick_tile(M)
    out = pl.pallas_call(
        _ln_kernel,
        out_shape=jax.ShapeDtypeStruct((M, D), jnp.float32),
        grid=(pl.cdiv(M, TM),),
        in_specs=[
            pl.BlockSpec((TM, D), lambda i: (i, 0)),
            pl.BlockSpec((1, D), lambda i: (0, 0)),
            pl.BlockSpec((1, D), lambda i: (0, 0)),
        ],
        out_specs=pl.BlockSpec((TM, D), lambda i: (i, 0)),
        compiler_params=pltpu.CompilerParams(dimension_semantics=("parallel",)),
    )(x2, g.reshape(1, D), b.reshape(1, D))
    return out.reshape(*lead, D)


def _mha_ln_kernel(xq_ref, pq_ref, xkv_ref, pkv_ref,
                   wq_ref, wk_ref, wv_ref, wo_ref,
                   bq_ref, bk_ref, bv_ref, bo_ref,
                   g_ref, beta_ref, o_ref, *, nheads, scale):
    """Fused MHA block for one batch element: LN(x_q + MHA(x_q+pos_q, x_kv+pos_kv, x_kv))."""
    xq = xq_ref[0]                              # (Sq, D) f32  (also the residual)
    xkv = xkv_ref[0]                            # (Sk, D) f32
    q_in = (xq + pq_ref[0]).astype(BF16)
    k_in = (xkv + pkv_ref[0]).astype(BF16)
    v_in = xkv.astype(BF16)

    q = jnp.dot(q_in, wq_ref[...].astype(BF16), preferred_element_type=jnp.float32) + bq_ref[...]
    k = jnp.dot(k_in, wk_ref[...].astype(BF16), preferred_element_type=jnp.float32) + bk_ref[...]
    v = jnp.dot(v_in, wv_ref[...].astype(BF16), preferred_element_type=jnp.float32) + bv_ref[...]

    D = q.shape[-1]
    Dh = D // nheads
    heads = []
    for h in range(nheads):                     # small static unroll over heads
        sl = slice(h * Dh, (h + 1) * Dh)
        qh = q[:, sl].astype(BF16)
        kh = k[:, sl].astype(BF16)
        vh = v[:, sl].astype(BF16)
        s = jax.lax.dot_general(qh, kh, (((1,), (1,)), ((), ())),
                                preferred_element_type=jnp.float32) * scale
        s = s - jnp.max(s, axis=-1, keepdims=True)
        p = jnp.exp(s)
        p = p * pl.reciprocal(jnp.sum(p, axis=-1, keepdims=True), approx=True)
        heads.append(jnp.dot(p.astype(BF16), vh, preferred_element_type=jnp.float32))
    attn = jnp.concatenate(heads, axis=-1)      # (Sq, D)

    out = jnp.dot(attn.astype(BF16), wo_ref[...].astype(BF16),
                  preferred_element_type=jnp.float32) + bo_ref[...]

    # residual + LayerNorm (post-norm, eval mode)
    y = xq + out
    mu = jnp.mean(y, axis=-1, keepdims=True)
    var = jnp.mean(jnp.square(y - mu), axis=-1, keepdims=True)
    y = (y - mu) * jax.lax.rsqrt(var + 1e-5)
    o_ref[0] = (y * g_ref[...] + beta_ref[...]).astype(o_ref.dtype)


def mha_ln_block(x_q, pos_q, x_kv, pos_kv, p, ln_g, ln_b, nheads):
    """Fused multi-head attention + residual + LayerNorm. One grid step per batch element."""
    B, Sq, D = x_q.shape
    Sk = x_kv.shape[1]
    scale = 1.0 / math.sqrt(D // nheads)

    def batch_spec(S, arr):
        if arr.shape[0] == 1:   # broadcast positional embeddings via the index_map (no HBM copy)
            return pl.BlockSpec((1, S, D), lambda b: (0, 0, 0))
        return pl.BlockSpec((1, S, D), lambda b: (b, 0, 0))

    w_spec = pl.BlockSpec((D, D), lambda b: (0, 0))
    v_spec = pl.BlockSpec((1, D), lambda b: (0, 0))

    return pl.pallas_call(
        partial(_mha_ln_kernel, nheads=nheads, scale=scale),
        out_shape=jax.ShapeDtypeStruct((B, Sq, D), jnp.float32),
        grid=(B,),
        in_specs=[
            batch_spec(Sq, x_q), batch_spec(Sq, pos_q),
            batch_spec(Sk, x_kv), batch_spec(Sk, pos_kv),
            w_spec, w_spec, w_spec, w_spec,
            v_spec, v_spec, v_spec, v_spec,
            v_spec, v_spec,
        ],
        out_specs=pl.BlockSpec((1, Sq, D), lambda b: (b, 0, 0)),
        compiler_params=pltpu.CompilerParams(dimension_semantics=("parallel",)),
    )(x_q, pos_q, x_kv, pos_kv,
      p["wq"], p["wk"], p["wv"], p["wo"],
      p["bq"].reshape(1, D), p["bk"].reshape(1, D),
      p["bv"].reshape(1, D), p["bo"].reshape(1, D),
      ln_g.reshape(1, D), ln_b.reshape(1, D))


def _ffn_ln_kernel(x_ref, w1_ref, b1_ref, w2_ref, b2_ref, g_ref, beta_ref, o_ref):
    """LN(x + linear2(relu(linear1(x)))) — FFN hidden never leaves VMEM."""
    x = x_ref[...].astype(jnp.float32)
    h = jnp.dot(x.astype(BF16), w1_ref[...].astype(BF16),
                preferred_element_type=jnp.float32) + b1_ref[...]
    h = jnp.maximum(h, 0.0)
    y = jnp.dot(h.astype(BF16), w2_ref[...].astype(BF16),
                preferred_element_type=jnp.float32) + b2_ref[...]
    y = x + y
    mu = jnp.mean(y, axis=-1, keepdims=True)
    var = jnp.mean(jnp.square(y - mu), axis=-1, keepdims=True)
    y = (y - mu) * jax.lax.rsqrt(var + 1e-5)
    o_ref[...] = (y * g_ref[...] + beta_ref[...]).astype(o_ref.dtype)


def ffn_ln_block(x, w1, b1, w2, b2, ln_g, ln_b):
    B, S, D = x.shape
    F = w1.shape[-1]
    M = B * S
    TM = _pick_tile(M)
    out = pl.pallas_call(
        _ffn_ln_kernel,
        out_shape=jax.ShapeDtypeStruct((M, D), jnp.float32),
        grid=(pl.cdiv(M, TM),),
        in_specs=[
            pl.BlockSpec((TM, D), lambda i: (i, 0)),
            pl.BlockSpec((D, F), lambda i: (0, 0)),
            pl.BlockSpec((1, F), lambda i: (0, 0)),
            pl.BlockSpec((F, D), lambda i: (0, 0)),
            pl.BlockSpec((1, D), lambda i: (0, 0)),
            pl.BlockSpec((1, D), lambda i: (0, 0)),
            pl.BlockSpec((1, D), lambda i: (0, 0)),
        ],
        out_specs=pl.BlockSpec((TM, D), lambda i: (i, 0)),
        compiler_params=pltpu.CompilerParams(dimension_semantics=("parallel",)),
    )(x.reshape(M, D), w1, b1.reshape(1, F), w2, b2.reshape(1, D),
      ln_g.reshape(1, D), ln_b.reshape(1, D))
    return out.reshape(B, S, D)


def _heads_kernel(hs_ref, w1_ref, b1_ref, w2_ref, b2_ref,
                  wc_ref, w3_ref, bpad_ref, o_ref, *, nc):
    """class_embed + bbox MLP fused; logits and sigmoid(boxes) packed into one 128-lane slab."""
    x = hs_ref[...]
    h1 = jnp.maximum(jnp.dot(x.astype(BF16), w1_ref[...].astype(BF16),
                             preferred_element_type=jnp.float32) + b1_ref[...], 0.0)
    h2 = jnp.maximum(jnp.dot(h1.astype(BF16), w2_ref[...].astype(BF16),
                             preferred_element_type=jnp.float32) + b2_ref[...], 0.0)
    y = (jnp.dot(x.astype(BF16), wc_ref[...].astype(BF16), preferred_element_type=jnp.float32)
         + jnp.dot(h2.astype(BF16), w3_ref[...].astype(BF16), preferred_element_type=jnp.float32)
         + bpad_ref[...])
    col = jax.lax.broadcasted_iota(jnp.int32, y.shape, 1)
    is_box = jnp.logical_and(col >= nc, col < nc + 4)
    y = jnp.where(is_box, jax.nn.sigmoid(y), y)   # sigmoid only on the 4 bbox columns
    o_ref[...] = y.astype(o_ref.dtype)


def prediction_heads(hs, params, num_classes):
    B, Q, D = hs.shape
    M = B * Q
    padw = params["head_b_pad"].shape[-1]
    return pl.pallas_call(
        partial(_heads_kernel, nc=num_classes),
        out_shape=jax.ShapeDtypeStruct((M, padw), jnp.float32),
    )(hs.reshape(M, D),
      params["bbox_w1"], params["bbox_b1"].reshape(1, D),
      params["bbox_w2"], params["bbox_b2"].reshape(1, D),
      params["head_wc_pad"], params["head_w3_pad"], params["head_b_pad"])


# ----------------------------------------------------------------------------
# JAX glue
# ----------------------------------------------------------------------------
def im2col(x, kh, kw, stride, pad):
    """x: (B, H, W, C) NHWC -> (B, oh, ow, kh*kw*C) patches (kh, kw, C order)."""
    # TODO(synk): at real backbone resolutions this 9x activation expansion should be replaced by
    #             a fused conv kernel (or lax.conv); at these toy sizes it is negligible.
    x = jnp.pad(x, ((0, 0), (pad, pad), (pad, pad), (0, 0)))
    B, H, W, C = x.shape
    oh = (H - kh) // stride + 1
    ow = (W - kw) // stride + 1
    patches = []
    for i in range(kh):
        for j in range(kw):
            patches.append(
                x[:, i:i + (oh - 1) * stride + 1:stride,
                     j:j + (ow - 1) * stride + 1:stride, :])
    return jnp.concatenate(patches, axis=-1), oh, ow


def conv2d(x, w, b, k, stride, pad, activation="none"):
    cols, oh, ow = im2col(x, k, k, stride, pad)
    B = x.shape[0]
    y = linear(cols.reshape(B * oh * ow, -1), w, b, activation=activation)
    return y.reshape(B, oh, ow, -1)


def sine_pos_embed(h, w, d_model):
    """DETR PositionEmbeddingSine (normalize=True), returns (h, w, d_model). Constant-folded under jit."""
    num_pos_feats = d_model // 2
    scale = 2.0 * math.pi
    eps = 1e-6
    y_embed = jnp.arange(1, h + 1, dtype=jnp.float32)[:, None] * jnp.ones((1, w), jnp.float32)
    x_embed = jnp.arange(1, w + 1, dtype=jnp.float32)[None, :] * jnp.ones((h, 1), jnp.float32)
    y_embed = y_embed / (h + eps) * scale
    x_embed = x_embed / (w + eps) * scale
    dim_t = jnp.arange(num_pos_feats, dtype=jnp.float32)
    dim_t = 10000.0 ** (2.0 * jnp.floor(dim_t / 2.0) / num_pos_feats)
    pos_x = x_embed[:, :, None] / dim_t
    pos_y = y_embed[:, :, None] / dim_t
    pos_x = jnp.stack([jnp.sin(pos_x[:, :, 0::2]), jnp.cos(pos_x[:, :, 1::2])], axis=3).reshape(h, w, -1)
    pos_y = jnp.stack([jnp.sin(pos_y[:, :, 0::2]), jnp.cos(pos_y[:, :, 1::2])], axis=3).reshape(h, w, -1)
    return jnp.concatenate([pos_y, pos_x], axis=-1)


def encoder_layer(src, pos, lp, nheads):
    # DETR post-norm encoder layer (normalize_before=False), eval mode (no dropout)
    src = mha_ln_block(src, pos, src, pos, lp["attn"], lp["ln1_g"], lp["ln1_b"], nheads)
    src = ffn_ln_block(src, lp["lin1_w"], lp["lin1_b"], lp["lin2_w"], lp["lin2_b"],
                       lp["ln2_g"], lp["ln2_b"])
    return src


def decoder_layer(tgt, memory, pos, query_pos, lp, nheads):
    tgt = mha_ln_block(tgt, query_pos, tgt, query_pos,
                       lp["self_attn"], lp["ln1_g"], lp["ln1_b"], nheads)
    tgt = mha_ln_block(tgt, query_pos, memory, pos,
                       lp["cross_attn"], lp["ln2_g"], lp["ln2_b"], nheads)
    tgt = ffn_ln_block(tgt, lp["lin1_w"], lp["lin1_b"], lp["lin2_w"], lp["lin2_b"],
                       lp["ln3_g"], lp["ln3_b"])
    return tgt


# ----------------------------------------------------------------------------
# Parameter initialization (deterministic, synthetic)
# ----------------------------------------------------------------------------
def init_params(key, num_classes, num_queries, d_model=32, nheads=4, dim_ff=64,
                n_enc=2, n_dec=2, in_ch=3, c1=16, c2=64):
    keys = jax.random.split(key, 512)
    ctr = [0]

    def nk():
        k = keys[ctr[0]]
        ctr[0] += 1
        return k

    def dense(fi, fo):
        w = jax.random.normal(nk(), (fi, fo), jnp.float32) * 0.05
        b = jax.random.normal(nk(), (fo,), jnp.float32) * 0.05
        return w, b

    def attn_params():
        p = {}
        for nm in ("q", "k", "v", "o"):
            p["w" + nm], p["b" + nm] = dense(d_model, d_model)
        return p

    def ln_params():
        return jnp.ones((d_model,), jnp.float32), jnp.zeros((d_model,), jnp.float32)

    params = {}
    # stand-in backbone (ResNet-50 replacement) + input_proj
    params["conv1_w"], params["conv1_b"] = dense(3 * 3 * in_ch, c1)
    params["conv2_w"], params["conv2_b"] = dense(3 * 3 * c1, c2)
    params["proj_w"], params["proj_b"] = dense(c2, d_model)

    enc = []
    for _ in range(n_enc):
        lp = {"attn": attn_params()}
        lp["lin1_w"], lp["lin1_b"] = dense(d_model, dim_ff)
        lp["lin2_w"], lp["lin2_b"] = dense(dim_ff, d_model)
        lp["ln1_g"], lp["ln1_b"] = ln_params()
        lp["ln2_g"], lp["ln2_b"] = ln_params()
        enc.append(lp)
    params["enc_layers"] = enc

    dec = []
    for _ in range(n_dec):
        lp = {"self_attn": attn_params(), "cross_attn": attn_params()}
        lp["lin1_w"], lp["lin1_b"] = dense(d_model, dim_ff)
        lp["lin2_w"], lp["lin2_b"] = dense(dim_ff, d_model)
        lp["ln1_g"], lp["ln1_b"] = ln_params()
        lp["ln2_g"], lp["ln2_b"] = ln_params()
        lp["ln3_g"], lp["ln3_b"] = ln_params()
        dec.append(lp)
    params["dec_layers"] = dec
    params["dec_norm_g"], params["dec_norm_b"] = ln_params()

    params["query_embed"] = jax.random.normal(nk(), (num_queries, d_model), jnp.float32) * 0.05

    # bbox_embed MLP hidden layers
    params["bbox_w1"], params["bbox_b1"] = dense(d_model, d_model)
    params["bbox_w2"], params["bbox_b2"] = dense(d_model, d_model)
    # class_embed (Linear(in_features, num_classes)) and bbox_embed final layer, packed into a
    # single 128-lane-padded slab so the fused heads kernel stores lane-dense.
    class_w, class_b = dense(d_model, num_classes)
    bbox_w3, bbox_b3 = dense(d_model, 4)
    padw = ((num_classes + 4 + 127) // 128) * 128
    params["head_wc_pad"] = jnp.zeros((d_model, padw), jnp.float32).at[:, :num_classes].set(class_w)
    params["head_w3_pad"] = (jnp.zeros((d_model, padw), jnp.float32)
                             .at[:, num_classes:num_classes + 4].set(bbox_w3))
    params["head_b_pad"] = (jnp.zeros((1, padw), jnp.float32)
                            .at[0, :num_classes].set(class_b)
                            .at[0, num_classes:num_classes + 4].set(bbox_b3))
    return params


# ----------------------------------------------------------------------------
# Full DETR forward
# ----------------------------------------------------------------------------
def detr_forward(params, images, *, nheads, num_classes):
    # images: NCHW (PyTorch convention) -> NHWC internally
    x = jnp.transpose(images, (0, 2, 3, 1)).astype(jnp.float32)

    # backbone (stand-in for ResNet-50, frozen-BN folded into convs)
    x = conv2d(x, params["conv1_w"], params["conv1_b"], k=3, stride=2, pad=1, activation="relu")
    x = conv2d(x, params["conv2_w"], params["conv2_b"], k=3, stride=2, pad=1, activation="relu")

    # input_proj: 1x1 conv == per-pixel linear
    feat = linear(x, params["proj_w"], params["proj_b"])         # (B, h, w, d)
    B, h, w, d = feat.shape

    pos = sine_pos_embed(h, w, d).reshape(1, h * w, d)            # (1, HW, d)
    src = feat.reshape(B, h * w, d)                               # (B, HW, d)

    # transformer encoder
    memory = src
    for lp in params["enc_layers"]:
        memory = encoder_layer(memory, pos, lp, nheads)

    # transformer decoder
    query_pos = params["query_embed"][None]                       # (1, Q, d)
    Q = params["query_embed"].shape[0]
    hs = jnp.zeros((B, Q, d), jnp.float32)
    for lp in params["dec_layers"]:
        hs = decoder_layer(hs, memory, pos, query_pos, lp, nheads)
    hs = layer_norm(hs, params["dec_norm_g"], params["dec_norm_b"])

    # fused heads -> lane-dense slab, sliced afterwards
    slab = prediction_heads(hs, params, num_classes)              # (B*Q, 128)
    pred_logits = slab[:, :num_classes].reshape(B, Q, num_classes)
    pred_boxes = slab[:, num_classes:num_classes + 4].reshape(B, Q, 4)

    # TODO(synk): original DETR (aux_loss=True) also returns 'aux_outputs' per decoder layer.
    return {"pred_logits": pred_logits, "pred_boxes": pred_boxes}


if __name__ == "__main__":
    num_classes, num_queries = 6, 8
    key = jax.random.PRNGKey(0)
    pkey, xkey = jax.random.split(key)
    params = init_params(pkey, num_classes, num_queries)

    images = jax.random.normal(xkey, (2, 3, 32, 32), jnp.float32)   # NCHW, like PyTorch

    fwd = jax.jit(partial(detr_forward, nheads=4, num_classes=num_classes))
    out = fwd(params, images)
    out = jax.block_until_ready(out)

    assert out["pred_logits"].shape == (2, num_queries, num_classes)
    assert out["pred_boxes"].shape == (2, num_queries, 4)
    assert bool(jnp.all(jnp.isfinite(out["pred_logits"])))
    assert bool(jnp.all((out["pred_boxes"] >= 0.0) & (out["pred_boxes"] <= 1.0)))
    print("KERNEL_OK")
</pallas_src>

<mosaic_0001>
module attributes {stable_mosaic.version = 11 : i64} {
  func.func @_linear_kernel(%arg0: i32, %arg1: memref<256x27xf32, #tpu.memory_space<vmem>>, %arg2: memref<27x16xf32, #tpu.memory_space<vmem>>, %arg3: memref<1x16xf32, #tpu.memory_space<vmem>>, %arg4: memref<256x16xf32, #tpu.memory_space<vmem>>) attributes {dimension_semantics = [#tpu.dimension_semantics<parallel>], iteration_bounds = array<i64: 2>, scalar_prefetch = 0 : i64, scratch_operands = 0 : i64, tpu.core_type = #tpu.core_type<tc>, window_params = [{transform_indices = @transform_0, window_bounds = array<i64: 256, 27>}, {pipeline_mode = #tpu.pipeline_mode<synchronous>, transform_indices = @transform_1, window_bounds = array<i64: 27, 16>}, {pipeline_mode = #tpu.pipeline_mode<synchronous>, transform_indices = @transform_2, window_bounds = array<i64: 1, 16>}, {transform_indices = @transform_3, window_bounds = array<i64: 256, 16>}]} {
    %c0 = arith.constant 0 : index
    %c0_0 = arith.constant 0 : index
    %0 = vector.load %arg1[%c0, %c0_0] : memref<256x27xf32, #tpu.memory_space<vmem>>, vector<256x27xf32>
    %1 = arith.truncf %0 : vector<256x27xf32> to vector<256x27xbf16>
    %c0_1 = arith.constant 0 : index
    %c0_2 = arith.constant 0 : index
    %2 = vector.load %arg2[%c0_1, %c0_2] : memref<27x16xf32, #tpu.memory_space<vmem>>, vector<27x16xf32>
    %3 = arith.truncf %2 : vector<27x16xf32> to vector<27x16xbf16>
    %cst = arith.constant dense<0.000000e+00> : vector<256x16xf32>
    %4 = tpu.matmul %1, %3, %cst {dimension_numbers = #tpu.dot_dimension_numbers<[1], [0], [0], [1], [0, 0, 1, 1], [], []>} : vector<256x27xbf16>, vector<27x16xbf16>, vector<256x16xf32> -> vector<256x16xf32>
    %c0_3 = arith.constant 0 : index
    %c0_4 = arith.constant 0 : index
    %5 = vector.load %arg3[%c0_3, %c0_4] : memref<1x16xf32, #tpu.memory_space<vmem>>, vector<1x16xf32>
    %6 = vector.broadcast %5 : vector<1x16xf32> to vector<256x16xf32>
    %7 = arith.addf %4, %6 : vector<256x16xf32>
    %cst_5 = arith.constant 0.000000e+00 : f32
    %8 = vector.broadcast %cst_5 : f32 to vector<256x16xf32>
    %9 = arith.maximumf %7, %8 : vector<256x16xf32>
    %c0_6 = arith.constant 0 : index
    %c0_7 = arith.constant 0 : index
    %10 = vector.load %arg4[%c0_6, %c0_7] : memref<256x16xf32, #tpu.memory_space<vmem>>, vector<256x16xf32>
    tpu.vector_store %arg4[%c0_6, %c0_7], %9 {strides = array<i32>} : memref<256x16xf32, #tpu.memory_space<vmem>>, vector<256x16xf32>,
    return
  }
  func.func @transform_0(%arg0: i32) -> (i32, i32) {
    %c0_i32 = arith.constant 0 : i32
    %c0_i32_0 = arith.constant 0 : i32
    return %arg0, %c0_i32 : i32, i32
  }
  func.func @transform_1(%arg0: i32) -> (i32, i32) {
    %c0_i32 = arith.constant 0 : i32
    %c0_i32_0 = arith.constant 0 : i32
    %c0_i32_1 = arith.constant 0 : i32
    return %c0_i32, %c0_i32_0 : i32, i32
  }
  func.func @transform_2(%arg0: i32) -> (i32, i32) {
    %c0_i32 = arith.constant 0 : i32
    %c0_i32_0 = arith.constant 0 : i32
    %c0_i32_1 = arith.constant 0 : i32
    return %c0_i32, %c0_i32_0 : i32, i32
  }
  func.func @transform_3(%arg0: i32) -> (i32, i32) {
    %c0_i32 = arith.constant 0 : i32
    %c0_i32_0 = arith.constant 0 : i32
    return %arg0, %c0_i32 : i32, i32
  }
}

module attributes {stable_mosaic.version = 11 : i64} {
  func.func @_linear_kernel(%arg0: i32, %arg1: memref<128x144xf32, #tpu.memory_space<vmem>>, %arg2: memref<144x64xf32, #tpu.memory_space<vmem>>, %arg3: memref<1x64xf32, #tpu.memory_space<vmem>>, %arg4: memref<128x64xf32, #tpu.memory_space<vmem>>) attributes {dimension_semantics = [#tpu.dimension_semantics<parallel>], iteration_bounds = array<i64: 1>, scalar_prefetch = 0 : i64, scratch_operands = 0 : i64, tpu.core_type = #tpu.core_type<tc>, window_params = [{transform_indices = @transform_0, window_bounds = array<i64: 128, 144>}, {pipeline_mode = #tpu.pipeline_mode<synchronous>, transform_indices = @transform_1, window_bounds = array<i64: 144, 64>}, {pipeline_mode = #tpu.pipeline_mode<synchronous>, transform_indices = @transform_2, window_bounds = array<i64: 1, 64>}, {transform_indices = @transform_3, window_bounds = array<i64: 128, 64>}]} {
    %c0 = arith.constant 0 : index
    %c0_0 = arith.constant 0 : index
    %0 = vector.load %arg1[%c0, %c0_0] : memref<128x144xf32, #tpu.memory_space<vmem>>, vector<128x144xf32>
    %1 = arith.truncf %0 : vector<128x144xf32> to vector<128x144xbf16>
    %c0_1 = arith.constant 0 : index
    %c0_2 = arith.constant 0 : index
    %2 = vector.load %arg2[%c0_1, %c0_2] : memref<144x64xf32, #tpu.memory_space<vmem>>, vector<144x64xf32>
    %3 = arith.truncf %2 : vector<144x64xf32> to vector<144x64xbf16>
    %cst = arith.constant dense<0.000000e+00> : vector<128x64xf32>
    %4 = tpu.matmul %1, %3, %cst {dimension_numbers = #tpu.dot_dimension_numbers<[1], [0], [0], [1], [0, 0, 1, 1], [], []>} : vector<128x144xbf16>, vector<144x64xbf16>, vector<128x64xf32> -> vector<128x64xf32>
    %c0_3 = arith.constant 0 : index
    %c0_4 = arith.constant 0 : index
    %5 = vector.load %arg3[%c0_3, %c0_4] : memref<1x64xf32, #tpu.memory_space<vmem>>, vector<1x64xf32>
    %6 = vector.broadcast %5 : vector<1x64xf32> to vector<128x64xf32>
    %7 = arith.addf %4, %6 : vector<128x64xf32>
    %cst_5 = arith.constant 0.000000e+00 : f32
    %8 = vector.broadcast %cst_5 : f32 to vector<128x64xf32>
    %9 = arith.maximumf %7, %8 : vector<128x64xf32>
    %c0_6 = arith.constant 0 : index
    %c0_7 = arith.constant 0 : index
    %10 = vector.load %arg4[%c0_6, %c0_7] : memref<128x64xf32, #tpu.memory_space<vmem>>, vector<128x64xf32>
    tpu.vector_store %arg4[%c0_6, %c0_7], %9 {strides = array<i32>} : memref<128x64xf32, #tpu.memory_space<vmem>>, vector<128x64xf32>,
    return
  }
  func.func @transform_0(%arg0: i32) -> (i32, i32) {
    %c0_i32 = arith.constant 0 : i32
    %c0_i32_0 = arith.constant 0 : i32
    return %arg0, %c0_i32 : i32, i32
  }
  func.func @transform_1(%arg0: i32) -> (i32, i32) {
    %c0_i32 = arith.constant 0 : i32
    %c0_i32_0 = arith.constant 0 : i32
    %c0_i32_1 = arith.constant 0 : i32
    return %c0_i32, %c0_i32_0 : i32, i32
  }
  func.func @transform_2(%arg0: i32) -> (i32, i32) {
    %c0_i32 = arith.constant 0 : i32
    %c0_i32_0 = arith.constant 0 : i32
    %c0_i32_1 = arith.constant 0 : i32
    return %c0_i32, %c0_i32_0 : i32, i32
  }
  func.func @transform_3(%arg0: i32) -> (i32, i32) {
    %c0_i32 = arith.constant 0 : i32
    %c0_i32_0 = arith.constant 0 : i32
    return %arg0, %c0_i32 : i32, i32
  }
}

module attributes {stable_mosaic.version = 11 : i64} {
  func.func @_linear_kernel(%arg0: i32, %arg1: memref<128x64xf32, #tpu.memory_space<vmem>>, %arg2: memref<64x32xf32, #tpu.memory_space<vmem>>, %arg3: memref<1x32xf32, #tpu.memory_space<vmem>>, %arg4: memref<128x32xf32, #tpu.memory_space<vmem>>) attributes {dimension_semantics = [#tpu.dimension_semantics<parallel>], iteration_bounds = array<i64: 1>, scalar_prefetch = 0 : i64, scratch_operands = 0 : i64, tpu.core_type = #tpu.core_type<tc>, window_params = [{transform_indices = @transform_0, window_bounds = array<i64: 128, 64>}, {pipeline_mode = #tpu.pipeline_mode<synchronous>, transform_indices = @transform_1, window_bounds = array<i64: 64, 32>}, {pipeline_mode = #tpu.pipeline_mode<synchronous>, transform_indices = @transform_2, window_bounds = array<i64: 1, 32>}, {transform_indices = @transform_3, window_bounds = array<i64: 128, 32>}]} {
    %c0 = arith.constant 0 : index
    %c0_0 = arith.constant 0 : index
    %0 = vector.load %arg1[%c0, %c0_0] : memref<128x64xf32, #tpu.memory_space<vmem>>, vector<128x64xf32>
    %1 = arith.truncf %0 : vector<128x64xf32> to vector<128x64xbf16>
    %c0_1 = arith.constant 0 : index
    %c0_2 = arith.constant 0 : index
    %2 = vector.load %arg2[%c0_1, %c0_2] : memref<64x32xf32, #tpu.memory_space<vmem>>, vector<64x32xf32>
    %3 = arith.truncf %2 : vector<64x32xf32> to vector<64x32xbf16>
    %cst = arith.constant dense<0.000000e+00> : vector<128x32xf32>
    %4 = tpu.matmul %1, %3, %cst {dimension_numbers = #tpu.dot_dimension_numbers<[1], [0], [0], [1], [0, 0, 1, 1], [], []>} : vector<128x64xbf16>, vector<64x32xbf16>, vector<128x32xf32> -> vector<128x32xf32>
    %c0_3 = arith.constant 0 : index
    %c0_4 = arith.constant 0 : index
    %5 = vector.load %arg3[%c0_3, %c0_4] : memref<1x32xf32, #tpu.memory_space<vmem>>, vector<1x32xf32>
    %6 = vector.broadcast %5 : vector<1x32xf32> to vector<128x32xf32>
    %7 = arith.addf %4, %6 : vector<128x32xf32>
    %c0_5 = arith.constant 0 : index
    %c0_6 = arith.constant 0 : index
    %8 = vector.load %arg4[%c0_5, %c0_6] : memref<128x32xf32, #tpu.memory_space<vmem>>, vector<128x32xf32>
    tpu.vector_store %arg4[%c0_5, %c0_6], %7 {strides = array<i32>} : memref<128x32xf32, #tpu.memory_space<vmem>>, vector<128x32xf32>,
    return
  }
  func.func @transform_0(%arg0: i32) -> (i32, i32) {
    %c0_i32 = arith.constant 0 : i32
    %c0_i32_0 = arith.constant 0 : i32
    return %arg0, %c0_i32 : i32, i32
  }
  func.func @transform_1(%arg0: i32) -> (i32, i32) {
    %c0_i32 = arith.constant 0 : i32
    %c0_i32_0 = arith.constant 0 : i32
    %c0_i32_1 = arith.constant 0 : i32
    return %c0_i32, %c0_i32_0 : i32, i32
  }
  func.func @transform_2(%arg0: i32) -> (i32, i32) {
    %c0_i32 = arith.constant 0 : i32
    %c0_i32_0 = arith.constant 0 : i32
    %c0_i32_1 = arith.constant 0 : i32
    return %c0_i32, %c0_i32_0 : i32, i32
  }
  func.func @transform_3(%arg0: i32) -> (i32, i32) {
    %c0_i32 = arith.constant 0 : i32
    %c0_i32_0 = arith.constant 0 : i32
    return %arg0, %c0_i32 : i32, i32
  }
}

module attributes {stable_mosaic.version = 11 : i64} {
  func.func @_ffn_ln_kernel(%arg0: i32, %arg1: memref<128x32xf32, #tpu.memory_space<vmem>>, %arg2: memref<32x64xf32, #tpu.memory_space<vmem>>, %arg3: memref<1x64xf32, #tpu.memory_space<vmem>>, %arg4: memref<64x32xf32, #tpu.memory_space<vmem>>, %arg5: memref<1x32xf32, #tpu.memory_space<vmem>>, %arg6: memref<1x32xf32, #tpu.memory_space<vmem>>, %arg7: memref<1x32xf32, #tpu.memory_space<vmem>>, %arg8: memref<128x32xf32, #tpu.memory_space<vmem>>) attributes {dimension_semantics = [#tpu.dimension_semantics<parallel>], iteration_bounds = array<i64: 1>, scalar_prefetch = 0 : i64, scratch_operands = 0 : i64, tpu.core_type = #tpu.core_type<tc>, window_params = [{transform_indices = @transform_0, window_bounds = array<i64: 128, 32>}, {pipeline_mode = #tpu.pipeline_mode<synchronous>, transform_indices = @transform_1, window_bounds = array<i64: 32, 64>}, {pipeline_mode = #tpu.pipeline_mode<synchronous>, transform_indices = @transform_2, window_bounds = array<i64: 1, 64>}, {pipeline_mode = #tpu.pipeline_mode<synchronous>, transform_indices = @transform_3, window_bounds = array<i64: 64, 32>}, {pipeline_mode = #tpu.pipeline_mode<synchronous>, transform_indices = @transform_4, window_bounds = array<i64: 1, 32>}, {pipeline_mode = #tpu.pipeline_mode<synchronous>, transform_indices = @transform_5, window_bounds = array<i64: 1, 32>}, {pipeline_mode = #tpu.pipeline_mode<synchronous>, transform_indices = @transform_6, window_bounds = array<i64: 1, 32>}, {transform_indices = @transform_7, window_bounds = array<i64: 128, 32>}]} {
    %c0 = arith.constant 0 : index
    %c0_0 = arith.constant 0 : index
    %0 = vector.load %arg1[%c0, %c0_0] : memref<128x32xf32, #tpu.memory_space<vmem>>, vector<128x32xf32>
    %1 = arith.truncf %0 : vector<128x32xf32> to vector<128x32xbf16>
    %c0_1 = arith.constant 0 : index
    %c0_2 = arith.constant 0 : index
    %2 = vector.load %arg2[%c0_1, %c0_2] : memref<32x64xf32, #tpu.memory_space<vmem>>, vector<32x64xf32>
    %3 = arith.truncf %2 : vector<32x64xf32> to vector<32x64xbf16>
    %cst = arith.constant dense<0.000000e+00> : vector<128x64xf32>
    %4 = tpu.matmul %1, %3, %cst {dimension_numbers = #tpu.dot_dimension_numbers<[1], [0], [0], [1], [0, 0, 1, 1], [], []>} : vector<128x32xbf16>, vector<32x64xbf16>, vector<128x64xf32> -> vector<128x64xf32>
    %c0_3 = arith.constant 0 : index
    %c0_4 = arith.constant 0 : index
    %5 = vector.load %arg3[%c0_3, %c0_4] : memref<1x64xf32, #tpu.memory_space<vmem>>, vector<1x64xf32>
    %6 = vector.broadcast %5 : vector<1x64xf32> to vector<128x64xf32>
    %7 = arith.addf %4, %6 : vector<128x64xf32>
    %cst_5 = arith.constant 0.000000e+00 : f32
    %8 = vector.broadcast %cst_5 : f32 to vector<128x64xf32>
    %9 = arith.maximumf %7, %8 : vector<128x64xf32>
    %10 = arith.truncf %9 : vector<128x64xf32> to vector<128x64xbf16>
    %c0_6 = arith.constant 0 : index
    %c0_7 = arith.constant 0 : index
    %11 = vector.load %arg4[%c0_6, %c0_7] : memref<64x32xf32, #tpu.memory_space<vmem>>, vector<64x32xf32>
    %12 = arith.truncf %11 : vector<64x32xf32> to vector<64x32xbf16>
    %cst_8 = arith.constant dense<0.000000e+00> : vector<128x32xf32>
    %13 = tpu.matmul %10, %12, %cst_8 {dimension_numbers = #tpu.dot_dimension_numbers<[1], [0], [0], [1], [0, 0, 1, 1], [], []>} : vector<128x64xbf16>, vector<64x32xbf16>, vector<128x32xf32> -> vector<128x32xf32>
    %c0_9 = arith.constant 0 : index
    %c0_10 = arith.constant 0 : index
    %14 = vector.load %arg5[%c0_9, %c0_10] : memref<1x32xf32, #tpu.memory_space<vmem>>, vector<1x32xf32>
    %15 = vector.broadcast %14 : vector<1x32xf32> to vector<128x32xf32>
    %16 = arith.addf %13, %15 : vector<128x32xf32>
    %17 = arith.addf %0, %16 : vector<128x32xf32>
    %cst_11 = arith.constant dense<0.000000e+00> : vector<128xf32>
    %18 = vector.multi_reduction <add>, %17, %cst_11 [1] : vector<128x32xf32> to vector<128xf32>
    %19 = vector.shape_cast %18 : vector<128xf32> to vector<128x1xf32>
    %cst_12 = arith.constant 3.200000e+01 : f32
    %20 = vector.broadcast %cst_12 : f32 to vector<128x1xf32>
    %21 = arith.divf %19, %20 : vector<128x1xf32>
    %22 = vector.broadcast %21 : vector<128x1xf32> to vector<128x32xf32>
    %23 = arith.subf %17, %22 : vector<128x32xf32>
    %24 = arith.mulf %23, %23 : vector<128x32xf32>
    %cst_13 = arith.constant dense<0.000000e+00> : vector<128xf32>
    %25 = vector.multi_reduction <add>, %24, %cst_13 [1] : vector<128x32xf32> to vector<128xf32>
    %26 = vector.shape_cast %25 : vector<128xf32> to vector<128x1xf32>
    %cst_14 = arith.constant 3.200000e+01 : f32
    %27 = vector.broadcast %cst_14 : f32 to vector<128x1xf32>
    %28 = arith.divf %26, %27 : vector<128x1xf32>
    %29 = vector.broadcast %21 : vector<128x1xf32> to vector<128x32xf32>
    %30 = arith.subf %17, %29 : vector<128x32xf32>
    %cst_15 = arith.constant 9.99999974E-6 : f32
    %31 = vector.broadcast %cst_15 : f32 to vector<128x1xf32>
    %32 = arith.addf %28, %31 : vector<128x1xf32>
    %33 = math.rsqrt %32 : vector<128x1xf32>
    %34 = vector.broadcast %33 : vector<128x1xf32> to vector<128x32xf32>
    %35 = arith.mulf %30, %34 : vector<128x32xf32>
    %c0_16 = arith.constant 0 : index
    %c0_17 = arith.constant 0 : index
    %36 = vector.load %arg6[%c0_16, %c0_17] : memref<1x32xf32, #tpu.memory_space<vmem>>, vector<1x32xf32>
    %37 = vector.broadcast %36 : vector<1x32xf32> to vector<128x32xf32>
    %38 = arith.mulf %35, %37 : vector<128x32xf32>
    %c0_18 = arith.constant 0 : index
    %c0_19 = arith.constant 0 : index
    %39 = vector.load %arg7[%c0_18, %c0_19] : memref<1x32xf32, #tpu.memory_space<vmem>>, vector<1x32xf32>
    %40 = vector.broadcast %39 : vector<1x32xf32> to vector<128x32xf32>
    %41 = arith.addf %38, %40 : vector<128x32xf32>
    %c0_20 = arith.constant 0 : index
    %c0_21 = arith.constant 0 : index
    %42 = vector.load %arg8[%c0_20, %c0_21] : memref<128x32xf32, #tpu.memory_space<vmem>>, vector<128x32xf32>
    tpu.vector_store %arg8[%c0_20, %c0_21], %41 {strides = array<i32>} : memref<128x32xf32, #tpu.memory_space<vmem>>, vector<128x32xf32>,
    return
  }
  func.func @transform_0(%arg0: i32) -> (i32, i32) {
    %c0_i32 = arith.constant 0 : i32
    %c0_i32_0 = arith.constant 0 : i32
    return %arg0, %c0_i32 : i32, i32
  }
  func.func @transform_1(%arg0: i32) -> (i32, i32) {
    %c0_i32 = arith.constant 0 : i32
    %c0_i32_0 = arith.constant 0 : i32
    %c0_i32_1 = arith.constant 0 : i32
    return %c0_i32, %c0_i32_0 : i32, i32
  }
  func.func @transform_2(%arg0: i32) -> (i32, i32) {
    %c0_i32 = arith.constant 0 : i32
    %c0_i32_0 = arith.constant 0 : i32
    %c0_i32_1 = arith.constant 0 : i32
    return %c0_i32, %c0_i32_0 : i32, i32
  }
  func.func @transform_3(%arg0: i32) -> (i32, i32) {
    %c0_i32 = arith.constant 0 : i32
    %c0_i32_0 = arith.constant 0 : i32
    %c0_i32_1 = arith.constant 0 : i32
    return %c0_i32, %c0_i32_0 : i32, i32
  }
  func.func @transform_4(%arg0: i32) -> (i32, i32) {
    %c0_i32 = arith.constant 0 : i32
    %c0_i32_0 = arith.constant 0 : i32
    %c0_i32_1 = arith.constant 0 : i32
    return %c0_i32, %c0_i32_0 : i32, i32
  }
  func.func @transform_5(%arg0: i32) -> (i32, i32) {
    %c0_i32 = arith.constant 0 : i32
    %c0_i32_0 = arith.constant 0 : i32
    %c0_i32_1 = arith.constant 0 : i32
    return %c0_i32, %c0_i32_0 : i32, i32
  }
  func.func @transform_6(%arg0: i32) -> (i32, i32) {
    %c0_i32 = arith.constant 0 : i32
    %c0_i32_0 = arith.constant 0 : i32
    %c0_i32_1 = arith.constant 0 : i32
    return %c0_i32, %c0_i32_0 : i32, i32
  }
  func.func @transform_7(%arg0: i32) -> (i32, i32) {
    %c0_i32 = arith.constant 0 : i32
    %c0_i32_0 = arith.constant 0 : i32
    return %arg0, %c0_i32 : i32, i32
  }
}

module attributes {stable_mosaic.version = 11 : i64} {
  func.func @_mha_ln_kernel(%arg0: i32, %arg1: memref<1x64x32xf32, #tpu.memory_space<vmem>>, %arg2: memref<1x64x32xf32, #tpu.memory_space<vmem>>, %arg3: memref<1x64x32xf32, #tpu.memory_space<vmem>>, %arg4: memref<1x64x32xf32, #tpu.memory_space<vmem>>, %arg5: memref<32x32xf32, #tpu.memory_space<vmem>>, %arg6: memref<32x32xf32, #tpu.memory_space<vmem>>, %arg7: memref<32x32xf32, #tpu.memory_space<vmem>>, %arg8: memref<32x32xf32, #tpu.memory_space<vmem>>, %arg9: memref<1x32xf32, #tpu.memory_space<vmem>>, %arg10: memref<1x32xf32, #tpu.memory_space<vmem>>, %arg11: memref<1x32xf32, #tpu.memory_space<vmem>>, %arg12: memref<1x32xf32, #tpu.memory_space<vmem>>, %arg13: memref<1x32xf32, #tpu.memory_space<vmem>>, %arg14: memref<1x32xf32, #tpu.memory_space<vmem>>, %arg15: memref<1x64x32xf32, #tpu.memory_space<vmem>>) attributes {dimension_semantics = [#tpu.dimension_semantics<parallel>], iteration_bounds = array<i64: 2>, scalar_prefetch = 0 : i64, scratch_operands = 0 : i64, tpu.core_type = #tpu.core_type<tc>, window_params = [{transform_indices = @transform_0, window_bounds = array<i64: 1, 64, 32>}, {pipeline_mode = #tpu.pipeline_mode<synchronous>, transform_indices = @transform_1, window_bounds = array<i64: 1, 64, 32>}, {transform_indices = @transform_2, window_bounds = array<i64: 1, 64, 32>}, {pipeline_mode = #tpu.pipeline_mode<synchronous>, transform_indices = @transform_3, window_bounds = array<i64: 1, 64, 32>}, {pipeline_mode = #tpu.pipeline_mode<synchronous>, transform_indices = @transform_4, window_bounds = array<i64: 32, 32>}, {pipeline_mode = #tpu.pipeline_mode<synchronous>, transform_indices = @transform_5, window_bounds = array<i64: 32, 32>}, {pipeline_mode = #tpu.pipeline_mode<synchronous>, transform_indices = @transform_6, window_bounds = array<i64: 32, 32>}, {pipeline_mode = #tpu.pipeline_mode<synchronous>, transform_indices = @transform_7, window_bounds = array<i64: 32, 32>}, {pipeline_mode = #tpu.pipeline_mode<synchronous>, transform_indices = @transform_8, window_bounds = array<i64: 1, 32>}, {pipeline_mode = #tpu.pipeline_mode<synchronous>, transform_indices = @transform_9, window_bounds = array<i64: 1, 32>}, {pipeline_mode = #tpu.pipeline_mode<synchronous>, transform_indices = @transform_10, window_bounds = array<i64: 1, 32>}, {pipeline_mode = #tpu.pipeline_mode<synchronous>, transform_indices = @transform_11, window_bounds = array<i64: 1, 32>}, {pipeline_mode = #tpu.pipeline_mode<synchronous>, transform_indices = @transform_12, window_bounds = array<i64: 1, 32>}, {pipeline_mode = #tpu.pipeline_mode<synchronous>, transform_indices = @transform_13, window_bounds = array<i64: 1, 32>}, {transform_indices = @transform_14, window_bounds = array<i64: 1, 64, 32>}]} {
    %c0 = arith.constant 0 : index
    %c0_0 = arith.constant 0 : index
    %c0_1 = arith.constant 0 : index
    %0 = vector.load %arg1[%c0, %c0_0, %c0_1] : memref<1x64x32xf32, #tpu.memory_space<vmem>>, vector<1x64x32xf32>
    %1 = vector.shape_cast %0 : vector<1x64x32xf32> to vector<64x32xf32>
    %c0_2 = arith.constant 0 : index
    %c0_3 = arith.constant 0 : index
    %c0_4 = arith.constant 0 : index
    %2 = vector.load %arg3[%c0_2, %c0_3, %c0_4] : memref<1x64x32xf32, #tpu.memory_space<vmem>>, vector<1x64x32xf32>
    %3 = vector.shape_cast %2 : vector<1x64x32xf32> to vector<64x32xf32>
    %c0_5 = arith.constant 0 : index
    %c0_6 = arith.constant 0 : index
    %c0_7 = arith.constant 0 : index
    %4 = vector.load %arg2[%c0_5, %c0_6, %c0_7] : memref<1x64x32xf32, #tpu.memory_space<vmem>>, vector<1x64x32xf32>
    %5 = vector.shape_cast %4 : vector<1x64x32xf32> to vector<64x32xf32>
    %6 = arith.addf %1, %5 : vector<64x32xf32>
    %7 = arith.truncf %6 : vector<64x32xf32> to vector<64x32xbf16>
    %c0_8 = arith.constant 0 : index
    %c0_9 = arith.constant 0 : index
    %c0_10 = arith.constant 0 : index
    %8 = vector.load %arg4[%c0_8, %c0_9, %c0_10] : memref<1x64x32xf32, #tpu.memory_space<vmem>>, vector<1x64x32xf32>
    %9 = vector.shape_cast %8 : vector<1x64x32xf32> to vector<64x32xf32>
    %10 = arith.addf %3, %9 : vector<64x32xf32>
    %11 = arith.truncf %10 : vector<64x32xf32> to vector<64x32xbf16>
    %12 = arith.truncf %3 : vector<64x32xf32> to vector<64x32xbf16>
    %c0_11 = arith.constant 0 : index
    %c0_12 = arith.constant 0 : index
    %13 = vector.load %arg5[%c0_11, %c0_12] : memref<32x32xf32, #tpu.memory_space<vmem>>, vector<32x32xf32>
    %14 = arith.truncf %13 : vector<32x32xf32> to vector<32x32xbf16>
    %cst = arith.constant dense<0.000000e+00> : vector<64x32xf32>
    %15 = tpu.matmul %7, %14, %cst {dimension_numbers = #tpu.dot_dimension_numbers<[1], [0], [0], [1], [0, 0, 1, 1], [], []>} : vector<64x32xbf16>, vector<32x32xbf16>, vector<64x32xf32> -> vector<64x32xf32>
    %c0_13 = arith.constant 0 : index
    %c0_14 = arith.constant 0 : index
    %16 = vector.load %arg9[%c0_13, %c0_14] : memref<1x32xf32, #tpu.memory_space<vmem>>, vector<1x32xf32>
    %17 = vector.broadcast %16 : vector<1x32xf32> to vector<64x32xf32>
    %18 = arith.addf %15, %17 : vector<64x32xf32>
    %c0_15 = arith.constant 0 : index
    %c0_16 = arith.constant 0 : index
    %19 = vector.load %arg6[%c0_15, %c0_16] : memref<32x32xf32, #tpu.memory_space<vmem>>, vector<32x32xf32>
    %20 = arith.truncf %19 : vector<32x32xf32> to vector<32x32xbf16>
    %cst_17 = arith.constant dense<0.000000e+00> : vector<64x32xf32>
    %21 = tpu.matmul %11, %20, %cst_17 {dimension_numbers = #tpu.dot_dimension_numbers<[1], [0], [0], [1], [0, 0, 1, 1], [], []>} : vector<64x32xbf16>, vector<32x32xbf16>, vector<64x32xf32> -> vector<64x32xf32>
    %c0_18 = arith.constant 0 : index
    %c0_19 = arith.constant 0 : index
    %22 = vector.load %arg10[%c0_18, %c0_19] : memref<1x32xf32, #tpu.memory_space<vmem>>, vector<1x32xf32>
    %23 = vector.broadcast %22 : vector<1x32xf32> to vector<64x32xf32>
    %24 = arith.addf %21, %23 : vector<64x32xf32>
    %c0_20 = arith.constant 0 : index
    %c0_21 = arith.constant 0 : index
    %25 = vector.load %arg7[%c0_20, %c0_21] : memref<32x32xf32, #tpu.memory_space<vmem>>, vector<32x32xf32>
    %26 = arith.truncf %25 : vector<32x32xf32> to vector<32x32xbf16>
    %cst_22 = arith.constant dense<0.000000e+00> : vector<64x32xf32>
    %27 = tpu.matmul %12, %26, %cst_22 {dimension_numbers = #tpu.dot_dimension_numbers<[1], [0], [0], [1], [0, 0, 1, 1], [], []>} : vector<64x32xbf16>, vector<32x32xbf16>, vector<64x32xf32> -> vector<64x32xf32>
    %c0_23 = arith.constant 0 : index
    %c0_24 = arith.constant 0 : index
    %28 = vector.load %arg11[%c0_23, %c0_24] : memref<1x32xf32, #tpu.memory_space<vmem>>, vector<1x32xf32>
    %29 = vector.broadcast %28 : vector<1x32xf32> to vector<64x32xf32>
    %30 = arith.addf %27, %29 : vector<64x32xf32>
    %31 = vector.extract_strided_slice %18 {offsets = [0, 0], sizes = [64, 8], strides = [1, 1]} : vector<64x32xf32> to vector<64x8xf32>
    %32 = arith.truncf %31 : vector<64x8xf32> to vector<64x8xbf16>
    %33 = vector.extract_strided_slice %24 {offsets = [0, 0], sizes = [64, 8], strides = [1, 1]} : vector<64x32xf32> to vector<64x8xf32>
    %34 = arith.truncf %33 : vector<64x8xf32> to vector<64x8xbf16>
    %35 = vector.extract_strided_slice %30 {offsets = [0, 0], sizes = [64, 8], strides = [1, 1]} : vector<64x32xf32> to vector<64x8xf32>
    %36 = arith.truncf %35 : vector<64x8xf32> to vector<64x8xbf16>
    %cst_25 = arith.constant dense<0.000000e+00> : vector<64x64xf32>
    %37 = tpu.matmul %32, %34, %cst_25 {dimension_numbers = #tpu.dot_dimension_numbers<[1], [1], [0], [0], [0, 0, 1, 0], [], []>} : vector<64x8xbf16>, vector<64x8xbf16>, vector<64x64xf32> -> vector<64x64xf32>
    %cst_26 = arith.constant 0.353553385 : f32
    %38 = vector.broadcast %cst_26 : f32 to vector<64x64xf32>
    %39 = arith.mulf %37, %38 : vector<64x64xf32>
    %cst_27 = arith.constant dense<0xFF800000> : vector<64xf32>
    %40 = vector.multi_reduction <maximumf>, %39, %cst_27 [1] : vector<64x64xf32> to vector<64xf32>
    %41 = vector.shape_cast %40 : vector<64xf32> to vector<64x1xf32>
    %42 = vector.broadcast %41 : vector<64x1xf32> to vector<64x64xf32>
    %43 = arith.subf %39, %42 : vector<64x64xf32>
    %44 = math.exp %43 : vector<64x64xf32>
    %cst_28 = arith.constant dense<0.000000e+00> : vector<64xf32>
    %45 = vector.multi_reduction <add>, %44, %cst_28 [1] : vector<64x64xf32> to vector<64xf32>
    %46 = vector.shape_cast %45 : vector<64xf32> to vector<64x1xf32>
    %47 = tpu.reciprocal %46 {approx = true} : vector<64x1xf32> -> vector<64x1xf32>
    %48 = vector.broadcast %47 : vector<64x1xf32> to vector<64x64xf32>
    %49 = arith.mulf %44, %48 : vector<64x64xf32>
    %50 = arith.truncf %49 : vector<64x64xf32> to vector<64x64xbf16>
    %cst_29 = arith.constant dense<0.000000e+00> : vector<64x8xf32>
    %51 = tpu.matmul %50, %36, %cst_29 {dimension_numbers = #tpu.dot_dimension_numbers<[1], [0], [0], [1], [0, 0, 1, 1], [], []>} : vector<64x64xbf16>, vector<64x8xbf16>, vector<64x8xf32> -> vector<64x8xf32>
    %52 = vector.extract_strided_slice %18 {offsets = [0, 8], sizes = [64, 8], strides = [1, 1]} : vector<64x32xf32> to vector<64x8xf32>
    %53 = arith.truncf %52 : vector<64x8xf32> to vector<64x8xbf16>
    %54 = vector.extract_strided_slice %24 {offsets = [0, 8], sizes = [64, 8], strides = [1, 1]} : vector<64x32xf32> to vector<64x8xf32>
    %55 = arith.truncf %54 : vector<64x8xf32> to vector<64x8xbf16>
    %56 = vector.extract_strided_slice %30 {offsets = [0, 8], sizes = [64, 8], strides = [1, 1]} : vector<64x32xf32> to vector<64x8xf32>
    %57 = arith.truncf %56 : vector<64x8xf32> to vector<64x8xbf16>
    %cst_30 = arith.constant dense<0.000000e+00> : vector<64x64xf32>
    %58 = tpu.matmul %53, %55, %cst_30 {dimension_numbers = #tpu.dot_dimension_numbers<[1], [1], [0], [0], [0, 0, 1, 0], [], []>} : vector<64x8xbf16>, vector<64x8xbf16>, vector<64x64xf32> -> vector<64x64xf32>
    %cst_31 = arith.constant 0.353553385 : f32
    %59 = vector.broadcast %cst_31 : f32 to vector<64x64xf32>
    %60 = arith.mulf %58, %59 : vector<64x64xf32>
    %cst_32 = arith.constant dense<0xFF800000> : vector<64xf32>
    %61 = vector.multi_reduction <maximumf>, %60, %cst_32 [1] : vector<64x64xf32> to vector<64xf32>
    %62 = vector.shape_cast %61 : vector<64xf32> to vector<64x1xf32>
    %63 = vector.broadcast %62 : vector<64x1xf32> to vector<64x64xf32>
    %64 = arith.subf %60, %63 : vector<64x64xf32>
    %65 = math.exp %64 : vector<64x64xf32>
    %cst_33 = arith.constant dense<0.000000e+00> : vector<64xf32>
    %66 = vector.multi_reduction <add>, %65, %cst_33 [1] : vector<64x64xf32> to vector<64xf32>
    %67 = vector.shape_cast %66 : vector<64xf32> to vector<64x1xf32>
    %68 = tpu.reciprocal %67 {approx = true} : vector<64x1xf32> -> vector<64x1xf32>
    %69 = vector.broadcast %68 : vector<64x1xf32> to vector<64x64xf32>
    %70 = arith.mulf %65, %69 : vector<64x64xf32>
    %71 = arith.truncf %70 : vector<64x64xf32> to vector<64x64xbf16>
    %cst_34 = arith.constant dense<0.000000e+00> : vector<64x8xf32>
    %72 = tpu.matmul %71, %57, %cst_34 {dimension_numbers = #tpu.dot_dimension_numbers<[1], [0], [0], [1], [0, 0, 1, 1], [], []>} : vector<64x64xbf16>, vector<64x8xbf16>, vector<64x8xf32> -> vector<64x8xf32>
    %73 = vector.extract_strided_slice %18 {offsets = [0, 16], sizes = [64, 8], strides = [1, 1]} : vector<64x32xf32> to vector<64x8xf32>
    %74 = arith.truncf %73 : vector<64x8xf32> to vector<64x8xbf16>
    %75 = vector.extract_strided_slice %24 {offsets = [0, 16], sizes = [64, 8], strides = [1, 1]} : vector<64x32xf32> to vector<64x8xf32>
    %76 = arith.truncf %75 : vector<64x8xf32> to vector<64x8xbf16>
    %77 = vector.extract_strided_slice %30 {offsets = [0, 16], sizes = [64, 8], strides = [1, 1]} : vector<64x32xf32> to vector<64x8xf32>
    %78 = arith.truncf %77 : vector<64x8xf32> to vector<64x8xbf16>
    %cst_35 = arith.constant dense<0.000000e+00> : vector<64x64xf32>
    %79 = tpu.matmul %74, %76, %cst_35 {dimension_numbers = #tpu.dot_dimension_numbers<[1], [1], [0], [0], [0, 0, 1, 0], [], []>} : vector<64x8xbf16>, vector<64x8xbf16>, vector<64x64xf32> -> vector<64x64xf32>
    %cst_36 = arith.constant 0.353553385 : f32
    %80 = vector.broadcast %cst_36 : f32 to vector<64x64xf32>
    %81 = arith.mulf %79, %80 : vector<64x64xf32>
    %cst_37 = arith.constant dense<0xFF800000> : vector<64xf32>
    %82 = vector.multi_reduction <maximumf>, %81, %cst_37 [1] : vector<64x64xf32> to vector<64xf32>
    %83 = vector.shape_cast %82 : vector<64xf32> to vector<64x1xf32>
    %84 = vector.broadcast %83 : vector<64x1xf32> to vector<64x64xf32>
    %85 = arith.subf %81, %84 : vector<64x64xf32>
    %86 = math.exp %85 : vector<64x64xf32>
    %cst_38 = arith.constant dense<0.000000e+00> : vector<64xf32>
    %87 = vector.multi_reduction <add>, %86, %cst_38 [1] : vector<64x64xf32> to vector<64xf32>
    %88 = vector.shape_cast %87 : vector<64xf32> to vector<64x1xf32>
    %89 = tpu.reciprocal %88 {approx = true} : vector<64x1xf32> -> vector<64x1xf32>
    %90 = vector.broadcast %89 : vector<64x1xf32> to vector<64x64xf32>
    %91 = arith.mulf %86, %90 : vector<64x64xf32>
    %92 = arith.truncf %91 : vector<64x64xf32> to vector<64x64xbf16>
    %cst_39 = arith.constant dense<0.000000e+00> : vector<64x8xf32>
    %93 = tpu.matmul %92, %78, %cst_39 {dimension_numbers = #tpu.dot_dimension_numbers<[1], [0], [0], [1], [0, 0, 1, 1], [], []>} : vector<64x64xbf16>, vector<64x8xbf16>, vector<64x8xf32> -> vector<64x8xf32>
    %94 = vector.extract_strided_slice %18 {offsets = [0, 24], sizes = [64, 8], strides = [1, 1]} : vector<64x32xf32> to vector<64x8xf32>
    %95 = arith.truncf %94 : vector<64x8xf32> to vector<64x8xbf16>
    %96 = vector.extract_strided_slice %24 {offsets = [0, 24], sizes = [64, 8], strides = [1, 1]} : vector<64x32xf32> to vector<64x8xf32>
    %97 = arith.truncf %96 : vector<64x8xf32> to vector<64x8xbf16>
    %98 = vector.extract_strided_slice %30 {offsets = [0, 24], sizes = [64, 8], strides = [1, 1]} : vector<64x32xf32> to vector<64x8xf32>
    %99 = arith.truncf %98 : vector<64x8xf32> to vector<64x8xbf16>
    %cst_40 = arith.constant dense<0.000000e+00> : vector<64x64xf32>
    %100 = tpu.matmul %95, %97, %cst_40 {dimension_numbers = #tpu.dot_dimension_numbers<[1], [1], [0], [0], [0, 0, 1, 0], [], []>} : vector<64x8xbf16>, vector<64x8xbf16>, vector<64x64xf32> -> vector<64x64xf32>
    %cst_41 = arith.constant 0.353553385 : f32
    %101 = vector.broadcast %cst_41 : f32 to vector<64x64xf32>
    %102 = arith.mulf %100, %101 : vector<64x64xf32>
    %cst_42 = arith.constant dense<0xFF800000> : vector<64xf32>
    %103 = vector.multi_reduction <maximumf>, %102, %cst_42 [1] : vector<64x64xf32> to vector<64xf32>
    %104 = vector.shape_cast %103 : vector<64xf32> to vector<64x1xf32>
    %105 = vector.broadcast %104 : vector<64x1xf32> to vector<64x64xf32>
    %106 = arith.subf %102, %105 : vector<64x64xf32>
    %107 = math.exp %106 : vector<64x64xf32>
    %cst_43 = arith.constant dense<0.000000e+00> : vector<64xf32>
    %108 = vector.multi_reduction <add>, %107, %cst_43 [1] : vector<64x64xf32> to vector<64xf32>
    %109 = vector.shape_cast %108 : vector<64xf32> to vector<64x1xf32>
    %110 = tpu.reciprocal %109 {approx = true} : vector<64x1xf32> -> vector<64x1xf32>
    %111 = vector.broadcast %110 : vector<64x1xf32> to vector<64x64xf32>
    %112 = arith.mulf %107, %111 : vector<64x64xf32>
    %113 = arith.truncf %112 : vector<64x64xf32> to vector<64x64xbf16>
    %cst_44 = arith.constant dense<0.000000e+00> : vector<64x8xf32>
    %114 = tpu.matmul %113, %99, %cst_44 {dimension_numbers = #tpu.dot_dimension_numbers<[1], [0], [0], [1], [0, 0, 1, 1], [], []>} : vector<64x64xbf16>, vector<64x8xbf16>, vector<64x8xf32> -> vector<64x8xf32>
    %115 = tpu.concatenate %51, %72, %93, %114 in 1 : vector<64x8xf32>, vector<64x8xf32>, vector<64x8xf32>, vector<64x8xf32> -> vector<64x32xf32>
    %116 = arith.truncf %115 : vector<64x32xf32> to vector<64x32xbf16>
    %c0_45 = arith.constant 0 : index
    %c0_46 = arith.constant 0 : index
    %117 = vector.load %arg8[%c0_45, %c0_46] : memref<32x32xf32, #tpu.memory_space<vmem>>, vector<32x32xf32>
    %118 = arith.truncf %117 : vector<32x32xf32> to vector<32x32xbf16>
    %cst_47 = arith.constant dense<0.000000e+00> : vector<64x32xf32>
    %119 = tpu.matmul %116, %118, %cst_47 {dimension_numbers = #tpu.dot_dimension_numbers<[1], [0], [0], [1], [0, 0, 1, 1], [], []>} : vector<64x32xbf16>, vector<32x32xbf16>, vector<64x32xf32> -> vector<64x32xf32>
    %c0_48 = arith.constant 0 : index
    %c0_49 = arith.constant 0 : index
    %120 = vector.load %arg12[%c0_48, %c0_49] : memref<1x32xf32, #tpu.memory_space<vmem>>, vector<1x32xf32>
    %121 = vector.broadcast %120 : vector<1x32xf32> to vector<64x32xf32>
    %122 = arith.addf %119, %121 : vector<64x32xf32>
    %123 = arith.addf %1, %122 : vector<64x32xf32>
    %cst_50 = arith.constant dense<0.000000e+00> : vector<64xf32>
    %124 = vector.multi_reduction <add>, %123, %cst_50 [1] : vector<64x32xf32> to vector<64xf32>
    %125 = vector.shape_cast %124 : vector<64xf32> to vector<64x1xf32>
    %cst_51 = arith.constant 3.200000e+01 : f32
    %126 = vector.broadcast %cst_51 : f32 to vector<64x1xf32>
    %127 = arith.divf %125, %126 : vector<64x1xf32>
    %128 = vector.broadcast %127 : vector<64x1xf32> to vector<64x32xf32>
    %129 = arith.subf %123, %128 : vector<64x32xf32>
    %130 = arith.mulf %129, %129 : vector<64x32xf32>
    %cst_52 = arith.constant dense<0.000000e+00> : vector<64xf32>
    %131 = vector.multi_reduction <add>, %130, %cst_52 [1] : vector<64x32xf32> to vector<64xf32>
    %132 = vector.shape_cast %131 : vector<64xf32> to vector<64x1xf32>
    %cst_53 = arith.constant 3.200000e+01 : f32
    %133 = vector.broadcast %cst_53 : f32 to vector<64x1xf32>
    %134 = arith.divf %132, %133 : vector<64x1xf32>
    %135 = vector.broadcast %127 : vector<64x1xf32> to vector<64x32xf32>
    %136 = arith.subf %123, %135 : vector<64x32xf32>
    %cst_54 = arith.constant 9.99999974E-6 : f32
    %137 = vector.broadcast %cst_54 : f32 to vector<64x1xf32>
    %138 = arith.addf %134, %137 : vector<64x1xf32>
    %139 = math.rsqrt %138 : vector<64x1xf32>
    %140 = vector.broadcast %139 : vector<64x1xf32> to vector<64x32xf32>
    %141 = arith.mulf %136, %140 : vector<64x32xf32>
    %c0_55 = arith.constant 0 : index
    %c0_56 = arith.constant 0 : index
    %142 = vector.load %arg13[%c0_55, %c0_56] : memref<1x32xf32, #tpu.memory_space<vmem>>, vector<1x32xf32>
    %143 = vector.broadcast %142 : vector<1x32xf32> to vector<64x32xf32>
    %144 = arith.mulf %141, %143 : vector<64x32xf32>
    %c0_57 = arith.constant 0 : index
    %c0_58 = arith.constant 0 : index
    %145 = vector.load %arg14[%c0_57, %c0_58] : memref<1x32xf32, #tpu.memory_space<vmem>>, vector<1x32xf32>
    %146 = vector.broadcast %145 : vector<1x32xf32> to vector<64x32xf32>
    %147 = arith.addf %144, %146 : vector<64x32xf32>
    %c0_59 = arith.constant 0 : index
    %c0_60 = arith.constant 0 : index
    %c0_61 = arith.constant 0 : index
    %148 = vector.load %arg15[%c0_59, %c0_60, %c0_61] : memref<1x64x32xf32, #tpu.memory_space<vmem>>, vector<1x64x32xf32>
    %149 = vector.shape_cast %148 : vector<1x64x32xf32> to vector<64x32xf32>
    %150 = vector.shape_cast %147 : vector<64x32xf32> to vector<1x64x32xf32>
    tpu.vector_store %arg15[%c0_59, %c0_60, %c0_61], %150 {strides = array<i32>} : memref<1x64x32xf32, #tpu.memory_space<vmem>>, vector<1x64x32xf32>,
    return
  }
  func.func @transform_0(%arg0: i32) -> (i32, i32, i32) {
    %c0_i32 = arith.constant 0 : i32
    %c0_i32_0 = arith.constant 0 : i32
    %c0_i32_1 = arith.constant 0 : i32
    return %arg0, %c0_i32, %c0_i32_0 : i32, i32, i32
  }
  func.func @transform_1(%arg0: i32) -> (i32, i32, i32) {
    %c0_i32 = arith.constant 0 : i32
    %c0_i32_0 = arith.constant 0 : i32
    %c0_i32_1 = arith.constant 0 : i32
    %c0_i32_2 = arith.constant 0 : i32
    return %c0_i32, %c0_i32_0, %c0_i32_1 : i32, i32, i32
  }
  func.func @transform_2(%arg0: i32) -> (i32, i32, i32) {
    %c0_i32 = arith.constant 0 : i32
    %c0_i32_0 = arith.constant 0 : i32
    %c0_i32_1 = arith.constant 0 : i32
    return %arg0, %c0_i32, %c0_i32_0 : i32, i32, i32
  }
  func.func @transform_3(%arg0: i32) -> (i32, i32, i32) {
    %c0_i32 = arith.constant 0 : i32
    %c0_i32_0 = arith.constant 0 : i32
    %c0_i32_1 = arith.constant 0 : i32
    %c0_i32_2 = arith.constant 0 : i32
    return %c0_i32, %c0_i32_0, %c0_i32_1 : i32, i32, i32
  }
  func.func @transform_4(%arg0: i32) -> (i32, i32) {
    %c0_i32 = arith.constant 0 : i32
    %c0_i32_0 = arith.constant 0 : i32
    %c0_i32_1 = arith.constant 0 : i32
    return %c0_i32, %c0_i32_0 : i32, i32
  }
  func.func @transform_5(%arg0: i32) -> (i32, i32) {
    %c0_i32 = arith.constant 0 : i32
    %c0_i32_0 = arith.constant 0 : i32
    %c0_i32_1 = arith.constant 0 : i32
    return %c0_i32, %c0_i32_0 : i32, i32
  }
  func.func @transform_6(%arg0: i32) -> (i32, i32) {
    %c0_i32 = arith.constant 0 : i32
    %c0_i32_0 = arith.constant 0 : i32
    %c0_i32_1 = arith.constant 0 : i32
    return %c0_i32, %c0_i32_0 : i32, i32
  }
  func.func @transform_7(%arg0: i32) -> (i32, i32) {
    %c0_i32 = arith.constant 0 : i32
    %c0_i32_0 = arith.constant 0 : i32
    %c0_i32_1 = arith.constant 0 : i32
    return %c0_i32, %c0_i32_0 : i32, i32
  }
  func.func @transform_8(%arg0: i32) -> (i32, i32) {
    %c0_i32 = arith.constant 0 : i32
    %c0_i32_0 = arith.constant 0 : i32
    %c0_i32_1 = arith.constant 0 : i32
    return %c0_i32, %c0_i32_0 : i32, i32
  }
  func.func @transform_9(%arg0: i32) -> (i32, i32) {
    %c0_i32 = arith.constant 0 : i32
    %c0_i32_0 = arith.constant 0 : i32
    %c0_i32_1 = arith.constant 0 : i32
    return %c0_i32, %c0_i32_0 : i32, i32
  }
  func.func @transform_10(%arg0: i32) -> (i32, i32) {
    %c0_i32 = arith.constant 0 : i32
    %c0_i32_0 = arith.constant 0 : i32
    %c0_i32_1 = arith.constant 0 : i32
    return %c0_i32, %c0_i32_0 : i32, i32
  }
  func.func @transform_11(%arg0: i32) -> (i32, i32) {
    %c0_i32 = arith.constant 0 : i32
    %c0_i32_0 = arith.constant 0 : i32
    %c0_i32_1 = arith.constant 0 : i32
    return %c0_i32, %c0_i32_0 : i32, i32
  }
  func.func @transform_12(%arg0: i32) -> (i32, i32) {
    %c0_i32 = arith.constant 0 : i32
    %c0_i32_0 = arith.constant 0 : i32
    %c0_i32_1 = arith.constant 0 : i32
    return %c0_i32, %c0_i32_0 : i32, i32
  }
  func.func @transform_13(%arg0: i32) -> (i32, i32) {
    %c0_i32 = arith.constant 0 : i32
    %c0_i32_0 = arith.constant 0 : i32
    %c0_i32_1 = arith.constant 0 : i32
    return %c0_i32, %c0_i32_0 : i32, i32
  }
  func.func @transform_14(%arg0: i32) -> (i32, i32, i32) {
    %c0_i32 = arith.constant 0 : i32
    %c0_i32_0 = arith.constant 0 : i32
    %c0_i32_1 = arith.constant 0 : i32
    return %arg0, %c0_i32, %c0_i32_0 : i32, i32, i32
  }
}

module attributes {stable_mosaic.version = 11 : i64} {
  func.func @_mha_ln_kernel(%arg0: i32, %arg1: memref<1x8x32xf32, #tpu.memory_space<vmem>>, %arg2: memref<1x8x32xf32, #tpu.memory_space<vmem>>, %arg3: memref<1x8x32xf32, #tpu.memory_space<vmem>>, %arg4: memref<1x8x32xf32, #tpu.memory_space<vmem>>, %arg5: memref<32x32xf32, #tpu.memory_space<vmem>>, %arg6: memref<32x32xf32, #tpu.memory_space<vmem>>, %arg7: memref<32x32xf32, #tpu.memory_space<vmem>>, %arg8: memref<32x32xf32, #tpu.memory_space<vmem>>, %arg9: memref<1x32xf32, #tpu.memory_space<vmem>>, %arg10: memref<1x32xf32, #tpu.memory_space<vmem>>, %arg11: memref<1x32xf32, #tpu.memory_space<vmem>>, %arg12: memref<1x32xf32, #tpu.memory_space<vmem>>, %arg13: memref<1x32xf32, #tpu.memory_space<vmem>>, %arg14: memref<1x32xf32, #tpu.memory_space<vmem>>, %arg15: memref<1x8x32xf32, #tpu.memory_space<vmem>>) attributes {dimension_semantics = [#tpu.dimension_semantics<parallel>], iteration_bounds = array<i64: 2>, scalar_prefetch = 0 : i64, scratch_operands = 0 : i64, tpu.core_type = #tpu.core_type<tc>, window_params = [{transform_indices = @transform_0, window_bounds = array<i64: 1, 8, 32>}, {pipeline_mode = #tpu.pipeline_mode<synchronous>, transform_indices = @transform_1, window_bounds = array<i64: 1, 8, 32>}, {transform_indices = @transform_2, window_bounds = array<i64: 1, 8, 32>}, {pipeline_mode = #tpu.pipeline_mode<synchronous>, transform_indices = @transform_3, window_bounds = array<i64: 1, 8, 32>}, {pipeline_mode = #tpu.pipeline_mode<synchronous>, transform_indices = @transform_4, window_bounds = array<i64: 32, 32>}, {pipeline_mode = #tpu.pipeline_mode<synchronous>, transform_indices = @transform_5, window_bounds = array<i64: 32, 32>}, {pipeline_mode = #tpu.pipeline_mode<synchronous>, transform_indices = @transform_6, window_bounds = array<i64: 32, 32>}, {pipeline_mode = #tpu.pipeline_mode<synchronous>, transform_indices = @transform_7, window_bounds = array<i64: 32, 32>}, {pipeline_mode = #tpu.pipeline_mode<synchronous>, transform_indices = @transform_8, window_bounds = array<i64: 1, 32>}, {pipeline_mode = #tpu.pipeline_mode<synchronous>, transform_indices = @transform_9, window_bounds = array<i64: 1, 32>}, {pipeline_mode = #tpu.pipeline_mode<synchronous>, transform_indices = @transform_10, window_bounds = array<i64: 1, 32>}, {pipeline_mode = #tpu.pipeline_mode<synchronous>, transform_indices = @transform_11, window_bounds = array<i64: 1, 32>}, {pipeline_mode = #tpu.pipeline_mode<synchronous>, transform_indices = @transform_12, window_bounds = array<i64: 1, 32>}, {pipeline_mode = #tpu.pipeline_mode<synchronous>, transform_indices = @transform_13, window_bounds = array<i64: 1, 32>}, {transform_indices = @transform_14, window_bounds = array<i64: 1, 8, 32>}]} {
    %c0 = arith.constant 0 : index
    %c0_0 = arith.constant 0 : index
    %c0_1 = arith.constant 0 : index
    %0 = vector.load %arg1[%c0, %c0_0, %c0_1] : memref<1x8x32xf32, #tpu.memory_space<vmem>>, vector<1x8x32xf32>
    %1 = vector.shape_cast %0 : vector<1x8x32xf32> to vector<8x32xf32>
    %c0_2 = arith.constant 0 : index
    %c0_3 = arith.constant 0 : index
    %c0_4 = arith.constant 0 : index
    %2 = vector.load %arg3[%c0_2, %c0_3, %c0_4] : memref<1x8x32xf32, #tpu.memory_space<vmem>>, vector<1x8x32xf32>
    %3 = vector.shape_cast %2 : vector<1x8x32xf32> to vector<8x32xf32>
    %c0_5 = arith.constant 0 : index
    %c0_6 = arith.constant 0 : index
    %c0_7 = arith.constant 0 : index
    %4 = vector.load %arg2[%c0_5, %c0_6, %c0_7] : memref<1x8x32xf32, #tpu.memory_space<vmem>>, vector<1x8x32xf32>
    %5 = vector.shape_cast %4 : vector<1x8x32xf32> to vector<8x32xf32>
    %6 = arith.addf %1, %5 : vector<8x32xf32>
    %7 = arith.truncf %6 : vector<8x32xf32> to vector<8x32xbf16>
    %c0_8 = arith.constant 0 : index
    %c0_9 = arith.constant 0 : index
    %c0_10 = arith.constant 0 : index
    %8 = vector.load %arg4[%c0_8, %c0_9, %c0_10] : memref<1x8x32xf32, #tpu.memory_space<vmem>>, vector<1x8x32xf32>
    %9 = vector.shape_cast %8 : vector<1x8x32xf32> to vector<8x32xf32>
    %10 = arith.addf %3, %9 : vector<8x32xf32>
    %11 = arith.truncf %10 : vector<8x32xf32> to vector<8x32xbf16>
    %12 = arith.truncf %3 : vector<8x32xf32> to vector<8x32xbf16>
    %c0_11 = arith.constant 0 : index
    %c0_12 = arith.constant 0 : index
    %13 = vector.load %arg5[%c0_11, %c0_12] : memref<32x32xf32, #tpu.memory_space<vmem>>, vector<32x32xf32>
    %14 = arith.truncf %13 : vector<32x32xf32> to vector<32x32xbf16>
    %cst = arith.constant dense<0.000000e+00> : vector<8x32xf32>
    %15 = tpu.matmul %7, %14, %cst {dimension_numbers = #tpu.dot_dimension_numbers<[1], [0], [0], [1], [0, 0, 1, 1], [], []>} : vector<8x32xbf16>, vector<32x32xbf16>, vector<8x32xf32> -> vector<8x32xf32>
    %c0_13 = arith.constant 0 : index
    %c0_14 = arith.constant 0 : index
    %16 = vector.load %arg9[%c0_13, %c0_14] : memref<1x32xf32, #tpu.memory_space<vmem>>, vector<1x32xf32>
    %17 = vector.broadcast %16 : vector<1x32xf32> to vector<8x32xf32>
    %18 = arith.addf %15, %17 : vector<8x32xf32>
    %c0_15 = arith.constant 0 : index
    %c0_16 = arith.constant 0 : index
    %19 = vector.load %arg6[%c0_15, %c0_16] : memref<32x32xf32, #tpu.memory_space<vmem>>, vector<32x32xf32>
    %20 = arith.truncf %19 : vector<32x32xf32> to vector<32x32xbf16>
    %cst_17 = arith.constant dense<0.000000e+00> : vector<8x32xf32>
    %21 = tpu.matmul %11, %20, %cst_17 {dimension_numbers = #tpu.dot_dimension_numbers<[1], [0], [0], [1], [0, 0, 1, 1], [], []>} : vector<8x32xbf16>, vector<32x32xbf16>, vector<8x32xf32> -> vector<8x32xf32>
    %c0_18 = arith.constant 0 : index
    %c0_19 = arith.constant 0 : index
    %22 = vector.load %arg10[%c0_18, %c0_19] : memref<1x32xf32, #tpu.memory_space<vmem>>, vector<1x32xf32>
    %23 = vector.broadcast %22 : vector<1x32xf32> to vector<8x32xf32>
    %24 = arith.addf %21, %23 : vector<8x32xf32>
    %c0_20 = arith.constant 0 : index
    %c0_21 = arith.constant 0 : index
    %25 = vector.load %arg7[%c0_20, %c0_21] : memref<32x32xf32, #tpu.memory_space<vmem>>, vector<32x32xf32>
    %26 = arith.truncf %25 : vector<32x32xf32> to vector<32x32xbf16>
    %cst_22 = arith.constant dense<0.000000e+00> : vector<8x32xf32>
    %27 = tpu.matmul %12, %26, %cst_22 {dimension_numbers = #tpu.dot_dimension_numbers<[1], [0], [0], [1], [0, 0, 1, 1], [], []>} : vector<8x32xbf16>, vector<32x32xbf16>, vector<8x32xf32> -> vector<8x32xf32>
    %c0_23 = arith.constant 0 : index
    %c0_24 = arith.constant 0 : index
    %28 = vector.load %arg11[%c0_23, %c0_24] : memref<1x32xf32, #tpu.memory_space<vmem>>, vector<1x32xf32>
    %29 = vector.broadcast %28 : vector<1x32xf32> to vector<8x32xf32>
    %30 = arith.addf %27, %29 : vector<8x32xf32>
    %31 = vector.extract_strided_slice %18 {offsets = [0, 0], sizes = [8, 8], strides = [1, 1]} : vector<8x32xf32> to vector<8x8xf32>
    %32 = arith.truncf %31 : vector<8x8xf32> to vector<8x8xbf16>
    %33 = vector.extract_strided_slice %24 {offsets = [0, 0], sizes = [8, 8], strides = [1, 1]} : vector<8x32xf32> to vector<8x8xf32>
    %34 = arith.truncf %33 : vector<8x8xf32> to vector<8x8xbf16>
    %35 = vector.extract_strided_slice %30 {offsets = [0, 0], sizes = [8, 8], strides = [1, 1]} : vector<8x32xf32> to vector<8x8xf32>
    %36 = arith.truncf %35 : vector<8x8xf32> to vector<8x8xbf16>
    %cst_25 = arith.constant dense<0.000000e+00> : vector<8x8xf32>
    %37 = tpu.matmul %32, %34, %cst_25 {dimension_numbers = #tpu.dot_dimension_numbers<[1], [1], [0], [0], [0, 0, 1, 0], [], []>} : vector<8x8xbf16>, vector<8x8xbf16>, vector<8x8xf32> -> vector<8x8xf32>
    %cst_26 = arith.constant 0.353553385 : f32
    %38 = vector.broadcast %cst_26 : f32 to vector<8x8xf32>
    %39 = arith.mulf %37, %38 : vector<8x8xf32>
    %cst_27 = arith.constant dense<0xFF800000> : vector<8xf32>
    %40 = vector.multi_reduction <maximumf>, %39, %cst_27 [1] : vector<8x8xf32> to vector<8xf32>
    %41 = vector.shape_cast %40 : vector<8xf32> to vector<8x1xf32>
    %42 = vector.broadcast %41 : vector<8x1xf32> to vector<8x8xf32>
    %43 = arith.subf %39, %42 : vector<8x8xf32>
    %44 = math.exp %43 : vector<8x8xf32>
    %cst_28 = arith.constant dense<0.000000e+00> : vector<8xf32>
    %45 = vector.multi_reduction <add>, %44, %cst_28 [1] : vector<8x8xf32> to vector<8xf32>
    %46 = vector.shape_cast %45 : vector<8xf32> to vector<8x1xf32>
    %47 = tpu.reciprocal %46 {approx = true} : vector<8x1xf32> -> vector<8x1xf32>
    %48 = vector.broadcast %47 : vector<8x1xf32> to vector<8x8xf32>
    %49 = arith.mulf %44, %48 : vector<8x8xf32>
    %50 = arith.truncf %49 : vector<8x8xf32> to vector<8x8xbf16>
    %cst_29 = arith.constant dense<0.000000e+00> : vector<8x8xf32>
    %51 = tpu.matmul %50, %36, %cst_29 {dimension_numbers = #tpu.dot_dimension_numbers<[1], [0], [0], [1], [0, 0, 1, 1], [], []>} : vector<8x8xbf16>, vector<8x8xbf16>, vector<8x8xf32> -> vector<8x8xf32>
    %52 = vector.extract_strided_slice %18 {offsets = [0, 8], sizes = [8, 8], strides = [1, 1]} : vector<8x32xf32> to vector<8x8xf32>
    %53 = arith.truncf %52 : vector<8x8xf32> to vector<8x8xbf16>
    %54 = vector.extract_strided_slice %24 {offsets = [0, 8], sizes = [8, 8], strides = [1, 1]} : vector<8x32xf32> to vector<8x8xf32>
    %55 = arith.truncf %54 : vector<8x8xf32> to vector<8x8xbf16>
    %56 = vector.extract_strided_slice %30 {offsets = [0, 8], sizes = [8, 8], strides = [1, 1]} : vector<8x32xf32> to vector<8x8xf32>
    %57 = arith.truncf %56 : vector<8x8xf32> to vector<8x8xbf16>
    %cst_30 = arith.constant dense<0.000000e+00> : vector<8x8xf32>
    %58 = tpu.matmul %53, %55, %cst_30 {dimension_numbers = #tpu.dot_dimension_numbers<[1], [1], [0], [0], [0, 0, 1, 0], [], []>} : vector<8x8xbf16>, vector<8x8xbf16>, vector<8x8xf32> -> vector<8x8xf32>
    %cst_31 = arith.constant 0.353553385 : f32
    %59 = vector.broadcast %cst_31 : f32 to vector<8x8xf32>
    %60 = arith.mulf %58, %59 : vector<8x8xf32>
    %cst_32 = arith.constant dense<0xFF800000> : vector<8xf32>
    %61 = vector.multi_reduction <maximumf>, %60, %cst_32 [1] : vector<8x8xf32> to vector<8xf32>
    %62 = vector.shape_cast %61 : vector<8xf32> to vector<8x1xf32>
    %63 = vector.broadcast %62 : vector<8x1xf32> to vector<8x8xf32>
    %64 = arith.subf %60, %63 : vector<8x8xf32>
    %65 = math.exp %64 : vector<8x8xf32>
    %cst_33 = arith.constant dense<0.000000e+00> : vector<8xf32>
    %66 = vector.multi_reduction <add>, %65, %cst_33 [1] : vector<8x8xf32> to vector<8xf32>
    %67 = vector.shape_cast %66 : vector<8xf32> to vector<8x1xf32>
    %68 = tpu.reciprocal %67 {approx = true} : vector<8x1xf32> -> vector<8x1xf32>
    %69 = vector.broadcast %68 : vector<8x1xf32> to vector<8x8xf32>
    %70 = arith.mulf %65, %69 : vector<8x8xf32>
    %71 = arith.truncf %70 : vector<8x8xf32> to vector<8x8xbf16>
    %cst_34 = arith.constant dense<0.000000e+00> : vector<8x8xf32>
    %72 = tpu.matmul %71, %57, %cst_34 {dimension_numbers = #tpu.dot_dimension_numbers<[1], [0], [0], [1], [0, 0, 1, 1], [], []>} : vector<8x8xbf16>, vector<8x8xbf16>, vector<8x8xf32> -> vector<8x8xf32>
    %73 = vector.extract_strided_slice %18 {offsets = [0, 16], sizes = [8, 8], strides = [1, 1]} : vector<8x32xf32> to vector<8x8xf32>
    %74 = arith.truncf %73 : vector<8x8xf32> to vector<8x8xbf16>
    %75 = vector.extract_strided_slice %24 {offsets = [0, 16], sizes = [8, 8], strides = [1, 1]} : vector<8x32xf32> to vector<8x8xf32>
    %76 = arith.truncf %75 : vector<8x8xf32> to vector<8x8xbf16>
    %77 = vector.extract_strided_slice %30 {offsets = [0, 16], sizes = [8, 8], strides = [1, 1]} : vector<8x32xf32> to vector<8x8xf32>
    %78 = arith.truncf %77 : vector<8x8xf32> to vector<8x8xbf16>
    %cst_35 = arith.constant dense<0.000000e+00> : vector<8x8xf32>
    %79 = tpu.matmul %74, %76, %cst_35 {dimension_numbers = #tpu.dot_dimension_numbers<[1], [1], [0], [0], [0, 0, 1, 0], [], []>} : vector<8x8xbf16>, vector<8x8xbf16>, vector<8x8xf32> -> vector<8x8xf32>
    %cst_36 = arith.constant 0.353553385 : f32
    %80 = vector.broadcast %cst_36 : f32 to vector<8x8xf32>
    %81 = arith.mulf %79, %80 : vector<8x8xf32>
    %cst_37 = arith.constant dense<0xFF800000> : vector<8xf32>
    %82 = vector.multi_reduction <maximumf>, %81, %cst_37 [1] : vector<8x8xf32> to vector<8xf32>
    %83 = vector.shape_cast %82 : vector<8xf32> to vector<8x1xf32>
    %84 = vector.broadcast %83 : vector<8x1xf32> to vector<8x8xf32>
    %85 = arith.subf %81, %84 : vector<8x8xf32>
    %86 = math.exp %85 : vector<8x8xf32>
    %cst_38 = arith.constant dense<0.000000e+00> : vector<8xf32>
    %87 = vector.multi_reduction <add>, %86, %cst_38 [1] : vector<8x8xf32> to vector<8xf32>
    %88 = vector.shape_cast %87 : vector<8xf32> to vector<8x1xf32>
    %89 = tpu.reciprocal %88 {approx = true} : vector<8x1xf32> -> vector<8x1xf32>
    %90 = vector.broadcast %89 : vector<8x1xf32> to vector<8x8xf32>
    %91 = arith.mulf %86, %90 : vector<8x8xf32>
    %92 = arith.truncf %91 : vector<8x8xf32> to vector<8x8xbf16>
    %cst_39 = arith.constant dense<0.000000e+00> : vector<8x8xf32>
    %93 = tpu.matmul %92, %78, %cst_39 {dimension_numbers = #tpu.dot_dimension_numbers<[1], [0], [0], [1], [0, 0, 1, 1], [], []>} : vector<8x8xbf16>, vector<8x8xbf16>, vector<8x8xf32> -> vector<8x8xf32>
    %94 = vector.extract_strided_slice %18 {offsets = [0, 24], sizes = [8, 8], strides = [1, 1]} : vector<8x32xf32> to vector<8x8xf32>
    %95 = arith.truncf %94 : vector<8x8xf32> to vector<8x8xbf16>
    %96 = vector.extract_strided_slice %24 {offsets = [0, 24], sizes = [8, 8], strides = [1, 1]} : vector<8x32xf32> to vector<8x8xf32>
    %97 = arith.truncf %96 : vector<8x8xf32> to vector<8x8xbf16>
    %98 = vector.extract_strided_slice %30 {offsets = [0, 24], sizes = [8, 8], strides = [1, 1]} : vector<8x32xf32> to vector<8x8xf32>
    %99 = arith.truncf %98 : vector<8x8xf32> to vector<8x8xbf16>
    %cst_40 = arith.constant dense<0.000000e+00> : vector<8x8xf32>
    %100 = tpu.matmul %95, %97, %cst_40 {dimension_numbers = #tpu.dot_dimension_numbers<[1], [1], [0], [0], [0, 0, 1, 0], [], []>} : vector<8x8xbf16>, vector<8x8xbf16>, vector<8x8xf32> -> vector<8x8xf32>
    %cst_41 = arith.constant 0.353553385 : f32
    %101 = vector.broadcast %cst_41 : f32 to vector<8x8xf32>
    %102 = arith.mulf %100, %101 : vector<8x8xf32>
    %cst_42 = arith.constant dense<0xFF800000> : vector<8xf32>
    %103 = vector.multi_reduction <maximumf>, %102, %cst_42 [1] : vector<8x8xf32> to vector<8xf32>
    %104 = vector.shape_cast %103 : vector<8xf32> to vector<8x1xf32>
    %105 = vector.broadcast %104 : vector<8x1xf32> to vector<8x8xf32>
    %106 = arith.subf %102, %105 : vector<8x8xf32>
    %107 = math.exp %106 : vector<8x8xf32>
    %cst_43 = arith.constant dense<0.000000e+00> : vector<8xf32>
    %108 = vector.multi_reduction <add>, %107, %cst_43 [1] : vector<8x8xf32> to vector<8xf32>
    %109 = vector.shape_cast %108 : vector<8xf32> to vector<8x1xf32>
    %110 = tpu.reciprocal %109 {approx = true} : vector<8x1xf32> -> vector<8x1xf32>
    %111 = vector.broadcast %110 : vector<8x1xf32> to vector<8x8xf32>
    %112 = arith.mulf %107, %111 : vector<8x8xf32>
    %113 = arith.truncf %112 : vector<8x8xf32> to vector<8x8xbf16>
    %cst_44 = arith.constant dense<0.000000e+00> : vector<8x8xf32>
    %114 = tpu.matmul %113, %99, %cst_44 {dimension_numbers = #tpu.dot_dimension_numbers<[1], [0], [0], [1], [0, 0, 1, 1], [], []>} : vector<8x8xbf16>, vector<8x8xbf16>, vector<8x8xf32> -> vector<8x8xf32>
    %115 = tpu.concatenate %51, %72, %93, %114 in 1 : vector<8x8xf32>, vector<8x8xf32>, vector<8x8xf32>, vector<8x8xf32> -> vector<8x32xf32>
    %116 = arith.truncf %115 : vector<8x32xf32> to vector<8x32xbf16>
    %c0_45 = arith.constant 0 : index
    %c0_46 = arith.constant 0 : index
    %117 = vector.load %arg8[%c0_45, %c0_46] : memref<32x32xf32, #tpu.memory_space<vmem>>, vector<32x32xf32>
    %118 = arith.truncf %117 : vector<32x32xf32> to vector<32x32xbf16>
    %cst_47 = arith.constant dense<0.000000e+00> : vector<8x32xf32>
    %119 = tpu.matmul %116, %118, %cst_47 {dimension_numbers = #tpu.dot_dimension_numbers<[1], [0], [0], [1], [0, 0, 1, 1], [], []>} : vector<8x32xbf16>, vector<32x32xbf16>, vector<8x32xf32> -> vector<8x32xf32>
    %c0_48 = arith.constant 0 : index
    %c0_49 = arith.constant 0 : index
    %120 = vector.load %arg12[%c0_48, %c0_49] : memref<1x32xf32, #tpu.memory_space<vmem>>, vector<1x32xf32>
    %121 = vector.broadcast %120 : vector<1x32xf32> to vector<8x32xf32>
    %122 = arith.addf %119, %121 : vector<8x32xf32>
    %123 = arith.addf %1, %122 : vector<8x32xf32>
    %cst_50 = arith.constant dense<0.000000e+00> : vector<8xf32>
    %124 = vector.multi_reduction <add>, %123, %cst_50 [1] : vector<8x32xf32> to vector<8xf32>
    %125 = vector.shape_cast %124 : vector<8xf32> to vector<8x1xf32>
    %cst_51 = arith.constant 3.200000e+01 : f32
    %126 = vector.broadcast %cst_51 : f32 to vector<8x1xf32>
    %127 = arith.divf %125, %126 : vector<8x1xf32>
    %128 = vector.broadcast %127 : vector<8x1xf32> to vector<8x32xf32>
    %129 = arith.subf %123, %128 : vector<8x32xf32>
    %130 = arith.mulf %129, %129 : vector<8x32xf32>
    %cst_52 = arith.constant dense<0.000000e+00> : vector<8xf32>
    %131 = vector.multi_reduction <add>, %130, %cst_52 [1] : vector<8x32xf32> to vector<8xf32>
    %132 = vector.shape_cast %131 : vector<8xf32> to vector<8x1xf32>
    %cst_53 = arith.constant 3.200000e+01 : f32
    %133 = vector.broadcast %cst_53 : f32 to vector<8x1xf32>
    %134 = arith.divf %132, %133 : vector<8x1xf32>
    %135 = vector.broadcast %127 : vector<8x1xf32> to vector<8x32xf32>
    %136 = arith.subf %123, %135 : vector<8x32xf32>
    %cst_54 = arith.constant 9.99999974E-6 : f32
    %137 = vector.broadcast %cst_54 : f32 to vector<8x1xf32>
    %138 = arith.addf %134, %137 : vector<8x1xf32>
    %139 = math.rsqrt %138 : vector<8x1xf32>
    %140 = vector.broadcast %139 : vector<8x1xf32> to vector<8x32xf32>
    %141 = arith.mulf %136, %140 : vector<8x32xf32>
    %c0_55 = arith.constant 0 : index
    %c0_56 = arith.constant 0 : index
    %142 = vector.load %arg13[%c0_55, %c0_56] : memref<1x32xf32, #tpu.memory_space<vmem>>, vector<1x32xf32>
    %143 = vector.broadcast %142 : vector<1x32xf32> to vector<8x32xf32>
    %144 = arith.mulf %141, %143 : vector<8x32xf32>
    %c0_57 = arith.constant 0 : index
    %c0_58 = arith.constant 0 : index
    %145 = vector.load %arg14[%c0_57, %c0_58] : memref<1x32xf32, #tpu.memory_space<vmem>>, vector<1x32xf32>
    %146 = vector.broadcast %145 : vector<1x32xf32> to vector<8x32xf32>
    %147 = arith.addf %144, %146 : vector<8x32xf32>
    %c0_59 = arith.constant 0 : index
    %c0_60 = arith.constant 0 : index
    %c0_61 = arith.constant 0 : index
    %148 = vector.load %arg15[%c0_59, %c0_60, %c0_61] : memref<1x8x32xf32, #tpu.memory_space<vmem>>, vector<1x8x32xf32>
    %149 = vector.shape_cast %148 : vector<1x8x32xf32> to vector<8x32xf32>
    %150 = vector.shape_cast %147 : vector<8x32xf32> to vector<1x8x32xf32>
    tpu.vector_store %arg15[%c0_59, %c0_60, %c0_61], %150 {strides = array<i32>} : memref<1x8x32xf32, #tpu.memory_space<vmem>>, vector<1x8x32xf32>,
    return
  }
  func.func @transform_0(%arg0: i32) -> (i32, i32, i32) {
    %c0_i32 = arith.constant 0 : i32
    %c0_i32_0 = arith.constant 0 : i32
    %c0_i32_1 = arith.constant 0 : i32
    return %arg0, %c0_i32, %c0_i32_0 : i32, i32, i32
  }
  func.func @transform_1(%arg0: i32) -> (i32, i32, i32) {
    %c0_i32 = arith.constant 0 : i32
    %c0_i32_0 = arith.constant 0 : i32
    %c0_i32_1 = arith.constant 0 : i32
    %c0_i32_2 = arith.constant 0 : i32
    return %c0_i32, %c0_i32_0, %c0_i32_1 : i32, i32, i32
  }
  func.func @transform_2(%arg0: i32) -> (i32, i32, i32) {
    %c0_i32 = arith.constant 0 : i32
    %c0_i32_0 = arith.constant 0 : i32
    %c0_i32_1 = arith.constant 0 : i32
    return %arg0, %c0_i32, %c0_i32_0 : i32, i32, i32
  }
  func.func @transform_3(%arg0: i32) -> (i32, i32, i32) {
    %c0_i32 = arith.constant 0 : i32
    %c0_i32_0 = arith.constant 0 : i32
    %c0_i32_1 = arith.constant 0 : i32
    %c0_i32_2 = arith.constant 0 : i32
    return %c0_i32, %c0_i32_0, %c0_i32_1 : i32, i32, i32
  }
  func.func @transform_4(%arg0: i32) -> (i32, i32) {
    %c0_i32 = arith.constant 0 : i32
    %c0_i32_0 = arith.constant 0 : i32
    %c0_i32_1 = arith.constant 0 : i32
    return %c0_i32, %c0_i32_0 : i32, i32
  }
  func.func @transform_5(%arg0: i32) -> (i32, i32) {
    %c0_i32 = arith.constant 0 : i32
    %c0_i32_0 = arith.constant 0 : i32
    %c0_i32_1 = arith.constant 0 : i32
    return %c0_i32, %c0_i32_0 : i32, i32
  }
  func.func @transform_6(%arg0: i32) -> (i32, i32) {
    %c0_i32 = arith.constant 0 : i32
    %c0_i32_0 = arith.constant 0 : i32
    %c0_i32_1 = arith.constant 0 : i32
    return %c0_i32, %c0_i32_0 : i32, i32
  }
  func.func @transform_7(%arg0: i32) -> (i32, i32) {
    %c0_i32 = arith.constant 0 : i32
    %c0_i32_0 = arith.constant 0 : i32
    %c0_i32_1 = arith.constant 0 : i32
    return %c0_i32, %c0_i32_0 : i32, i32
  }
  func.func @transform_8(%arg0: i32) -> (i32, i32) {
    %c0_i32 = arith.constant 0 : i32
    %c0_i32_0 = arith.constant 0 : i32
    %c0_i32_1 = arith.constant 0 : i32
    return %c0_i32, %c0_i32_0 : i32, i32
  }
  func.func @transform_9(%arg0: i32) -> (i32, i32) {
    %c0_i32 = arith.constant 0 : i32
    %c0_i32_0 = arith.constant 0 : i32
    %c0_i32_1 = arith.constant 0 : i32
    return %c0_i32, %c0_i32_0 : i32, i32
  }
  func.func @transform_10(%arg0: i32) -> (i32, i32) {
    %c0_i32 = arith.constant 0 : i32
    %c0_i32_0 = arith.constant 0 : i32
    %c0_i32_1 = arith.constant 0 : i32
    return %c0_i32, %c0_i32_0 : i32, i32
  }
  func.func @transform_11(%arg0: i32) -> (i32, i32) {
    %c0_i32 = arith.constant 0 : i32
    %c0_i32_0 = arith.constant 0 : i32
    %c0_i32_1 = arith.constant 0 : i32
    return %c0_i32, %c0_i32_0 : i32, i32
  }
  func.func @transform_12(%arg0: i32) -> (i32, i32) {
    %c0_i32 = arith.constant 0 : i32
    %c0_i32_0 = arith.constant 0 : i32
    %c0_i32_1 = arith.constant 0 : i32
    return %c0_i32, %c0_i32_0 : i32, i32
  }
  func.func @transform_13(%arg0: i32) -> (i32, i32) {
    %c0_i32 = arith.constant 0 : i32
    %c0_i32_0 = arith.constant 0 : i32
    %c0_i32_1 = arith.constant 0 : i32
    return %c0_i32, %c0_i32_0 : i32, i32
  }
  func.func @transform_14(%arg0: i32) -> (i32, i32, i32) {
    %c0_i32 = arith.constant 0 : i32
    %c0_i32_0 = arith.constant 0 : i32
    %c0_i32_1 = arith.constant 0 : i32
    return %arg0, %c0_i32, %c0_i32_0 : i32, i32, i32
  }
}

module attributes {stable_mosaic.version = 11 : i64} {
  func.func @_mha_ln_kernel(%arg0: i32, %arg1: memref<1x8x32xf32, #tpu.memory_space<vmem>>, %arg2: memref<1x8x32xf32, #tpu.memory_space<vmem>>, %arg3: memref<1x64x32xf32, #tpu.memory_space<vmem>>, %arg4: memref<1x64x32xf32, #tpu.memory_space<vmem>>, %arg5: memref<32x32xf32, #tpu.memory_space<vmem>>, %arg6: memref<32x32xf32, #tpu.memory_space<vmem>>, %arg7: memref<32x32xf32, #tpu.memory_space<vmem>>, %arg8: memref<32x32xf32, #tpu.memory_space<vmem>>, %arg9: memref<1x32xf32, #tpu.memory_space<vmem>>, %arg10: memref<1x32xf32, #tpu.memory_space<vmem>>, %arg11: memref<1x32xf32, #tpu.memory_space<vmem>>, %arg12: memref<1x32xf32, #tpu.memory_space<vmem>>, %arg13: memref<1x32xf32, #tpu.memory_space<vmem>>, %arg14: memref<1x32xf32, #tpu.memory_space<vmem>>, %arg15: memref<1x8x32xf32, #tpu.memory_space<vmem>>) attributes {dimension_semantics = [#tpu.dimension_semantics<parallel>], iteration_bounds = array<i64: 2>, scalar_prefetch = 0 : i64, scratch_operands = 0 : i64, tpu.core_type = #tpu.core_type<tc>, window_params = [{transform_indices = @transform_0, window_bounds = array<i64: 1, 8, 32>}, {pipeline_mode = #tpu.pipeline_mode<synchronous>, transform_indices = @transform_1, window_bounds = array<i64: 1, 8, 32>}, {transform_indices = @transform_2, window_bounds = array<i64: 1, 64, 32>}, {pipeline_mode = #tpu.pipeline_mode<synchronous>, transform_indices = @transform_3, window_bounds = array<i64: 1, 64, 32>}, {pipeline_mode = #tpu.pipeline_mode<synchronous>, transform_indices = @transform_4, window_bounds = array<i64: 32, 32>}, {pipeline_mode = #tpu.pipeline_mode<synchronous>, transform_indices = @transform_5, window_bounds = array<i64: 32, 32>}, {pipeline_mode = #tpu.pipeline_mode<synchronous>, transform_indices = @transform_6, window_bounds = array<i64: 32, 32>}, {pipeline_mode = #tpu.pipeline_mode<synchronous>, transform_indices = @transform_7, window_bounds = array<i64: 32, 32>}, {pipeline_mode = #tpu.pipeline_mode<synchronous>, transform_indices = @transform_8, window_bounds = array<i64: 1, 32>}, {pipeline_mode = #tpu.pipeline_mode<synchronous>, transform_indices = @transform_9, window_bounds = array<i64: 1, 32>}, {pipeline_mode = #tpu.pipeline_mode<synchronous>, transform_indices = @transform_10, window_bounds = array<i64: 1, 32>}, {pipeline_mode = #tpu.pipeline_mode<synchronous>, transform_indices = @transform_11, window_bounds = array<i64: 1, 32>}, {pipeline_mode = #tpu.pipeline_mode<synchronous>, transform_indices = @transform_12, window_bounds = array<i64: 1, 32>}, {pipeline_mode = #tpu.pipeline_mode<synchronous>, transform_indices = @transform_13, window_bounds = array<i64: 1, 32>}, {transform_indices = @transform_14, window_bounds = array<i64: 1, 8, 32>}]} {
    %c0 = arith.constant 0 : index
    %c0_0 = arith.constant 0 : index
    %c0_1 = arith.constant 0 : index
    %0 = vector.load %arg1[%c0, %c0_0, %c0_1] : memref<1x8x32xf32, #tpu.memory_space<vmem>>, vector<1x8x32xf32>
    %1 = vector.shape_cast %0 : vector<1x8x32xf32> to vector<8x32xf32>
    %c0_2 = arith.constant 0 : index
    %c0_3 = arith.constant 0 : index
    %c0_4 = arith.constant 0 : index
    %2 = vector.load %arg3[%c0_2, %c0_3, %c0_4] : memref<1x64x32xf32, #tpu.memory_space<vmem>>, vector<1x64x32xf32>
    %3 = vector.shape_cast %2 : vector<1x64x32xf32> to vector<64x32xf32>
    %c0_5 = arith.constant 0 : index
    %c0_6 = arith.constant 0 : index
    %c0_7 = arith.constant 0 : index
    %4 = vector.load %arg2[%c0_5, %c0_6, %c0_7] : memref<1x8x32xf32, #tpu.memory_space<vmem>>, vector<1x8x32xf32>
    %5 = vector.shape_cast %4 : vector<1x8x32xf32> to vector<8x32xf32>
    %6 = arith.addf %1, %5 : vector<8x32xf32>
    %7 = arith.truncf %6 : vector<8x32xf32> to vector<8x32xbf16>
    %c0_8 = arith.constant 0 : index
    %c0_9 = arith.constant 0 : index
    %c0_10 = arith.constant 0 : index
    %8 = vector.load %arg4[%c0_8, %c0_9, %c0_10] : memref<1x64x32xf32, #tpu.memory_space<vmem>>, vector<1x64x32xf32>
    %9 = vector.shape_cast %8 : vector<1x64x32xf32> to vector<64x32xf32>
    %10 = arith.addf %3, %9 : vector<64x32xf32>
    %11 = arith.truncf %10 : vector<64x32xf32> to vector<64x32xbf16>
    %12 = arith.truncf %3 : vector<64x32xf32> to vector<64x32xbf16>
    %c0_11 = arith.constant 0 : index
    %c0_12 = arith.constant 0 : index
    %13 = vector.load %arg5[%c0_11, %c0_12] : memref<32x32xf32, #tpu.memory_space<vmem>>, vector<32x32xf32>
    %14 = arith.truncf %13 : vector<32x32xf32> to vector<32x32xbf16>
    %cst = arith.constant dense<0.000000e+00> : vector<8x32xf32>
    %15 = tpu.matmul %7, %14, %cst {dimension_numbers = #tpu.dot_dimension_numbers<[1], [0], [0], [1], [0, 0, 1, 1], [], []>} : vector<8x32xbf16>, vector<32x32xbf16>, vector<8x32xf32> -> vector<8x32xf32>
    %c0_13 = arith.constant 0 : index
    %c0_14 = arith.constant 0 : index
    %16 = vector.load %arg9[%c0_13, %c0_14] : memref<1x32xf32, #tpu.memory_space<vmem>>, vector<1x32xf32>
    %17 = vector.broadcast %16 : vector<1x32xf32> to vector<8x32xf32>
    %18 = arith.addf %15, %17 : vector<8x32xf32>
    %c0_15 = arith.constant 0 : index
    %c0_16 = arith.constant 0 : index
    %19 = vector.load %arg6[%c0_15, %c0_16] : memref<32x32xf32, #tpu.memory_space<vmem>>, vector<32x32xf32>
    %20 = arith.truncf %19 : vector<32x32xf32> to vector<32x32xbf16>
    %cst_17 = arith.constant dense<0.000000e+00> : vector<64x32xf32>
    %21 = tpu.matmul %11, %20, %cst_17 {dimension_numbers = #tpu.dot_dimension_numbers<[1], [0], [0], [1], [0, 0, 1, 1], [], []>} : vector<64x32xbf16>, vector<32x32xbf16>, vector<64x32xf32> -> vector<64x32xf32>
    %c0_18 = arith.constant 0 : index
    %c0_19 = arith.constant 0 : index
    %22 = vector.load %arg10[%c0_18, %c0_19] : memref<1x32xf32, #tpu.memory_space<vmem>>, vector<1x32xf32>
    %23 = vector.broadcast %22 : vector<1x32xf32> to vector<64x32xf32>
    %24 = arith.addf %21, %23 : vector<64x32xf32>
    %c0_20 = arith.constant 0 : index
    %c0_21 = arith.constant 0 : index
    %25 = vector.load %arg7[%c0_20, %c0_21] : memref<32x32xf32, #tpu.memory_space<vmem>>, vector<32x32xf32>
    %26 = arith.truncf %25 : vector<32x32xf32> to vector<32x32xbf16>
    %cst_22 = arith.constant dense<0.000000e+00> : vector<64x32xf32>
    %27 = tpu.matmul %12, %26, %cst_22 {dimension_numbers = #tpu.dot_dimension_numbers<[1], [0], [0], [1], [0, 0, 1, 1], [], []>} : vector<64x32xbf16>, vector<32x32xbf16>, vector<64x32xf32> -> vector<64x32xf32>
    %c0_23 = arith.constant 0 : index
    %c0_24 = arith.constant 0 : index
    %28 = vector.load %arg11[%c0_23, %c0_24] : memref<1x32xf32, #tpu.memory_space<vmem>>, vector<1x32xf32>
    %29 = vector.broadcast %28 : vector<1x32xf32> to vector<64x32xf32>
    %30 = arith.addf %27, %29 : vector<64x32xf32>
    %31 = vector.extract_strided_slice %18 {offsets = [0, 0], sizes = [8, 8], strides = [1, 1]} : vector<8x32xf32> to vector<8x8xf32>
    %32 = arith.truncf %31 : vector<8x8xf32> to vector<8x8xbf16>
    %33 = vector.extract_strided_slice %24 {offsets = [0, 0], sizes = [64, 8], strides = [1, 1]} : vector<64x32xf32> to vector<64x8xf32>
    %34 = arith.truncf %33 : vector<64x8xf32> to vector<64x8xbf16>
    %35 = vector.extract_strided_slice %30 {offsets = [0, 0], sizes = [64, 8], strides = [1, 1]} : vector<64x32xf32> to vector<64x8xf32>
    %36 = arith.truncf %35 : vector<64x8xf32> to vector<64x8xbf16>
    %cst_25 = arith.constant dense<0.000000e+00> : vector<8x64xf32>
    %37 = tpu.matmul %32, %34, %cst_25 {dimension_numbers = #tpu.dot_dimension_numbers<[1], [1], [0], [0], [0, 0, 1, 0], [], []>} : vector<8x8xbf16>, vector<64x8xbf16>, vector<8x64xf32> -> vector<8x64xf32>
    %cst_26 = arith.constant 0.353553385 : f32
    %38 = vector.broadcast %cst_26 : f32 to vector<8x64xf32>
    %39 = arith.mulf %37, %38 : vector<8x64xf32>
    %cst_27 = arith.constant dense<0xFF800000> : vector<8xf32>
    %40 = vector.multi_reduction <maximumf>, %39, %cst_27 [1] : vector<8x64xf32> to vector<8xf32>
    %41 = vector.shape_cast %40 : vector<8xf32> to vector<8x1xf32>
    %42 = vector.broadcast %41 : vector<8x1xf32> to vector<8x64xf32>
    %43 = arith.subf %39, %42 : vector<8x64xf32>
    %44 = math.exp %43 : vector<8x64xf32>
    %cst_28 = arith.constant dense<0.000000e+00> : vector<8xf32>
    %45 = vector.multi_reduction <add>, %44, %cst_28 [1] : vector<8x64xf32> to vector<8xf32>
    %46 = vector.shape_cast %45 : vector<8xf32> to vector<8x1xf32>
    %47 = tpu.reciprocal %46 {approx = true} : vector<8x1xf32> -> vector<8x1xf32>
    %48 = vector.broadcast %47 : vector<8x1xf32> to vector<8x64xf32>
    %49 = arith.mulf %44, %48 : vector<8x64xf32>
    %50 = arith.truncf %49 : vector<8x64xf32> to vector<8x64xbf16>
    %cst_29 = arith.constant dense<0.000000e+00> : vector<8x8xf32>
    %51 = tpu.matmul %50, %36, %cst_29 {dimension_numbers = #tpu.dot_dimension_numbers<[1], [0], [0], [1], [0, 0, 1, 1], [], []>} : vector<8x64xbf16>, vector<64x8xbf16>, vector<8x8xf32> -> vector<8x8xf32>
    %52 = vector.extract_strided_slice %18 {offsets = [0, 8], sizes = [8, 8], strides = [1, 1]} : vector<8x32xf32> to vector<8x8xf32>
    %53 = arith.truncf %52 : vector<8x8xf32> to vector<8x8xbf16>
    %54 = vector.extract_strided_slice %24 {offsets = [0, 8], sizes = [64, 8], strides = [1, 1]} : vector<64x32xf32> to vector<64x8xf32>
    %55 = arith.truncf %54 : vector<64x8xf32> to vector<64x8xbf16>
    %56 = vector.extract_strided_slice %30 {offsets = [0, 8], sizes = [64, 8], strides = [1, 1]} : vector<64x32xf32> to vector<64x8xf32>
    %57 = arith.truncf %56 : vector<64x8xf32> to vector<64x8xbf16>
    %cst_30 = arith.constant dense<0.000000e+00> : vector<8x64xf32>
    %58 = tpu.matmul %53, %55, %cst_30 {dimension_numbers = #tpu.dot_dimension_numbers<[1], [1], [0], [0], [0, 0, 1, 0], [], []>} : vector<8x8xbf16>, vector<64x8xbf16>, vector<8x64xf32> -> vector<8x64xf32>
    %cst_31 = arith.constant 0.353553385 : f32
    %59 = vector.broadcast %cst_31 : f32 to vector<8x64xf32>
    %60 = arith.mulf %58, %59 : vector<8x64xf32>
    %cst_32 = arith.constant dense<0xFF800000> : vector<8xf32>
    %61 = vector.multi_reduction <maximumf>, %60, %cst_32 [1] : vector<8x64xf32> to vector<8xf32>
    %62 = vector.shape_cast %61 : vector<8xf32> to vector<8x1xf32>
    %63 = vector.broadcast %62 : vector<8x1xf32> to vector<8x64xf32>
    %64 = arith.subf %60, %63 : vector<8x64xf32>
    %65 = math.exp %64 : vector<8x64xf32>
    %cst_33 = arith.constant dense<0.000000e+00> : vector<8xf32>
    %66 = vector.multi_reduction <add>, %65, %cst_33 [1] : vector<8x64xf32> to vector<8xf32>
    %67 = vector.shape_cast %66 : vector<8xf32> to vector<8x1xf32>
    %68 = tpu.reciprocal %67 {approx = true} : vector<8x1xf32> -> vector<8x1xf32>
    %69 = vector.broadcast %68 : vector<8x1xf32> to vector<8x64xf32>
    %70 = arith.mulf %65, %69 : vector<8x64xf32>
    %71 = arith.truncf %70 : vector<8x64xf32> to vector<8x64xbf16>
    %cst_34 = arith.constant dense<0.000000e+00> : vector<8x8xf32>
    %72 = tpu.matmul %71, %57, %cst_34 {dimension_numbers = #tpu.dot_dimension_numbers<[1], [0], [0], [1], [0, 0, 1, 1], [], []>} : vector<8x64xbf16>, vector<64x8xbf16>, vector<8x8xf32> -> vector<8x8xf32>
    %73 = vector.extract_strided_slice %18 {offsets = [0, 16], sizes = [8, 8], strides = [1, 1]} : vector<8x32xf32> to vector<8x8xf32>
    %74 = arith.truncf %73 : vector<8x8xf32> to vector<8x8xbf16>
    %75 = vector.extract_strided_slice %24 {offsets = [0, 16], sizes = [64, 8], strides = [1, 1]} : vector<64x32xf32> to vector<64x8xf32>
    %76 = arith.truncf %75 : vector<64x8xf32> to vector<64x8xbf16>
    %77 = vector.extract_strided_slice %30 {offsets = [0, 16], sizes = [64, 8], strides = [1, 1]} : vector<64x32xf32> to vector<64x8xf32>
    %78 = arith.truncf %77 : vector<64x8xf32> to vector<64x8xbf16>
    %cst_35 = arith.constant dense<0.000000e+00> : vector<8x64xf32>
    %79 = tpu.matmul %74, %76, %cst_35 {dimension_numbers = #tpu.dot_dimension_numbers<[1], [1], [0], [0], [0, 0, 1, 0], [], []>} : vector<8x8xbf16>, vector<64x8xbf16>, vector<8x64xf32> -> vector<8x64xf32>
    %cst_36 = arith.constant 0.353553385 : f32
    %80 = vector.broadcast %cst_36 : f32 to vector<8x64xf32>
    %81 = arith.mulf %79, %80 : vector<8x64xf32>
    %cst_37 = arith.constant dense<0xFF800000> : vector<8xf32>
    %82 = vector.multi_reduction <maximumf>, %81, %cst_37 [1] : vector<8x64xf32> to vector<8xf32>
    %83 = vector.shape_cast %82 : vector<8xf32> to vector<8x1xf32>
    %84 = vector.broadcast %83 : vector<8x1xf32> to vector<8x64xf32>
    %85 = arith.subf %81, %84 : vector<8x64xf32>
    %86 = math.exp %85 : vector<8x64xf32>
    %cst_38 = arith.constant dense<0.000000e+00> : vector<8xf32>
    %87 = vector.multi_reduction <add>, %86, %cst_38 [1] : vector<8x64xf32> to vector<8xf32>
    %88 = vector.shape_cast %87 : vector<8xf32> to vector<8x1xf32>
    %89 = tpu.reciprocal %88 {approx = true} : vector<8x1xf32> -> vector<8x1xf32>
    %90 = vector.broadcast %89 : vector<8x1xf32> to vector<8x64xf32>
    %91 = arith.mulf %86, %90 : vector<8x64xf32>
    %92 = arith.truncf %91 : vector<8x64xf32> to vector<8x64xbf16>
    %cst_39 = arith.constant dense<0.000000e+00> : vector<8x8xf32>
    %93 = tpu.matmul %92, %78, %cst_39 {dimension_numbers = #tpu.dot_dimension_numbers<[1], [0], [0], [1], [0, 0, 1, 1], [], []>} : vector<8x64xbf16>, vector<64x8xbf16>, vector<8x8xf32> -> vector<8x8xf32>
    %94 = vector.extract_strided_slice %18 {offsets = [0, 24], sizes = [8, 8], strides = [1, 1]} : vector<8x32xf32> to vector<8x8xf32>
    %95 = arith.truncf %94 : vector<8x8xf32> to vector<8x8xbf16>
    %96 = vector.extract_strided_slice %24 {offsets = [0, 24], sizes = [64, 8], strides = [1, 1]} : vector<64x32xf32> to vector<64x8xf32>
    %97 = arith.truncf %96 : vector<64x8xf32> to vector<64x8xbf16>
    %98 = vector.extract_strided_slice %30 {offsets = [0, 24], sizes = [64, 8], strides = [1, 1]} : vector<64x32xf32> to vector<64x8xf32>
    %99 = arith.truncf %98 : vector<64x8xf32> to vector<64x8xbf16>
    %cst_40 = arith.constant dense<0.000000e+00> : vector<8x64xf32>
    %100 = tpu.matmul %95, %97, %cst_40 {dimension_numbers = #tpu.dot_dimension_numbers<[1], [1], [0], [0], [0, 0, 1, 0], [], []>} : vector<8x8xbf16>, vector<64x8xbf16>, vector<8x64xf32> -> vector<8x64xf32>
    %cst_41 = arith.constant 0.353553385 : f32
    %101 = vector.broadcast %cst_41 : f32 to vector<8x64xf32>
    %102 = arith.mulf %100, %101 : vector<8x64xf32>
    %cst_42 = arith.constant dense<0xFF800000> : vector<8xf32>
    %103 = vector.multi_reduction <maximumf>, %102, %cst_42 [1] : vector<8x64xf32> to vector<8xf32>
    %104 = vector.shape_cast %103 : vector<8xf32> to vector<8x1xf32>
    %105 = vector.broadcast %104 : vector<8x1xf32> to vector<8x64xf32>
    %106 = arith.subf %102, %105 : vector<8x64xf32>
    %107 = math.exp %106 : vector<8x64xf32>
    %cst_43 = arith.constant dense<0.000000e+00> : vector<8xf32>
    %108 = vector.multi_reduction <add>, %107, %cst_43 [1] : vector<8x64xf32> to vector<8xf32>
    %109 = vector.shape_cast %108 : vector<8xf32> to vector<8x1xf32>
    %110 = tpu.reciprocal %109 {approx = true} : vector<8x1xf32> -> vector<8x1xf32>
    %111 = vector.broadcast %110 : vector<8x1xf32> to vector<8x64xf32>
    %112 = arith.mulf %107, %111 : vector<8x64xf32>
    %113 = arith.truncf %112 : vector<8x64xf32> to vector<8x64xbf16>
    %cst_44 = arith.constant dense<0.000000e+00> : vector<8x8xf32>
    %114 = tpu.matmul %113, %99, %cst_44 {dimension_numbers = #tpu.dot_dimension_numbers<[1], [0], [0], [1], [0, 0, 1, 1], [], []>} : vector<8x64xbf16>, vector<64x8xbf16>, vector<8x8xf32> -> vector<8x8xf32>
    %115 = tpu.concatenate %51, %72, %93, %114 in 1 : vector<8x8xf32>, vector<8x8xf32>, vector<8x8xf32>, vector<8x8xf32> -> vector<8x32xf32>
    %116 = arith.truncf %115 : vector<8x32xf32> to vector<8x32xbf16>
    %c0_45 = arith.constant 0 : index
    %c0_46 = arith.constant 0 : index
    %117 = vector.load %arg8[%c0_45, %c0_46] : memref<32x32xf32, #tpu.memory_space<vmem>>, vector<32x32xf32>
    %118 = arith.truncf %117 : vector<32x32xf32> to vector<32x32xbf16>
    %cst_47 = arith.constant dense<0.000000e+00> : vector<8x32xf32>
    %119 = tpu.matmul %116, %118, %cst_47 {dimension_numbers = #tpu.dot_dimension_numbers<[1], [0], [0], [1], [0, 0, 1, 1], [], []>} : vector<8x32xbf16>, vector<32x32xbf16>, vector<8x32xf32> -> vector<8x32xf32>
    %c0_48 = arith.constant 0 : index
    %c0_49 = arith.constant 0 : index
    %120 = vector.load %arg12[%c0_48, %c0_49] : memref<1x32xf32, #tpu.memory_space<vmem>>, vector<1x32xf32>
    %121 = vector.broadcast %120 : vector<1x32xf32> to vector<8x32xf32>
    %122 = arith.addf %119, %121 : vector<8x32xf32>
    %123 = arith.addf %1, %122 : vector<8x32xf32>
    %cst_50 = arith.constant dense<0.000000e+00> : vector<8xf32>
    %124 = vector.multi_reduction <add>, %123, %cst_50 [1] : vector<8x32xf32> to vector<8xf32>
    %125 = vector.shape_cast %124 : vector<8xf32> to vector<8x1xf32>
    %cst_51 = arith.constant 3.200000e+01 : f32
    %126 = vector.broadcast %cst_51 : f32 to vector<8x1xf32>
    %127 = arith.divf %125, %126 : vector<8x1xf32>
    %128 = vector.broadcast %127 : vector<8x1xf32> to vector<8x32xf32>
    %129 = arith.subf %123, %128 : vector<8x32xf32>
    %130 = arith.mulf %129, %129 : vector<8x32xf32>
    %cst_52 = arith.constant dense<0.000000e+00> : vector<8xf32>
    %131 = vector.multi_reduction <add>, %130, %cst_52 [1] : vector<8x32xf32> to vector<8xf32>
    %132 = vector.shape_cast %131 : vector<8xf32> to vector<8x1xf32>
    %cst_53 = arith.constant 3.200000e+01 : f32
    %133 = vector.broadcast %cst_53 : f32 to vector<8x1xf32>
    %134 = arith.divf %132, %133 : vector<8x1xf32>
    %135 = vector.broadcast %127 : vector<8x1xf32> to vector<8x32xf32>
    %136 = arith.subf %123, %135 : vector<8x32xf32>
    %cst_54 = arith.constant 9.99999974E-6 : f32
    %137 = vector.broadcast %cst_54 : f32 to vector<8x1xf32>
    %138 = arith.addf %134, %137 : vector<8x1xf32>
    %139 = math.rsqrt %138 : vector<8x1xf32>
    %140 = vector.broadcast %139 : vector<8x1xf32> to vector<8x32xf32>
    %141 = arith.mulf %136, %140 : vector<8x32xf32>
    %c0_55 = arith.constant 0 : index
    %c0_56 = arith.constant 0 : index
    %142 = vector.load %arg13[%c0_55, %c0_56] : memref<1x32xf32, #tpu.memory_space<vmem>>, vector<1x32xf32>
    %143 = vector.broadcast %142 : vector<1x32xf32> to vector<8x32xf32>
    %144 = arith.mulf %141, %143 : vector<8x32xf32>
    %c0_57 = arith.constant 0 : index
    %c0_58 = arith.constant 0 : index
    %145 = vector.load %arg14[%c0_57, %c0_58] : memref<1x32xf32, #tpu.memory_space<vmem>>, vector<1x32xf32>
    %146 = vector.broadcast %145 : vector<1x32xf32> to vector<8x32xf32>
    %147 = arith.addf %144, %146 : vector<8x32xf32>
    %c0_59 = arith.constant 0 : index
    %c0_60 = arith.constant 0 : index
    %c0_61 = arith.constant 0 : index
    %148 = vector.load %arg15[%c0_59, %c0_60, %c0_61] : memref<1x8x32xf32, #tpu.memory_space<vmem>>, vector<1x8x32xf32>
    %149 = vector.shape_cast %148 : vector<1x8x32xf32> to vector<8x32xf32>
    %150 = vector.shape_cast %147 : vector<8x32xf32> to vector<1x8x32xf32>
    tpu.vector_store %arg15[%c0_59, %c0_60, %c0_61], %150 {strides = array<i32>} : memref<1x8x32xf32, #tpu.memory_space<vmem>>, vector<1x8x32xf32>,
    return
  }
  func.func @transform_0(%arg0: i32) -> (i32, i32, i32) {
    %c0_i32 = arith.constant 0 : i32
    %c0_i32_0 = arith.constant 0 : i32
    %c0_i32_1 = arith.constant 0 : i32
    return %arg0, %c0_i32, %c0_i32_0 : i32, i32, i32
  }
  func.func @transform_1(%arg0: i32) -> (i32, i32, i32) {
    %c0_i32 = arith.constant 0 : i32
    %c0_i32_0 = arith.constant 0 : i32
    %c0_i32_1 = arith.constant 0 : i32
    %c0_i32_2 = arith.constant 0 : i32
    return %c0_i32, %c0_i32_0, %c0_i32_1 : i32, i32, i32
  }
  func.func @transform_2(%arg0: i32) -> (i32, i32, i32) {
    %c0_i32 = arith.constant 0 : i32
    %c0_i32_0 = arith.constant 0 : i32
    %c0_i32_1 = arith.constant 0 : i32
    return %arg0, %c0_i32, %c0_i32_0 : i32, i32, i32
  }
  func.func @transform_3(%arg0: i32) -> (i32, i32, i32) {
    %c0_i32 = arith.constant 0 : i32
    %c0_i32_0 = arith.constant 0 : i32
    %c0_i32_1 = arith.constant 0 : i32
    %c0_i32_2 = arith.constant 0 : i32
    return %c0_i32, %c0_i32_0, %c0_i32_1 : i32, i32, i32
  }
  func.func @transform_4(%arg0: i32) -> (i32, i32) {
    %c0_i32 = arith.constant 0 : i32
    %c0_i32_0 = arith.constant 0 : i32
    %c0_i32_1 = arith.constant 0 : i32
    return %c0_i32, %c0_i32_0 : i32, i32
  }
  func.func @transform_5(%arg0: i32) -> (i32, i32) {
    %c0_i32 = arith.constant 0 : i32
    %c0_i32_0 = arith.constant 0 : i32
    %c0_i32_1 = arith.constant 0 : i32
    return %c0_i32, %c0_i32_0 : i32, i32
  }
  func.func @transform_6(%arg0: i32) -> (i32, i32) {
    %c0_i32 = arith.constant 0 : i32
    %c0_i32_0 = arith.constant 0 : i32
    %c0_i32_1 = arith.constant 0 : i32
    return %c0_i32, %c0_i32_0 : i32, i32
  }
  func.func @transform_7(%arg0: i32) -> (i32, i32) {
    %c0_i32 = arith.constant 0 : i32
    %c0_i32_0 = arith.constant 0 : i32
    %c0_i32_1 = arith.constant 0 : i32
    return %c0_i32, %c0_i32_0 : i32, i32
  }
  func.func @transform_8(%arg0: i32) -> (i32, i32) {
    %c0_i32 = arith.constant 0 : i32
    %c0_i32_0 = arith.constant 0 : i32
    %c0_i32_1 = arith.constant 0 : i32
    return %c0_i32, %c0_i32_0 : i32, i32
  }
  func.func @transform_9(%arg0: i32) -> (i32, i32) {
    %c0_i32 = arith.constant 0 : i32
    %c0_i32_0 = arith.constant 0 : i32
    %c0_i32_1 = arith.constant 0 : i32
    return %c0_i32, %c0_i32_0 : i32, i32
  }
  func.func @transform_10(%arg0: i32) -> (i32, i32) {
    %c0_i32 = arith.constant 0 : i32
    %c0_i32_0 = arith.constant 0 : i32
    %c0_i32_1 = arith.constant 0 : i32
    return %c0_i32, %c0_i32_0 : i32, i32
  }
  func.func @transform_11(%arg0: i32) -> (i32, i32) {
    %c0_i32 = arith.constant 0 : i32
    %c0_i32_0 = arith.constant 0 : i32
    %c0_i32_1 = arith.constant 0 : i32
    return %c0_i32, %c0_i32_0 : i32, i32
  }
  func.func @transform_12(%arg0: i32) -> (i32, i32) {
    %c0_i32 = arith.constant 0 : i32
    %c0_i32_0 = arith.constant 0 : i32
    %c0_i32_1 = arith.constant 0 : i32
    return %c0_i32, %c0_i32_0 : i32, i32
  }
  func.func @transform_13(%arg0: i32) -> (i32, i32) {
    %c0_i32 = arith.constant 0 : i32
    %c0_i32_0 = arith.constant 0 : i32
    %c0_i32_1 = arith.constant 0 : i32
    return %c0_i32, %c0_i32_0 : i32, i32
  }
  func.func @transform_14(%arg0: i32) -> (i32, i32, i32) {
    %c0_i32 = arith.constant 0 : i32
    %c0_i32_0 = arith.constant 0 : i32
    %c0_i32_1 = arith.constant 0 : i32
    return %arg0, %c0_i32, %c0_i32_0 : i32, i32, i32
  }
}

module attributes {stable_mosaic.version = 11 : i64} {
  func.func @_ffn_ln_kernel(%arg0: i32, %arg1: memref<16x32xf32, #tpu.memory_space<vmem>>, %arg2: memref<32x64xf32, #tpu.memory_space<vmem>>, %arg3: memref<1x64xf32, #tpu.memory_space<vmem>>, %arg4: memref<64x32xf32, #tpu.memory_space<vmem>>, %arg5: memref<1x32xf32, #tpu.memory_space<vmem>>, %arg6: memref<1x32xf32, #tpu.memory_space<vmem>>, %arg7: memref<1x32xf32, #tpu.memory_space<vmem>>, %arg8: memref<16x32xf32, #tpu.memory_space<vmem>>) attributes {dimension_semantics = [#tpu.dimension_semantics<parallel>], iteration_bounds = array<i64: 1>, scalar_prefetch = 0 : i64, scratch_operands = 0 : i64, tpu.core_type = #tpu.core_type<tc>, window_params = [{transform_indices = @transform_0, window_bounds = array<i64: 16, 32>}, {pipeline_mode = #tpu.pipeline_mode<synchronous>, transform_indices = @transform_1, window_bounds = array<i64: 32, 64>}, {pipeline_mode = #tpu.pipeline_mode<synchronous>, transform_indices = @transform_2, window_bounds = array<i64: 1, 64>}, {pipeline_mode = #tpu.pipeline_mode<synchronous>, transform_indices = @transform_3, window_bounds = array<i64: 64, 32>}, {pipeline_mode = #tpu.pipeline_mode<synchronous>, transform_indices = @transform_4, window_bounds = array<i64: 1, 32>}, {pipeline_mode = #tpu.pipeline_mode<synchronous>, transform_indices = @transform_5, window_bounds = array<i64: 1, 32>}, {pipeline_mode = #tpu.pipeline_mode<synchronous>, transform_indices = @transform_6, window_bounds = array<i64: 1, 32>}, {transform_indices = @transform_7, window_bounds = array<i64: 16, 32>}]} {
    %c0 = arith.constant 0 : index
    %c0_0 = arith.constant 0 : index
    %0 = vector.load %arg1[%c0, %c0_0] : memref<16x32xf32, #tpu.memory_space<vmem>>, vector<16x32xf32>
    %1 = arith.truncf %0 : vector<16x32xf32> to vector<16x32xbf16>
    %c0_1 = arith.constant 0 : index
    %c0_2 = arith.constant 0 : index
    %2 = vector.load %arg2[%c0_1, %c0_2] : memref<32x64xf32, #tpu.memory_space<vmem>>, vector<32x64xf32>
    %3 = arith.truncf %2 : vector<32x64xf32> to vector<32x64xbf16>
    %cst = arith.constant dense<0.000000e+00> : vector<16x64xf32>
    %4 = tpu.matmul %1, %3, %cst {dimension_numbers = #tpu.dot_dimension_numbers<[1], [0], [0], [1], [0, 0, 1, 1], [], []>} : vector<16x32xbf16>, vector<32x64xbf16>, vector<16x64xf32> -> vector<16x64xf32>
    %c0_3 = arith.constant 0 : index
    %c0_4 = arith.constant 0 : index
    %5 = vector.load %arg3[%c0_3, %c0_4] : memref<1x64xf32, #tpu.memory_space<vmem>>, vector<1x64xf32>
    %6 = vector.broadcast %5 : vector<1x64xf32> to vector<16x64xf32>
    %7 = arith.addf %4, %6 : vector<16x64xf32>
    %cst_5 = arith.constant 0.000000e+00 : f32
    %8 = vector.broadcast %cst_5 : f32 to vector<16x64xf32>
    %9 = arith.maximumf %7, %8 : vector<16x64xf32>
    %10 = arith.truncf %9 : vector<16x64xf32> to vector<16x64xbf16>
    %c0_6 = arith.constant 0 : index
    %c0_7 = arith.constant 0 : index
    %11 = vector.load %arg4[%c0_6, %c0_7] : memref<64x32xf32, #tpu.memory_space<vmem>>, vector<64x32xf32>
    %12 = arith.truncf %11 : vector<64x32xf32> to vector<64x32xbf16>
    %cst_8 = arith.constant dense<0.000000e+00> : vector<16x32xf32>
    %13 = tpu.matmul %10, %12, %cst_8 {dimension_numbers = #tpu.dot_dimension_numbers<[1], [0], [0], [1], [0, 0, 1, 1], [], []>} : vector<16x64xbf16>, vector<64x32xbf16>, vector<16x32xf32> -> vector<16x32xf32>
    %c0_9 = arith.constant 0 : index
    %c0_10 = arith.constant 0 : index
    %14 = vector.load %arg5[%c0_9, %c0_10] : memref<1x32xf32, #tpu.memory_space<vmem>>, vector<1x32xf32>
    %15 = vector.broadcast %14 : vector<1x32xf32> to vector<16x32xf32>
    %16 = arith.addf %13, %15 : vector<16x32xf32>
    %17 = arith.addf %0, %16 : vector<16x32xf32>
    %cst_11 = arith.constant dense<0.000000e+00> : vector<16xf32>
    %18 = vector.multi_reduction <add>, %17, %cst_11 [1] : vector<16x32xf32> to vector<16xf32>
    %19 = vector.shape_cast %18 : vector<16xf32> to vector<16x1xf32>
    %cst_12 = arith.constant 3.200000e+01 : f32
    %20 = vector.broadcast %cst_12 : f32 to vector<16x1xf32>
    %21 = arith.divf %19, %20 : vector<16x1xf32>
    %22 = vector.broadcast %21 : vector<16x1xf32> to vector<16x32xf32>
    %23 = arith.subf %17, %22 : vector<16x32xf32>
    %24 = arith.mulf %23, %23 : vector<16x32xf32>
    %cst_13 = arith.constant dense<0.000000e+00> : vector<16xf32>
    %25 = vector.multi_reduction <add>, %24, %cst_13 [1] : vector<16x32xf32> to vector<16xf32>
    %26 = vector.shape_cast %25 : vector<16xf32> to vector<16x1xf32>
    %cst_14 = arith.constant 3.200000e+01 : f32
    %27 = vector.broadcast %cst_14 : f32 to vector<16x1xf32>
    %28 = arith.divf %26, %27 : vector<16x1xf32>
    %29 = vector.broadcast %21 : vector<16x1xf32> to vector<16x32xf32>
    %30 = arith.subf %17, %29 : vector<16x32xf32>
    %cst_15 = arith.constant 9.99999974E-6 : f32
    %31 = vector.broadcast %cst_15 : f32 to vector<16x1xf32>
    %32 = arith.addf %28, %31 : vector<16x1xf32>
    %33 = math.rsqrt %32 : vector<16x1xf32>
    %34 = vector.broadcast %33 : vector<16x1xf32> to vector<16x32xf32>
    %35 = arith.mulf %30, %34 : vector<16x32xf32>
    %c0_16 = arith.constant 0 : index
    %c0_17 = arith.constant 0 : index
    %36 = vector.load %arg6[%c0_16, %c0_17] : memref<1x32xf32, #tpu.memory_space<vmem>>, vector<1x32xf32>
    %37 = vector.broadcast %36 : vector<1x32xf32> to vector<16x32xf32>
    %38 = arith.mulf %35, %37 : vector<16x32xf32>
    %c0_18 = arith.constant 0 : index
    %c0_19 = arith.constant 0 : index
    %39 = vector.load %arg7[%c0_18, %c0_19] : memref<1x32xf32, #tpu.memory_space<vmem>>, vector<1x32xf32>
    %40 = vector.broadcast %39 : vector<1x32xf32> to vector<16x32xf32>
    %41 = arith.addf %38, %40 : vector<16x32xf32>
    %c0_20 = arith.constant 0 : index
    %c0_21 = arith.constant 0 : index
    %42 = vector.load %arg8[%c0_20, %c0_21] : memref<16x32xf32, #tpu.memory_space<vmem>>, vector<16x32xf32>
    tpu.vector_store %arg8[%c0_20, %c0_21], %41 {strides = array<i32>} : memref<16x32xf32, #tpu.memory_space<vmem>>, vector<16x32xf32>,
    return
  }
  func.func @transform_0(%arg0: i32) -> (i32, i32) {
    %c0_i32 = arith.constant 0 : i32
    %c0_i32_0 = arith.constant 0 : i32
    return %arg0, %c0_i32 : i32, i32
  }
  func.func @transform_1(%arg0: i32) -> (i32, i32) {
    %c0_i32 = arith.constant 0 : i32
    %c0_i32_0 = arith.constant 0 : i32
    %c0_i32_1 = arith.constant 0 : i32
    return %c0_i32, %c0_i32_0 : i32, i32
  }
  func.func @transform_2(%arg0: i32) -> (i32, i32) {
    %c0_i32 = arith.constant 0 : i32
    %c0_i32_0 = arith.constant 0 : i32
    %c0_i32_1 = arith.constant 0 : i32
    return %c0_i32, %c0_i32_0 : i32, i32
  }
  func.func @transform_3(%arg0: i32) -> (i32, i32) {
    %c0_i32 = arith.constant 0 : i32
    %c0_i32_0 = arith.constant 0 : i32
    %c0_i32_1 = arith.constant 0 : i32
    return %c0_i32, %c0_i32_0 : i32, i32
  }
  func.func @transform_4(%arg0: i32) -> (i32, i32) {
    %c0_i32 = arith.constant 0 : i32
    %c0_i32_0 = arith.constant 0 : i32
    %c0_i32_1 = arith.constant 0 : i32
    return %c0_i32, %c0_i32_0 : i32, i32
  }
  func.func @transform_5(%arg0: i32) -> (i32, i32) {
    %c0_i32 = arith.constant 0 : i32
    %c0_i32_0 = arith.constant 0 : i32
    %c0_i32_1 = arith.constant 0 : i32
    return %c0_i32, %c0_i32_0 : i32, i32
  }
  func.func @transform_6(%arg0: i32) -> (i32, i32) {
    %c0_i32 = arith.constant 0 : i32
    %c0_i32_0 = arith.constant 0 : i32
    %c0_i32_1 = arith.constant 0 : i32
    return %c0_i32, %c0_i32_0 : i32, i32
  }
  func.func @transform_7(%arg0: i32) -> (i32, i32) {
    %c0_i32 = arith.constant 0 : i32
    %c0_i32_0 = arith.constant 0 : i32
    return %arg0, %c0_i32 : i32, i32
  }
}

module attributes {stable_mosaic.version = 11 : i64} {
  func.func @_ln_kernel(%arg0: i32, %arg1: memref<16x32xf32, #tpu.memory_space<vmem>>, %arg2: memref<1x32xf32, #tpu.memory_space<vmem>>, %arg3: memref<1x32xf32, #tpu.memory_space<vmem>>, %arg4: memref<16x32xf32, #tpu.memory_space<vmem>>) attributes {dimension_semantics = [#tpu.dimension_semantics<parallel>], iteration_bounds = array<i64: 1>, scalar_prefetch = 0 : i64, scratch_operands = 0 : i64, tpu.core_type = #tpu.core_type<tc>, window_params = [{transform_indices = @transform_0, window_bounds = array<i64: 16, 32>}, {pipeline_mode = #tpu.pipeline_mode<synchronous>, transform_indices = @transform_1, window_bounds = array<i64: 1, 32>}, {pipeline_mode = #tpu.pipeline_mode<synchronous>, transform_indices = @transform_2, window_bounds = array<i64: 1, 32>}, {transform_indices = @transform_3, window_bounds = array<i64: 16, 32>}]} {
    %c0 = arith.constant 0 : index
    %c0_0 = arith.constant 0 : index
    %0 = vector.load %arg1[%c0, %c0_0] : memref<16x32xf32, #tpu.memory_space<vmem>>, vector<16x32xf32>
    %cst = arith.constant dense<0.000000e+00> : vector<16xf32>
    %1 = vector.multi_reduction <add>, %0, %cst [1] : vector<16x32xf32> to vector<16xf32>
    %2 = vector.shape_cast %1 : vector<16xf32> to vector<16x1xf32>
    %cst_1 = arith.constant 3.200000e+01 : f32
    %3 = vector.broadcast %cst_1 : f32 to vector<16x1xf32>
    %4 = arith.divf %2, %3 : vector<16x1xf32>
    %5 = vector.broadcast %4 : vector<16x1xf32> to vector<16x32xf32>
    %6 = arith.subf %0, %5 : vector<16x32xf32>
    %7 = arith.mulf %6, %6 : vector<16x32xf32>
    %cst_2 = arith.constant dense<0.000000e+00> : vector<16xf32>
    %8 = vector.multi_reduction <add>, %7, %cst_2 [1] : vector<16x32xf32> to vector<16xf32>
    %9 = vector.shape_cast %8 : vector<16xf32> to vector<16x1xf32>
    %cst_3 = arith.constant 3.200000e+01 : f32
    %10 = vector.broadcast %cst_3 : f32 to vector<16x1xf32>
    %11 = arith.divf %9, %10 : vector<16x1xf32>
    %12 = vector.broadcast %4 : vector<16x1xf32> to vector<16x32xf32>
    %13 = arith.subf %0, %12 : vector<16x32xf32>
    %cst_4 = arith.constant 9.99999974E-6 : f32
    %14 = vector.broadcast %cst_4 : f32 to vector<16x1xf32>
    %15 = arith.addf %11, %14 : vector<16x1xf32>
    %16 = math.rsqrt %15 : vector<16x1xf32>
    %17 = vector.broadcast %16 : vector<16x1xf32> to vector<16x32xf32>
    %18 = arith.mulf %13, %17 : vector<16x32xf32>
    %c0_5 = arith.constant 0 : index
    %c0_6 = arith.constant 0 : index
    %19 = vector.load %arg2[%c0_5, %c0_6] : memref<1x32xf32, #tpu.memory_space<vmem>>, vector<1x32xf32>
    %20 = vector.broadcast %19 : vector<1x32xf32> to vector<16x32xf32>
    %21 = arith.mulf %18, %20 : vector<16x32xf32>
    %c0_7 = arith.constant 0 : index
    %c0_8 = arith.constant 0 : index
    %22 = vector.load %arg3[%c0_7, %c0_8] : memref<1x32xf32, #tpu.memory_space<vmem>>, vector<1x32xf32>
    %23 = vector.broadcast %22 : vector<1x32xf32> to vector<16x32xf32>
    %24 = arith.addf %21, %23 : vector<16x32xf32>
    %c0_9 = arith.constant 0 : index
    %c0_10 = arith.constant 0 : index
    %25 = vector.load %arg4[%c0_9, %c0_10] : memref<16x32xf32, #tpu.memory_space<vmem>>, vector<16x32xf32>
    tpu.vector_store %arg4[%c0_9, %c0_10], %24 {strides = array<i32>} : memref<16x32xf32, #tpu.memory_space<vmem>>, vector<16x32xf32>,
    return
  }
  func.func @transform_0(%arg0: i32) -> (i32, i32) {
    %c0_i32 = arith.constant 0 : i32
    %c0_i32_0 = arith.constant 0 : i32
    return %arg0, %c0_i32 : i32, i32
  }
  func.func @transform_1(%arg0: i32) -> (i32, i32) {
    %c0_i32 = arith.constant 0 : i32
    %c0_i32_0 = arith.constant 0 : i32
    %c0_i32_1 = arith.constant 0 : i32
    return %c0_i32, %c0_i32_0 : i32, i32
  }
  func.func @transform_2(%arg0: i32) -> (i32, i32) {
    %c0_i32 = arith.constant 0 : i32
    %c0_i32_0 = arith.constant 0 : i32
    %c0_i32_1 = arith.constant 0 : i32
    return %c0_i32, %c0_i32_0 : i32, i32
  }
  func.func @transform_3(%arg0: i32) -> (i32, i32) {
    %c0_i32 = arith.constant 0 : i32
    %c0_i32_0 = arith.constant 0 : i32
    return %arg0, %c0_i32 : i32, i32
  }
}

module attributes {stable_mosaic.version = 11 : i64} {
  func.func @_heads_kernel(%arg0: memref<16x32xf32, #tpu.memory_space<vmem>>, %arg1: memref<32x32xf32, #tpu.memory_space<vmem>>, %arg2: memref<1x32xf32, #tpu.memory_space<vmem>>, %arg3: memref<32x32xf32, #tpu.memory_space<vmem>>, %arg4: memref<1x32xf32, #tpu.memory_space<vmem>>, %arg5: memref<32x128xf32, #tpu.memory_space<vmem>>, %arg6: memref<32x128xf32, #tpu.memory_space<vmem>>, %arg7: memref<1x128xf32, #tpu.memory_space<vmem>>, %arg8: memref<16x128xf32, #tpu.memory_space<vmem>>) attributes {dimension_semantics = [], scalar_prefetch = 0 : i64, scratch_operands = 0 : i64, tpu.core_type = #tpu.core_type<tc>} {
    %c0 = arith.constant 0 : index
    %c0_0 = arith.constant 0 : index
    %0 = vector.load %arg0[%c0, %c0_0] : memref<16x32xf32, #tpu.memory_space<vmem>>, vector<16x32xf32>
    %1 = arith.truncf %0 : vector<16x32xf32> to vector<16x32xbf16>
    %c0_1 = arith.constant 0 : index
    %c0_2 = arith.constant 0 : index
    %2 = vector.load %arg1[%c0_1, %c0_2] : memref<32x32xf32, #tpu.memory_space<vmem>>, vector<32x32xf32>
    %3 = arith.truncf %2 : vector<32x32xf32> to vector<32x32xbf16>
    %cst = arith.constant dense<0.000000e+00> : vector<16x32xf32>
    %4 = tpu.matmul %1, %3, %cst {dimension_numbers = #tpu.dot_dimension_numbers<[1], [0], [0], [1], [0, 0, 1, 1], [], []>} : vector<16x32xbf16>, vector<32x32xbf16>, vector<16x32xf32> -> vector<16x32xf32>
    %c0_3 = arith.constant 0 : index
    %c0_4 = arith.constant 0 : index
    %5 = vector.load %arg2[%c0_3, %c0_4] : memref<1x32xf32, #tpu.memory_space<vmem>>, vector<1x32xf32>
    %6 = vector.broadcast %5 : vector<1x32xf32> to vector<16x32xf32>
    %7 = arith.addf %4, %6 : vector<16x32xf32>
    %cst_5 = arith.constant 0.000000e+00 : f32
    %8 = vector.broadcast %cst_5 : f32 to vector<16x32xf32>
    %9 = arith.maximumf %7, %8 : vector<16x32xf32>
    %10 = arith.truncf %9 : vector<16x32xf32> to vector<16x32xbf16>
    %c0_6 = arith.constant 0 : index
    %c0_7 = arith.constant 0 : index
    %11 = vector.load %arg3[%c0_6, %c0_7] : memref<32x32xf32, #tpu.memory_space<vmem>>, vector<32x32xf32>
    %12 = arith.truncf %11 : vector<32x32xf32> to vector<32x32xbf16>
    %cst_8 = arith.constant dense<0.000000e+00> : vector<16x32xf32>
    %13 = tpu.matmul %10, %12, %cst_8 {dimension_numbers = #tpu.dot_dimension_numbers<[1], [0], [0], [1], [0, 0, 1, 1], [], []>} : vector<16x32xbf16>, vector<32x32xbf16>, vector<16x32xf32> -> vector<16x32xf32>
    %c0_9 = arith.constant 0 : index
    %c0_10 = arith.constant 0 : index
    %14 = vector.load %arg4[%c0_9, %c0_10] : memref<1x32xf32, #tpu.memory_space<vmem>>, vector<1x32xf32>
    %15 = vector.broadcast %14 : vector<1x32xf32> to vector<16x32xf32>
    %16 = arith.addf %13, %15 : vector<16x32xf32>
    %cst_11 = arith.constant 0.000000e+00 : f32
    %17 = vector.broadcast %cst_11 : f32 to vector<16x32xf32>
    %18 = arith.maximumf %16, %17 : vector<16x32xf32>
    %19 = arith.truncf %0 : vector<16x32xf32> to vector<16x32xbf16>
    %c0_12 = arith.constant 0 : index
    %c0_13 = arith.constant 0 : index
    %20 = vector.load %arg5[%c0_12, %c0_13] : memref<32x128xf32, #tpu.memory_space<vmem>>, vector<32x128xf32>
    %21 = arith.truncf %20 : vector<32x128xf32> to vector<32x128xbf16>
    %cst_14 = arith.constant dense<0.000000e+00> : vector<16x128xf32>
    %22 = tpu.matmul %19, %21, %cst_14 {dimension_numbers = #tpu.dot_dimension_numbers<[1], [0], [0], [1], [0, 0, 1, 1], [], []>} : vector<16x32xbf16>, vector<32x128xbf16>, vector<16x128xf32> -> vector<16x128xf32>
    %23 = arith.truncf %18 : vector<16x32xf32> to vector<16x32xbf16>
    %c0_15 = arith.constant 0 : index
    %c0_16 = arith.constant 0 : index
    %24 = vector.load %arg6[%c0_15, %c0_16] : memref<32x128xf32, #tpu.memory_space<vmem>>, vector<32x128xf32>
    %25 = arith.truncf %24 : vector<32x128xf32> to vector<32x128xbf16>
    %cst_17 = arith.constant dense<0.000000e+00> : vector<16x128xf32>
    %26 = tpu.matmul %23, %25, %cst_17 {dimension_numbers = #tpu.dot_dimension_numbers<[1], [0], [0], [1], [0, 0, 1, 1], [], []>} : vector<16x32xbf16>, vector<32x128xbf16>, vector<16x128xf32> -> vector<16x128xf32>
    %27 = arith.addf %22, %26 : vector<16x128xf32>
    %c0_18 = arith.constant 0 : index
    %c0_19 = arith.constant 0 : index
    %28 = vector.load %arg7[%c0_18, %c0_19] : memref<1x128xf32, #tpu.memory_space<vmem>>, vector<1x128xf32>
    %29 = vector.broadcast %28 : vector<1x128xf32> to vector<16x128xf32>
    %30 = arith.addf %27, %29 : vector<16x128xf32>
    %31 = tpu.iota {dimensions = array<i32: 1>} : vector<16x128xi32>
    %c6_i32 = arith.constant 6 : i32
    %32 = vector.broadcast %c6_i32 : i32 to vector<16x128xi32>
    %33 = arith.cmpi sge, %31, %32 : vector<16x128xi32>
    %c10_i32 = arith.constant 10 : i32
    %34 = vector.broadcast %c10_i32 : i32 to vector<16x128xi32>
    %35 = arith.cmpi slt, %31, %34 : vector<16x128xi32>
    %36 = arith.andi %33, %35 : vector<16x128xi1>
    %37 = arith.negf %30 : vector<16x128xf32>
    %38 = math.exp %37 : vector<16x128xf32>
    %cst_20 = arith.constant 1.000000e+00 : f32
    %39 = vector.broadcast %cst_20 : f32 to vector<16x128xf32>
    %40 = arith.addf %39, %38 : vector<16x128xf32>
    %41 = arith.divf %39, %40 : vector<16x128xf32>
    %42 = arith.select %36, %41, %30 : vector<16x128xi1>, vector<16x128xf32>
    %c0_21 = arith.constant 0 : index
    %c0_22 = arith.constant 0 : index
    %43 = vector.load %arg8[%c0_21, %c0_22] : memref<16x128xf32, #tpu.memory_space<vmem>>, vector<16x128xf32>
    tpu.vector_store %arg8[%c0_21, %c0_22], %42 {strides = array<i32>} : memref<16x128xf32, #tpu.memory_space<vmem>>, vector<16x128xf32>,
    return
  }
}

</mosaic_0001>

<bundles_post_ra>
// kernel: detr_forward.15
= control target key start
LH: loop header
LB: loop body
LE: loop exit
PB: predicated region body
PF: predicated region fallthrough
CT: control target
= control target key end

     0   :  { %s698_s12 = smov 0   ;;  %s887_s0 = inlined_call_operand.vmem [shape: f32[512,27], index: 0, kind: input, shape index: {}]   ;;  %s888_s1 = inlined_call_operand.vmem [shape: f32[27,16], index: 1, kind: input, shape index: {}]   ;;  %s889_s2 = inlined_call_operand.vmem [shape: f32[1,16], index: 2, kind: input, shape index: {}]   ;;  %s890_s3 = inlined_call_operand.vmem [shape: f32[512,16], index: 3, kind: output, shape index: {}]  }
   0x1 LB: > { %s574_s13 = sadd.s32 4294967295, %s675_s12   ;;  %p578_p0 = scmp.ge.s32.totalorder %s675_s12, 1  ;;  %s675_s12 = sphi %s698_s12, %s13_s12  }
   0x2   : > { %p138_p1 = scmp.lt.s32.totalorder %s675_s12, 3 }
   0x4   : > { %p139_p2 = pnand %p578_p0, %p138_p1 }
   0x5   : > { %v223_v0 = vld [vmem:[%s888_s1] sm:$0xff] (!%p139_p2)  ;;  %v224_v1 = vld [vmem:[%s888_s1 + $0x8] sm:$0xff] (!%p139_p2)  ;;  %v225_v2 = vld [vmem:[%s888_s1 + $0x10] sm:$0xff] (!%p139_p2)  ;;  %vm285_vm0 = vcmask (!%p139_p2), 1044480   ;;  %vm286_vm1 = vcmask (!%p139_p2), 1045504   ;;  %v677_v5 = vmov (!%p139_p2), 65535  }
   0x6   : > { %142 = sbr.rel (%p139_p2) target bundleno = 265 (0x109), region = 32  ;;  %v227_v3 = vpack.c.bf16 (!%p139_p2), %v224_v1, %v223_v0  ;;  %v226_v4 = vld [vmem:[%s888_s1 + $0x18] sm:$0x7] (!%p139_p2)  ;;  %v287_v6 = vsel (!%p139_p2), %vm285_vm0, 4294967295, %v677_v5  ;;  %s579_s22 = sshll.u32 (!%p139_p2), %s574_s13, 5  ;;  %vm236_vm2 = vcmask (!%p139_p2), 220160  }
   0x7   : > { %v228_v7 = vpack.c.bf16 (!%p139_p2), %v226_v4, %v225_v2  ;;  %v288_v8 = vsel (!%p139_p2), %vm286_vm1, %v287_v6, 0  ;;  %p163_p3 = scmp.lt.s32.totalorder (!%p139_p2), %s579_s22, 63  ;;  %v779_v58 = vld [vmem:[%s889_s2] ss:$0 sm:$0xff] (!%p139_p2)  ;;  %vm485_vm3 = vcmask (!%p139_p2), 130048  }
   0x8   : > { %620 = vmatprep.subr.bf16.mxu0 (!%p139_p2), %v227_v3  ;;  %656 = vmatprep.subr.bf16.mxu1 (!%p139_p2), %v227_v3 }
   0x9   : > { %621 = vmatpush3.bf16.msra.mxu0 (!%p139_p2), %v227_v3  ;;  %658 = vmatpush3.bf16.msra.mxu1 (!%p139_p2), %v227_v3  ;;  %v290_v9 = vand.u32 (!%p139_p2), %v288_v8, %v228_v7 }
   0xb   : > { %622 = vmatprep.subr.bf16.mxu0 (!%p139_p2), %v290_v9  ;;  %657 = vmatprep.subr.bf16.mxu1 (!%p139_p2), %v290_v9 }
   0xd   : > { %s892_s22 = smov (!%p163_p3, %s579_s22), 63  ;;  %623 = vmatpush3.bf16.msra.mxu0 %v290_v9  ;;  %659 = vmatpush3.bf16.msra.mxu1 %v290_v9 }
   0xe   : > { %s580_s23 = sshll.u32 %s892_s22, 3 }
   0xf   : > { %s726_s26 = scalar_lea.vmem %s887_s0, %s580_s23  ;;  %s787_s4 = scalar_lea.vmem %s890_s3, %s580_s23 }
  0x10   : > { %v175_v10 = vld [vmem:[%s726_s26] sm:$0xff]  ;;  %v176_v11 = vld [vmem:[%s726_s26 + $0x8] sm:$0xff]  ;;  %v177_v15 = vld [vmem:[%s726_s26 + $0x10] sm:$0xff] }
  0x11   : > { %v191_v12 = vld [vmem:[%s726_s26 + $0x80] sm:$0xff]  ;;  %v207_v13 = vpack.c.bf16 %v176_v11, %v175_v10  ;;  %v192_v14 = vld [vmem:[%s726_s26 + $0x88] sm:$0xff]  ;;  %v178_v16 = vld [vmem:[%s726_s26 + $0x18] sm:$0xff] }
  0x12   : > { %v215_v17 = vpack.c.bf16 %v192_v14, %v191_v12  ;;  %v208_v18 = vpack.c.bf16 %v178_v16, %v177_v15  ;;  %v193_v19 = vld [vmem:[%s726_s26 + $0x90] sm:$0xff]  ;;  %v194_v20 = vld [vmem:[%s726_s26 + $0x98] sm:$0xff]  ;;  %v179_v21 = vld [vmem:[%s726_s26 + $0x20] sm:$0xff] }
  0x13   : > { %624 = vmatprep.mubr.msk.bf16.mxu0 %vm236_vm2, %v207_v13  ;;  %v216_v22 = vpack.c.bf16 %v194_v20, %v193_v19  ;;  %v180_v23 = vld [vmem:[%s726_s26 + $0x28] sm:$0xff]  ;;  %v195_v24 = vld [vmem:[%s726_s26 + $0xa0] sm:$0xff]  ;;  %v181_v28 = vld [vmem:[%s726_s26 + $0x30] sm:$0xff] }
  0x14   : > { %v196_v25 = vld [vmem:[%s726_s26 + $0xa8] sm:$0xff]  ;;  %640 = vmatprep.mubr.msk.bf16.mxu1 %vm236_vm2, %v215_v17  ;;  %625 = vmatmul.mubr.msk.bf16.vlgmr.msra.gmra.mrb[0].mxu0 %vm236_vm2, %v208_v18  ;;  %v209_v26 = vpack.c.bf16 %v180_v23, %v179_v21  ;;  %v182_v29 = vld [vmem:[%s726_s26 + $0x38] sm:$0xff]  ;;  %v197_v30 = vld [vmem:[%s726_s26 + $0xb0] sm:$0xff] }
  0x15   : > { %v217_v27 = vpack.c.bf16 %v196_v25, %v195_v24  ;;  %641 = vmatmul.mubr.msk.bf16.vlgmr.msra.gmra.mrb[0].mxu1 %vm236_vm2, %v216_v22  ;;  %v198_v31 = vld [vmem:[%s726_s26 + $0xb8] sm:$0xff]  ;;  %v183_v32 = vld [vmem:[%s726_s26 + $0x40] sm:$0xff]  ;;  %v184_v33 = vld [vmem:[%s726_s26 + $0x48] sm:$0xff]  ;;  %v210_v36 = vpack.c.bf16 %v182_v29, %v181_v28 }
  0x16   : > { %628 = vmatprep.mubr.msk.bf16.mxu0 %vm236_vm2, %v209_v26  ;;  %v199_v34 = vld [vmem:[%s726_s26 + $0xc0] sm:$0xff]  ;;  %v200_v35 = vld [vmem:[%s726_s26 + $0xc8] sm:$0xff]  ;;  %v218_v37 = vpack.c.bf16 %v198_v31, %v197_v30  ;;  %v211_v38 = vpack.c.bf16 %v184_v33, %v183_v32  ;;  %v185_v40 = vld [vmem:[%s726_s26 + $0x50] sm:$0xff] }
  0x17   : > { %644 = vmatprep.mubr.msk.bf16.mxu1 %vm236_vm2, %v217_v27  ;;  %v219_v39 = vpack.c.bf16 %v200_v35, %v199_v34  ;;  %v186_v41 = vld [vmem:[%s726_s26 + $0x58] sm:$0xff]  ;;  %v201_v42 = vld [vmem:[%s726_s26 + $0xd0] sm:$0xff]  ;;  %v187_v44 = vld [vmem:[%s726_s26 + $0x60] sm:$0xff] }
  0x18   : > { %v202_v43 = vld [vmem:[%s726_s26 + $0xd8] sm:$0xff]  ;;  %v188_v45 = vld [vmem:[%s726_s26 + $0x68] sm:$0xff]  ;;  %v203_v46 = vld [vmem:[%s726_s26 + $0xe0] sm:$0xff]  ;;  %v212_v48 = vpack.c.bf16 %v186_v41, %v185_v40 }
  0x19   : > { %v204_v47 = vld [vmem:[%s726_s26 + $0xe8] sm:$0xff]  ;;  %v220_v49 = vpack.c.bf16 %v202_v43, %v201_v42  ;;  %v213_v50 = vpack.c.bf16 %v188_v45, %v187_v44  ;;  %v189_v52 = vld [vmem:[%s726_s26 + $0x70] sm:$0xff]  ;;  %v190_v53 = vld [vmem:[%s726_s26 + $0x78] sm:$0xff] }
  0x1a   : > { %v221_v51 = vpack.c.bf16 %v204_v47, %v203_v46  ;;  %v205_v54 = vld [vmem:[%s726_s26 + $0xf0] sm:$0xff]  ;;  %v206_v55 = vld [vmem:[%s726_s26 + $0xf8] sm:$0xff]  ;;  %v214_v56 = vpack.c.bf16 %v190_v53, %v189_v52 }
  0x1b   : > { %v222_v57 = vpack.c.bf16 %v206_v55, %v205_v54 }
  0x1c   : > { %629 = vmatmul.mubr.msk.bf16.gmra.mrb[4].mxu0 %vm236_vm2, %v210_v36 }
  0x1d   : > { %645 = vmatmul.mubr.msk.bf16.gmra.mrb[4].mxu1 %vm236_vm2, %v218_v37  ;;  %632 = vmatprep.mubr.msk.bf16.mxu0 %vm236_vm2, %v211_v38 }
  0x1e   : > { %648 = vmatprep.mubr.msk.bf16.mxu1 %vm236_vm2, %v219_v39 }
  0x24   : > { %633 = vmatmul.mubr.msk.bf16.gmra.mrb[8].mxu0 %vm236_vm2, %v212_v48 }
  0x25   : > { %649 = vmatmul.mubr.msk.bf16.gmra.mrb[8].mxu1 %vm236_vm2, %v220_v49  ;;  %636 = vmatprep.mubr.msk.bf16.mxu0 %vm236_vm2, %v213_v50 }
  0x26   : > { %652 = vmatprep.mubr.msk.bf16.mxu1 %vm236_vm2, %v221_v51 }
  0x2c   : > { %637 = vmatmul.mubr.msk.bf16.gmra.mrb[12].mxu0 %vm236_vm2, %v214_v56 }
  0x2d   : > { %653 = vmatmul.mubr.msk.bf16.gmra.mrb[12].mxu1 %vm236_vm2, %v222_v57 }
  0xe7   : > { %v626_v59 = vpop.f32.mrb[0].mxu0 }
  0xe8   : > { %v335_v60 = vadd.f32 %v626_v59, %v779_v58  ;;  %v642_v61 = vpop.f32.mrb[0].mxu1  ;;  %v326_v62 = vpop.f32.mrb[1].mxu0 }
  0xe9   : > { %v399_v63 = vadd.f32 %v642_v61, %v779_v58  ;;  %v327_v0 = vadd.f32 %v779_v58, %v326_v62  ;;  %v390_v1 = vpop.f32.mrb[1].mxu1  ;;  %v627_v2 = vpop.f32.mrb[2].mxu0 }
  0xea   : > { %v455_v3 = vmax.f32 %v335_v60, 0.0  ;;  %v391_v4 = vadd.f32 %v779_v58, %v390_v1  ;;  %v338_v5 = vadd.f32 %v627_v2, %v779_v58  ;;  %v643_v6 = vpop.f32.mrb[2].mxu1  ;;  %v329_v7 = vpop.f32.mrb[3].mxu0 }
  0xeb   : > { %v471_v8 = vmax.f32 %v399_v63, 0.0  ;;  %v453_v9 = vmax.f32 %v327_v0, 0.0  ;;  %v402_v10 = vadd.f32 %v643_v6, %v779_v58  ;;  %v330_v11 = vadd.f32 %v779_v58, %v329_v7  ;;  %v393_v12 = vpop.f32.mrb[3].mxu1 }
  0xec   : > { %488 = vst.msk [vmem:[%s787_s4 + $0x10] sm:$0xff] %vm485_vm3, %v455_v3  ;;  %v469_v13 = vmax.f32 %v391_v4, 0.0  ;;  %v456_v14 = vmax.f32 %v338_v5, 0.0  ;;  %v394_v15 = vadd.f32 %v779_v58, %v393_v12 }
  0xed   : > { %504 = vst.msk [vmem:[%s787_s4 + $0x90] sm:$0xff] %vm485_vm3, %v471_v8  ;;  %486 = vst.msk [vmem:[%s787_s4] sm:$0xff] %vm485_vm3, %v453_v9  ;;  %v472_v16 = vmax.f32 %v402_v10, 0.0  ;;  %v454_v17 = vmax.f32 %v330_v11, 0.0 }
  0xee   : > { %502 = vst.msk [vmem:[%s787_s4 + $0x80] sm:$0xff] %vm485_vm3, %v469_v13  ;;  %489 = vst.msk [vmem:[%s787_s4 + $0x18] sm:$0xff] %vm485_vm3, %v456_v14  ;;  %v470_v18 = vmax.f32 %v394_v15, 0.0 }
  0xef   : > { %505 = vst.msk [vmem:[%s787_s4 + $0x98] sm:$0xff] %vm485_vm3, %v472_v16  ;;  %487 = vst.msk [vmem:[%s787_s4 + $0x8] sm:$0xff] %vm485_vm3, %v454_v17  ;;  %v630_v19 = vpop.f32.mrb[4].mxu0 }
  0xf0   : > { %503 = vst.msk [vmem:[%s787_s4 + $0x88] sm:$0xff] %vm485_vm3, %v470_v18  ;;  %v351_v20 = vadd.f32 %v630_v19, %v779_v58  ;;  %v646_v21 = vpop.f32.mrb[4].mxu1  ;;  %v342_v22 = vpop.f32.mrb[5].mxu0 }
  0xf1   : > { %v415_v23 = vadd.f32 %v646_v21, %v779_v58  ;;  %v343_v24 = vadd.f32 %v779_v58, %v342_v22  ;;  %v406_v25 = vpop.f32.mrb[5].mxu1  ;;  %v631_v26 = vpop.f32.mrb[6].mxu0 }
  0xf2   : > { %v459_v27 = vmax.f32 %v351_v20, 0.0  ;;  %v407_v28 = vadd.f32 %v779_v58, %v406_v25  ;;  %v354_v29 = vadd.f32 %v631_v26, %v779_v58  ;;  %v647_v30 = vpop.f32.mrb[6].mxu1  ;;  %v345_v31 = vpop.f32.mrb[7].mxu0 }
  0xf3   : > { %v475_v32 = vmax.f32 %v415_v23, 0.0  ;;  %v457_v33 = vmax.f32 %v343_v24, 0.0  ;;  %v418_v34 = vadd.f32 %v647_v30, %v779_v58  ;;  %v346_v35 = vadd.f32 %v779_v58, %v345_v31  ;;  %v409_v36 = vpop.f32.mrb[7].mxu1 }
  0xf4   : > { %492 = vst.msk [vmem:[%s787_s4 + $0x30] sm:$0xff] %vm485_vm3, %v459_v27  ;;  %v473_v37 = vmax.f32 %v407_v28, 0.0  ;;  %v460_v38 = vmax.f32 %v354_v29, 0.0  ;;  %v410_v39 = vadd.f32 %v779_v58, %v409_v36 }
  0xf5   : > { %508 = vst.msk [vmem:[%s787_s4 + $0xb0] sm:$0xff] %vm485_vm3, %v475_v32  ;;  %490 = vst.msk [vmem:[%s787_s4 + $0x20] sm:$0xff] %vm485_vm3, %v457_v33  ;;  %v476_v40 = vmax.f32 %v418_v34, 0.0  ;;  %v458_v41 = vmax.f32 %v346_v35, 0.0 }
  0xf6   : > { %506 = vst.msk [vmem:[%s787_s4 + $0xa0] sm:$0xff] %vm485_vm3, %v473_v37  ;;  %493 = vst.msk [vmem:[%s787_s4 + $0x38] sm:$0xff] %vm485_vm3, %v460_v38  ;;  %v474_v42 = vmax.f32 %v410_v39, 0.0 }
  0xf7   : > { %509 = vst.msk [vmem:[%s787_s4 + $0xb8] sm:$0xff] %vm485_vm3, %v476_v40  ;;  %491 = vst.msk [vmem:[%s787_s4 + $0x28] sm:$0xff] %vm485_vm3, %v458_v41  ;;  %v634_v43 = vpop.f32.mrb[8].mxu0 }
  0xf8   : > { %507 = vst.msk [vmem:[%s787_s4 + $0xa8] sm:$0xff] %vm485_vm3, %v474_v42  ;;  %v367_v44 = vadd.f32 %v634_v43, %v779_v58  ;;  %v650_v45 = vpop.f32.mrb[8].mxu1  ;;  %v358_v46 = vpop.f32.mrb[9].mxu0 }
  0xf9   : > { %v431_v47 = vadd.f32 %v650_v45, %v779_v58  ;;  %v359_v48 = vadd.f32 %v779_v58, %v358_v46  ;;  %v422_v49 = vpop.f32.mrb[9].mxu1  ;;  %v635_v50 = vpop.f32.mrb[10].mxu0 }
  0xfa   : > { %v463_v51 = vmax.f32 %v367_v44, 0.0  ;;  %v423_v52 = vadd.f32 %v779_v58, %v422_v49  ;;  %v370_v53 = vadd.f32 %v635_v50, %v779_v58  ;;  %v651_v54 = vpop.f32.mrb[10].mxu1  ;;  %v361_v55 = vpop.f32.mrb[11].mxu0 }
  0xfb   : > { %v479_v56 = vmax.f32 %v431_v47, 0.0  ;;  %v461_v57 = vmax.f32 %v359_v48, 0.0  ;;  %v434_v59 = vadd.f32 %v651_v54, %v779_v58  ;;  %v362_v60 = vadd.f32 %v779_v58, %v361_v55  ;;  %v425_v61 = vpop.f32.mrb[11].mxu1 }
  0xfc   : > { %496 = vst.msk [vmem:[%s787_s4 + $0x50] sm:$0xff] %vm485_vm3, %v463_v51  ;;  %v477_v62 = vmax.f32 %v423_v52, 0.0  ;;  %v464_v63 = vmax.f32 %v370_v53, 0.0  ;;  %v426_v0 = vadd.f32 %v779_v58, %v425_v61 }
  0xfd   : > { %512 = vst.msk [vmem:[%s787_s4 + $0xd0] sm:$0xff] %vm485_vm3, %v479_v56  ;;  %494 = vst.msk [vmem:[%s787_s4 + $0x40] sm:$0xff] %vm485_vm3, %v461_v57  ;;  %v480_v1 = vmax.f32 %v434_v59, 0.0  ;;  %v462_v2 = vmax.f32 %v362_v60, 0.0 }
  0xfe   : > { %510 = vst.msk [vmem:[%s787_s4 + $0xc0] sm:$0xff] %vm485_vm3, %v477_v62  ;;  %497 = vst.msk [vmem:[%s787_s4 + $0x58] sm:$0xff] %vm485_vm3, %v464_v63  ;;  %v478_v3 = vmax.f32 %v426_v0, 0.0 }
  0xff   : > { %513 = vst.msk [vmem:[%s787_s4 + $0xd8] sm:$0xff] %vm485_vm3, %v480_v1  ;;  %495 = vst.msk [vmem:[%s787_s4 + $0x48] sm:$0xff] %vm485_vm3, %v462_v2  ;;  %v638_v4 = vpop.f32.mrb[12].mxu0 }
 0x100   : > { %511 = vst.msk [vmem:[%s787_s4 + $0xc8] sm:$0xff] %vm485_vm3, %v478_v3  ;;  %v383_v5 = vadd.f32 %v638_v4, %v779_v58  ;;  %v654_v6 = vpop.f32.mrb[12].mxu1  ;;  %v374_v7 = vpop.f32.mrb[13].mxu0 }
 0x101   : > { %v447_v8 = vadd.f32 %v654_v6, %v779_v58  ;;  %v375_v9 = vadd.f32 %v779_v58, %v374_v7  ;;  %v438_v10 = vpop.f32.mrb[13].mxu1  ;;  %v639_v11 = vpop.f32.mrb[14].mxu0 }
 0x102   : > { %v467_v12 = vmax.f32 %v383_v5, 0.0  ;;  %v439_v13 = vadd.f32 %v779_v58, %v438_v10  ;;  %v386_v14 = vadd.f32 %v639_v11, %v779_v58  ;;  %v655_v15 = vpop.f32.mrb[14].mxu1  ;;  %v377_v16 = vpop.f32.mrb[15].mxu0 }
 0x103   : > { %v483_v17 = vmax.f32 %v447_v8, 0.0  ;;  %v465_v18 = vmax.f32 %v375_v9, 0.0  ;;  %v450_v19 = vadd.f32 %v655_v15, %v779_v58  ;;  %v378_v20 = vadd.f32 %v779_v58, %v377_v16  ;;  %v441_v21 = vpop.f32.mrb[15].mxu1 }
 0x104   : > { %500 = vst.msk [vmem:[%s787_s4 + $0x70] sm:$0xff] %vm485_vm3, %v467_v12  ;;  %v481_v22 = vmax.f32 %v439_v13, 0.0  ;;  %v468_v23 = vmax.f32 %v386_v14, 0.0  ;;  %v442_v24 = vadd.f32 %v779_v58, %v441_v21 }
 0x105   : > { %516 = vst.msk [vmem:[%s787_s4 + $0xf0] sm:$0xff] %vm485_vm3, %v483_v17  ;;  %498 = vst.msk [vmem:[%s787_s4 + $0x60] sm:$0xff] %vm485_vm3, %v465_v18  ;;  %v484_v25 = vmax.f32 %v450_v19, 0.0  ;;  %v466_v26 = vmax.f32 %v378_v20, 0.0 }
 0x106   : > { %514 = vst.msk [vmem:[%s787_s4 + $0xe0] sm:$0xff] %vm485_vm3, %v481_v22  ;;  %501 = vst.msk [vmem:[%s787_s4 + $0x78] sm:$0xff] %vm485_vm3, %v468_v23  ;;  %v482_v27 = vmax.f32 %v442_v24, 0.0 }
 0x107   : > { %517 = vst.msk [vmem:[%s787_s4 + $0xf8] sm:$0xff] %vm485_vm3, %v484_v25  ;;  %499 = vst.msk [vmem:[%s787_s4 + $0x68] sm:$0xff] %vm485_vm3, %v466_v26 }
 0x108   : > { %515 = vst.msk [vmem:[%s787_s4 + $0xe8] sm:$0xff] %vm485_vm3, %v482_v27 }
 0x109 PF: > { %s13_s12 = sadd.s32 1, %s675_s12  }
 0x10a   : > { %p10_p4 = scmp.ge.s32.totalorder %s13_s12, 4  }
 0x10c   :  { %12 = sbr.rel (!%p10_p4) target bundleno = 1 (0x1), region = 62 }

// kernel: detr_forward.16
= control target key start
LH: loop header
LB: loop body
LE: loop exit
PB: predicated region body
PF: predicated region fallthrough
CT: control target
= control target key end

     0   :  { %v284_v0 = vmov 0   ;;  %vm97_vm0 = vcmask 130048   ;;  %vm235_vm1 = vcmask 523264   ;;  %s566_s1 = inlined_call_operand.vmem [shape: f32[144,64], index: 1, kind: input, shape index: {}]   ;;  %s567_s0 = inlined_call_operand.vmem [shape: f32[128,144], index: 0, kind: input, shape index: {}]   ;;  %s568_s2 = inlined_call_operand.vmem [shape: f32[1,64], index: 2, kind: input, shape index: {}]   ;;  %s569_s3 = inlined_call_operand.vmem [shape: f32[128,64], index: 3, kind: output, shape index: {}]  }
   0x1   :  { %122 = vmatprep.subr.bf16.mxu0 %v284_v0  ;;  %265 = vmatprep.subr.bf16.mxu1 %v284_v0  ;;  %v63_v1 = vld [vmem:[%s566_s1] sm:$0xff]  ;;  %v64_v2 = vld [vmem:[%s566_s1 + $0x8] sm:$0xff]  ;;  %v65_v3 = vld [vmem:[%s566_s1 + $0x10] sm:$0xff] }
   0x2   :  { %v81_v4 = vpack.c.bf16 %v64_v2, %v63_v1  ;;  %v66_v5 = vld [vmem:[%s566_s1 + $0x18] sm:$0xff]  ;;  %v67_v7 = vld [vmem:[%s566_s1 + $0x20] sm:$0xff]  ;;  %v68_v8 = vld [vmem:[%s566_s1 + $0x28] sm:$0xff] }
   0x3   :  { %v82_v6 = vpack.c.bf16 %v66_v5, %v65_v3  ;;  %v16_v9 = vld [vmem:[%s567_s0 + $0x8] sm:$0xff]  ;;  %v18_v10 = vld [vmem:[%s567_s0 + $0x18] sm:$0xff]  ;;  %v83_v12 = vpack.c.bf16 %v68_v8, %v67_v7  ;;  %v69_v15 = vld [vmem:[%s566_s1 + $0x30] sm:$0xff] }
   0x4   :  { %123 = vmatpush1.bf16.msra.mxu0 %v81_v4  ;;  %274 = vmatpush1.bf16.msra.mxu1 %v81_v4  ;;  %v32_v11 = vld [vmem:[%s567_s0 + $0x88] sm:$0xff]  ;;  %v48_v13 = vpack.c.bf16 %v18_v10, %v16_v9  ;;  %v34_v14 = vld [vmem:[%s567_s0 + $0x98] sm:$0xff]  ;;  %v71_v19 = vld [vmem:[%s566_s1 + $0x40] sm:$0xff] }
   0x5   :  { %124 = vmatprep.subr.bf16.mxu0 %v284_v0  ;;  %266 = vmatprep.subr.bf16.mxu1 %v284_v0  ;;  %v70_v16 = vld [vmem:[%s566_s1 + $0x38] sm:$0xff]  ;;  %v56_v17 = vpack.c.bf16 %v34_v14, %v32_v11  ;;  %v72_v20 = vld [vmem:[%s566_s1 + $0x48] sm:$0xff]  ;;  %v73_v22 = vld [vmem:[%s566_s1 + $0x50] sm:$0xff] }
   0x6   :  { %257 = vmatprep.mubr.msk.bf16.mxu0 %vm97_vm0, %v48_v13  ;;  %v84_v18 = vpack.c.bf16 %v70_v16, %v69_v15  ;;  %v85_v21 = vpack.c.bf16 %v72_v20, %v71_v19  ;;  %v74_v23 = vld [vmem:[%s566_s1 + $0x58] sm:$0xff]  ;;  %v75_v25 = vld [vmem:[%s566_s1 + $0x60] sm:$0xff]  ;;  %v76_v26 = vld [vmem:[%s566_s1 + $0x68] sm:$0xff] }
   0x7   :  { %261 = vmatprep.mubr.msk.bf16.mxu1 %vm97_vm0, %v56_v17  ;;  %v86_v24 = vpack.c.bf16 %v74_v23, %v73_v22  ;;  %v87_v27 = vpack.c.bf16 %v76_v26, %v75_v25  ;;  %v77_v28 = vld [vmem:[%s566_s1 + $0x70] sm:$0xff]  ;;  %v78_v29 = vld [vmem:[%s566_s1 + $0x78] sm:$0xff]  ;;  %v79_v31 = vld [vmem:[%s566_s1 + $0x80] sm:$0xff] }
   0x8   :  { %125 = vmatpush1.bf16.msra.mxu0 %v82_v6  ;;  %275 = vmatpush1.bf16.msra.mxu1 %v82_v6  ;;  %v88_v30 = vpack.c.bf16 %v78_v29, %v77_v28  ;;  %v80_v32 = vld [vmem:[%s566_s1 + $0x88] sm:$0xff]  ;;  %v15_v33 = vld [vmem:[%s567_s0] sm:$0xff]  ;;  %v17_v34 = vld [vmem:[%s567_s0 + $0x10] sm:$0xff] }
   0x9   :  { %126 = vmatprep.subr.bf16.mxu0 %v284_v0  ;;  %267 = vmatprep.subr.bf16.mxu1 %v284_v0  ;;  %v89_v35 = vpack.c.bf16 %v80_v32, %v79_v31  ;;  %v31_v36 = vld [vmem:[%s567_s0 + $0x80] sm:$0xff]  ;;  %v33_v37 = vld [vmem:[%s567_s0 + $0x90] sm:$0xff]  ;;  %v20_v38 = vld [vmem:[%s567_s0 + $0x28] sm:$0xff]  ;;  %v47_v42 = vpack.c.bf16 %v17_v34, %v15_v33 }
   0xa   :  { %v22_v39 = vld [vmem:[%s567_s0 + $0x38] sm:$0xff]  ;;  %v36_v40 = vld [vmem:[%s567_s0 + $0xa8] sm:$0xff]  ;;  %v55_v43 = vpack.c.bf16 %v33_v37, %v31_v36  ;;  %v19_v46 = vld [vmem:[%s567_s0 + $0x20] sm:$0xff] }
   0xb   :  { %v38_v41 = vld [vmem:[%s567_s0 + $0xb8] sm:$0xff]  ;;  %v50_v44 = vpack.c.bf16 %v22_v39, %v20_v38  ;;  %v21_v47 = vld [vmem:[%s567_s0 + $0x30] sm:$0xff]  ;;  %v35_v48 = vld [vmem:[%s567_s0 + $0xa0] sm:$0xff] }
   0xc   :  { %127 = vmatpush1.bf16.msra.mxu0 %v83_v12  ;;  %276 = vmatpush1.bf16.msra.mxu1 %v83_v12  ;;  %v58_v45 = vpack.c.bf16 %v38_v41, %v36_v40  ;;  %v37_v49 = vld [vmem:[%s567_s0 + $0xb0] sm:$0xff]  ;;  %v24_v50 = vld [vmem:[%s567_s0 + $0x48] sm:$0xff]  ;;  %v26_v51 = vld [vmem:[%s567_s0 + $0x58] sm:$0xff]  ;;  %v49_v54 = vpack.c.bf16 %v21_v47, %v19_v46 }
   0xd   :  { %128 = vmatprep.subr.bf16.mxu0 %v284_v0  ;;  %268 = vmatprep.subr.bf16.mxu1 %v284_v0  ;;  %v40_v52 = vld [vmem:[%s567_s0 + $0xc8] sm:$0xff]  ;;  %v42_v53 = vld [vmem:[%s567_s0 + $0xd8] sm:$0xff]  ;;  %v57_v55 = vpack.c.bf16 %v37_v49, %v35_v48  ;;  %v52_v56 = vpack.c.bf16 %v26_v51, %v24_v50  ;;  %v23_v58 = vld [vmem:[%s567_s0 + $0x40] sm:$0xff] }
   0xe   :  { %v60_v57 = vpack.c.bf16 %v42_v53, %v40_v52  ;;  %v25_v59 = vld [vmem:[%s567_s0 + $0x50] sm:$0xff]  ;;  %v39_v60 = vld [vmem:[%s567_s0 + $0xc0] sm:$0xff]  ;;  %v28_v62 = vld [vmem:[%s567_s0 + $0x68] sm:$0xff] }
   0xf   :  { %v41_v61 = vld [vmem:[%s567_s0 + $0xd0] sm:$0xff]  ;;  %v30_v63 = vld [vmem:[%s567_s0 + $0x78] sm:$0xff]  ;;  %v51_v2 = vpack.c.bf16 %v25_v59, %v23_v58  ;;  %v27_v6 = vld [vmem:[%s567_s0 + $0x60] sm:$0xff] }
  0x10   :  { %129 = vmatpush1.bf16.msra.mxu0 %v84_v18  ;;  %277 = vmatpush1.bf16.msra.mxu1 %v84_v18  ;;  %v46_v1 = vld [vmem:[%s567_s0 + $0xf8] sm:$0xff]  ;;  %v59_v3 = vpack.c.bf16 %v41_v61, %v39_v60  ;;  %v54_v4 = vpack.c.bf16 %v30_v63, %v28_v62  ;;  %v29_v7 = vld [vmem:[%s567_s0 + $0x70] sm:$0xff]  ;;  %v43_v8 = vld [vmem:[%s567_s0 + $0xe0] sm:$0xff] }
  0x11   :  { %130 = vmatprep.subr.bf16.mxu0 %v284_v0  ;;  %269 = vmatprep.subr.bf16.mxu1 %v284_v0  ;;  %v45_v9 = vld [vmem:[%s567_s0 + $0xf0] sm:$0xff]  ;;  %v53_v10 = vpack.c.bf16 %v29_v7, %v27_v6  ;;  %v484_v12 = vld [vmem:[%s568_s2] ss:$0 sm:$0xff] }
  0x12   :  { %v61_v11 = vpack.c.bf16 %v45_v9, %v43_v8 }
  0x14   :  { %131 = vmatpush1.bf16.msra.mxu0 %v85_v21  ;;  %278 = vmatpush1.bf16.msra.mxu1 %v85_v21 }
  0x15   :  { %132 = vmatprep.subr.bf16.mxu0 %v284_v0  ;;  %270 = vmatprep.subr.bf16.mxu1 %v284_v0 }
  0x18   :  { %133 = vmatpush1.bf16.msra.mxu0 %v86_v24  ;;  %279 = vmatpush1.bf16.msra.mxu1 %v86_v24 }
  0x19   :  { %134 = vmatprep.subr.bf16.mxu0 %v284_v0  ;;  %271 = vmatprep.subr.bf16.mxu1 %v284_v0 }
  0x1c   :  { %135 = vmatpush1.bf16.msra.mxu0 %v87_v27  ;;  %280 = vmatpush1.bf16.msra.mxu1 %v87_v27 }
  0x1d   :  { %136 = vmatprep.subr.bf16.mxu0 %v284_v0  ;;  %272 = vmatprep.subr.bf16.mxu1 %v284_v0 }
  0x20   :  { %137 = vmatpush1.bf16.msra.mxu0 %v88_v30  ;;  %281 = vmatpush1.bf16.msra.mxu1 %v88_v30 }
  0x21   :  { %138 = vmatprep.subr.bf16.mxu0 %v284_v0  ;;  %273 = vmatprep.subr.bf16.mxu1 %v284_v0  ;;  %v44_v0 = vld [vmem:[%s567_s0 + $0xe8] sm:$0xff] }
  0x22   :  { %v62_v5 = vpack.c.bf16 %v46_v1, %v44_v0 }
  0x24   :  { %139 = vmatpush1.bf16.msra.mxu0 %v89_v35  ;;  %282 = vmatpush1.bf16.msra.mxu1 %v89_v35 }
  0x27   :  { %155 = vmatmul.mubr.bf16.vlgmr.msra.gmra.mrb[0].mxu0 %v47_v42  ;;  %187 = vmatmul.mubr.bf16.vlgmr.msra.gmra.mrb[0].mxu1 %v55_v43 }
  0x28   :  { %258 = vmatprep.mubr.msk.bf16.mxu0 %vm97_vm0, %v50_v44  ;;  %262 = vmatprep.mubr.msk.bf16.mxu1 %vm97_vm0, %v58_v45 }
  0x2f   :  { %163 = vmatmul.mubr.bf16.gmra.mrb[4].mxu0 %v49_v54  ;;  %195 = vmatmul.mubr.bf16.gmra.mrb[4].mxu1 %v57_v55 }
  0x30   :  { %259 = vmatprep.mubr.msk.bf16.mxu0 %vm97_vm0, %v52_v56  ;;  %263 = vmatprep.mubr.msk.bf16.mxu1 %vm97_vm0, %v60_v57 }
  0x37   :  { %171 = vmatmul.mubr.bf16.gmra.mrb[8].mxu0 %v51_v2  ;;  %203 = vmatmul.mubr.bf16.gmra.mrb[8].mxu1 %v59_v3 }
  0x38   :  { %260 = vmatprep.mubr.msk.bf16.mxu0 %vm97_vm0, %v54_v4  ;;  %264 = vmatprep.mubr.msk.bf16.mxu1 %vm97_vm0, %v62_v5 }
  0x3f   :  { %179 = vmatmul.mubr.bf16.gmra.mrb[12].mxu0 %v53_v10  ;;  %211 = vmatmul.mubr.bf16.gmra.mrb[12].mxu1 %v61_v11 }
  0xfa   :  { %v156_v13 = vpop.f32.mrb[0].mxu0  ;;  %v188_v14 = vpop.f32.mrb[0].mxu1 }
  0xfb   :  { %v157_v15 = vadd.f32 %v484_v12, %v156_v13  ;;  %v189_v16 = vadd.f32 %v484_v12, %v188_v14  ;;  %v158_v17 = vpop.f32.mrb[1].mxu0  ;;  %v190_v18 = vpop.f32.mrb[1].mxu1 }
  0xfc   :  { %v159_v19 = vpop.f32.mrb[2].mxu0  ;;  %v191_v20 = vpop.f32.mrb[2].mxu1 }
  0xfd   :  { %v219_v21 = vmax.f32 %v157_v15, 0.0  ;;  %v227_v22 = vmax.f32 %v189_v16, 0.0  ;;  %v160_v23 = vadd.f32 %v484_v12, %v159_v19  ;;  %v192_v24 = vadd.f32 %v484_v12, %v191_v20  ;;  %v161_v25 = vpop.f32.mrb[3].mxu0  ;;  %v193_v26 = vpop.f32.mrb[3].mxu1 }
  0xff   :  { %236 = vst.msk [vmem:[%s569_s3] sm:$0xff] %vm235_vm1, %v219_v21  ;;  %244 = vst.msk [vmem:[%s569_s3 + $0x40] sm:$0xff] %vm235_vm1, %v227_v22  ;;  %v220_v27 = vmax.f32 %v160_v23, 0.0  ;;  %v228_v28 = vmax.f32 %v192_v24, 0.0 }
 0x101   :  { %237 = vst.msk [vmem:[%s569_s3 + $0x8] sm:$0xff] %vm235_vm1, %v220_v27  ;;  %245 = vst.msk [vmem:[%s569_s3 + $0x48] sm:$0xff] %vm235_vm1, %v228_v28 }
 0x102   :  { %v164_v29 = vpop.f32.mrb[4].mxu0  ;;  %v196_v30 = vpop.f32.mrb[4].mxu1 }
 0x103   :  { %v165_v31 = vadd.f32 %v484_v12, %v164_v29  ;;  %v197_v32 = vadd.f32 %v484_v12, %v196_v30  ;;  %v166_v33 = vpop.f32.mrb[5].mxu0  ;;  %v198_v34 = vpop.f32.mrb[5].mxu1 }
 0x104   :  { %v167_v35 = vpop.f32.mrb[6].mxu0  ;;  %v199_v36 = vpop.f32.mrb[6].mxu1 }
 0x105   :  { %v221_v37 = vmax.f32 %v165_v31, 0.0  ;;  %v229_v38 = vmax.f32 %v197_v32, 0.0  ;;  %v168_v39 = vadd.f32 %v484_v12, %v167_v35  ;;  %v200_v40 = vadd.f32 %v484_v12, %v199_v36  ;;  %v169_v41 = vpop.f32.mrb[7].mxu0  ;;  %v201_v42 = vpop.f32.mrb[7].mxu1 }
 0x107   :  { %238 = vst.msk [vmem:[%s569_s3 + $0x10] sm:$0xff] %vm235_vm1, %v221_v37  ;;  %246 = vst.msk [vmem:[%s569_s3 + $0x50] sm:$0xff] %vm235_vm1, %v229_v38  ;;  %v222_v43 = vmax.f32 %v168_v39, 0.0  ;;  %v230_v44 = vmax.f32 %v200_v40, 0.0 }
 0x109   :  { %239 = vst.msk [vmem:[%s569_s3 + $0x18] sm:$0xff] %vm235_vm1, %v222_v43  ;;  %247 = vst.msk [vmem:[%s569_s3 + $0x58] sm:$0xff] %vm235_vm1, %v230_v44 }
 0x10a   :  { %v172_v45 = vpop.f32.mrb[8].mxu0  ;;  %v204_v46 = vpop.f32.mrb[8].mxu1 }
 0x10b   :  { %v173_v47 = vadd.f32 %v484_v12, %v172_v45  ;;  %v205_v48 = vadd.f32 %v484_v12, %v204_v46  ;;  %v174_v49 = vpop.f32.mrb[9].mxu0  ;;  %v206_v50 = vpop.f32.mrb[9].mxu1 }
 0x10c   :  { %v175_v51 = vpop.f32.mrb[10].mxu0  ;;  %v207_v52 = vpop.f32.mrb[10].mxu1 }
 0x10d   :  { %v223_v53 = vmax.f32 %v173_v47, 0.0  ;;  %v231_v54 = vmax.f32 %v205_v48, 0.0  ;;  %v176_v55 = vadd.f32 %v484_v12, %v175_v51  ;;  %v208_v56 = vadd.f32 %v484_v12, %v207_v52  ;;  %v177_v57 = vpop.f32.mrb[11].mxu0  ;;  %v209_v58 = vpop.f32.mrb[11].mxu1 }
 0x10f   :  { %240 = vst.msk [vmem:[%s569_s3 + $0x20] sm:$0xff] %vm235_vm1, %v223_v53  ;;  %248 = vst.msk [vmem:[%s569_s3 + $0x60] sm:$0xff] %vm235_vm1, %v231_v54  ;;  %v224_v59 = vmax.f32 %v176_v55, 0.0  ;;  %v232_v60 = vmax.f32 %v208_v56, 0.0 }
 0x111   :  { %241 = vst.msk [vmem:[%s569_s3 + $0x28] sm:$0xff] %vm235_vm1, %v224_v59  ;;  %249 = vst.msk [vmem:[%s569_s3 + $0x68] sm:$0xff] %vm235_vm1, %v232_v60 }
 0x112   :  { %v180_v61 = vpop.f32.mrb[12].mxu0  ;;  %v212_v62 = vpop.f32.mrb[12].mxu1 }
 0x113   :  { %v181_v63 = vadd.f32 %v484_v12, %v180_v61  ;;  %v213_v0 = vadd.f32 %v484_v12, %v212_v62  ;;  %v182_v1 = vpop.f32.mrb[13].mxu0  ;;  %v214_v2 = vpop.f32.mrb[13].mxu1 }
 0x114   :  { %v183_v3 = vpop.f32.mrb[14].mxu0  ;;  %v215_v4 = vpop.f32.mrb[14].mxu1 }
 0x115   :  { %v225_v5 = vmax.f32 %v181_v63, 0.0  ;;  %v233_v6 = vmax.f32 %v213_v0, 0.0  ;;  %v184_v7 = vadd.f32 %v484_v12, %v183_v3  ;;  %v216_v8 = vadd.f32 %v484_v12, %v215_v4  ;;  %v185_v9 = vpop.f32.mrb[15].mxu0  ;;  %v217_v10 = vpop.f32.mrb[15].mxu1 }
 0x117   :  { %242 = vst.msk [vmem:[%s569_s3 + $0x30] sm:$0xff] %vm235_vm1, %v225_v5  ;;  %250 = vst.msk [vmem:[%s569_s3 + $0x70] sm:$0xff] %vm235_vm1, %v233_v6  ;;  %v226_v11 = vmax.f32 %v184_v7, 0.0  ;;  %v234_v13 = vmax.f32 %v216_v8, 0.0 }
 0x119   :  { %243 = vst.msk [vmem:[%s569_s3 + $0x38] sm:$0xff] %vm235_vm1, %v226_v11  ;;  %251 = vst.msk [vmem:[%s569_s3 + $0x78] sm:$0xff] %vm235_vm1, %v234_v13 }

// kernel: detr_forward.17
= control target key start
LH: loop header
LB: loop body
LE: loop exit
PB: predicated region body
PF: predicated region fallthrough
CT: control target
= control target key end

     0   :  { %vm58_vm0 = vcmask 523264   ;;  %vm180_vm1 = vcmask 261120   ;;  %s421_s1 = inlined_call_operand.vmem [shape: f32[64,32], index: 1, kind: input, shape index: {}]   ;;  %s422_s0 = inlined_call_operand.vmem [shape: f32[128,64], index: 0, kind: input, shape index: {}]   ;;  %s423_s2 = inlined_call_operand.vmem [shape: f32[1,32], index: 2, kind: input, shape index: {}]   ;;  %s424_s3 = inlined_call_operand.vmem [shape: f32[128,32], index: 3, kind: output, shape index: {}]  }
   0x1   :  { %v39_v0 = vld [vmem:[%s421_s1] sm:$0xff]  ;;  %v40_v1 = vld [vmem:[%s421_s1 + $0x8] sm:$0xff]  ;;  %v41_v2 = vld [vmem:[%s421_s1 + $0x10] sm:$0xff] }
   0x2   :  { %v47_v3 = vpack.c.bf16 %v40_v1, %v39_v0  ;;  %v42_v4 = vld [vmem:[%s421_s1 + $0x18] sm:$0xff]  ;;  %v43_v6 = vld [vmem:[%s421_s1 + $0x20] sm:$0xff]  ;;  %v44_v7 = vld [vmem:[%s421_s1 + $0x28] sm:$0xff] }
   0x3   :  { %v48_v5 = vpack.c.bf16 %v42_v4, %v41_v2  ;;  %v15_v8 = vld [vmem:[%s422_s0] sm:$0xff]  ;;  %v16_v9 = vld [vmem:[%s422_s0 + $0x8] sm:$0xff]  ;;  %v49_v14 = vpack.c.bf16 %v44_v7, %v43_v6  ;;  %v45_v15 = vld [vmem:[%s421_s1 + $0x30] sm:$0xff] }
   0x4   :  { %222 = vmatprep.subr.bf16.mxu0 %v47_v3  ;;  %246 = vmatprep.subr.bf16.mxu1 %v47_v3  ;;  %v23_v10 = vld [vmem:[%s422_s0 + $0x40] sm:$0xff]  ;;  %v24_v11 = vld [vmem:[%s422_s0 + $0x48] sm:$0xff]  ;;  %v31_v12 = vpack.c.bf16 %v16_v9, %v15_v8  ;;  %v46_v16 = vld [vmem:[%s421_s1 + $0x38] sm:$0xff] }
   0x5   :  { %223 = vmatpush3.bf16.msra.mxu0 %v47_v3  ;;  %250 = vmatpush3.bf16.msra.mxu1 %v47_v3  ;;  %v35_v13 = vpack.c.bf16 %v24_v11, %v23_v10  ;;  %v50_v17 = vpack.c.bf16 %v46_v16, %v45_v15  ;;  %v17_v18 = vld [vmem:[%s422_s0 + $0x10] sm:$0xff]  ;;  %v18_v19 = vld [vmem:[%s422_s0 + $0x18] sm:$0xff]  ;;  %v19_v22 = vld [vmem:[%s422_s0 + $0x20] sm:$0xff] }
   0x6   :  { %224 = vmatprep.subr.bf16.mxu0 %v48_v5  ;;  %247 = vmatprep.subr.bf16.mxu1 %v48_v5  ;;  %v25_v20 = vld [vmem:[%s422_s0 + $0x50] sm:$0xff]  ;;  %v26_v21 = vld [vmem:[%s422_s0 + $0x58] sm:$0xff]  ;;  %v20_v23 = vld [vmem:[%s422_s0 + $0x28] sm:$0xff]  ;;  %v32_v26 = vpack.c.bf16 %v18_v19, %v17_v18 }
   0x7   :  { %230 = vmatprep.mubr.msk.bf16.mxu0 %vm58_vm0, %v31_v12  ;;  %238 = vmatprep.mubr.msk.bf16.mxu1 %vm58_vm0, %v35_v13  ;;  %v27_v24 = vld [vmem:[%s422_s0 + $0x60] sm:$0xff]  ;;  %v28_v25 = vld [vmem:[%s422_s0 + $0x68] sm:$0xff]  ;;  %v36_v27 = vpack.c.bf16 %v26_v21, %v25_v20  ;;  %v33_v28 = vpack.c.bf16 %v20_v23, %v19_v22  ;;  %v21_v30 = vld [vmem:[%s422_s0 + $0x30] sm:$0xff] }
   0x8   :  { %v37_v29 = vpack.c.bf16 %v28_v25, %v27_v24  ;;  %v22_v31 = vld [vmem:[%s422_s0 + $0x38] sm:$0xff]  ;;  %v29_v32 = vld [vmem:[%s422_s0 + $0x70] sm:$0xff]  ;;  %v201_v36 = vld [vmem:[%s423_s2] ss:$0 sm:$0xff] }
   0x9   :  { %225 = vmatpush3.bf16.msra.mxu0 %v48_v5  ;;  %251 = vmatpush3.bf16.msra.mxu1 %v48_v5  ;;  %v30_v33 = vld [vmem:[%s422_s0 + $0x78] sm:$0xff]  ;;  %v34_v34 = vpack.c.bf16 %v22_v31, %v21_v30 }
   0xa   :  { %226 = vmatprep.subr.bf16.mxu0 %v49_v14  ;;  %248 = vmatprep.subr.bf16.mxu1 %v49_v14  ;;  %v38_v35 = vpack.c.bf16 %v30_v33, %v29_v32 }
   0xd   :  { %227 = vmatpush3.bf16.msra.mxu0 %v49_v14  ;;  %252 = vmatpush3.bf16.msra.mxu1 %v49_v14 }
   0xe   :  { %228 = vmatprep.subr.bf16.mxu0 %v50_v17  ;;  %249 = vmatprep.subr.bf16.mxu1 %v50_v17 }
  0x11   :  { %229 = vmatpush3.bf16.msra.mxu0 %v50_v17  ;;  %253 = vmatpush3.bf16.msra.mxu1 %v50_v17 }
  0x14   :  { %231 = vmatmul.mubr.msk.bf16.vlgmr.msra.gmra.mrb[0].mxu0 %vm58_vm0, %v32_v26  ;;  %239 = vmatmul.mubr.msk.bf16.vlgmr.msra.gmra.mrb[0].mxu1 %vm58_vm0, %v36_v27 }
  0x15   :  { %234 = vmatprep.mubr.msk.bf16.mxu0 %vm58_vm0, %v33_v28  ;;  %242 = vmatprep.mubr.msk.bf16.mxu1 %vm58_vm0, %v37_v29 }
  0x1c   :  { %235 = vmatmul.mubr.msk.bf16.gmra.mrb[4].mxu0 %vm58_vm0, %v34_v34  ;;  %243 = vmatmul.mubr.msk.bf16.gmra.mrb[4].mxu1 %vm58_vm0, %v38_v35 }
  0xe7   :  { %v232_v37 = vpop.f32.mrb[0].mxu0  ;;  %v240_v38 = vpop.f32.mrb[0].mxu1 }
  0xe8   :  { %v126_v39 = vadd.f32 %v232_v37, %v201_v36  ;;  %v158_v40 = vadd.f32 %v240_v38, %v201_v36  ;;  %v117_v41 = vpop.f32.mrb[1].mxu0  ;;  %v149_v42 = vpop.f32.mrb[1].mxu1 }
  0xe9   :  { %v118_v43 = vadd.f32 %v201_v36, %v117_v41  ;;  %v150_v44 = vadd.f32 %v201_v36, %v149_v42  ;;  %v233_v45 = vpop.f32.mrb[2].mxu0  ;;  %v241_v46 = vpop.f32.mrb[2].mxu1 }
  0xea   :  { %183 = vst.msk [vmem:[%s424_s3 + $0x10] sm:$0xff] %vm180_vm1, %v126_v39  ;;  %191 = vst.msk [vmem:[%s424_s3 + $0x50] sm:$0xff] %vm180_vm1, %v158_v40  ;;  %v129_v47 = vadd.f32 %v233_v45, %v201_v36  ;;  %v161_v48 = vadd.f32 %v241_v46, %v201_v36  ;;  %v120_v49 = vpop.f32.mrb[3].mxu0  ;;  %v152_v50 = vpop.f32.mrb[3].mxu1 }
  0xeb   :  { %181 = vst.msk [vmem:[%s424_s3] sm:$0xff] %vm180_vm1, %v118_v43  ;;  %189 = vst.msk [vmem:[%s424_s3 + $0x40] sm:$0xff] %vm180_vm1, %v150_v44  ;;  %v121_v51 = vadd.f32 %v201_v36, %v120_v49  ;;  %v153_v52 = vadd.f32 %v201_v36, %v152_v50 }
  0xec   :  { %184 = vst.msk [vmem:[%s424_s3 + $0x18] sm:$0xff] %vm180_vm1, %v129_v47  ;;  %192 = vst.msk [vmem:[%s424_s3 + $0x58] sm:$0xff] %vm180_vm1, %v161_v48 }
  0xed   :  { %182 = vst.msk [vmem:[%s424_s3 + $0x8] sm:$0xff] %vm180_vm1, %v121_v51  ;;  %190 = vst.msk [vmem:[%s424_s3 + $0x48] sm:$0xff] %vm180_vm1, %v153_v52 }
  0xef   :  { %v236_v53 = vpop.f32.mrb[4].mxu0  ;;  %v244_v54 = vpop.f32.mrb[4].mxu1 }
  0xf0   :  { %v142_v55 = vadd.f32 %v236_v53, %v201_v36  ;;  %v174_v56 = vadd.f32 %v244_v54, %v201_v36  ;;  %v133_v57 = vpop.f32.mrb[5].mxu0  ;;  %v165_v58 = vpop.f32.mrb[5].mxu1 }
  0xf1   :  { %v134_v59 = vadd.f32 %v201_v36, %v133_v57  ;;  %v166_v60 = vadd.f32 %v201_v36, %v165_v58  ;;  %v237_v61 = vpop.f32.mrb[6].mxu0  ;;  %v245_v62 = vpop.f32.mrb[6].mxu1 }
  0xf2   :  { %187 = vst.msk [vmem:[%s424_s3 + $0x30] sm:$0xff] %vm180_vm1, %v142_v55  ;;  %195 = vst.msk [vmem:[%s424_s3 + $0x70] sm:$0xff] %vm180_vm1, %v174_v56  ;;  %v145_v63 = vadd.f32 %v237_v61, %v201_v36  ;;  %v177_v0 = vadd.f32 %v245_v62, %v201_v36  ;;  %v136_v1 = vpop.f32.mrb[7].mxu0  ;;  %v168_v2 = vpop.f32.mrb[7].mxu1 }
  0xf3   :  { %185 = vst.msk [vmem:[%s424_s3 + $0x20] sm:$0xff] %vm180_vm1, %v134_v59  ;;  %193 = vst.msk [vmem:[%s424_s3 + $0x60] sm:$0xff] %vm180_vm1, %v166_v60  ;;  %v137_v3 = vadd.f32 %v201_v36, %v136_v1  ;;  %v169_v4 = vadd.f32 %v201_v36, %v168_v2 }
  0xf4   :  { %188 = vst.msk [vmem:[%s424_s3 + $0x38] sm:$0xff] %vm180_vm1, %v145_v63  ;;  %196 = vst.msk [vmem:[%s424_s3 + $0x78] sm:$0xff] %vm180_vm1, %v177_v0 }
  0xf5   :  { %186 = vst.msk [vmem:[%s424_s3 + $0x28] sm:$0xff] %vm180_vm1, %v137_v3  ;;  %194 = vst.msk [vmem:[%s424_s3 + $0x68] sm:$0xff] %vm180_vm1, %v169_v4 }

// kernel: detr_forward.19
= control target key start
LH: loop header
LB: loop body
LE: loop exit
PB: predicated region body
PF: predicated region fallthrough
CT: control target
= control target key end

     0   :  { %vm64_vm0 = vcmask 261120   ;;  %vm229_vm1 = vcmask 523264   ;;  %s1270_s1 = inlined_call_operand.vmem [shape: f32[32,64], index: 1, kind: input, shape index: {}]   ;;  %s1271_s0 = inlined_call_operand.vmem [shape: f32[128,32], index: 0, kind: input, shape index: {}]   ;;  %s1272_s3 = inlined_call_operand.vmem [shape: f32[64,32], index: 3, kind: input, shape index: {}]   ;;  %s1273_s2 = inlined_call_operand.vmem [shape: f32[1,64], index: 2, kind: input, shape index: {}]   ;;  %s1274_s4 = inlined_call_operand.vmem [shape: f32[1,32], index: 4, kind: input, shape index: {}]   ;;  %s1275_s5 = inlined_call_operand.vmem [shape: f32[1,32], index: 5, kind: input, shape index: {}]   ;;  %s1276_s6 = inlined_call_operand.vmem [shape: f32[1,32], index: 6, kind: input, shape index: {}]   ;;  %s1277_s7 = inlined_call_operand.vmem [shape: f32[128,32], index: 7, kind: output, shape index: {}]  }
   0x1   :  { %v51_v0 = vld [vmem:[%s1270_s1] sm:$0xff]  ;;  %v52_v1 = vld [vmem:[%s1270_s1 + $0x8] sm:$0xff]  ;;  %v53_v2 = vld [vmem:[%s1270_s1 + $0x10] sm:$0xff] }
   0x2   :  { %v55_v3 = vpack.c.bf16 %v52_v1, %v51_v0  ;;  %v54_v4 = vld [vmem:[%s1270_s1 + $0x18] sm:$0xff]  ;;  %v815_v5 = vld [vmem:[%s1271_s0] sm:$0xff]  ;;  %v820_v6 = vld [vmem:[%s1271_s0 + $0x8] sm:$0xff] }
   0x3   :  { %v56_v7 = vpack.c.bf16 %v54_v4, %v53_v2  ;;  %v43_v8 = vpack.c.bf16 %v820_v6, %v815_v5  ;;  %v828_v9 = vld [vmem:[%s1271_s0 + $0x10] sm:$0xff]  ;;  %v833_v10 = vld [vmem:[%s1271_s0 + $0x18] sm:$0xff]  ;;  %v838_v11 = vld [vmem:[%s1271_s0 + $0x20] sm:$0xff] }
   0x4   :  { %684 = vmatprep.subr.bf16.mxu0 %v55_v3  ;;  %v843_v12 = vld [vmem:[%s1271_s0 + $0x28] sm:$0xff]  ;;  %v210_v13 = vld [vmem:[%s1272_s3] sm:$0xff]  ;;  %v44_v14 = vpack.c.bf16 %v833_v10, %v828_v9  ;;  %v212_v16 = vld [vmem:[%s1272_s3 + $0x10] sm:$0xff] }
   0x5   :  { %685 = vmatpush3.bf16.msra.mxu0 %v55_v3  ;;  %688 = vmatprep.mubr.msk.bf16.mxu0 %vm64_vm0, %v43_v8  ;;  %v211_v15 = vld [vmem:[%s1272_s3 + $0x8] sm:$0xff]  ;;  %v213_v17 = vld [vmem:[%s1272_s3 + $0x18] sm:$0xff]  ;;  %v45_v18 = vpack.c.bf16 %v843_v12, %v838_v11  ;;  %v866_v21 = vld [vmem:[%s1271_s0 + $0x30] sm:$0xff] }
   0x6   :  { %686 = vmatprep.subr.bf16.mxu0 %v56_v7  ;;  %v218_v19 = vpack.c.bf16 %v211_v15, %v210_v13  ;;  %v219_v20 = vpack.c.bf16 %v213_v17, %v212_v16  ;;  %v871_v22 = vld [vmem:[%s1271_s0 + $0x38] sm:$0xff]  ;;  %v876_v23 = vld [vmem:[%s1271_s0 + $0x40] sm:$0xff]  ;;  %v881_v24 = vld [vmem:[%s1271_s0 + $0x48] sm:$0xff] }
   0x7   :  { %v46_v25 = vpack.c.bf16 %v871_v22, %v866_v21  ;;  %v47_v26 = vpack.c.bf16 %v881_v24, %v876_v23  ;;  %v892_v27 = vld [vmem:[%s1271_s0 + $0x50] sm:$0xff]  ;;  %v897_v28 = vld [vmem:[%s1271_s0 + $0x58] sm:$0xff]  ;;  %v902_v29 = vld [vmem:[%s1271_s0 + $0x60] sm:$0xff] }
   0x8   :  { %704 = vmatprep.subr.bf16.mxu1 %v218_v19  ;;  %v907_v30 = vld [vmem:[%s1271_s0 + $0x68] sm:$0xff]  ;;  %v48_v31 = vpack.c.bf16 %v897_v28, %v892_v27  ;;  %v918_v33 = vld [vmem:[%s1271_s0 + $0x70] sm:$0xff]  ;;  %v923_v34 = vld [vmem:[%s1271_s0 + $0x78] sm:$0xff] }
   0x9   :  { %687 = vmatpush3.bf16.msra.mxu0 %v56_v7  ;;  %705 = vmatpush3.bf16.msra.mxu1 %v218_v19  ;;  %v49_v32 = vpack.c.bf16 %v907_v30, %v902_v29  ;;  %v50_v35 = vpack.c.bf16 %v923_v34, %v918_v33  ;;  %v214_v36 = vld [vmem:[%s1272_s3 + $0x20] sm:$0xff]  ;;  %v215_v37 = vld [vmem:[%s1272_s3 + $0x28] sm:$0xff]  ;;  %v216_v39 = vld [vmem:[%s1272_s3 + $0x30] sm:$0xff] }
   0xa   :  { %706 = vmatprep.subr.bf16.mxu1 %v219_v20  ;;  %v220_v38 = vpack.c.bf16 %v215_v37, %v214_v36  ;;  %v217_v40 = vld [vmem:[%s1272_s3 + $0x38] sm:$0xff]  ;;  %v642_v42 = vld [vmem:[%s1273_s2] ss:$0 sm:$0xff] }
   0xb   :  { %v221_v41 = vpack.c.bf16 %v217_v40, %v216_v39 }
   0xc   :  { %689 = vmatmul.mubr.msk.bf16.vlgmr.msra.gmra.mrb[0].mxu0 %vm64_vm0, %v44_v14 }
   0xd   :  { %692 = vmatprep.mubr.msk.bf16.mxu0 %vm64_vm0, %v45_v18  ;;  %707 = vmatpush3.bf16.msra.mxu1 %v219_v20 }
   0xe   :  { %708 = vmatprep.subr.bf16.mxu1 %v220_v38 }
  0x11   :  { %709 = vmatpush3.bf16.msra.mxu1 %v220_v38 }
  0x12   :  { %710 = vmatprep.subr.bf16.mxu1 %v221_v41 }
  0x14   :  { %693 = vmatmul.mubr.msk.bf16.gmra.mrb[4].mxu0 %vm64_vm0, %v46_v25 }
  0x15   :  { %696 = vmatprep.mubr.msk.bf16.mxu0 %vm64_vm0, %v47_v26  ;;  %711 = vmatpush3.bf16.msra.mxu1 %v221_v41 }
  0x1c   :  { %697 = vmatmul.mubr.msk.bf16.gmra.mrb[8].mxu0 %vm64_vm0, %v48_v31 }
  0x1d   :  { %700 = vmatprep.mubr.msk.bf16.mxu0 %vm64_vm0, %v49_v32 }
  0x24   :  { %701 = vmatmul.mubr.msk.bf16.gmra.mrb[12].mxu0 %vm64_vm0, %v50_v35 }
  0xdf   :  { %v690_v43 = vpop.f32.mrb[0].mxu0 }
  0xe0   :  { %v132_v44 = vadd.f32 %v690_v43, %v642_v42  ;;  %v123_v45 = vpop.f32.mrb[1].mxu0 }
  0xe1   :  { %v124_v46 = vadd.f32 %v642_v42, %v123_v45  ;;  %v691_v47 = vpop.f32.mrb[2].mxu0 }
  0xe2   :  { %v135_v48 = vadd.f32 %v691_v47, %v642_v42  ;;  %v126_v49 = vpop.f32.mrb[3].mxu0  ;;  %v188_v51 = vmax.f32 %v132_v44, 0.0 }
  0xe3   :  { %v127_v50 = vadd.f32 %v642_v42, %v126_v49  ;;  %v186_v53 = vmax.f32 %v124_v46, 0.0 }
  0xe4   :  { %v189_v52 = vmax.f32 %v135_v48, 0.0 }
  0xe5   :  { %v187_v54 = vmax.f32 %v127_v50, 0.0 }
  0xe6   :  { %v203_v55 = vpack.c.bf16 %v189_v52, %v188_v51  ;;  %v954_v52 = vld [vmem:[%s1274_s4] ss:$0 sm:$0xff] }
  0xe7   :  { %v694_v56 = vpop.f32.mrb[4].mxu0  ;;  %v202_v57 = vpack.c.bf16 %v187_v54, %v186_v53 }
  0xe8   :  { %v148_v58 = vadd.f32 %v694_v56, %v642_v42  ;;  %v139_v59 = vpop.f32.mrb[5].mxu0 }
  0xe9   :  { %v140_v60 = vadd.f32 %v642_v42, %v139_v59  ;;  %v695_v61 = vpop.f32.mrb[6].mxu0  ;;  %712 = vmatprep.mubr.msk.bf16.mxu1 %vm229_vm1, %v202_v57 }
  0xea   :  { %v192_v62 = vmax.f32 %v148_v58, 0.0  ;;  %v151_v63 = vadd.f32 %v695_v61, %v642_v42  ;;  %v142_v0 = vpop.f32.mrb[7].mxu0  ;;  %713 = vmatmul.mubr.msk.bf16.vlgmr.msra.gmra.mrb[0].mxu1 %vm229_vm1, %v203_v55 }
  0xeb   :  { %v143_v1 = vadd.f32 %v642_v42, %v142_v0  ;;  %v190_v3 = vmax.f32 %v140_v60, 0.0 }
  0xec   :  { %v193_v2 = vmax.f32 %v151_v63, 0.0 }
  0xed   :  { %v191_v4 = vmax.f32 %v143_v1, 0.0 }
  0xee   :  { %v205_v7 = vpack.c.bf16 %v193_v2, %v192_v62 }
  0xef   :  { %v204_v8 = vpack.c.bf16 %v191_v4, %v190_v3  ;;  %v698_v13 = vpop.f32.mrb[8].mxu0 }
  0xf0   :  { %v164_v14 = vadd.f32 %v698_v13, %v642_v42  ;;  %v155_v15 = vpop.f32.mrb[9].mxu0 }
  0xf1   :  { %v156_v16 = vadd.f32 %v642_v42, %v155_v15  ;;  %v699_v17 = vpop.f32.mrb[10].mxu0  ;;  %716 = vmatprep.mubr.msk.bf16.mxu1 %vm229_vm1, %v204_v8 }
  0xf2   :  { %v196_v18 = vmax.f32 %v164_v14, 0.0  ;;  %v167_v19 = vadd.f32 %v699_v17, %v642_v42  ;;  %v158_v20 = vpop.f32.mrb[11].mxu0  ;;  %717 = vmatmul.mubr.msk.bf16.gmra.mrb[4].mxu1 %vm229_vm1, %v205_v7 }
  0xf3   :  { %v159_v25 = vadd.f32 %v642_v42, %v158_v20  ;;  %v194_v31 = vmax.f32 %v156_v16, 0.0 }
  0xf4   :  { %v197_v26 = vmax.f32 %v167_v19, 0.0 }
  0xf5   :  { %v195_v32 = vmax.f32 %v159_v25, 0.0 }
  0xf6   :  { %v207_v35 = vpack.c.bf16 %v197_v26, %v196_v18 }
  0xf7   :  { %v206_v36 = vpack.c.bf16 %v195_v32, %v194_v31  ;;  %v702_v37 = vpop.f32.mrb[12].mxu0 }
  0xf8   :  { %v180_v38 = vadd.f32 %v702_v37, %v642_v42  ;;  %v171_v39 = vpop.f32.mrb[13].mxu0 }
  0xf9   :  { %v172_v40 = vadd.f32 %v642_v42, %v171_v39  ;;  %v703_v41 = vpop.f32.mrb[14].mxu0  ;;  %720 = vmatprep.mubr.msk.bf16.mxu1 %vm229_vm1, %v206_v36 }
  0xfa   :  { %v200_v43 = vmax.f32 %v180_v38, 0.0  ;;  %v183_v44 = vadd.f32 %v703_v41, %v642_v42  ;;  %v174_v45 = vpop.f32.mrb[15].mxu0  ;;  %721 = vmatmul.mubr.msk.bf16.gmra.mrb[8].mxu1 %vm229_vm1, %v207_v35 }
  0xfb   :  { %v175_v46 = vadd.f32 %v642_v42, %v174_v45  ;;  %v198_v48 = vmax.f32 %v172_v40, 0.0 }
  0xfc   :  { %v201_v47 = vmax.f32 %v183_v44, 0.0 }
  0xfd   :  { %v199_v49 = vmax.f32 %v175_v46, 0.0 }
  0xfe   :  { %v209_v50 = vpack.c.bf16 %v201_v47, %v200_v43 }
  0xff   :  { %v208_v51 = vpack.c.bf16 %v199_v49, %v198_v48 }
 0x101   :  { %724 = vmatprep.mubr.msk.bf16.mxu1 %vm229_vm1, %v208_v51 }
 0x102   :  { %725 = vmatmul.mubr.msk.bf16.gmra.mrb[12].mxu1 %vm229_vm1, %v209_v50 }
 0x1bd   :  { %v714_v53 = vpop.f32.mrb[0].mxu1 }
 0x1be   :  { %v297_v54 = vadd.f32 %v714_v53, %v954_v52  ;;  %v288_v55 = vpop.f32.mrb[1].mxu1 }
 0x1bf   :  { %v289_v42 = vadd.f32 %v954_v52, %v288_v55  ;;  %v715_v56 = vpop.f32.mrb[2].mxu1 }
 0x1c0   :  { %v300_v57 = vadd.f32 %v715_v56, %v954_v52  ;;  %v291_v58 = vpop.f32.mrb[3].mxu1  ;;  %v960_v59 = vadd.f32 %v297_v54, %v828_v9 }
 0x1c1   :  { %v292_v60 = vadd.f32 %v954_v52, %v291_v58  ;;  %v964_v61 = vadd.f32 %v289_v42, %v815_v5 }
 0x1c2   :  { %v373_v62 = vsel %vm64_vm0, %v960_v59, 0.0  ;;  %v969_v63 = vadd.f32 %v300_v57, %v833_v10 }
 0x1c3   :  { %374 = vadd.xlane.f32.xlu1 %v373_v62  ;;  %v367_v0 = vsel %vm64_vm0, %v964_v61, 0.0  ;;  %v974_v1 = vadd.f32 %v292_v60, %v820_v6 }
 0x1c4   :  { %368 = vadd.xlane.f32.xlu0 %v367_v0  ;;  %v376_v5 = vsel %vm64_vm0, %v969_v63, 0.0 }
 0x1c5   :  { %v718_v9 = vpop.f32.mrb[4].mxu1  ;;  %v370_v7 = vsel %vm64_vm0, %v974_v1, 0.0 }
 0x1c6   :  { %v313_v2 = vadd.f32 %v718_v9, %v954_v52  ;;  %v304_v3 = vpop.f32.mrb[5].mxu1 }
 0x1c7   :  { %v305_v4 = vadd.f32 %v954_v52, %v304_v3  ;;  %377 = vadd.xlane.f32.xlu1 %v376_v5  ;;  %v719_v10 = vpop.f32.mrb[6].mxu1 }
 0x1c8   :  { %v316_v8 = vadd.f32 %v719_v10, %v954_v52  ;;  %v307_v13 = vpop.f32.mrb[7].mxu1  ;;  %371 = vadd.xlane.f32.xlu0 %v370_v7  ;;  %v984_v6 = vadd.f32 %v313_v2, %v866_v21 }
 0x1c9   :  { %v308_v14 = vadd.f32 %v954_v52, %v307_v13  ;;  %v993_v17 = vadd.f32 %v305_v4, %v838_v11 }
 0x1ca   :  { %v385_v15 = vsel %vm64_vm0, %v984_v6, 0.0  ;;  %v990_v16 = vadd.f32 %v316_v8, %v871_v22 }
 0x1cb   :  { %v998_v19 = vadd.f32 %v308_v14, %v843_v12  ;;  %v379_v22 = vsel %vm64_vm0, %v993_v17, 0.0 }
 0x1cc   :  { %386 = vadd.xlane.f32.xlu0 %v385_v15  ;;  %v388_v18 = vsel %vm64_vm0, %v990_v16, 0.0 }
 0x1cd   :  { %389 = vadd.xlane.f32.xlu1 %v388_v18  ;;  %v722_v21 = vpop.f32.mrb[8].mxu1  ;;  %v382_v35 = vsel %vm64_vm0, %v998_v19, 0.0 }
 0x1ce   :  { %v329_v20 = vadd.f32 %v722_v21, %v954_v52  ;;  %v320_v25 = vpop.f32.mrb[9].mxu1 }
 0x1cf   :  { %v321_v26 = vadd.f32 %v954_v52, %v320_v25  ;;  %v723_v31 = vpop.f32.mrb[10].mxu1 }
 0x1d0   :  { %v332_v11 = vadd.f32 %v723_v31, %v954_v52  ;;  %v323_v32 = vpop.f32.mrb[11].mxu1  ;;  %380 = vadd.xlane.f32.xlu0 %v379_v22  ;;  %v1008_v12 = vadd.f32 %v329_v20, %v892_v27 }
 0x1d1   :  { %v324_v36 = vadd.f32 %v954_v52, %v323_v32  ;;  %383 = vadd.xlane.f32.xlu1 %v382_v35  ;;  %v1017_v39 = vadd.f32 %v321_v26, %v876_v23 }
 0x1d2   :  { %v397_v37 = vsel %vm64_vm0, %v1008_v12, 0.0  ;;  %v1014_v38 = vadd.f32 %v332_v11, %v897_v28 }
 0x1d3   :  { %v1022_v41 = vadd.f32 %v324_v36, %v881_v24  ;;  %v391_v28 = vsel %vm64_vm0, %v1017_v39, 0.0 }
 0x1d4   :  { %398 = vadd.xlane.f32.xlu0 %v397_v37  ;;  %v400_v40 = vsel %vm64_vm0, %v1014_v38, 0.0 }
 0x1d5   :  { %v726_v27 = vpop.f32.mrb[12].mxu1  ;;  %401 = vadd.xlane.f32.xlu1 %v400_v40  ;;  %v394_v47 = vsel %vm64_vm0, %v1022_v41, 0.0 }
 0x1d6   :  { %v336_v43 = vpop.f32.mrb[13].mxu1  ;;  %v345_v44 = vadd.f32 %v726_v27, %v954_v52 }
 0x1d7   :  { %v337_v45 = vadd.f32 %v954_v52, %v336_v43  ;;  %v727_v46 = vpop.f32.mrb[14].mxu1 }
 0x1d8   :  { %v339_v23 = vpop.f32.mrb[15].mxu1  ;;  %392 = vadd.xlane.f32.xlu0 %v391_v28  ;;  %v348_v48 = vadd.f32 %v727_v46, %v954_v52  ;;  %v1041_v53 = vadd.f32 %v345_v44, %v918_v33 }
 0x1d9   :  { %v340_v24 = vadd.f32 %v954_v52, %v339_v23  ;;  %395 = vadd.xlane.f32.xlu1 %v394_v47  ;;  %v1033_v49 = vadd.f32 %v337_v45, %v902_v29 }
 0x1da   :  { %v1046_v55 = vadd.f32 %v348_v48, %v923_v34  ;;  %v409_v29 = vsel %vm64_vm0, %v1041_v53, 0.0 }
 0x1db   :  { %v403_v50 = vsel %vm64_vm0, %v1033_v49, 0.0  ;;  %v1038_v51 = vadd.f32 %v340_v24, %v907_v30 }
 0x1dc   :  { %404 = vadd.xlane.f32.xlu0 %v403_v50  ;;  %v412_v52 = vsel %vm64_vm0, %v1046_v55, 0.0 }
 0x1dd   :  { %v406_v54 = vsel %vm64_vm0, %v1038_v51, 0.0 }
 0x1de   :  { %407 = vadd.xlane.f32.xlu1 %v406_v54 }
 0x1e0   :  { %410 = vadd.xlane.f32.xlu0 %v409_v29 }
 0x1e2   :  { %413 = vadd.xlane.f32.xlu1 %v412_v52 }
 0x250   :  { %v375_v30 = vpop.xlane.xlu1 %374 }
 0x251   :  { %v418_v42 = vmul.f32 0.03125, %v375_v30  ;;  %v369_v33 = vpop.xlane.xlu0 %368 }
 0x252   :  { %v416_v56 = vmul.f32 0.03125, %v369_v33 }
 0x253   :  { %v1053_v57 = vsub.f32 %v960_v59, %v418_v42 }
 0x254   :  { %v1056_v58 = vsub.f32 %v964_v61, %v416_v56  ;;  %v378_v34 = vpop.xlane.xlu1 %377 }
 0x255   :  { %v419_v60 = vmul.f32 0.03125, %v378_v34  ;;  %v372_v62 = vpop.xlane.xlu0 %371  ;;  %v450_v0 = vmul.f32 %v1053_v57, %v1053_v57 }
 0x256   :  { %v417_v9 = vmul.f32 0.03125, %v372_v62  ;;  %v448_v5 = vmul.f32 %v1056_v58, %v1056_v58 }
 0x257   :  { %v1061_v2 = vsub.f32 %v969_v63, %v419_v60  ;;  %v470_v3 = vsel %vm64_vm0, %v450_v0, 0.0 }
 0x258   :  { %v1067_v59 = vsub.f32 %v974_v1, %v417_v9  ;;  %471 = vadd.xlane.f32.xlu0 %v470_v3  ;;  %v464_v63 = vsel %vm64_vm0, %v448_v5, 0.0 }
 0x259   :  { %v387_v61 = vpop.xlane.xlu0 %386  ;;  %v451_v4 = vmul.f32 %v1061_v2, %v1061_v2 }
 0x25a   :  { %v422_v10 = vmul.f32 0.03125, %v387_v61  ;;  %v390_v7 = vpop.xlane.xlu1 %389  ;;  %v449_v14 = vmul.f32 %v1067_v59, %v1067_v59 }
 0x25b   :  { %v423_v8 = vmul.f32 0.03125, %v390_v7  ;;  %v473_v13 = vsel %vm64_vm0, %v451_v4, 0.0 }
 0x25c   :  { %v1076_v15 = vsub.f32 %v984_v6, %v422_v10  ;;  %474 = vadd.xlane.f32.xlu1 %v473_v13  ;;  %465 = vadd.xlane.f32.xlu0 %v464_v63  ;;  %v467_v31 = vsel %vm64_vm0, %v449_v14, 0.0 }
 0x25d   :  { %v1079_v1 = vsub.f32 %v990_v16, %v423_v8  ;;  %v381_v18 = vpop.xlane.xlu0 %380 }
 0x25e   :  { %v420_v21 = vmul.f32 0.03125, %v381_v18  ;;  %v384_v20 = vpop.xlane.xlu1 %383  ;;  %v454_v25 = vmul.f32 %v1076_v15, %v1076_v15 }
 0x25f   :  { %v421_v26 = vmul.f32 0.03125, %v384_v20  ;;  %v455_v22 = vmul.f32 %v1079_v1, %v1079_v1 }
 0x260   :  { %v1087_v6 = vsub.f32 %v993_v17, %v420_v21  ;;  %468 = vadd.xlane.f32.xlu1 %v467_v31  ;;  %v482_v11 = vsel %vm64_vm0, %v454_v25, 0.0 }
 0x261   :  { %v1091_v16 = vsub.f32 %v998_v19, %v421_v26  ;;  %483 = vadd.xlane.f32.xlu0 %v482_v11  ;;  %v399_v32 = vpop.xlane.xlu0 %398  ;;  %v485_v27 = vsel %vm64_vm0, %v455_v22, 0.0 }
 0x262   :  { %v426_v35 = vmul.f32 0.03125, %v399_v32  ;;  %v402_v36 = vpop.xlane.xlu1 %401  ;;  %v452_v37 = vmul.f32 %v1087_v6, %v1087_v6 }
 0x263   :  { %v427_v40 = vmul.f32 0.03125, %v402_v36  ;;  %v453_v17 = vmul.f32 %v1091_v16, %v1091_v16 }
 0x264   :  { %v1099_v43 = vsub.f32 %v1008_v12, %v426_v35  ;;  %486 = vadd.xlane.f32.xlu1 %v485_v27  ;;  %v476_v19 = vsel %vm64_vm0, %v452_v37, 0.0 }
 0x265   :  { %v1103_v44 = vsub.f32 %v1014_v38, %v427_v40  ;;  %477 = vadd.xlane.f32.xlu0 %v476_v19  ;;  %v393_v45 = vpop.xlane.xlu0 %392  ;;  %v479_v48 = vsel %vm64_vm0, %v453_v17, 0.0 }
 0x266   :  { %v424_v46 = vmul.f32 0.03125, %v393_v45  ;;  %v396_v28 = vpop.xlane.xlu1 %395  ;;  %v458_v23 = vmul.f32 %v1099_v43, %v1099_v43 }
 0x267   :  { %v425_v47 = vmul.f32 0.03125, %v396_v28  ;;  %v459_v12 = vmul.f32 %v1103_v44, %v1103_v44 }
 0x268   :  { %v1111_v24 = vsub.f32 %v1017_v39, %v424_v46  ;;  %480 = vadd.xlane.f32.xlu1 %v479_v48  ;;  %v494_v38 = vsel %vm64_vm0, %v458_v23, 0.0  ;;  %v1151_v46 = vld [vmem:[%s1275_s5] ss:$0 sm:$0xff] }
 0x269   :  { %v1115_v50 = vsub.f32 %v1022_v41, %v425_v47  ;;  %495 = vadd.xlane.f32.xlu0 %v494_v38  ;;  %v405_v54 = vpop.xlane.xlu0 %404  ;;  %v497_v42 = vsel %vm64_vm0, %v459_v12, 0.0  ;;  %v1157_v12 = vld [vmem:[%s1276_s6] ss:$0 sm:$0xff] }
 0x26a   :  { %v428_v29 = vmul.f32 0.03125, %v405_v54  ;;  %v456_v52 = vmul.f32 %v1111_v24, %v1111_v24 }
 0x26b   :  { %v408_v30 = vpop.xlane.xlu1 %407  ;;  %v457_v33 = vmul.f32 %v1115_v50, %v1115_v50 }
 0x26c   :  { %v1123_v39 = vsub.f32 %v1033_v49, %v428_v29  ;;  %v429_v56 = vmul.f32 0.03125, %v408_v30  ;;  %498 = vadd.xlane.f32.xlu1 %v497_v42  ;;  %v488_v41 = vsel %vm64_vm0, %v456_v52, 0.0 }
 0x26d   :  { %489 = vadd.xlane.f32.xlu0 %v488_v41  ;;  %v411_v34 = vpop.xlane.xlu0 %410  ;;  %v491_v3 = vsel %vm64_vm0, %v457_v33, 0.0 }
 0x26e   :  { %v1127_v60 = vsub.f32 %v1038_v51, %v429_v56  ;;  %v430_v62 = vmul.f32 0.03125, %v411_v34  ;;  %v460_v0 = vmul.f32 %v1123_v39, %v1123_v39 }
 0x26f   :  { %v414_v9 = vpop.xlane.xlu1 %413 }
 0x270   :  { %v1133_v5 = vsub.f32 %v1041_v53, %v430_v62  ;;  %v431_v49 = vmul.f32 0.03125, %v414_v9  ;;  %492 = vadd.xlane.f32.xlu1 %v491_v3  ;;  %v500_v61 = vsel %vm64_vm0, %v460_v0, 0.0  ;;  %v461_v4 = vmul.f32 %v1127_v60, %v1127_v60 }
 0x271   :  { %501 = vadd.xlane.f32.xlu0 %v500_v61 }
 0x272   :  { %v1139_v51 = vsub.f32 %v1046_v55, %v431_v49  ;;  %v503_v10 = vsel %vm64_vm0, %v461_v4, 0.0  ;;  %v462_v7 = vmul.f32 %v1133_v5, %v1133_v5 }
 0x274   :  { %504 = vadd.xlane.f32.xlu1 %v503_v10  ;;  %v506_v53 = vsel %vm64_vm0, %v462_v7, 0.0  ;;  %v463_v8 = vmul.f32 %v1139_v51, %v1139_v51 }
 0x275   :  { %507 = vadd.xlane.f32.xlu0 %v506_v53 }
 0x276   :  { %v509_v13 = vsel %vm64_vm0, %v463_v8, 0.0 }
 0x278   :  { %510 = vadd.xlane.f32.xlu1 %v509_v13 }
 0x2e5   :  { %v472_v63 = vpop.xlane.xlu0 %471 }
 0x2e6   :  { %v514_v14 = vmul.f32 0.03125, %v472_v63 }
 0x2e8   :  { %v530_v18 = vadd.f32 1e-05, %v514_v14 }
 0x2e9   :  { %v475_v55 = vpop.xlane.xlu1 %474  ;;  %v466_v21 = vpop.xlane.xlu0 %465 }
 0x2ea   :  { %728 = vrsqrt.f32 %v530_v18  ;;  %v515_v20 = vmul.f32 0.03125, %v475_v55  ;;  %v512_v25 = vmul.f32 0.03125, %v466_v21 }
 0x2ec   :  { %v531_v26 = vadd.f32 1e-05, %v515_v20  ;;  %v528_v31 = vadd.f32 1e-05, %v512_v25 }
 0x2ed   :  { %v469_v22 = vpop.xlane.xlu1 %468 }
 0x2ee   :  { %730 = vrsqrt.f32 %v531_v26  ;;  %v513_v11 = vmul.f32 0.03125, %v469_v22  ;;  %v484_v32 = vpop.xlane.xlu0 %483 }
 0x2ef   :  { %732 = vrsqrt.f32 %v528_v31  ;;  %v518_v35 = vmul.f32 0.03125, %v484_v32 }
 0x2f0   :  { %v529_v36 = vadd.f32 1e-05, %v513_v11 }
 0x2f1   :  { %v534_v37 = vadd.f32 1e-05, %v518_v35  ;;  %v487_v40 = vpop.xlane.xlu1 %486 }
 0x2f2   :  { %734 = vrsqrt.f32 %v529_v36  ;;  %v519_v27 = vmul.f32 0.03125, %v487_v40  ;;  %v478_v17 = vpop.xlane.xlu0 %477 }
 0x2f3   :  { %736 = vrsqrt.f32 %v534_v37  ;;  %v516_v19 = vmul.f32 0.03125, %v478_v17 }
 0x2f4   :  { %v729_v45 = vpop.eup %728  ;;  %v535_v28 = vadd.f32 1e-05, %v519_v27 }
 0x2f5   :  { %v562_v23 = vmul.f32 %v729_v45, %v1053_v57  ;;  %v532_v47 = vadd.f32 1e-05, %v516_v19  ;;  %v481_v48 = vpop.xlane.xlu1 %480 }
 0x2f6   :  { %738 = vrsqrt.f32 %v535_v28  ;;  %v517_v38 = vmul.f32 0.03125, %v481_v48  ;;  %v496_v54 = vpop.xlane.xlu0 %495 }
 0x2f7   :  { %v585_v29 = vmul.f32 %v1151_v46, %v562_v23  ;;  %740 = vrsqrt.f32 %v532_v47  ;;  %v522_v52 = vmul.f32 0.03125, %v496_v54 }
 0x2f8   :  { %v731_v30 = vpop.eup %730  ;;  %v533_v42 = vadd.f32 1e-05, %v517_v38 }
 0x2f9   :  { %v733_v33 = vpop.eup %732  ;;  %v608_v56 = vadd.f32 %v1157_v12, %v585_v29  ;;  %v563_v57 = vmul.f32 %v731_v30, %v1061_v2  ;;  %v538_v41 = vadd.f32 1e-05, %v522_v52  ;;  %v499_v34 = vpop.xlane.xlu1 %498 }
 0x2fa   :  { %v560_v62 = vmul.f32 %v733_v33, %v1056_v58  ;;  %742 = vrsqrt.f32 %v533_v42  ;;  %v523_v0 = vmul.f32 0.03125, %v499_v34  ;;  %v490_v9 = vpop.xlane.xlu0 %489 }
 0x2fb   :  { %624 = vst.msk [vmem:[%s1277_s7 + $0x10] sm:$0xff] %vm64_vm0, %v608_v56  ;;  %v586_v3 = vmul.f32 %v1151_v46, %v563_v57  ;;  %744 = vrsqrt.f32 %v538_v41  ;;  %v520_v49 = vmul.f32 0.03125, %v490_v9 }
 0x2fc   :  { %v735_v61 = vpop.eup %734  ;;  %v583_v4 = vmul.f32 %v1151_v46, %v560_v62  ;;  %v539_v2 = vadd.f32 1e-05, %v523_v0 }
 0x2fd   :  { %v737_v10 = vpop.eup %736  ;;  %v609_v7 = vadd.f32 %v1157_v12, %v586_v3  ;;  %v561_v58 = vmul.f32 %v735_v61, %v1067_v59  ;;  %v536_v53 = vadd.f32 1e-05, %v520_v49  ;;  %v493_v8 = vpop.xlane.xlu1 %492 }
 0x2fe   :  { %v606_v13 = vadd.f32 %v1157_v12, %v583_v4  ;;  %v566_v63 = vmul.f32 %v737_v10, %v1076_v15  ;;  %746 = vrsqrt.f32 %v539_v2  ;;  %v521_v14 = vmul.f32 0.03125, %v493_v8  ;;  %v502_v18 = vpop.xlane.xlu0 %501 }
 0x2ff   :  { %625 = vst.msk [vmem:[%s1277_s7 + $0x18] sm:$0xff] %vm64_vm0, %v609_v7  ;;  %v584_v55 = vmul.f32 %v1151_v46, %v561_v58  ;;  %748 = vrsqrt.f32 %v536_v53  ;;  %v524_v21 = vmul.f32 0.03125, %v502_v18 }
 0x300   :  { %v739_v20 = vpop.eup %738  ;;  %622 = vst.msk [vmem:[%s1277_s7] sm:$0xff] %vm64_vm0, %v606_v13  ;;  %v589_v59 = vmul.f32 %v1151_v46, %v566_v63  ;;  %v537_v15 = vadd.f32 1e-05, %v521_v14 }
 0x301   :  { %v741_v25 = vpop.eup %740  ;;  %v607_v26 = vadd.f32 %v1157_v12, %v584_v55  ;;  %v567_v31 = vmul.f32 %v739_v20, %v1079_v1  ;;  %v540_v22 = vadd.f32 1e-05, %v524_v21  ;;  %v505_v11 = vpop.xlane.xlu1 %504 }
 0x302   :  { %v612_v32 = vadd.f32 %v1157_v12, %v589_v59  ;;  %v564_v35 = vmul.f32 %v741_v25, %v1087_v6  ;;  %750 = vrsqrt.f32 %v537_v15  ;;  %v525_v36 = vmul.f32 0.03125, %v505_v11  ;;  %v508_v37 = vpop.xlane.xlu0 %507 }
 0x303   :  { %623 = vst.msk [vmem:[%s1277_s7 + $0x8] sm:$0xff] %vm64_vm0, %v607_v26  ;;  %v590_v40 = vmul.f32 %v1151_v46, %v567_v31  ;;  %752 = vrsqrt.f32 %v540_v22  ;;  %v526_v27 = vmul.f32 0.03125, %v508_v37 }
 0x304   :  { %v743_v17 = vpop.eup %742  ;;  %628 = vst.msk [vmem:[%s1277_s7 + $0x30] sm:$0xff] %vm64_vm0, %v612_v32  ;;  %v587_v1 = vmul.f32 %v1151_v46, %v564_v35  ;;  %v541_v6 = vadd.f32 1e-05, %v525_v36 }
 0x305   :  { %v745_v19 = vpop.eup %744  ;;  %v613_v45 = vadd.f32 %v1157_v12, %v590_v40  ;;  %v565_v28 = vmul.f32 %v743_v17, %v1091_v16  ;;  %v542_v23 = vadd.f32 1e-05, %v526_v27  ;;  %v511_v47 = vpop.xlane.xlu1 %510 }
 0x306   :  { %v610_v48 = vadd.f32 %v1157_v12, %v587_v1  ;;  %v570_v38 = vmul.f32 %v745_v19, %v1099_v43  ;;  %754 = vrsqrt.f32 %v541_v6  ;;  %v527_v54 = vmul.f32 0.03125, %v511_v47 }
 0x307   :  { %629 = vst.msk [vmem:[%s1277_s7 + $0x38] sm:$0xff] %vm64_vm0, %v613_v45  ;;  %v588_v29 = vmul.f32 %v1151_v46, %v565_v28  ;;  %756 = vrsqrt.f32 %v542_v23 }
 0x308   :  { %v747_v52 = vpop.eup %746  ;;  %626 = vst.msk [vmem:[%s1277_s7 + $0x20] sm:$0xff] %vm64_vm0, %v610_v48  ;;  %v593_v16 = vmul.f32 %v1151_v46, %v570_v38  ;;  %v543_v30 = vadd.f32 1e-05, %v527_v54 }
 0x309   :  { %v749_v43 = vpop.eup %748  ;;  %v611_v42 = vadd.f32 %v1157_v12, %v588_v29  ;;  %v571_v33 = vmul.f32 %v747_v52, %v1103_v44 }
 0x30a   :  { %v616_v56 = vadd.f32 %v1157_v12, %v593_v16  ;;  %v568_v57 = vmul.f32 %v749_v43, %v1111_v24  ;;  %758 = vrsqrt.f32 %v543_v30 }
 0x30b   :  { %627 = vst.msk [vmem:[%s1277_s7 + $0x28] sm:$0xff] %vm64_vm0, %v611_v42  ;;  %v594_v41 = vmul.f32 %v1151_v46, %v571_v33 }
 0x30c   :  { %v751_v34 = vpop.eup %750  ;;  %632 = vst.msk [vmem:[%s1277_s7 + $0x50] sm:$0xff] %vm64_vm0, %v616_v56  ;;  %v591_v44 = vmul.f32 %v1151_v46, %v568_v57 }
 0x30d   :  { %v753_v62 = vpop.eup %752  ;;  %v617_v0 = vadd.f32 %v1157_v12, %v594_v41  ;;  %v569_v24 = vmul.f32 %v751_v34, %v1115_v50 }
 0x30e   :  { %v614_v9 = vadd.f32 %v1157_v12, %v591_v44  ;;  %v572_v3 = vmul.f32 %v753_v62, %v1123_v39 }
 0x30f   :  { %633 = vst.msk [vmem:[%s1277_s7 + $0x58] sm:$0xff] %vm64_vm0, %v617_v0  ;;  %v592_v49 = vmul.f32 %v1151_v46, %v569_v24 }
 0x310   :  { %v755_v61 = vpop.eup %754  ;;  %630 = vst.msk [vmem:[%s1277_s7 + $0x40] sm:$0xff] %vm64_vm0, %v614_v9  ;;  %v595_v4 = vmul.f32 %v1151_v46, %v572_v3 }
 0x311   :  { %v757_v50 = vpop.eup %756  ;;  %v615_v2 = vadd.f32 %v1157_v12, %v592_v49  ;;  %v573_v39 = vmul.f32 %v755_v61, %v1127_v60 }
 0x312   :  { %v618_v10 = vadd.f32 %v1157_v12, %v595_v4  ;;  %v574_v7 = vmul.f32 %v757_v50, %v1133_v5 }
 0x313   :  { %631 = vst.msk [vmem:[%s1277_s7 + $0x48] sm:$0xff] %vm64_vm0, %v615_v2  ;;  %v596_v58 = vmul.f32 %v1151_v46, %v573_v39 }
 0x314   :  { %v759_v53 = vpop.eup %758  ;;  %634 = vst.msk [vmem:[%s1277_s7 + $0x60] sm:$0xff] %vm64_vm0, %v618_v10  ;;  %v597_v8 = vmul.f32 %v1151_v46, %v574_v7 }
 0x315   :  { %v619_v60 = vadd.f32 %v1157_v12, %v596_v58  ;;  %v575_v13 = vmul.f32 %v759_v53, %v1139_v51 }
 0x316   :  { %v620_v5 = vadd.f32 %v1157_v12, %v597_v8 }
 0x317   :  { %635 = vst.msk [vmem:[%s1277_s7 + $0x68] sm:$0xff] %vm64_vm0, %v619_v60  ;;  %v598_v63 = vmul.f32 %v1151_v46, %v575_v13 }
 0x318   :  { %636 = vst.msk [vmem:[%s1277_s7 + $0x70] sm:$0xff] %vm64_vm0, %v620_v5 }
 0x319   :  { %v621_v14 = vadd.f32 %v1157_v12, %v598_v63 }
 0x31b   :  { %637 = vst.msk [vmem:[%s1277_s7 + $0x78] sm:$0xff] %vm64_vm0, %v621_v14 }

// kernel: detr_forward.22
= control target key start
LH: loop header
LB: loop body
LE: loop exit
PB: predicated region body
PF: predicated region fallthrough
CT: control target
= control target key end

     0   :  { %s1537_s29 = smov 0   ;;  %s1719_s0 = inlined_call_operand.vmem [shape: f32[2,8,32], index: 0, kind: input, shape index: {}, may-alias: {0,2}]   ;;  %s1720_s1 = inlined_call_operand.vmem [shape: f32[1,8,32], index: 1, kind: input, shape index: {}, may-alias: {1,3}]   ;;  %s1721_s2 = inlined_call_operand.vmem [shape: f32[2,8,32], index: 2, kind: input, shape index: {}, may-alias: {0,2}]   ;;  %s1722_s3 = inlined_call_operand.vmem [shape: f32[1,8,32], index: 3, kind: input, shape index: {}, may-alias: {1,3}]   ;;  %s1723_s4 = inlined_call_operand.vmem [shape: f32[32,32], index: 4, kind: input, shape index: {}]   ;;  %s1724_s5 = inlined_call_operand.vmem [shape: f32[32,32], index: 5, kind: input, shape index: {}]   ;;  %s1725_s6 = inlined_call_operand.vmem [shape: f32[32,32], index: 6, kind: input, shape index: {}]   ;;  %s1726_s7 = inlined_call_operand.vmem [shape: f32[32,32], index: 7, kind: input, shape index: {}]   ;;  %s1727_s8 = inlined_call_operand.vmem [shape: f32[1,32], index: 8, kind: input, shape index: {}]   ;;  %s1728_s9 = inlined_call_operand.vmem [shape: f32[1,32], index: 9, kind: input, shape index: {}]   ;;  %s1729_s10 = inlined_call_operand.vmem [shape: f32[1,32], index: 10, kind: input, shape index: {}]   ;;  %s1730_s11 = inlined_call_operand.vmem [shape: f32[1,32], index: 11, kind: input, shape index: {}]   ;;  %s1731_s12 = inlined_call_operand.vmem [shape: f32[1,32], index: 12, kind: input, shape index: {}]   ;;  %s1732_s13 = inlined_call_operand.vmem [shape: f32[1,32], index: 13, kind: input, shape index: {}]   ;;  %s1733_s14 = inlined_call_operand.vmem [shape: f32[2,8,32], index: 14, kind: output, shape index: {}]  }
   0x1 LB: > { %s1276_s30 = sadd.s32 4294967295, %s1452_s29   ;;  %p1280_p0 = scmp.ge.s32.totalorder %s1452_s29, 1  ;;  %s1452_s29 = sphi %s1537_s29, %s24_s29  }
   0x2   : > { %p420_p1 = scmp.lt.s32.totalorder %s1452_s29, 3 }
   0x4   : > { %p421_p2 = pnand %p1280_p0, %p420_p1 }
   0x5   : > { %v547_v0 = vld [vmem:[%s1724_s5] sm:$0xff] (!%p421_p2)  ;;  %v548_v1 = vld [vmem:[%s1724_s5 + $0x8] sm:$0xff] (!%p421_p2)  ;;  %p468_p3 = scmp.lt.s32.totalorder (!%p421_p2), %s1276_s30, 1  ;;  %v1454_v3 = vmov (!%p421_p2), 0.0   ;;  %v549_v6 = vld [vmem:[%s1724_s5 + $0x10] sm:$0xff] (!%p421_p2)  ;;  %vm1455_vm0 = vmmov (!%p421_p2), 0  }
   0x6   : > { %424 = sbr.rel (%p421_p2) target bundleno = 1767 (0x6e7), region = 76  ;;  %v490_v2 = vld [vmem:[%s1723_s4] sm:$0xff] (!%p421_p2)  ;;  %1340 = vmatprep.subr.bf16.mxu1 (!%p421_p2), %v1454_v3  ;;  %v551_v4 = vpack.c.bf16 (!%p421_p2), %v548_v1, %v547_v0  ;;  %1332 = vmatprep.subr.bf16.mxu0 (!%p421_p2), %v1454_v3  ;;  %v491_v5 = vld [vmem:[%s1723_s4 + $0x8] sm:$0xff] (!%p421_p2)  ;;  %v550_v7 = vld [vmem:[%s1724_s5 + $0x18] sm:$0xff] (!%p421_p2)  ;;  %vm503_vm1 = vcmask (!%p421_p2), 261120   ;;  %vm662_vm2 = vcmask (!%p421_p2), 64512  }
   0x7   : > { %v494_v8 = vpack.c.bf16 (!%p421_p2), %v491_v5, %v490_v2  ;;  %1344 = vmatprep.mubr.msk.bf16.mxu1 (!%p421_p2), %vm1455_vm0, %v1454_v3  ;;  %v492_v9 = vld [vmem:[%s1723_s4 + $0x10] sm:$0xff] (!%p421_p2)  ;;  %v493_v10 = vld [vmem:[%s1723_s4 + $0x18] sm:$0xff] (!%p421_p2)  ;;  %1336 = vmatprep.mubr.msk.bf16.mxu0 (!%p421_p2), %vm1455_vm0, %v1454_v3  ;;  %v552_v11 = vpack.c.bf16 (!%p421_p2), %v550_v7, %v549_v6  ;;  %v486_v12 = vld [vmem:[%s1722_s3] sm:$0xff] (!%p421_p2)  ;;  %s1456_s18 = smov (!%p421_p2), 112   ;;  %s1457_s19 = smov (!%p421_p2), 120   ;;  %vm725_vm3 = vcmask (!%p421_p2), 1043456  }
   0x8   : > { %1341 = vmatpush3.bf16.msra.mxu1 (!%p421_p2), %v551_v4  ;;  %v495_v13 = vpack.c.bf16 (!%p421_p2), %v493_v10, %v492_v9  ;;  %v483_v14 = vld [vmem:[%s1720_s1] sm:$0xff] (!%p421_p2)  ;;  %s1458_s20 = smov (!%p421_p2), 104   ;;  %v604_v37 = vld [vmem:[%s1725_s6 + $0x8] sm:$0xff] (!%p421_p2)  ;;  %v605_v38 = vld [vmem:[%s1725_s6 + $0x10] sm:$0xff] (!%p421_p2)  ;;  %s1459_s21 = smov (!%p421_p2), 8   ;;  %vm1118_vm4 = vcmask (!%p421_p2), 130048  }
   0x9   : > { %1342 = vmatprep.subr.bf16.mxu1 (!%p421_p2), %v1454_v3  ;;  %1333 = vmatpush3.bf16.msra.mxu0 (!%p421_p2), %v494_v8  ;;  %v1286_v21 = vld [vmem:[%s1728_s9] ss:$0 sm:$0xff] (!%p421_p2)  ;;  %v606_v40 = vld [vmem:[%s1725_s6 + $0x18] sm:$0xff] (!%p421_p2)  ;;  %s1460_s25 = smov (!%p421_p2), 16   ;;  %vm1120_vm5 = vcmask (!%p421_p2), 195584  }
   0xa   : > { %1334 = vmatprep.subr.bf16.mxu0 (!%p421_p2), %v1454_v3  ;;  %v1284_v22 = vld [vmem:[%s1727_s8] ss:$0 sm:$0xff] (!%p421_p2)  ;;  %v608_v41 = vpack.c.bf16 (!%p421_p2), %v606_v40, %v605_v38 }
   0xb   : > { %v603_v36 = vld [vmem:[%s1725_s6] sm:$0xff] (!%p421_p2) }
   0xc   : > { %1343 = vmatpush3.bf16.msra.mxu1 (!%p421_p2), %v552_v11  ;;  %v607_v39 = vpack.c.bf16 (!%p421_p2), %v604_v37, %v603_v36  ;;  %v1288_v58 = vld [vmem:[%s1729_s10] ss:$0 sm:$0xff] (!%p421_p2) }
   0xd   : > { %s1735_s30 = smov (!%p468_p3, %s1276_s30), 1  ;;  %1335 = vmatpush3.bf16.msra.mxu0 %v495_v13  ;;  %1356 = vmatprep.subr.bf16.mxu1 %v1454_v3 }
   0xe   : > { %s1576_s17 = sshll.u32 %s1735_s30, 3  ;;  %1348 = vmatprep.subr.bf16.mxu0 %v1454_v3 }
   0xf   : > { %s475_s22 = scalar_lea.vmem %s1721_s2, %s1576_s17  ;;  %s471_s26 = scalar_lea.vmem %s1719_s0, %s1576_s17 }
  0x10   : > { %v482_v15 = vld [vmem:[%s475_s22] sm:$0xff]  ;;  %s479_s22 = scalar_lea.vmem %s1733_s14, %s1576_s17 }
  0x11   : > { %v487_v16 = vadd.f32 %v486_v12, %v482_v15  ;;  %v1593_v17 = vld [vmem:[%s471_s26] sm:$0xff]  ;;  %v489_v42 = vpack.c.bf16 %v482_v15, %v482_v15  ;;  %s1461_s26 = smov 24  }
  0x12   : > { %v484_v18 = vadd.f32 %v483_v14, %v1593_v17 }
  0x13   : > { %v488_v19 = vpack.c.bf16 %v487_v16, %v487_v16 }
  0x14   : > { %v485_v20 = vpack.c.bf16 %v484_v18, %v484_v18 }
  0x15   : > { %1345 = vmatmul.mubr.msk.bf16.vlgmr.msra.gmra.mrb[0].mxu1 %vm503_vm1, %v488_v19 }
  0x16   : > { %1337 = vmatmul.mubr.msk.bf16.vlgmr.msra.gmra.mrb[0].mxu0 %vm503_vm1, %v485_v20  ;;  %1358 = vmatprep.mubr.msk.bf16.mxu1 %vm1455_vm0, %v1454_v3 }
  0x17   : > { %1352 = vmatprep.mubr.msk.bf16.mxu0 %vm1455_vm0, %v1454_v3  ;;  %1349 = vmatpush3.bf16.msra.mxu0 %v607_v39 }
  0x18   : > { %1350 = vmatprep.subr.bf16.mxu0 %v1454_v3 }
  0x1b   : > { %1351 = vmatpush3.bf16.msra.mxu0 %v608_v41 }
  0x1c   : > { %1362 = vmatprep.subr.bf16.mxu0 %v1454_v3 }
  0x1e   : > { %1353 = vmatmul.mubr.msk.bf16.vlgmr.msra.gmra.mrb[4].mxu0 %vm503_vm1, %v489_v42 }
  0x1f   : > { %1364 = vmatprep.mubr.msk.bf16.mxu0 %vm1455_vm0, %v1454_v3 }
  0xe8   : > { %v597_v23 = vpop.f32.mrb[0].mxu1 }
  0xe9   : > { %v598_v24 = vadd.f32 %v1286_v21, %v597_v23  ;;  %v1346_v25 = vpop.f32.mrb[1].mxu1  ;;  %v541_v26 = vpop.f32.mrb[0].mxu0 }
  0xea   : > { %v600_v27 = vpop.f32.mrb[2].mxu1  ;;  %v542_v28 = vadd.f32 %v1284_v22, %v541_v26  ;;  %v1338_v29 = vpop.f32.mrb[1].mxu0 }
  0xeb   : > { %v660_v30 = vpack.c.bf16 %v598_v24, %v598_v24  ;;  %v1347_v31 = vpop.f32.mrb[3].mxu1  ;;  %v544_v32 = vpop.f32.mrb[2].mxu0 }
  0xec   : > { %v1339_v33 = vpop.f32.mrb[3].mxu0  ;;  %v659_v34 = vpack.c.bf16 %v542_v28, %v542_v28 }
  0xed   : > { %885 = vrot.lane.b32.xlu1 %v660_v30, %s1456_s18  ;;  %773 = vrot.lane.b32.xlu0 %v660_v30, %s1457_s19  ;;  %v667_v35 = vsel %vm662_vm2, %v660_v30, 0 }
  0xee   : > { %1357 = vmatpush3.bf16.xpose.msra.mxu1 %v667_v35 }
  0xef   : > { %1368 = vmatprep.subr.bf16.mxu1 %v1454_v3 }
  0xf1   : > { %883 = vrot.lane.b32.xlu1 %v659_v34, %s1456_s18  ;;  %770 = vrot.lane.b32.xlu0 %v659_v34, %s1457_s19  ;;  %v653_v59 = vpop.f32.mrb[4].mxu0 }
  0xf2   : > { %v654_v60 = vadd.f32 %v1288_v58, %v653_v59  ;;  %v1354_v61 = vpop.f32.mrb[5].mxu0 }
  0xf3   : > { %v656_v62 = vpop.f32.mrb[6].mxu0 }
  0xf4   : > { %v661_v63 = vpack.c.bf16 %v654_v60, %v654_v60  ;;  %v1355_v0 = vpop.f32.mrb[7].mxu0 }
  0xf5   : > { %994 = vrot.lane.b32.xlu1 %v659_v34, %s1458_s20  ;;  %996 = vrot.lane.b32.xlu0 %v660_v30, %s1458_s20 }
  0xf6   : > { %1359 = vmatmul.mubr.msk.bf16.vlgmr.msra.gmra.mrb[4].mxu1 %vm662_vm2, %v659_v34  ;;  %v727_v1 = vsel %vm725_vm3, %v661_v63, 0 }
  0xf7   : > { %1370 = vmatprep.mubr.msk.bf16.mxu1 %vm1455_vm0, %v1454_v3  ;;  %1363 = vmatpush3.bf16.msra.mxu0 %v727_v1 }
  0xf8   : > { %1374 = vmatprep.subr.bf16.mxu0 %v1454_v3 }
 0x15f   : > { %v774_v43 = vpop.permute.xlu0 %773  ;;  %v886_v45 = vpop.permute.xlu1 %885 }
 0x160   : > { %v779_v44 = vsel %vm662_vm2, %v774_v43, 0  ;;  %v891_v47 = vsel %vm662_vm2, %v886_v45, 0 }
 0x161   : > { %1369 = vmatpush3.bf16.xpose.msra.mxu1 %v779_v44 }
 0x162   : > { %1380 = vmatprep.subr.bf16.mxu1 %v1454_v3 }
 0x163   : > { %v771_v46 = vpop.permute.xlu0 %770  ;;  %v884_v49 = vpop.permute.xlu1 %883 }
 0x167   : > { %v997_v48 = vpop.permute.xlu0 %996  ;;  %v995_v51 = vpop.permute.xlu1 %994 }
 0x168   : > { %1371 = vmatmul.mubr.msk.bf16.vlgmr.msra.gmra.mrb[8].mxu1 %vm662_vm2, %v771_v46  ;;  %v1002_v50 = vsel %vm662_vm2, %v997_v48, 0 }
 0x169   : > { %1381 = vmatpush3.bf16.xpose.msra.mxu1 %v891_v47  ;;  %1382 = vmatprep.mubr.msk.bf16.mxu1 %vm1455_vm0, %v1454_v3 }
 0x16a   : > { %1392 = vmatprep.subr.bf16.mxu1 %v1454_v3 }
 0x170   : > { %1383 = vmatmul.mubr.msk.bf16.vlgmr.msra.gmra.mrb[12].mxu1 %vm662_vm2, %v884_v49 }
 0x171   : > { %1393 = vmatpush3.bf16.xpose.msra.mxu1 %v1002_v50  ;;  %1394 = vmatprep.mubr.msk.bf16.mxu1 %vm1455_vm0, %v1454_v3 }
 0x172   : > { %1404 = vmatprep.subr.bf16.mxu1 %v1454_v3 }
 0x178   : > { %1395 = vmatmul.mubr.msk.bf16.vlgmr.msra.gmra.mrb[16].mxu1 %vm662_vm2, %v995_v51 }
 0x179   : > { %1408 = vmatprep.mubr.msk.bf16.mxu1 %vm1455_vm0, %v1454_v3 }
 0x1c9   : > { %v703_v52 = vpop.f32.mrb[4].mxu1 }
 0x1ca   : > { %v709_v53 = vmul.f32 0.35355338, %v703_v52  ;;  %v1360_v54 = vpop.f32.mrb[5].mxu1 }
 0x1cb   : > { %v706_v55 = vpop.f32.mrb[6].mxu1 }
 0x1cc   : > { %v1361_v56 = vpop.f32.mrb[7].mxu1  ;;  %v710_v57 = vsel %vm662_vm2, %v709_v53, -inf }
 0x1cd   : > { %711 = vmax.xlane.f32.xlu0 %v710_v57 }
 0x23b   : > { %v815_v2 = vpop.f32.mrb[8].mxu1 }
 0x23c   : > { %v821_v4 = vmul.f32 0.35355338, %v815_v2  ;;  %v1372_v5 = vpop.f32.mrb[9].mxu1 }
 0x23d   : > { %v818_v6 = vpop.f32.mrb[10].mxu1  ;;  %v1123_v5 = vld [vmem:[%s1726_s7] sm:$0xff] }
 0x23e   : > { %v1373_v7 = vpop.f32.mrb[11].mxu1  ;;  %v822_v8 = vsel %vm662_vm2, %v821_v4, -inf  ;;  %v1124_v6 = vld [vmem:[%s1726_s7 + $0x8] sm:$0xff] }
 0x23f   : > { %823 = vmax.xlane.f32.xlu1 %v822_v8  ;;  %v1127_v7 = vpack.c.bf16 %v1124_v6, %v1123_v5 }
 0x241   : > { %1405 = vmatpush3.bf16.msra.mxu1 %v1127_v7 }
 0x242   : > { %1406 = vmatprep.subr.bf16.mxu1 %v1454_v3 }
 0x243   : > { %v927_v9 = vpop.f32.mrb[12].mxu1 }
 0x244   : > { %v933_v10 = vmul.f32 0.35355338, %v927_v9  ;;  %v1384_v11 = vpop.f32.mrb[13].mxu1 }
 0x245   : > { %v930_v12 = vpop.f32.mrb[14].mxu1 }
 0x246   : > { %v1385_v13 = vpop.f32.mrb[15].mxu1  ;;  %v934_v14 = vsel %vm662_vm2, %v933_v10, -inf  ;;  %v1125_v12 = vld [vmem:[%s1726_s7 + $0x10] sm:$0xff] }
 0x247   : > { %935 = vmax.xlane.f32.xlu0 %v934_v14  ;;  %v1126_v13 = vld [vmem:[%s1726_s7 + $0x18] sm:$0xff] }
 0x248   : > { %v1128_v14 = vpack.c.bf16 %v1126_v13, %v1125_v12 }
 0x24a   : > { %1407 = vmatpush3.bf16.msra.mxu1 %v1128_v14 }
 0x24b   : > { %v1038_v15 = vpop.f32.mrb[16].mxu1 }
 0x24c   : > { %v1044_v16 = vmul.f32 0.35355338, %v1038_v15  ;;  %v1396_v18 = vpop.f32.mrb[17].mxu1 }
 0x24d   : > { %v1041_v19 = vpop.f32.mrb[18].mxu1 }
 0x24e   : > { %v1397_v20 = vpop.f32.mrb[19].mxu1  ;;  %v1045_v21 = vsel %vm662_vm2, %v1044_v16, -inf }
 0x24f   : > { %1046 = vmax.xlane.f32.xlu0 %v1045_v21 }
 0x25a   : > { %v712_v22 = vpop.xlane.xlu0 %711 }
 0x25b   : > { %v713_v23 = vsub.f32 %v709_v53, %v712_v22 }
 0x25d   : > { %v714_v24 = vmul.f32 1.442695, %v713_v23 }
 0x25f   : > { %1428 = vpow2.f32 %v714_v24 }
 0x269   : > { %v1429_v25 = vpop.eup %1428 }
 0x26a   : > { %v716_v26 = vsel %vm662_vm2, %v1429_v25, 0.0 }
 0x26b   : > { %717 = vadd.xlane.f32.xlu1 %v716_v26 }
 0x27c   : > { %835 = vrot.lane.b32.xlu1 %v661_v63, %s1457_s19 }
 0x2cc   : > { %v824_v27 = vpop.xlane.xlu1 %823 }
 0x2cd   : > { %v825_v28 = vsub.f32 %v821_v4, %v824_v27 }
 0x2cf   : > { %v826_v29 = vmul.f32 1.442695, %v825_v28 }
 0x2d1   : > { %1430 = vpow2.f32 %v826_v29 }
 0x2d4   : > { %v936_v30 = vpop.xlane.xlu0 %935 }
 0x2d5   : > { %v937_v31 = vsub.f32 %v933_v10, %v936_v30  ;;  %v1298_v30 = vld [vmem:[%s1730_s11] ss:$0 sm:$0xff] }
 0x2d7   : > { %v938_v32 = vmul.f32 1.442695, %v937_v31 }
 0x2d9   : > { %1432 = vpow2.f32 %v938_v32 }
 0x2db   : > { %v1431_v33 = vpop.eup %1430 }
 0x2dc   : > { %v1047_v34 = vpop.xlane.xlu0 %1046  ;;  %v828_v35 = vsel %vm662_vm2, %v1431_v33, 0.0 }
 0x2dd   : > { %v1048_v36 = vsub.f32 %v1044_v16, %v1047_v34  ;;  %829 = vadd.xlane.f32.xlu0 %v828_v35 }
 0x2df   : > { %v1049_v37 = vmul.f32 1.442695, %v1048_v36 }
 0x2e1   : > { %1434 = vpow2.f32 %v1049_v37 }
 0x2e3   : > { %v1433_v38 = vpop.eup %1432 }
 0x2e4   : > { %v940_v39 = vsel %vm662_vm2, %v1433_v38, 0.0 }
 0x2e5   : > { %941 = vadd.xlane.f32.xlu1 %v940_v39 }
 0x2eb   : > { %v1435_v40 = vpop.eup %1434 }
 0x2ec   : > { %v1051_v41 = vsel %vm662_vm2, %v1435_v40, 0.0 }
 0x2ed   : > { %1052 = vadd.xlane.f32.xlu0 %v1051_v41 }
 0x2f6   : > { %1057 = vrot.lane.b32.xlu1 %v661_v63, %s1458_s20 }
 0x2f8   : > { %v718_v42 = vpop.xlane.xlu1 %717 }
 0x2f9   : > { %1436 = vrcp.f32 %v718_v42 }
 0x2fc   : > { %v836_v44 = vpop.permute.xlu1 %835 }
 0x2fd   : > { %v841_v47 = vsel %vm725_vm3, %v836_v44, 0 }
 0x303   : > { %v1437_v43 = vpop.eup %1436  ;;  %946 = vrot.lane.b32.xlu0 %v661_v63, %s1456_s18 }
 0x304   : > { %v720_v45 = vmul.f32 %v1437_v43, %v1429_v25 }
 0x306   : > { %v721_v46 = vpack.c.bf16 %v720_v45, %v720_v45 }
 0x308   : > { %1365 = vmatmul.mubr.msk.bf16.vlgmr.msra.gmra.mrb[8].mxu0 %vm662_vm2, %v721_v46 }
 0x309   : > { %1375 = vmatpush3.bf16.msra.mxu0 %v841_v47  ;;  %1376 = vmatprep.mubr.msk.bf16.mxu0 %vm1455_vm0, %v1454_v3 }
 0x30a   : > { %1386 = vmatprep.subr.bf16.mxu0 %v1454_v3 }
 0x36a   : > { %v830_v48 = vpop.xlane.xlu0 %829 }
 0x36b   : > { %1438 = vrcp.f32 %v830_v48  ;;  %v1301_v48 = vld [vmem:[%s1732_s13] ss:$0 sm:$0xff] }
 0x372   : > { %v942_v49 = vpop.xlane.xlu1 %941 }
 0x373   : > { %1440 = vrcp.f32 %v942_v49 }
 0x375   : > { %v1439_v50 = vpop.eup %1438 }
 0x376   : > { %v832_v51 = vmul.f32 %v1439_v50, %v1431_v33  ;;  %v1058_v58 = vpop.permute.xlu1 %1057 }
 0x377   : > { %v1063_v60 = vsel %vm725_vm3, %v1058_v58, 0 }
 0x378   : > { %v833_v52 = vpack.c.bf16 %v832_v51, %v832_v51 }
 0x37a   : > { %v1053_v53 = vpop.xlane.xlu0 %1052  ;;  %1377 = vmatmul.mubr.msk.bf16.vlgmr.msra.gmra.mrb[12].mxu0 %vm662_vm2, %v833_v52 }
 0x37b   : > { %1442 = vrcp.f32 %v1053_v53  ;;  %1388 = vmatprep.mubr.msk.bf16.mxu0 %vm1455_vm0, %v1454_v3 }
 0x37d   : > { %v1441_v54 = vpop.eup %1440 }
 0x37e   : > { %v944_v55 = vmul.f32 %v1441_v54, %v1433_v38  ;;  %v947_v56 = vpop.permute.xlu0 %946 }
 0x37f   : > { %v952_v57 = vsel %vm725_vm3, %v947_v56, 0 }
 0x380   : > { %1387 = vmatpush3.bf16.msra.mxu0 %v952_v57  ;;  %v945_v59 = vpack.c.bf16 %v944_v55, %v944_v55 }
 0x381   : > { %1398 = vmatprep.subr.bf16.mxu0 %v1454_v3 }
 0x383   : > { %1389 = vmatmul.mubr.msk.bf16.vlgmr.msra.gmra.mrb[16].mxu0 %vm662_vm2, %v945_v59 }
 0x384   : > { %1399 = vmatpush3.bf16.msra.mxu0 %v1063_v60  ;;  %1400 = vmatprep.mubr.msk.bf16.mxu0 %vm1455_vm0, %v1454_v3 }
 0x385   : > { %v1443_v61 = vpop.eup %1442 }
 0x386   : > { %v1055_v62 = vmul.f32 %v1443_v61, %v1435_v40 }
 0x388   : > { %v1056_v63 = vpack.c.bf16 %v1055_v62, %v1055_v62 }
 0x38b   : > { %1401 = vmatmul.mubr.msk.bf16.vlgmr.msra.gmra.mrb[20].mxu0 %vm662_vm2, %v1056_v63 }
 0x3db   : > { %v763_v0 = vpop.f32.mrb[8].mxu0 }
 0x3dc   : > { %v1366_v1 = vpop.f32.mrb[9].mxu0 }
 0x3dd   : > { %v766_v2 = vpop.f32.mrb[10].mxu0 }
 0x3de   : > { %v1367_v4 = vpop.f32.mrb[11].mxu0 }
 0x44d   : > { %v877_v8 = vpop.f32.mrb[12].mxu0 }
 0x44e   : > { %1106 = vrot.lane.b32.xlu1 %v877_v8, %s1459_s21  ;;  %v1378_v9 = vpop.f32.mrb[13].mxu0 }
 0x44f   : > { %v880_v10 = vpop.f32.mrb[14].mxu0 }
 0x450   : > { %v1379_v11 = vpop.f32.mrb[15].mxu0 }
 0x456   : > { %v988_v15 = vpop.f32.mrb[16].mxu0 }
 0x457   : > { %1110 = vrot.lane.b32.xlu0 %v988_v15, %s1460_s25  ;;  %v1390_v16 = vpop.f32.mrb[17].mxu0 }
 0x458   : > { %v991_v18 = vpop.f32.mrb[18].mxu0 }
 0x459   : > { %v1391_v19 = vpop.f32.mrb[19].mxu0 }
 0x45e   : > { %v1099_v20 = vpop.f32.mrb[20].mxu0 }
 0x45f   : > { %1114 = vrot.lane.b32.xlu1 %v1099_v20, %s1461_s26  ;;  %v1402_v3 = vpop.f32.mrb[21].mxu0 }
 0x460   : > { %v1102_v21 = vpop.f32.mrb[22].mxu0 }
 0x461   : > { %v1403_v22 = vpop.f32.mrb[23].mxu0 }
 0x4c0   : > { %v1107_v23 = vpop.permute.xlu1 %1106 }
 0x4c1   : > { %v1117_v25 = vsel %vm662_vm2, %v763_v0, %v1107_v23 }
 0x4c9   : > { %v1111_v24 = vpop.permute.xlu0 %1110 }
 0x4ca   : > { %v1119_v26 = vsel %vm1118_vm4, %v1117_v25, %v1111_v24 }
 0x4d1   : > { %v1115_v27 = vpop.permute.xlu1 %1114 }
 0x4d2   : > { %v1121_v28 = vsel %vm1120_vm5, %v1119_v26, %v1115_v27 }
 0x4d3   : > { %v1122_v29 = vpack.c.bf16 %v1121_v28, %v1121_v28 }
 0x4d5   : > { %1409 = vmatmul.mubr.msk.bf16.vlgmr.msra.gmra.mrb[20].mxu1 %vm503_vm1, %v1122_v29 }
 0x5a8   : > { %v1173_v31 = vpop.f32.mrb[20].mxu1 }
 0x5a9   : > { %v1174_v32 = vadd.f32 %v1298_v30, %v1173_v31  ;;  %v1410_v33 = vpop.f32.mrb[21].mxu1 }
 0x5aa   : > { %v1176_v34 = vpop.f32.mrb[22].mxu1 }
 0x5ab   : > { %v1411_v35 = vpop.f32.mrb[23].mxu1  ;;  %v1179_v36 = vadd.f32 %v1174_v32, %v1593_v17  ;;  %v1300_v17 = vld [vmem:[%s1731_s12] ss:$0 sm:$0xff] }
 0x5ad   : > { %v1180_v37 = vsel %vm503_vm1, %v1179_v36, 0.0 }
 0x5ae   : > { %1181 = vadd.xlane.f32.xlu0 %v1180_v37 }
 0x63b   : > { %v1182_v38 = vpop.xlane.xlu0 %1181 }
 0x63c   : > { %v1184_v39 = vmul.f32 0.03125, %v1182_v38 }
 0x63e   : > { %v1185_v40 = vsub.f32 %v1179_v36, %v1184_v39 }
 0x640   : > { %v1186_v41 = vmul.f32 %v1185_v40, %v1185_v40 }
 0x642   : > { %v1187_v42 = vsel %vm503_vm1, %v1186_v41, 0.0 }
 0x643   : > { %1188 = vadd.xlane.f32.xlu1 %v1187_v42 }
 0x6d0   : > { %v1189_v43 = vpop.xlane.xlu1 %1188 }
 0x6d1   : > { %v1190_v44 = vmul.f32 0.03125, %v1189_v43 }
 0x6d3   : > { %v1191_v45 = vadd.f32 1e-05, %v1190_v44 }
 0x6d5   : > { %1444 = vrsqrt.f32 %v1191_v45 }
 0x6df   : > { %v1445_v46 = vpop.eup %1444 }
 0x6e0   : > { %v1193_v47 = vmul.f32 %v1445_v46, %v1185_v40 }
 0x6e2   : > { %v1201_v49 = vmul.f32 %v1300_v17, %v1193_v47 }
 0x6e4   : > { %v1209_v50 = vadd.f32 %v1301_v48, %v1201_v49 }
 0x6e6   : > { %1210 = vst.msk [vmem:[%s479_s22] sm:$0xff] %vm503_vm1, %v1209_v50 }
 0x6e7 PF: > { %s24_s29 = sadd.s32 1, %s1452_s29  }
 0x6e8   : > { %p21_p4 = scmp.ge.s32.totalorder %s24_s29, 4  }
 0x6ea   :  { %23 = sbr.rel (!%p21_p4) target bundleno = 1 (0x1), region = 109 }

// kernel: detr_forward.23
= control target key start
LH: loop header
LB: loop body
LE: loop exit
PB: predicated region body
PF: predicated region fallthrough
CT: control target
= control target key end

     0   :  { %s1813_s29 = smov 0   ;;  %s2154_s0 = inlined_call_operand.vmem [shape: f32[2,8,32], index: 0, kind: input, shape index: {}]   ;;  %s2155_s1 = inlined_call_operand.vmem [shape: f32[1,8,32], index: 1, kind: input, shape index: {}]   ;;  %s2156_s2 = inlined_call_operand.vmem [shape: f32[2,64,32], index: 2, kind: input, shape index: {}]   ;;  %s2157_s3 = inlined_call_operand.vmem [shape: f32[1,64,32], index: 3, kind: input, shape index: {}]   ;;  %s2158_s4 = inlined_call_operand.vmem [shape: f32[32,32], index: 4, kind: input, shape index: {}]   ;;  %s2159_s5 = inlined_call_operand.vmem [shape: f32[32,32], index: 5, kind: input, shape index: {}]   ;;  %s2160_s6 = inlined_call_operand.vmem [shape: f32[32,32], index: 6, kind: input, shape index: {}]   ;;  %s2161_s7 = inlined_call_operand.vmem [shape: f32[32,32], index: 7, kind: input, shape index: {}]   ;;  %s2162_s8 = inlined_call_operand.vmem [shape: f32[1,32], index: 8, kind: input, shape index: {}]   ;;  %s2163_s9 = inlined_call_operand.vmem [shape: f32[1,32], index: 9, kind: input, shape index: {}]   ;;  %s2164_s10 = inlined_call_operand.vmem [shape: f32[1,32], index: 10, kind: input, shape index: {}]   ;;  %s2165_s11 = inlined_call_operand.vmem [shape: f32[1,32], index: 11, kind: input, shape index: {}]   ;;  %s2166_s12 = inlined_call_operand.vmem [shape: f32[1,32], index: 12, kind: input, shape index: {}]   ;;  %s2167_s13 = inlined_call_operand.vmem [shape: f32[1,32], index: 13, kind: input, shape index: {}]   ;;  %s2168_s14 = inlined_call_operand.vmem [shape: f32[2,8,32], index: 14, kind: output, shape index: {}]  }
   0x1 LB: > { %s1458_s30 = sadd.s32 4294967295, %s1728_s29   ;;  %p1462_p0 = scmp.ge.s32.totalorder %s1728_s29, 1  ;;  %s1728_s29 = sphi %s1813_s29, %s24_s29  }
   0x2   : > { %p421_p1 = scmp.lt.s32.totalorder %s1728_s29, 3 }
   0x4   : > { %p422_p2 = pnand %p1462_p0, %p421_p1 }
   0x5   : > { %v577_v0 = vld [vmem:[%s2159_s5] sm:$0xff] (!%p422_p2)  ;;  %v578_v1 = vld [vmem:[%s2159_s5 + $0x8] sm:$0xff] (!%p422_p2)  ;;  %v579_v2 = vld [vmem:[%s2159_s5 + $0x10] sm:$0xff] (!%p422_p2)  ;;  %p470_p3 = scmp.lt.s32.totalorder (!%p422_p2), %s1458_s30, 1  ;;  %v1730_v5 = vmov (!%p422_p2), 0.0   ;;  %vm1731_vm0 = vmmov (!%p422_p2), 0  }
   0x6   : > { %425 = sbr.rel (%p422_p2) target bundleno = 3354 (0xd1a), region = 76  ;;  %v581_v3 = vpack.c.bf16 (!%p422_p2), %v578_v1, %v577_v0  ;;  %v580_v4 = vld [vmem:[%s2159_s5 + $0x18] sm:$0xff] (!%p422_p2)  ;;  %1552 = vmatprep.subr.bf16.mxu0 (!%p422_p2), %v1730_v5  ;;  %v496_v7 = vld [vmem:[%s2157_s3] sm:$0xff] (!%p422_p2)  ;;  %v497_v8 = vld [vmem:[%s2157_s3 + $0x8] sm:$0xff] (!%p422_p2)  ;;  %1556 = vmatprep.mubr.msk.bf16.mxu0 (!%p422_p2), %vm1731_vm0, %v1730_v5  ;;  %vm533_vm1 = vcmask (!%p422_p2), 261120   ;;  %vm766_vm2 = vcmask (!%p422_p2), 64512  }
   0x7   : > { %v582_v6 = vpack.c.bf16 (!%p422_p2), %v580_v4, %v579_v2  ;;  %v498_v9 = vld [vmem:[%s2157_s3 + $0x10] sm:$0xff] (!%p422_p2)  ;;  %v499_v10 = vld [vmem:[%s2157_s3 + $0x18] sm:$0xff] (!%p422_p2)  ;;  %v500_v11 = vld [vmem:[%s2157_s3 + $0x20] sm:$0xff] (!%p422_p2)  ;;  %s1732_s18 = smov (!%p422_p2), 120   ;;  %vm823_vm3 = vcmask (!%p422_p2), 523264   ;;  %s1733_s20 = smov (!%p422_p2), 112  }
   0x8   : > { %1560 = vmatprep.subr.bf16.mxu1 (!%p422_p2), %v581_v3  ;;  %v520_v12 = vld [vmem:[%s2158_s4] sm:$0xff] (!%p422_p2)  ;;  %v521_v13 = vld [vmem:[%s2158_s4 + $0x8] sm:$0xff] (!%p422_p2)  ;;  %v522_v14 = vld [vmem:[%s2158_s4 + $0x10] sm:$0xff] (!%p422_p2)  ;;  %s1735_s21 = smov (!%p422_p2), 8   ;;  %s1736_s22 = smov (!%p422_p2), 16   ;;  %vm1300_vm4 = vcmask (!%p422_p2), 130048  }
   0x9   : > { %1561 = vmatpush3.bf16.msra.mxu1 (!%p422_p2), %v581_v3  ;;  %v501_v15 = vld [vmem:[%s2157_s3 + $0x28] sm:$0xff] (!%p422_p2)  ;;  %v524_v16 = vpack.c.bf16 (!%p422_p2), %v521_v13, %v520_v12  ;;  %v523_v17 = vld [vmem:[%s2158_s4 + $0x18] sm:$0xff] (!%p422_p2)  ;;  %v493_v18 = vld [vmem:[%s2155_s1] sm:$0xff] (!%p422_p2)  ;;  %s1737_s17 = smov (!%p422_p2), 24   ;;  %vm1302_vm5 = vcmask (!%p422_p2), 195584  }
   0xa   : > { %1562 = vmatprep.subr.bf16.mxu1 (!%p422_p2), %v582_v6  ;;  %v525_v28 = vpack.c.bf16 (!%p422_p2), %v523_v17, %v522_v14  ;;  %v502_v33 = vld [vmem:[%s2157_s3 + $0x30] sm:$0xff] (!%p422_p2)  ;;  %v503_v38 = vld [vmem:[%s2157_s3 + $0x38] sm:$0xff] (!%p422_p2)  ;;  %v1469_v48 = vld [vmem:[%s2163_s9] ss:$0 sm:$0xff] (!%p422_p2) }
   0xb   : > { %1553 = vmatpush3.bf16.msra.mxu0 (!%p422_p2), %v524_v16  ;;  %v1467_v2 = vld [vmem:[%s2162_s8] ss:$0 sm:$0xff] (!%p422_p2)  ;;  %v668_v17 = vld [vmem:[%s2160_s6 + $0x8] sm:$0xff] (!%p422_p2) }
   0xc   : > { %1554 = vmatprep.subr.bf16.mxu0 (!%p422_p2), %v1730_v5  ;;  %v667_v16 = vld [vmem:[%s2160_s6] sm:$0xff] (!%p422_p2) }
   0xd   : > { %s2170_s30 = smov (!%p470_p3, %s1458_s30), 1  ;;  %1563 = vmatpush3.bf16.msra.mxu1 %v582_v6 }
   0xe   : > { %s1493_s19 = sshll.u32 %s2170_s30, 6  ;;  %s1463_s26 = sshll.u32 %s2170_s30, 3  ;;  %1584 = vmatprep.subr.bf16.mxu1 %v1730_v5 }
   0xf   : > { %s478_s15 = scalar_lea.vmem %s2156_s2, %s1493_s19  ;;  %s473_s23 = scalar_lea.vmem %s2154_s0, %s1463_s26  ;;  %1555 = vmatpush3.bf16.msra.mxu0 %v525_v28 }
  0x10   : > { %v485_v19 = vld [vmem:[%s478_s15] sm:$0xff]  ;;  %v486_v20 = vld [vmem:[%s478_s15 + $0x8] sm:$0xff]  ;;  %v1881_v21 = vld [vmem:[%s478_s15 + $0x10] sm:$0xff]  ;;  %s482_s27 = scalar_lea.vmem %s2168_s14, %s1463_s26 }
  0x11   : > { %v504_v22 = vadd.f32 %v496_v7, %v485_v19  ;;  %v505_v23 = vadd.f32 %v497_v8, %v486_v20  ;;  %v1883_v24 = vld [vmem:[%s478_s15 + $0x18] sm:$0xff]  ;;  %v506_v25 = vadd.f32 %v498_v9, %v1881_v21  ;;  %v1886_v26 = vld [vmem:[%s478_s15 + $0x20] sm:$0xff]  ;;  %v1888_v27 = vld [vmem:[%s478_s15 + $0x28] sm:$0xff]  ;;  %v516_v42 = vpack.c.bf16 %v486_v20, %v485_v19 }
  0x12   : > { %v507_v29 = vadd.f32 %v499_v10, %v1883_v24  ;;  %v517_v30 = vpack.c.bf16 %v1883_v24, %v1881_v21  ;;  %v508_v31 = vadd.f32 %v500_v11, %v1886_v26  ;;  %v509_v32 = vadd.f32 %v501_v15, %v1888_v27  ;;  %v1898_v34 = vld [vmem:[%s473_s23] sm:$0xff]  ;;  %v1900_v36 = vld [vmem:[%s478_s15 + $0x30] sm:$0xff]  ;;  %v1902_v37 = vld [vmem:[%s478_s15 + $0x38] sm:$0xff] }
  0x13   : > { %v512_v35 = vpack.c.bf16 %v505_v23, %v504_v22  ;;  %v494_v39 = vadd.f32 %v493_v18, %v1898_v34  ;;  %v510_v44 = vadd.f32 %v502_v33, %v1900_v36  ;;  %v511_v45 = vadd.f32 %v503_v38, %v1902_v37  ;;  %v669_v18 = vld [vmem:[%s2160_s6 + $0x10] sm:$0xff]  ;;  %v670_v20 = vld [vmem:[%s2160_s6 + $0x18] sm:$0xff]  ;;  %v1474_v24 = vld [vmem:[%s2164_s10] ss:$0 sm:$0xff] }
  0x14   : > { %v513_v40 = vpack.c.bf16 %v507_v29, %v506_v25  ;;  %v514_v41 = vpack.c.bf16 %v509_v32, %v508_v31  ;;  %v671_v19 = vpack.c.bf16 %v668_v17, %v667_v16  ;;  %v672_v22 = vpack.c.bf16 %v670_v20, %v669_v18 }
  0x15   : > { %1564 = vmatprep.mubr.msk.bf16.mxu1 %vm533_vm1, %v512_v35  ;;  %v495_v43 = vpack.c.bf16 %v494_v39, %v494_v39  ;;  %v515_v46 = vpack.c.bf16 %v511_v45, %v510_v44  ;;  %v518_v23 = vpack.c.bf16 %v1888_v27, %v1886_v26  ;;  %v519_v25 = vpack.c.bf16 %v1902_v37, %v1900_v36 }
  0x16   : > { %1565 = vmatmul.mubr.msk.bf16.vlgmr.msra.gmra.mrb[0].mxu1 %vm533_vm1, %v513_v40  ;;  %1572 = vmatprep.subr.bf16.mxu0 %v671_v19 }
  0x17   : > { %1568 = vmatprep.mubr.msk.bf16.mxu1 %vm533_vm1, %v514_v41  ;;  %1557 = vmatmul.mubr.msk.bf16.vlgmr.msra.gmra.mrb[0].mxu0 %vm533_vm1, %v495_v43 }
  0x18   : > { %1576 = vmatprep.mubr.msk.bf16.mxu0 %vm533_vm1, %v516_v42  ;;  %1573 = vmatpush3.bf16.msra.mxu0 %v671_v19 }
  0x19   : > { %1574 = vmatprep.subr.bf16.mxu0 %v672_v22 }
  0x1c   : > { %1575 = vmatpush3.bf16.msra.mxu0 %v672_v22 }
  0x1d   : > { %1596 = vmatprep.subr.bf16.mxu0 %v1730_v5 }
  0x1e   : > { %1569 = vmatmul.mubr.msk.bf16.gmra.mrb[4].mxu1 %vm533_vm1, %v515_v46 }
  0x1f   : > { %1592 = vmatprep.mubr.msk.bf16.mxu1 %vm1731_vm0, %v1730_v5  ;;  %1577 = vmatmul.mubr.msk.bf16.vlgmr.msra.gmra.mrb[4].mxu0 %vm533_vm1, %v517_v30 }
  0x20   : > { %1580 = vmatprep.mubr.msk.bf16.mxu0 %vm533_vm1, %v518_v23 }
  0x27   : > { %1581 = vmatmul.mubr.msk.bf16.gmra.mrb[8].mxu0 %vm533_vm1, %v519_v25 }
  0x28   : > { %1604 = vmatprep.mubr.msk.bf16.mxu0 %vm1731_vm0, %v1730_v5 }
  0xe9   : > { %v1566_v47 = vpop.f32.mrb[0].mxu1 }
  0xea   : > { %v636_v49 = vpop.f32.mrb[1].mxu1  ;;  %v571_v51 = vpop.f32.mrb[0].mxu0  ;;  %v645_v52 = vadd.f32 %v1566_v47, %v1469_v48 }
  0xeb   : > { %v1567_v50 = vpop.f32.mrb[2].mxu1  ;;  %v1558_v55 = vpop.f32.mrb[1].mxu0  ;;  %v637_v56 = vadd.f32 %v1469_v48, %v636_v49  ;;  %v572_v9 = vadd.f32 %v1467_v2, %v571_v51 }
  0xec   : > { %v648_v53 = vadd.f32 %v1567_v50, %v1469_v48  ;;  %v639_v54 = vpop.f32.mrb[3].mxu1  ;;  %v574_v58 = vpop.f32.mrb[2].mxu0 }
  0xed   : > { %v640_v57 = vadd.f32 %v1469_v48, %v639_v54  ;;  %v1559_v60 = vpop.f32.mrb[3].mxu0  ;;  %v1945_v13 = vpack.c.bf16 %v572_v9, %v572_v9 }
  0xee   : > { %v1923_v59 = vpack.c.bf16 %v648_v53, %v645_v52 }
  0xef   : > { %v1925_v61 = vpack.c.bf16 %v640_v57, %v637_v56 }
  0xf0   : > { %v774_v12 = vsel %vm766_vm2, %v1923_v59, 0 }
  0xf1   : > { %886 = vrot.lane.b32.xlu1 %v1925_v61, %s1732_s18  ;;  %v771_v62 = vsel %vm766_vm2, %v1925_v61, 0  ;;  %v1570_v63 = vpop.f32.mrb[4].mxu1 }
  0xf2   : > { %1585 = vmatpush3.bf16.xpose.msra.mxu1 %v771_v62  ;;  %v661_v0 = vadd.f32 %v1570_v63, %v1469_v48  ;;  %v652_v1 = vpop.f32.mrb[5].mxu1  ;;  %v1578_v30 = vpop.f32.mrb[4].mxu0 }
  0xf3   : > { %v653_v3 = vadd.f32 %v1469_v48, %v652_v1  ;;  %v1571_v4 = vpop.f32.mrb[6].mxu1  ;;  %1586 = vmatprep.subr.bf16.mxu1 %v1730_v5  ;;  %v735_v32 = vadd.f32 %v1578_v30, %v1474_v24  ;;  %v726_v33 = vpop.f32.mrb[5].mxu0 }
  0xf4   : > { %v664_v6 = vadd.f32 %v1571_v4, %v1469_v48  ;;  %v655_v7 = vpop.f32.mrb[7].mxu1  ;;  %v727_v35 = vadd.f32 %v1474_v24, %v726_v33  ;;  %v1579_v36 = vpop.f32.mrb[6].mxu0 }
  0xf5   : > { %888 = vrot.lane.b32.xlu1 %v1923_v59, %s1732_s18  ;;  %v656_v8 = vadd.f32 %v1469_v48, %v655_v7  ;;  %v738_v37 = vadd.f32 %v1579_v36, %v1474_v24  ;;  %v729_v38 = vpop.f32.mrb[7].mxu0 }
  0xf6   : > { %v1937_v10 = vpack.c.bf16 %v664_v6, %v661_v0  ;;  %v730_v39 = vadd.f32 %v1474_v24, %v729_v38 }
  0xf7   : > { %v1939_v11 = vpack.c.bf16 %v656_v8, %v653_v3  ;;  %v1989_v40 = vpack.c.bf16 %v738_v37, %v735_v32 }
  0xf8   : > { %v780_v15 = vsel %vm766_vm2, %v1937_v10, 0  ;;  %v1991_v41 = vpack.c.bf16 %v730_v39, %v727_v35 }
  0xf9   : > { %892 = vrot.lane.b32.xlu1 %v1937_v10, %s1732_s18  ;;  %v777_v14 = vsel %vm766_vm2, %v1939_v11, 0 }
  0xfa   : > { %1587 = vmatpush3.bf16.xpose.msra.mxu1 %v774_v12  ;;  %v1582_v42 = vpop.f32.mrb[8].mxu0  ;;  %1597 = vmatpush3.bf16.msra.mxu0 %v1991_v41 }
  0xfb   : > { %1588 = vmatprep.subr.bf16.mxu1 %v1730_v5  ;;  %v751_v43 = vadd.f32 %v1582_v42, %v1474_v24  ;;  %v742_v44 = vpop.f32.mrb[9].mxu0  ;;  %1598 = vmatprep.subr.bf16.mxu0 %v1730_v5 }
  0xfc   : > { %v743_v45 = vadd.f32 %v1474_v24, %v742_v44  ;;  %v1583_v46 = vpop.f32.mrb[10].mxu0 }
  0xfd   : > { %880 = vrot.lane.b32.xlu1 %v1945_v13, %s1732_s18  ;;  %v754_v47 = vadd.f32 %v1583_v46, %v1474_v24  ;;  %v745_v48 = vpop.f32.mrb[11].mxu0 }
  0xfe   : > { %v746_v49 = vadd.f32 %v1474_v24, %v745_v48  ;;  %1599 = vmatpush3.bf16.msra.mxu0 %v1989_v40 }
  0xff   : > { %v1996_v50 = vpack.c.bf16 %v754_v47, %v751_v43  ;;  %1600 = vmatprep.subr.bf16.mxu0 %v1730_v5 }
 0x100   : > { %v1999_v51 = vpack.c.bf16 %v746_v49, %v743_v45 }
 0x102   : > { %1589 = vmatpush3.bf16.xpose.msra.mxu1 %v777_v14  ;;  %1601 = vmatpush3.bf16.msra.mxu0 %v1999_v51 }
 0x103   : > { %1590 = vmatprep.subr.bf16.mxu1 %v1730_v5  ;;  %1602 = vmatprep.subr.bf16.mxu0 %v1730_v5 }
 0x106   : > { %1603 = vmatpush3.bf16.msra.mxu0 %v1996_v50 }
 0x107   : > { %1608 = vmatprep.subr.bf16.mxu0 %v1730_v5 }
 0x10a   : > { %1591 = vmatpush3.bf16.xpose.msra.mxu1 %v780_v15 }
 0x10b   : > { %1620 = vmatprep.subr.bf16.mxu1 %v1730_v5 }
 0x111   : > { %1593 = vmatmul.mubr.msk.bf16.vlgmr.msra.gmra.mrb[8].mxu1 %vm766_vm2, %v1945_v13 }
 0x112   : > { %1628 = vmatprep.mubr.msk.bf16.mxu1 %vm1731_vm0, %v1730_v5 }
 0x163   : > { %v887_v62 = vpop.permute.xlu1 %886 }
 0x164   : > { %v898_v0 = vsel %vm766_vm2, %v887_v62, 0 }
 0x167   : > { %v889_v1 = vpop.permute.xlu1 %888 }
 0x168   : > { %v901_v2 = vsel %vm766_vm2, %v889_v1, 0 }
 0x16b   : > { %v893_v6 = vpop.permute.xlu1 %892 }
 0x16c   : > { %v907_v7 = vsel %vm766_vm2, %v893_v6, 0 }
 0x16f   : > { %v881_v8 = vpop.permute.xlu1 %880 }
 0x1e4   : > { %v816_v28 = vpop.f32.mrb[8].mxu1 }
 0x1e5   : > { %v822_v26 = vmul.f32 0.35355338, %v816_v28  ;;  %v1594_v27 = vpop.f32.mrb[9].mxu1 }
 0x1e6   : > { %v819_v29 = vpop.f32.mrb[10].mxu1 }
 0x1e7   : > { %v1595_v31 = vpop.f32.mrb[11].mxu1  ;;  %v824_v21 = vsel %vm823_vm3, %v822_v26, -inf }
 0x1e8   : > { %825 = vmax.xlane.f32.xlu0 %v824_v21 }
 0x275   : > { %v826_v52 = vpop.xlane.xlu0 %825 }
 0x276   : > { %v827_v53 = vsub.f32 %v822_v26, %v826_v52 }
 0x278   : > { %v828_v54 = vmul.f32 1.442695, %v827_v53 }
 0x27a   : > { %1704 = vpow2.f32 %v828_v54 }
 0x284   : > { %v1705_v55 = vpop.eup %1704 }
 0x285   : > { %v830_v56 = vsel %vm823_vm3, %v1705_v55, 0.0 }
 0x286   : > { %831 = vadd.xlane.f32.xlu0 %v830_v56 }
 0x29c   : > { %890 = vrot.lane.b32.xlu0 %v1939_v11, %s1732_s18 }
 0x313   : > { %v832_v57 = vpop.xlane.xlu0 %831 }
 0x314   : > { %1706 = vrcp.f32 %v832_v57 }
 0x317   : > { %v891_v3 = vpop.permute.xlu0 %890 }
 0x318   : > { %v904_v4 = vsel %vm766_vm2, %v891_v3, 0 }
 0x31e   : > { %v1707_v58 = vpop.eup %1706 }
 0x31f   : > { %v834_v60 = vmul.f32 %v1707_v58, %v1705_v55 }
 0x321   : > { %v835_v63 = vpack.c.bf16 %v834_v60, %v834_v60 }
 0x323   : > { %1605 = vmatmul.mubr.msk.bf16.vlgmr.msra.gmra.mrb[12].mxu0 %vm823_vm3, %v835_v63 }
 0x324   : > { %1609 = vmatpush3.bf16.xpose.msra.mxu0 %v898_v0  ;;  %1616 = vmatprep.mubr.msk.bf16.mxu0 %vm1731_vm0, %v1730_v5 }
 0x325   : > { %1610 = vmatprep.subr.bf16.mxu0 %v1730_v5 }
 0x32c   : > { %1611 = vmatpush3.bf16.xpose.msra.mxu0 %v901_v2 }
 0x32d   : > { %1612 = vmatprep.subr.bf16.mxu0 %v1730_v5 }
 0x334   : > { %1613 = vmatpush3.bf16.xpose.msra.mxu0 %v904_v4 }
 0x335   : > { %1614 = vmatprep.subr.bf16.mxu0 %v1730_v5 }
 0x33c   : > { %1615 = vmatpush3.bf16.xpose.msra.mxu0 %v907_v7 }
 0x33d   : > { %1644 = vmatprep.subr.bf16.mxu0 %v1730_v5 }
 0x343   : > { %1617 = vmatmul.mubr.msk.bf16.vlgmr.msra.gmra.mrb[16].mxu0 %vm766_vm2, %v881_v8 }
 0x344   : > { %1652 = vmatprep.mubr.msk.bf16.mxu0 %vm1731_vm0, %v1730_v5 }
 0x3f6   : > { %v2022_v9 = vpop.f32.mrb[12].mxu0 }
 0x3f7   : > { %v1606_v12 = vpop.f32.mrb[13].mxu0 }
 0x3f8   : > { %v876_v14 = vpop.f32.mrb[14].mxu0 }
 0x3f9   : > { %v1607_v15 = vpop.f32.mrb[15].mxu0 }
 0x416   : > { %v943_v16 = vpop.f32.mrb[16].mxu0 }
 0x417   : > { %v949_v17 = vmul.f32 0.35355338, %v943_v16  ;;  %v1618_v18 = vpop.f32.mrb[17].mxu0 }
 0x418   : > { %v946_v19 = vpop.f32.mrb[18].mxu0 }
 0x419   : > { %v1619_v20 = vpop.f32.mrb[19].mxu0  ;;  %v950_v22 = vsel %vm823_vm3, %v949_v17, -inf }
 0x41a   : > { %951 = vmax.xlane.f32.xlu1 %v950_v22 }
 0x42b   : > { %966 = vrot.lane.b32.xlu1 %v1991_v41, %s1732_s18 }
 0x42f   : > { %970 = vrot.lane.b32.xlu1 %v1999_v51, %s1732_s18 }
 0x433   : > { %972 = vrot.lane.b32.xlu1 %v1996_v50, %s1732_s18 }
 0x437   : > { %1023 = vrot.lane.b32.xlu1 %v1925_v61, %s1733_s20 }
 0x43b   : > { %1025 = vrot.lane.b32.xlu1 %v1923_v59, %s1733_s20 }
 0x43f   : > { %1029 = vrot.lane.b32.xlu1 %v1937_v10, %s1733_s20 }
 0x4a7   : > { %v952_v23 = vpop.xlane.xlu1 %951 }
 0x4a8   : > { %v953_v25 = vsub.f32 %v949_v17, %v952_v23 }
 0x4aa   : > { %v954_v28 = vmul.f32 1.442695, %v953_v25 }
 0x4ab   : > { %v967_v26 = vpop.permute.xlu1 %966 }
 0x4ac   : > { %1708 = vpow2.f32 %v954_v28  ;;  %1621 = vmatpush3.bf16.msra.mxu1 %v967_v26 }
 0x4ad   : > { %1622 = vmatprep.subr.bf16.mxu1 %v1730_v5 }
 0x4af   : > { %v971_v24 = vpop.permute.xlu1 %970 }
 0x4b3   : > { %v973_v33 = vpop.permute.xlu1 %972 }
 0x4b6   : > { %v1709_v27 = vpop.eup %1708 }
 0x4b7   : > { %v956_v29 = vsel %vm823_vm3, %v1709_v27, 0.0  ;;  %v1024_v39 = vpop.permute.xlu1 %1023 }
 0x4b8   : > { %957 = vadd.xlane.f32.xlu0 %v956_v29  ;;  %v1035_v42 = vsel %vm766_vm2, %v1024_v39, 0 }
 0x4bb   : > { %v1026_v43 = vpop.permute.xlu1 %1025 }
 0x4bc   : > { %v1038_v44 = vsel %vm766_vm2, %v1026_v43, 0  ;;  %v1307_v43 = vld [vmem:[%s2161_s7 + $0x10] sm:$0xff] }
 0x4bf   : > { %v1030_v46 = vpop.permute.xlu1 %1029 }
 0x4c0   : > { %v1044_v47 = vsel %vm766_vm2, %v1030_v46, 0 }
 0x4ce   : > { %968 = vrot.lane.b32.xlu0 %v1989_v40, %s1732_s18  ;;  %s1734_s18 = smov 104  }
 0x4d2   : > { %1027 = vrot.lane.b32.xlu0 %v1939_v11, %s1733_s20 }
 0x4d6   : > { %1021 = vrot.lane.b32.xlu0 %v1945_v13, %s1733_s20 }
 0x4da   : > { %1099 = vrot.lane.b32.xlu0 %v1991_v41, %s1733_s20 }
 0x545   : > { %v958_v31 = vpop.xlane.xlu0 %957 }
 0x546   : > { %1710 = vrcp.f32 %v958_v31 }
 0x549   : > { %v969_v21 = vpop.permute.xlu0 %968 }
 0x54a   : > { %1623 = vmatpush3.bf16.msra.mxu1 %v969_v21 }
 0x54b   : > { %1624 = vmatprep.subr.bf16.mxu1 %v1730_v5 }
 0x54d   : > { %v1028_v30 = vpop.permute.xlu0 %1027 }
 0x54e   : > { %1625 = vmatpush3.bf16.msra.mxu1 %v971_v24  ;;  %v1041_v45 = vsel %vm766_vm2, %v1028_v30, 0 }
 0x54f   : > { %1626 = vmatprep.subr.bf16.mxu1 %v1730_v5 }
 0x550   : > { %v1711_v32 = vpop.eup %1710 }
 0x551   : > { %v960_v35 = vmul.f32 %v1711_v32, %v1709_v27  ;;  %v1022_v36 = vpop.permute.xlu0 %1021 }
 0x552   : > { %1627 = vmatpush3.bf16.msra.mxu1 %v973_v33 }
 0x553   : > { %v961_v37 = vpack.c.bf16 %v960_v35, %v960_v35  ;;  %1632 = vmatprep.subr.bf16.mxu1 %v1730_v5 }
 0x555   : > { %v1100_v38 = vpop.permute.xlu0 %1099  ;;  %1629 = vmatmul.mubr.msk.bf16.vlgmr.msra.gmra.mrb[12].mxu1 %vm823_vm3, %v961_v37 }
 0x556   : > { %1645 = vmatpush3.bf16.msra.mxu0 %v1100_v38  ;;  %1640 = vmatprep.mubr.msk.bf16.mxu1 %vm1731_vm0, %v1730_v5 }
 0x557   : > { %1646 = vmatprep.subr.bf16.mxu0 %v1730_v5 }
 0x55b   : > { %1633 = vmatpush3.bf16.xpose.msra.mxu1 %v1035_v42  ;;  %v1306_v42 = vld [vmem:[%s2161_s7 + $0x8] sm:$0xff] }
 0x55c   : > { %1634 = vmatprep.subr.bf16.mxu1 %v1730_v5 }
 0x563   : > { %1635 = vmatpush3.bf16.xpose.msra.mxu1 %v1038_v44 }
 0x564   : > { %1636 = vmatprep.subr.bf16.mxu1 %v1730_v5 }
 0x56b   : > { %1637 = vmatpush3.bf16.xpose.msra.mxu1 %v1041_v45  ;;  %v1308_v45 = vld [vmem:[%s2161_s7 + $0x18] sm:$0xff] }
 0x56c   : > { %1638 = vmatprep.subr.bf16.mxu1 %v1730_v5  ;;  %v1310_v46 = vpack.c.bf16 %v1308_v45, %v1307_v43 }
 0x573   : > { %1639 = vmatpush3.bf16.xpose.msra.mxu1 %v1044_v47 }
 0x574   : > { %1668 = vmatprep.subr.bf16.mxu1 %v1730_v5 }
 0x57a   : > { %1641 = vmatmul.mubr.msk.bf16.vlgmr.msra.gmra.mrb[16].mxu1 %vm766_vm2, %v1022_v36 }
 0x57b   : > { %1676 = vmatprep.mubr.msk.bf16.mxu1 %vm1731_vm0, %v1730_v5 }
 0x628   : > { %v2065_v48 = vpop.f32.mrb[12].mxu1 }
 0x629   : > { %v1630_v49 = vpop.f32.mrb[13].mxu1 }
 0x62a   : > { %v1018_v52 = vpop.f32.mrb[14].mxu1 }
 0x62b   : > { %v1631_v53 = vpop.f32.mrb[15].mxu1 }
 0x64d   : > { %v1080_v54 = vpop.f32.mrb[16].mxu1 }
 0x64e   : > { %v1086_v55 = vmul.f32 0.35355338, %v1080_v54  ;;  %v1642_v56 = vpop.f32.mrb[17].mxu1 }
 0x64f   : > { %v1083_v57 = vpop.f32.mrb[18].mxu1 }
 0x650   : > { %v1643_v58 = vpop.f32.mrb[19].mxu1  ;;  %v1087_v60 = vsel %vm823_vm3, %v1086_v55, -inf }
 0x651   : > { %1088 = vmax.xlane.f32.xlu1 %v1087_v60 }
 0x662   : > { %1101 = vrot.lane.b32.xlu1 %v1989_v40, %s1733_s20 }
 0x666   : > { %1103 = vrot.lane.b32.xlu1 %v1999_v51, %s1733_s20 }
 0x66a   : > { %1156 = vrot.lane.b32.xlu1 %v1925_v61, %s1734_s18 }
 0x66e   : > { %1160 = vrot.lane.b32.xlu1 %v1939_v11, %s1734_s18 }
 0x672   : > { %1154 = vrot.lane.b32.xlu1 %v1945_v13, %s1734_s18 }
 0x676   : > { %1234 = vrot.lane.b32.xlu1 %v1989_v40, %s1734_s18 }
 0x6de   : > { %v1089_v62 = vpop.xlane.xlu1 %1088 }
 0x6df   : > { %v1090_v63 = vsub.f32 %v1086_v55, %v1089_v62 }
 0x6e1   : > { %v1091_v0 = vmul.f32 1.442695, %v1090_v63 }
 0x6e2   : > { %v1102_v1 = vpop.permute.xlu1 %1101 }
 0x6e3   : > { %1712 = vpow2.f32 %v1091_v0  ;;  %1647 = vmatpush3.bf16.msra.mxu0 %v1102_v1 }
 0x6e4   : > { %1648 = vmatprep.subr.bf16.mxu0 %v1730_v5 }
 0x6e6   : > { %v1104_v2 = vpop.permute.xlu1 %1103 }
 0x6e7   : > { %1649 = vmatpush3.bf16.msra.mxu0 %v1104_v2 }
 0x6e8   : > { %1650 = vmatprep.subr.bf16.mxu0 %v1730_v5 }
 0x6ea   : > { %v1157_v6 = vpop.permute.xlu1 %1156 }
 0x6eb   : > { %v1168_v8 = vsel %vm766_vm2, %v1157_v6, 0 }
 0x6ed   : > { %v1713_v61 = vpop.eup %1712 }
 0x6ee   : > { %v1093_v11 = vsel %vm823_vm3, %v1713_v61, 0.0  ;;  %v1161_v12 = vpop.permute.xlu1 %1160 }
 0x6ef   : > { %1094 = vadd.xlane.f32.xlu0 %v1093_v11  ;;  %v1174_v14 = vsel %vm766_vm2, %v1161_v12, 0  ;;  %v1490_v12 = vld [vmem:[%s2167_s13] ss:$0 sm:$0xff] }
 0x6f2   : > { %v1155_v17 = vpop.permute.xlu1 %1154 }
 0x6f6   : > { %v1235_v32 = vpop.permute.xlu1 %1234 }
 0x705   : > { %1105 = vrot.lane.b32.xlu0 %v1996_v50, %s1733_s20 }
 0x709   : > { %1158 = vrot.lane.b32.xlu0 %v1923_v59, %s1734_s18 }
 0x70d   : > { %1162 = vrot.lane.b32.xlu0 %v1937_v10, %s1734_s18 }
 0x77c   : > { %v1095_v13 = vpop.xlane.xlu0 %1094 }
 0x77d   : > { %1714 = vrcp.f32 %v1095_v13 }
 0x780   : > { %v1106_v40 = vpop.permute.xlu0 %1105 }
 0x781   : > { %1651 = vmatpush3.bf16.msra.mxu0 %v1106_v40 }
 0x782   : > { %1656 = vmatprep.subr.bf16.mxu0 %v1730_v5 }
 0x784   : > { %v1159_v59 = vpop.permute.xlu0 %1158 }
 0x785   : > { %v1171_v10 = vsel %vm766_vm2, %v1159_v59, 0 }
 0x787   : > { %v1715_v3 = vpop.eup %1714 }
 0x788   : > { %v1097_v4 = vmul.f32 %v1715_v3, %v1713_v61  ;;  %v1163_v15 = vpop.permute.xlu0 %1162 }
 0x789   : > { %v1177_v16 = vsel %vm766_vm2, %v1163_v15, 0 }
 0x78a   : > { %v1098_v7 = vpack.c.bf16 %v1097_v4, %v1097_v4 }
 0x78c   : > { %1653 = vmatmul.mubr.msk.bf16.vlgmr.msra.gmra.mrb[20].mxu0 %vm823_vm3, %v1098_v7 }
 0x78d   : > { %1657 = vmatpush3.bf16.xpose.msra.mxu0 %v1168_v8  ;;  %1664 = vmatprep.mubr.msk.bf16.mxu0 %vm1731_vm0, %v1730_v5 }
 0x78e   : > { %1658 = vmatprep.subr.bf16.mxu0 %v1730_v5 }
 0x795   : > { %1659 = vmatpush3.bf16.xpose.msra.mxu0 %v1171_v10 }
 0x796   : > { %1660 = vmatprep.subr.bf16.mxu0 %v1730_v5 }
 0x79d   : > { %1661 = vmatpush3.bf16.xpose.msra.mxu0 %v1174_v14 }
 0x79e   : > { %1662 = vmatprep.subr.bf16.mxu0 %v1730_v5 }
 0x7a5   : > { %1663 = vmatpush3.bf16.xpose.msra.mxu0 %v1177_v16 }
 0x7ac   : > { %1665 = vmatmul.mubr.msk.bf16.vlgmr.msra.gmra.mrb[24].mxu0 %vm766_vm2, %v1155_v17 }
 0x85f   : > { %v1148_v18 = vpop.f32.mrb[20].mxu0 }
 0x860   : > { %v1654_v19 = vpop.f32.mrb[21].mxu0 }
 0x861   : > { %v1151_v20 = vpop.f32.mrb[22].mxu0 }
 0x862   : > { %v1655_v22 = vpop.f32.mrb[23].mxu0 }
 0x87f   : > { %v1213_v23 = vpop.f32.mrb[24].mxu0 }
 0x880   : > { %v1219_v25 = vmul.f32 0.35355338, %v1213_v23  ;;  %v1666_v28 = vpop.f32.mrb[25].mxu0 }
 0x881   : > { %v1216_v26 = vpop.f32.mrb[26].mxu0 }
 0x882   : > { %v1667_v27 = vpop.f32.mrb[27].mxu0  ;;  %v1220_v29 = vsel %vm823_vm3, %v1219_v25, -inf }
 0x883   : > { %1221 = vmax.xlane.f32.xlu0 %v1220_v29 }
 0x899   : > { %1232 = vrot.lane.b32.xlu0 %v1991_v41, %s1734_s18 }
 0x89d   : > { %1236 = vrot.lane.b32.xlu0 %v1999_v51, %s1734_s18 }
 0x8a1   : > { %1288 = vrot.lane.b32.xlu0 %v2065_v48, %s1735_s21 }
 0x910   : > { %v1222_v31 = vpop.xlane.xlu0 %1221 }
 0x911   : > { %v1223_v21 = vsub.f32 %v1219_v25, %v1222_v31 }
 0x913   : > { %v1224_v24 = vmul.f32 1.442695, %v1223_v21 }
 0x914   : > { %v1233_v30 = vpop.permute.xlu0 %1232 }
 0x915   : > { %1716 = vpow2.f32 %v1224_v24  ;;  %1669 = vmatpush3.bf16.msra.mxu1 %v1233_v30 }
 0x916   : > { %1670 = vmatprep.subr.bf16.mxu1 %v1730_v5 }
 0x918   : > { %v1237_v33 = vpop.permute.xlu0 %1236 }
 0x919   : > { %1671 = vmatpush3.bf16.msra.mxu1 %v1235_v32 }
 0x91a   : > { %1672 = vmatprep.subr.bf16.mxu1 %v1730_v5 }
 0x91c   : > { %v1289_v53 = vpop.permute.xlu0 %1288 }
 0x91d   : > { %1673 = vmatpush3.bf16.msra.mxu1 %v1237_v33  ;;  %v1299_v55 = vsel %vm766_vm2, %v2022_v9, %v1289_v53 }
 0x91e   : > { %1674 = vmatprep.subr.bf16.mxu1 %v1730_v5 }
 0x91f   : > { %v1717_v41 = vpop.eup %1716 }
 0x920   : > { %v1226_v51 = vsel %vm823_vm3, %v1717_v41, 0.0 }
 0x921   : > { %1227 = vadd.xlane.f32.xlu1 %v1226_v51 }
 0x932   : > { %1238 = vrot.lane.b32.xlu1 %v1996_v50, %s1734_s18  ;;  %v1305_v50 = vld [vmem:[%s2161_s7] sm:$0xff] }
 0x933   : > { %v1309_v44 = vpack.c.bf16 %v1306_v42, %v1305_v50 }
 0x936   : > { %1292 = vrot.lane.b32.xlu1 %v1148_v18, %s1736_s22 }
 0x9ae   : > { %v1228_v35 = vpop.xlane.xlu1 %1227 }
 0x9af   : > { %1718 = vrcp.f32 %v1228_v35 }
 0x9b2   : > { %v1239_v36 = vpop.permute.xlu1 %1238 }
 0x9b3   : > { %1675 = vmatpush3.bf16.msra.mxu1 %v1239_v36 }
 0x9b4   : > { %1680 = vmatprep.subr.bf16.mxu1 %v1730_v5 }
 0x9b6   : > { %v1293_v54 = vpop.permute.xlu1 %1292 }
 0x9b7   : > { %v1301_v56 = vsel %vm1300_vm4, %v1299_v55, %v1293_v54 }
 0x9b9   : > { %v1719_v37 = vpop.eup %1718 }
 0x9ba   : > { %v1230_v38 = vmul.f32 %v1719_v37, %v1717_v41 }
 0x9bc   : > { %v1231_v39 = vpack.c.bf16 %v1230_v38, %v1230_v38 }
 0x9be   : > { %1677 = vmatmul.mubr.msk.bf16.vlgmr.msra.gmra.mrb[20].mxu1 %vm823_vm3, %v1231_v39 }
 0x9bf   : > { %1684 = vmatprep.mubr.msk.bf16.mxu1 %vm1731_vm0, %v1730_v5  ;;  %1681 = vmatpush3.bf16.msra.mxu1 %v1309_v44 }
 0x9c0   : > { %1682 = vmatprep.subr.bf16.mxu1 %v1730_v5  ;;  %v1487_v5 = vld [vmem:[%s2165_s11] ss:$0 sm:$0xff] }
 0x9c3   : > { %1683 = vmatpush3.bf16.msra.mxu1 %v1310_v46 }
 0xa91   : > { %v1281_v47 = vpop.f32.mrb[20].mxu1 }
 0xa92   : > { %1296 = vrot.lane.b32.xlu0 %v1281_v47, %s1737_s17  ;;  %v1678_v48 = vpop.f32.mrb[21].mxu1 }
 0xa93   : > { %v1284_v49 = vpop.f32.mrb[22].mxu1 }
 0xa94   : > { %v1679_v52 = vpop.f32.mrb[23].mxu1 }
 0xb04   : > { %v1297_v57 = vpop.permute.xlu0 %1296 }
 0xb05   : > { %v1303_v58 = vsel %vm1302_vm5, %v1301_v56, %v1297_v57 }
 0xb06   : > { %v1304_v60 = vpack.c.bf16 %v1303_v58, %v1303_v58 }
 0xb08   : > { %1685 = vmatmul.mubr.msk.bf16.vlgmr.msra.gmra.mrb[24].mxu1 %vm533_vm1, %v1304_v60 }
 0xbdb   : > { %v1355_v62 = vpop.f32.mrb[24].mxu1 }
 0xbdc   : > { %v1356_v63 = vadd.f32 %v1487_v5, %v1355_v62  ;;  %v1686_v0 = vpop.f32.mrb[25].mxu1 }
 0xbdd   : > { %v1358_v1 = vpop.f32.mrb[26].mxu1 }
 0xbde   : > { %v1687_v2 = vpop.f32.mrb[27].mxu1  ;;  %v1361_v61 = vadd.f32 %v1356_v63, %v1898_v34  ;;  %v1489_v34 = vld [vmem:[%s2166_s12] ss:$0 sm:$0xff] }
 0xbe0   : > { %v1362_v11 = vsel %vm533_vm1, %v1361_v61, 0.0 }
 0xbe1   : > { %1363 = vadd.xlane.f32.xlu1 %v1362_v11 }
 0xc6e   : > { %v1364_v9 = vpop.xlane.xlu1 %1363 }
 0xc6f   : > { %v1366_v13 = vmul.f32 0.03125, %v1364_v9 }
 0xc71   : > { %v1367_v40 = vsub.f32 %v1361_v61, %v1366_v13 }
 0xc73   : > { %v1368_v3 = vmul.f32 %v1367_v40, %v1367_v40 }
 0xc75   : > { %v1369_v4 = vsel %vm533_vm1, %v1368_v3, 0.0 }
 0xc76   : > { %1370 = vadd.xlane.f32.xlu0 %v1369_v4 }
 0xd03   : > { %v1371_v6 = vpop.xlane.xlu0 %1370 }
 0xd04   : > { %v1372_v7 = vmul.f32 0.03125, %v1371_v6 }
 0xd06   : > { %v1373_v8 = vadd.f32 1e-05, %v1372_v7 }
 0xd08   : > { %1720 = vrsqrt.f32 %v1373_v8 }
 0xd12   : > { %v1721_v59 = vpop.eup %1720 }
 0xd13   : > { %v1375_v10 = vmul.f32 %v1721_v59, %v1367_v40 }
 0xd15   : > { %v1383_v14 = vmul.f32 %v1489_v34, %v1375_v10 }
 0xd17   : > { %v1391_v15 = vadd.f32 %v1490_v12, %v1383_v14 }
 0xd19   : > { %1392 = vst.msk [vmem:[%s482_s27] sm:$0xff] %vm533_vm1, %v1391_v15 }
 0xd1a PF: > { %s24_s29 = sadd.s32 1, %s1728_s29  }
 0xd1b   : > { %p21_p4 = scmp.ge.s32.totalorder %s24_s29, 4  }
 0xd1d   :  { %23 = sbr.rel (!%p21_p4) target bundleno = 1 (0x1), region = 109 }

// kernel: detr_forward.24
= control target key start
LH: loop header
LB: loop body
LE: loop exit
PB: predicated region body
PF: predicated region fallthrough
CT: control target
= control target key end

     0   :  { %v248_v0 = vmov 0.0   ;;  %vm249_vm0 = vmmov 0   ;;  %vm43_vm1 = vcmask 261120   ;;  %vm110_vm2 = vcmask 523264   ;;  %s357_s1 = inlined_call_operand.vmem [shape: f32[32,64], index: 1, kind: input, shape index: {}]   ;;  %s358_s3 = inlined_call_operand.vmem [shape: f32[64,32], index: 3, kind: input, shape index: {}]   ;;  %s359_s0 = inlined_call_operand.vmem [shape: f32[16,32], index: 0, kind: input, shape index: {}]   ;;  %s360_s2 = inlined_call_operand.vmem [shape: f32[1,64], index: 2, kind: input, shape index: {}]   ;;  %s361_s4 = inlined_call_operand.vmem [shape: f32[1,32], index: 4, kind: input, shape index: {}]   ;;  %s362_s5 = inlined_call_operand.vmem [shape: f32[1,32], index: 5, kind: input, shape index: {}]   ;;  %s363_s6 = inlined_call_operand.vmem [shape: f32[1,32], index: 6, kind: input, shape index: {}]   ;;  %s364_s7 = inlined_call_operand.vmem [shape: f32[16,32], index: 7, kind: output, shape index: {}]  }
   0x1   :  { %222 = vmatprep.subr.bf16.mxu0 %v248_v0  ;;  %v30_v1 = vld [vmem:[%s357_s1] sm:$0xff]  ;;  %v31_v2 = vld [vmem:[%s357_s1 + $0x8] sm:$0xff]  ;;  %v32_v3 = vld [vmem:[%s357_s1 + $0x10] sm:$0xff]  ;;  %226 = vmatprep.mubr.msk.bf16.mxu0 %vm249_vm0, %v248_v0 }
   0x2   :  { %v34_v4 = vpack.c.bf16 %v31_v2, %v30_v1  ;;  %v33_v5 = vld [vmem:[%s357_s1 + $0x18] sm:$0xff]  ;;  %230 = vmatprep.subr.bf16.mxu1 %v248_v0  ;;  %238 = vmatprep.mubr.msk.bf16.mxu1 %vm249_vm0, %v248_v0  ;;  %v91_v6 = vld [vmem:[%s358_s3] sm:$0xff]  ;;  %v92_v7 = vld [vmem:[%s358_s3 + $0x8] sm:$0xff] }
   0x3   :  { %v93_v8 = vld [vmem:[%s358_s3 + $0x10] sm:$0xff]  ;;  %v35_v9 = vpack.c.bf16 %v33_v5, %v32_v3  ;;  %v27_v10 = vld [vmem:[%s359_s0] sm:$0xff]  ;;  %v28_v11 = vld [vmem:[%s359_s0 + $0x8] sm:$0xff]  ;;  %v99_v12 = vpack.c.bf16 %v92_v7, %v91_v6 }
   0x4   :  { %223 = vmatpush3.bf16.msra.mxu0 %v34_v4  ;;  %v94_v13 = vld [vmem:[%s358_s3 + $0x18] sm:$0xff]  ;;  %v29_v15 = vpack.c.bf16 %v28_v11, %v27_v10  ;;  %v95_v16 = vld [vmem:[%s358_s3 + $0x20] sm:$0xff]  ;;  %v96_v17 = vld [vmem:[%s358_s3 + $0x28] sm:$0xff] }
   0x5   :  { %224 = vmatprep.subr.bf16.mxu0 %v248_v0  ;;  %231 = vmatpush3.bf16.msra.mxu1 %v99_v12  ;;  %v100_v14 = vpack.c.bf16 %v94_v13, %v93_v8  ;;  %v101_v18 = vpack.c.bf16 %v96_v17, %v95_v16  ;;  %v97_v19 = vld [vmem:[%s358_s3 + $0x30] sm:$0xff]  ;;  %v98_v20 = vld [vmem:[%s358_s3 + $0x38] sm:$0xff]  ;;  %v208_v22 = vld [vmem:[%s360_s2] ss:$0 sm:$0xff] }
   0x6   :  { %232 = vmatprep.subr.bf16.mxu1 %v248_v0  ;;  %v102_v21 = vpack.c.bf16 %v98_v20, %v97_v19  ;;  %v210_v32 = vld [vmem:[%s361_s4] ss:$0 sm:$0xff] }
   0x7   :  { %v212_v60 = vld [vmem:[%s362_s5] ss:$0 sm:$0xff] }
   0x8   :  { %225 = vmatpush3.bf16.msra.mxu0 %v35_v9  ;;  %v213_v62 = vld [vmem:[%s363_s6] ss:$0 sm:$0xff] }
   0x9   :  { %233 = vmatpush3.bf16.msra.mxu1 %v100_v14 }
   0xa   :  { %234 = vmatprep.subr.bf16.mxu1 %v248_v0 }
   0xb   :  { %227 = vmatmul.mubr.msk.bf16.vlgmr.msra.gmra.mrb[0].mxu0 %vm43_vm1, %v29_v15 }
   0xd   :  { %235 = vmatpush3.bf16.msra.mxu1 %v101_v18 }
   0xe   :  { %236 = vmatprep.subr.bf16.mxu1 %v248_v0 }
  0x11   :  { %237 = vmatpush3.bf16.msra.mxu1 %v102_v21 }
  0xde   :  { %v81_v23 = vpop.f32.mrb[0].mxu0 }
  0xdf   :  { %v82_v24 = vadd.f32 %v208_v22, %v81_v23  ;;  %v228_v25 = vpop.f32.mrb[1].mxu0 }
  0xe0   :  { %v84_v26 = vpop.f32.mrb[2].mxu0 }
  0xe1   :  { %v85_v27 = vadd.f32 %v208_v22, %v84_v26  ;;  %v229_v28 = vpop.f32.mrb[3].mxu0  ;;  %v88_v29 = vmax.f32 %v82_v24, 0.0 }
  0xe3   :  { %v89_v30 = vmax.f32 %v85_v27, 0.0 }
  0xe5   :  { %v90_v31 = vpack.c.bf16 %v89_v30, %v88_v29 }
  0xe7   :  { %239 = vmatmul.mubr.msk.bf16.vlgmr.msra.gmra.mrb[0].mxu1 %vm110_vm2, %v90_v31 }
 0x1ba   :  { %v148_v33 = vpop.f32.mrb[0].mxu1 }
 0x1bb   :  { %v149_v34 = vadd.f32 %v210_v32, %v148_v33  ;;  %v240_v35 = vpop.f32.mrb[1].mxu1 }
 0x1bc   :  { %v151_v36 = vpop.f32.mrb[2].mxu1 }
 0x1bd   :  { %v152_v37 = vadd.f32 %v210_v32, %v151_v36  ;;  %v241_v38 = vpop.f32.mrb[3].mxu1  ;;  %v155_v39 = vadd.f32 %v149_v34, %v27_v10 }
 0x1bf   :  { %v157_v40 = vsel %vm43_vm1, %v155_v39, 0.0  ;;  %v156_v41 = vadd.f32 %v152_v37, %v28_v11 }
 0x1c0   :  { %158 = vadd.xlane.f32.xlu0 %v157_v40 }
 0x1c1   :  { %v160_v42 = vsel %vm43_vm1, %v156_v41, 0.0 }
 0x1c4   :  { %161 = vadd.xlane.f32.xlu0 %v160_v42 }
 0x24d   :  { %v159_v43 = vpop.xlane.xlu0 %158 }
 0x24e   :  { %v164_v44 = vmul.f32 0.03125, %v159_v43 }
 0x250   :  { %v166_v45 = vsub.f32 %v155_v39, %v164_v44 }
 0x251   :  { %v162_v46 = vpop.xlane.xlu0 %161 }
 0x252   :  { %v165_v47 = vmul.f32 0.03125, %v162_v46  ;;  %v168_v48 = vmul.f32 %v166_v45, %v166_v45 }
 0x254   :  { %v167_v49 = vsub.f32 %v156_v41, %v165_v47  ;;  %v170_v50 = vsel %vm43_vm1, %v168_v48, 0.0 }
 0x255   :  { %171 = vadd.xlane.f32.xlu1 %v170_v50 }
 0x256   :  { %v169_v51 = vmul.f32 %v167_v49, %v167_v49 }
 0x258   :  { %v173_v52 = vsel %vm43_vm1, %v169_v51, 0.0 }
 0x259   :  { %174 = vadd.xlane.f32.xlu1 %v173_v52 }
 0x2e2   :  { %v172_v53 = vpop.xlane.xlu1 %171 }
 0x2e3   :  { %v176_v54 = vmul.f32 0.03125, %v172_v53 }
 0x2e5   :  { %v178_v55 = vadd.f32 1e-05, %v176_v54 }
 0x2e6   :  { %v175_v56 = vpop.xlane.xlu1 %174 }
 0x2e7   :  { %244 = vrsqrt.f32 %v178_v55  ;;  %v177_v57 = vmul.f32 0.03125, %v175_v56 }
 0x2e9   :  { %v179_v58 = vadd.f32 1e-05, %v177_v57 }
 0x2eb   :  { %246 = vrsqrt.f32 %v179_v58 }
 0x2f1   :  { %v245_v59 = vpop.eup %244 }
 0x2f2   :  { %v182_v61 = vmul.f32 %v245_v59, %v166_v45 }
 0x2f4   :  { %v191_v63 = vmul.f32 %v212_v60, %v182_v61 }
 0x2f5   :  { %v247_v0 = vpop.eup %246 }
 0x2f6   :  { %v200_v1 = vadd.f32 %v213_v62, %v191_v63  ;;  %v183_v2 = vmul.f32 %v247_v0, %v167_v49 }
 0x2f8   :  { %202 = vst.msk [vmem:[%s364_s7] sm:$0xff] %vm43_vm1, %v200_v1  ;;  %v192_v3 = vmul.f32 %v212_v60, %v183_v2 }
 0x2fa   :  { %v201_v4 = vadd.f32 %v213_v62, %v192_v3 }
 0x2fc   :  { %203 = vst.msk [vmem:[%s364_s7 + $0x8] sm:$0xff] %vm43_vm1, %v201_v4 }

// kernel: detr_forward.18
= control target key start
LH: loop header
LB: loop body
LE: loop exit
PB: predicated region body
PF: predicated region fallthrough
CT: control target
= control target key end

     0   :  { %s3093_s29 = smov 0   ;;  %s3857_s0 = inlined_call_operand.vmem [shape: f32[2,64,32], index: 0, kind: input, shape index: {}, may-alias: {0,2}]   ;;  %s3858_s1 = inlined_call_operand.vmem [shape: f32[1,64,32], index: 1, kind: input, shape index: {}, may-alias: {1,3}]   ;;  %s3859_s2 = inlined_call_operand.vmem [shape: f32[2,64,32], index: 2, kind: input, shape index: {}, may-alias: {0,2}]   ;;  %s3860_s3 = inlined_call_operand.vmem [shape: f32[1,64,32], index: 3, kind: input, shape index: {}, may-alias: {1,3}]   ;;  %s3861_s4 = inlined_call_operand.vmem [shape: f32[32,32], index: 4, kind: input, shape index: {}]   ;;  %s3862_s5 = inlined_call_operand.vmem [shape: f32[32,32], index: 5, kind: input, shape index: {}]   ;;  %s3863_s6 = inlined_call_operand.vmem [shape: f32[32,32], index: 6, kind: input, shape index: {}]   ;;  %s3864_s7 = inlined_call_operand.vmem [shape: f32[32,32], index: 7, kind: input, shape index: {}]   ;;  %s3865_s8 = inlined_call_operand.vmem [shape: f32[1,32], index: 8, kind: input, shape index: {}]   ;;  %s3866_s9 = inlined_call_operand.vmem [shape: f32[1,32], index: 9, kind: input, shape index: {}]   ;;  %s3867_s10 = inlined_call_operand.vmem [shape: f32[1,32], index: 10, kind: input, shape index: {}]   ;;  %s3868_s11 = inlined_call_operand.vmem [shape: f32[1,32], index: 11, kind: input, shape index: {}]   ;;  %s3869_s12 = inlined_call_operand.vmem [shape: f32[1,32], index: 12, kind: input, shape index: {}]   ;;  %s3870_s13 = inlined_call_operand.vmem [shape: f32[1,32], index: 13, kind: input, shape index: {}]   ;;  %s3871_s14 = inlined_call_operand.vmem [shape: f32[2,64,32], index: 14, kind: output, shape index: {}]  }
   0x1 LB: > { %s2428_s30 = sadd.s32 4294967295, %s3010_s29   ;;  %p2432_p0 = scmp.ge.s32.totalorder %s3010_s29, 1  ;;  %s3010_s29 = sphi %s3093_s29, %s24_s29  }
   0x2   : > { %p422_p1 = scmp.lt.s32.totalorder %s3010_s29, 3 }
   0x4   : > { %p423_p2 = pnand %p2432_p0, %p422_p1 }
   0x5   : > { %v640_v0 = vld [vmem:[%s3862_s5] sm:$0xff] (!%p423_p2)  ;;  %v641_v1 = vld [vmem:[%s3862_s5 + $0x8] sm:$0xff] (!%p423_p2)  ;;  %v642_v2 = vld [vmem:[%s3862_s5 + $0x10] sm:$0xff] (!%p423_p2)  ;;  %p473_p3 = scmp.lt.s32.totalorder (!%p423_p2), %s2428_s30, 1  ;;  %vm562_vm0 = vcmask (!%p423_p2), 261120   ;;  %vm832_vm1 = vcmask (!%p423_p2), 64512  }
   0x6   : > { %426 = sbr.rel (%p423_p2) target bundleno = 3588 (0xe04), region = 76  ;;  %v644_v3 = vpack.c.bf16 (!%p423_p2), %v641_v1, %v640_v0  ;;  %v643_v4 = vld [vmem:[%s3862_s5 + $0x18] sm:$0xff] (!%p423_p2)  ;;  %v525_v6 = vld [vmem:[%s3860_s3] sm:$0xff] (!%p423_p2)  ;;  %v526_v7 = vld [vmem:[%s3860_s3 + $0x8] sm:$0xff] (!%p423_p2)  ;;  %vm930_vm2 = vcmask (!%p423_p2), 523264   ;;  %s3012_s16 = smov (!%p423_p2), 120  }
   0x7   : > { %v645_v5 = vpack.c.bf16 (!%p423_p2), %v643_v4, %v642_v2  ;;  %v527_v8 = vld [vmem:[%s3860_s3 + $0x10] sm:$0xff] (!%p423_p2)  ;;  %v528_v9 = vld [vmem:[%s3860_s3 + $0x18] sm:$0xff] (!%p423_p2)  ;;  %v529_v10 = vld [vmem:[%s3860_s3 + $0x20] sm:$0xff] (!%p423_p2)  ;;  %s3013_s17 = smov (!%p423_p2), 112   ;;  %s3014_s18 = smov (!%p423_p2), 104   ;;  %vm2098_vm3 = vcmask (!%p423_p2), 130048  }
   0x8   : > { %2598 = vmatprep.subr.bf16.mxu1 (!%p423_p2), %v644_v3  ;;  %v530_v11 = vld [vmem:[%s3860_s3 + $0x28] sm:$0xff] (!%p423_p2)  ;;  %v549_v12 = vld [vmem:[%s3861_s4] sm:$0xff] (!%p423_p2)  ;;  %v551_v14 = vld [vmem:[%s3861_s4 + $0x10] sm:$0xff] (!%p423_p2)  ;;  %s3016_s19 = smov (!%p423_p2), 16   ;;  %vm2107_vm4 = vcmask (!%p423_p2), 195584  }
   0x9   : > { %2599 = vmatpush3.bf16.msra.mxu1 (!%p423_p2), %v644_v3  ;;  %v550_v13 = vld [vmem:[%s3861_s4 + $0x8] sm:$0xff] (!%p423_p2)  ;;  %v552_v16 = vld [vmem:[%s3861_s4 + $0x18] sm:$0xff] (!%p423_p2)  ;;  %v505_v17 = vld [vmem:[%s3858_s1] sm:$0xff] (!%p423_p2) }
   0xa   : > { %2600 = vmatprep.subr.bf16.mxu1 (!%p423_p2), %v645_v5  ;;  %v553_v15 = vpack.c.bf16 (!%p423_p2), %v550_v13, %v549_v12  ;;  %v506_v18 = vld [vmem:[%s3858_s1 + $0x8] sm:$0xff] (!%p423_p2)  ;;  %v531_v22 = vld [vmem:[%s3860_s3 + $0x30] sm:$0xff] (!%p423_p2)  ;;  %v554_v23 = vpack.c.bf16 (!%p423_p2), %v552_v16, %v551_v14  ;;  %v532_v30 = vld [vmem:[%s3860_s3 + $0x38] sm:$0xff] (!%p423_p2) }
   0xb   : > { %v507_v46 = vld [vmem:[%s3858_s1 + $0x10] sm:$0xff] (!%p423_p2)  ;;  %v508_v47 = vld [vmem:[%s3858_s1 + $0x18] sm:$0xff] (!%p423_p2)  ;;  %v509_v53 = vld [vmem:[%s3858_s1 + $0x20] sm:$0xff] (!%p423_p2) }
   0xc   : > { %2586 = vmatprep.subr.bf16.mxu0 (!%p423_p2), %v553_v15  ;;  %v510_v54 = vld [vmem:[%s3858_s1 + $0x28] sm:$0xff] (!%p423_p2)  ;;  %v511_v62 = vld [vmem:[%s3858_s1 + $0x30] sm:$0xff] (!%p423_p2)  ;;  %v512_v63 = vld [vmem:[%s3858_s1 + $0x38] sm:$0xff] (!%p423_p2) }
   0xd   : > { %s3873_s30 = smov (!%p473_p3, %s2428_s30), 1  ;;  %2601 = vmatpush3.bf16.msra.mxu1 %v645_v5  ;;  %2587 = vmatpush3.bf16.msra.mxu0 %v553_v15 }
   0xe   : > { %s3131_s21 = sshll.u32 %s3873_s30, 6  ;;  %2588 = vmatprep.subr.bf16.mxu0 %v554_v23 }
   0xf   : > { %s482_s30 = scalar_lea.vmem %s3859_s2, %s3131_s21  ;;  %s3168_s27 = scalar_lea.vmem %s3857_s0, %s3131_s21 }
  0x10   : > { %v3155_v19 = vld [vmem:[%s482_s30] sm:$0xff]  ;;  %v3157_v20 = vld [vmem:[%s482_s30 + $0x8] sm:$0xff]  ;;  %v3159_v21 = vld [vmem:[%s482_s30 + $0x10] sm:$0xff]  ;;  %s3829_s24 = scalar_lea.vmem %s3871_s14, %s3131_s21 }
  0x11   : > { %v533_v24 = vadd.f32 %v525_v6, %v3155_v19  ;;  %v534_v25 = vadd.f32 %v526_v7, %v3157_v20  ;;  %v3172_v26 = vld [vmem:[%s482_s30 + $0x18] sm:$0xff]  ;;  %v535_v27 = vadd.f32 %v527_v8, %v3159_v21  ;;  %v3175_v28 = vld [vmem:[%s482_s30 + $0x20] sm:$0xff]  ;;  %v3177_v29 = vld [vmem:[%s482_s30 + $0x28] sm:$0xff]  ;;  %2589 = vmatpush3.bf16.msra.mxu0 %v554_v23  ;;  %v545_v5 = vpack.c.bf16 %v3157_v20, %v3155_v19 }
  0x12   : > { %v536_v31 = vadd.f32 %v528_v9, %v3172_v26  ;;  %v546_v32 = vpack.c.bf16 %v3172_v26, %v3159_v21  ;;  %v537_v33 = vadd.f32 %v529_v10, %v3175_v28  ;;  %v538_v34 = vadd.f32 %v530_v11, %v3177_v29  ;;  %v3187_v35 = vld [vmem:[%s482_s30 + $0x30] sm:$0xff]  ;;  %v3189_v36 = vld [vmem:[%s482_s30 + $0x38] sm:$0xff]  ;;  %v489_v37 = vld [vmem:[%s3168_s27] sm:$0xff]  ;;  %s3015_s30 = smov 8  }
  0x13   : > { %v541_v38 = vpack.c.bf16 %v534_v25, %v533_v24  ;;  %v490_v39 = vld [vmem:[%s3168_s27 + $0x8] sm:$0xff]  ;;  %v513_v40 = vadd.f32 %v505_v17, %v489_v37  ;;  %v491_v41 = vld [vmem:[%s3168_s27 + $0x10] sm:$0xff]  ;;  %v492_v42 = vld [vmem:[%s3168_s27 + $0x18] sm:$0xff]  ;;  %v539_v49 = vadd.f32 %v531_v22, %v3187_v35  ;;  %v540_v55 = vadd.f32 %v532_v30, %v3189_v36 }
  0x14   : > { %v542_v43 = vpack.c.bf16 %v536_v31, %v535_v27  ;;  %v543_v44 = vpack.c.bf16 %v538_v34, %v537_v33  ;;  %v514_v45 = vadd.f32 %v506_v18, %v490_v39  ;;  %v493_v48 = vld [vmem:[%s3168_s27 + $0x20] sm:$0xff]  ;;  %v515_v50 = vadd.f32 %v507_v46, %v491_v41  ;;  %v494_v52 = vld [vmem:[%s3168_s27 + $0x28] sm:$0xff]  ;;  %v495_v59 = vld [vmem:[%s3168_s27 + $0x30] sm:$0xff] }
  0x15   : > { %2602 = vmatprep.mubr.msk.bf16.mxu1 %vm562_vm0, %v541_v38  ;;  %v516_v51 = vadd.f32 %v508_v47, %v492_v42  ;;  %v517_v57 = vadd.f32 %v509_v53, %v493_v48  ;;  %v518_v58 = vadd.f32 %v510_v54, %v494_v52  ;;  %v496_v61 = vld [vmem:[%s3168_s27 + $0x38] sm:$0xff]  ;;  %v544_v1 = vpack.c.bf16 %v540_v55, %v539_v49  ;;  %v2444_v7 = vld [vmem:[%s3866_s9] ss:$0 sm:$0xff] }
  0x16   : > { %2603 = vmatmul.mubr.msk.bf16.vlgmr.msra.gmra.mrb[0].mxu1 %vm562_vm0, %v542_v43  ;;  %v521_v56 = vpack.c.bf16 %v514_v45, %v513_v40  ;;  %v519_v2 = vadd.f32 %v511_v62, %v495_v59  ;;  %v520_v3 = vadd.f32 %v512_v63, %v496_v61  ;;  %v2439_v10 = vld [vmem:[%s3865_s8] ss:$0 sm:$0xff]  ;;  %v732_v61 = vld [vmem:[%s3863_s6 + $0x10] sm:$0xff]  ;;  %v733_v63 = vld [vmem:[%s3863_s6 + $0x18] sm:$0xff] }
  0x17   : > { %2606 = vmatprep.mubr.msk.bf16.mxu1 %vm562_vm0, %v543_v44  ;;  %v522_v60 = vpack.c.bf16 %v516_v51, %v515_v50  ;;  %v523_v0 = vpack.c.bf16 %v518_v58, %v517_v57  ;;  %v730_v59 = vld [vmem:[%s3863_s6] sm:$0xff] }
  0x18   : > { %2590 = vmatprep.mubr.msk.bf16.mxu0 %vm562_vm0, %v521_v56  ;;  %v524_v4 = vpack.c.bf16 %v520_v3, %v519_v2  ;;  %v548_v2 = vpack.c.bf16 %v3189_v36, %v3187_v35 }
  0x19   : > { %2591 = vmatmul.mubr.msk.bf16.vlgmr.msra.gmra.mrb[0].mxu0 %vm562_vm0, %v522_v60  ;;  %v731_v60 = vld [vmem:[%s3863_s6 + $0x8] sm:$0xff] }
  0x1a   : > { %2594 = vmatprep.mubr.msk.bf16.mxu0 %vm562_vm0, %v523_v0  ;;  %v734_v62 = vpack.c.bf16 %v731_v60, %v730_v59  ;;  %v735_v0 = vpack.c.bf16 %v733_v63, %v732_v61 }
  0x1c   : > { %2610 = vmatprep.subr.bf16.mxu0 %v734_v62 }
  0x1d   : > { %2611 = vmatpush3.bf16.msra.mxu0 %v734_v62 }
  0x1e   : > { %2607 = vmatmul.mubr.msk.bf16.gmra.mrb[4].mxu1 %vm562_vm0, %v544_v1  ;;  %2612 = vmatprep.subr.bf16.mxu0 %v735_v0  ;;  %v547_v1 = vpack.c.bf16 %v3177_v29, %v3175_v28 }
  0x21   : > { %2595 = vmatmul.mubr.msk.bf16.gmra.mrb[4].mxu0 %vm562_vm0, %v524_v4 }
  0x22   : > { %2614 = vmatprep.mubr.msk.bf16.mxu0 %vm562_vm0, %v545_v5  ;;  %2613 = vmatpush3.bf16.msra.mxu0 %v735_v0 }
  0x29   : > { %2615 = vmatmul.mubr.msk.bf16.vlgmr.msra.gmra.mrb[8].mxu0 %vm562_vm0, %v546_v32 }
  0x2a   : > { %2618 = vmatprep.mubr.msk.bf16.mxu0 %vm562_vm0, %v547_v1 }
  0x31   : > { %2619 = vmatmul.mubr.msk.bf16.gmra.mrb[12].mxu0 %vm562_vm0, %v548_v2 }
  0xe9   : > { %v2604_v6 = vpop.f32.mrb[0].mxu1 }
  0xea   : > { %v699_v8 = vpop.f32.mrb[1].mxu1  ;;  %v708_v11 = vadd.f32 %v2604_v6, %v2444_v7 }
  0xeb   : > { %v2605_v9 = vpop.f32.mrb[2].mxu1  ;;  %v700_v14 = vadd.f32 %v2444_v7, %v699_v8 }
  0xec   : > { %v711_v12 = vadd.f32 %v2605_v9, %v2444_v7  ;;  %v702_v13 = vpop.f32.mrb[3].mxu1  ;;  %v2592_v16 = vpop.f32.mrb[0].mxu0 }
  0xed   : > { %v703_v15 = vadd.f32 %v2444_v7, %v702_v13  ;;  %v618_v18 = vadd.f32 %v2592_v16, %v2439_v10  ;;  %v609_v19 = vpop.f32.mrb[1].mxu0 }
  0xee   : > { %v3236_v17 = vpack.c.bf16 %v711_v12, %v708_v11  ;;  %v610_v22 = vadd.f32 %v2439_v10, %v609_v19  ;;  %v2593_v23 = vpop.f32.mrb[2].mxu0 }
  0xef   : > { %v3238_v20 = vpack.c.bf16 %v703_v15, %v700_v14  ;;  %v621_v24 = vadd.f32 %v2593_v23, %v2439_v10  ;;  %v612_v25 = vpop.f32.mrb[3].mxu0 }
  0xf0   : > { %v613_v31 = vadd.f32 %v2439_v10, %v612_v25  ;;  %v849_v53 = vsel %vm832_vm1, %v3236_v17, 0 }
  0xf1   : > { %2762 = vmatprep.subr.msk.bf16.mxu1 %vm832_vm1, %v3238_v20  ;;  %v846_v27 = vsel %vm832_vm1, %v3238_v20, 0  ;;  %v2608_v30 = vpop.f32.mrb[4].mxu1  ;;  %v3244_v37 = vpack.c.bf16 %v621_v24, %v618_v18  ;;  %v3315_v24 = vld [vmem:[%s3867_s10] ss:$0 sm:$0xff] }
  0xf2   : > { %2623 = vmatpush3.bf16.xpose.msra.mxu1 %v846_v27  ;;  %v724_v33 = vadd.f32 %v2608_v30, %v2444_v7  ;;  %v715_v34 = vpop.f32.mrb[5].mxu1  ;;  %v3248_v40 = vpack.c.bf16 %v613_v31, %v610_v22 }
  0xf3   : > { %2763 = vmatprep.subr.msk.bf16.mxu1 %vm832_vm1, %v3236_v17  ;;  %v716_v38 = vadd.f32 %v2444_v7, %v715_v34  ;;  %v2609_v39 = vpop.f32.mrb[6].mxu1 }
  0xf4   : > { %v727_v41 = vadd.f32 %v2609_v39, %v2444_v7  ;;  %v718_v42 = vpop.f32.mrb[7].mxu1  ;;  %2630 = vmatprep.mubr.msk.bf16.mxu1 %vm832_vm1, %v3248_v40  ;;  %v2596_v44 = vpop.f32.mrb[4].mxu0 }
  0xf5   : > { %v719_v43 = vadd.f32 %v2444_v7, %v718_v42  ;;  %v634_v46 = vadd.f32 %v2596_v44, %v2439_v10  ;;  %v625_v47 = vpop.f32.mrb[5].mxu0 }
  0xf6   : > { %v3252_v45 = vpack.c.bf16 %v727_v41, %v724_v33  ;;  %v626_v49 = vadd.f32 %v2439_v10, %v625_v47  ;;  %v2597_v50 = vpop.f32.mrb[6].mxu0 }
  0xf7   : > { %v3254_v48 = vpack.c.bf16 %v719_v43, %v716_v38  ;;  %v637_v51 = vadd.f32 %v2597_v50, %v2439_v10  ;;  %v628_v52 = vpop.f32.mrb[7].mxu0 }
  0xf8   : > { %v629_v54 = vadd.f32 %v2439_v10, %v628_v52  ;;  %v855_v58 = vsel %vm832_vm1, %v3252_v45, 0 }
  0xf9   : > { %v3258_v55 = vpack.c.bf16 %v637_v51, %v634_v46  ;;  %v852_v57 = vsel %vm832_vm1, %v3254_v48, 0 }
  0xfa   : > { %2625 = vmatpush3.bf16.xpose.msra.mxu1 %v849_v53  ;;  %v3262_v56 = vpack.c.bf16 %v629_v54, %v626_v49 }
  0xfb   : > { %2764 = vmatprep.subr.msk.bf16.mxu1 %vm832_vm1, %v3254_v48 }
  0xfc   : > { %v2616_v23 = vpop.f32.mrb[8].mxu0 }
  0xfd   : > { %v798_v25 = vadd.f32 %v2616_v23, %v3315_v24  ;;  %v789_v27 = vpop.f32.mrb[9].mxu0 }
  0xfe   : > { %v790_v30 = vadd.f32 %v3315_v24, %v789_v27  ;;  %v2617_v31 = vpop.f32.mrb[10].mxu0 }
  0xff   : > { %v801_v33 = vadd.f32 %v2617_v31, %v3315_v24  ;;  %v792_v34 = vpop.f32.mrb[11].mxu0 }
 0x100   : > { %v793_v38 = vadd.f32 %v3315_v24, %v792_v34 }
 0x101   : > { %v3321_v39 = vpack.c.bf16 %v801_v33, %v798_v25 }
 0x102   : > { %2627 = vmatpush3.bf16.xpose.msra.mxu1 %v852_v57  ;;  %v3323_v41 = vpack.c.bf16 %v793_v38, %v790_v30 }
 0x103   : > { %2765 = vmatprep.subr.msk.bf16.mxu1 %vm832_vm1, %v3252_v45 }
 0x104   : > { %2638 = vmatprep.subr.bf16.mxu0 %v3323_v41 }
 0x105   : > { %2639 = vmatpush3.bf16.msra.mxu0 %v3323_v41 }
 0x106   : > { %2640 = vmatprep.subr.bf16.mxu0 %v3321_v39 }
 0x109   : > { %2641 = vmatpush3.bf16.msra.mxu0 %v3321_v39 }
 0x10a   : > { %2629 = vmatpush3.bf16.xpose.msra.mxu1 %v855_v58 }
 0x111   : > { %2631 = vmatmul.mubr.msk.bf16.vlgmr.msra.gmra.mrb[8].mxu1 %vm832_vm1, %v3244_v37 }
 0x112   : > { %2634 = vmatprep.mubr.msk.bf16.mxu1 %vm832_vm1, %v3262_v56 }
 0x119   : > { %2635 = vmatmul.mubr.msk.bf16.gmra.mrb[12].mxu1 %vm832_vm1, %v3258_v55 }
 0x1e4   : > { %v2632_v3 = vpop.f32.mrb[8].mxu1 }
 0x1e5   : > { %v924_v4 = vmul.f32 0.35355338, %v2632_v3  ;;  %v891_v5 = vpop.f32.mrb[9].mxu1 }
 0x1e6   : > { %v922_v6 = vmul.f32 0.35355338, %v891_v5  ;;  %v2633_v7 = vpop.f32.mrb[10].mxu1 }
 0x1e7   : > { %v925_v8 = vmul.f32 0.35355338, %v2633_v7  ;;  %v894_v28 = vpop.f32.mrb[11].mxu1  ;;  %v937_v29 = vsel %vm930_vm2, %v924_v4, -inf }
 0x1e8   : > { %v923_v21 = vmul.f32 0.35355338, %v894_v28  ;;  %938 = vmax.xlane.f32.xlu1 %v937_v29  ;;  %v931_v26 = vsel %vm930_vm2, %v922_v6, -inf }
 0x1e9   : > { %932 = vmax.xlane.f32.xlu0 %v931_v26  ;;  %v940_v32 = vsel %vm930_vm2, %v925_v8, -inf  ;;  %v2620_v26 = vpop.f32.mrb[12].mxu0 }
 0x1ea   : > { %v934_v36 = vsel %vm930_vm2, %v923_v21, -inf }
 0x1ec   : > { %941 = vmax.xlane.f32.xlu1 %v940_v32  ;;  %v2636_v35 = vpop.f32.mrb[12].mxu1  ;;  %v805_v32 = vpop.f32.mrb[13].mxu0 }
 0x1ed   : > { %935 = vmax.xlane.f32.xlu0 %v934_v36  ;;  %v907_v9 = vpop.f32.mrb[13].mxu1  ;;  %v928_v10 = vmul.f32 0.35355338, %v2636_v35  ;;  %v2621_v35 = vpop.f32.mrb[14].mxu0  ;;  %v806_v36 = vadd.f32 %v3315_v24, %v805_v32 }
 0x1ee   : > { %v926_v11 = vmul.f32 0.35355338, %v907_v9  ;;  %v2637_v12 = vpop.f32.mrb[14].mxu1  ;;  %v808_v9 = vpop.f32.mrb[15].mxu0 }
 0x1ef   : > { %v910_v13 = vpop.f32.mrb[15].mxu1  ;;  %v3302_v14 = vmul.f32 0.35355338, %v2637_v12  ;;  %v949_v19 = vsel %vm930_vm2, %v928_v10, -inf  ;;  %v814_v12 = vadd.f32 %v2620_v26, %v3315_v24 }
 0x1f0   : > { %v3304_v15 = vmul.f32 0.35355338, %v910_v13  ;;  %v943_v16 = vsel %vm930_vm2, %v926_v11, -inf  ;;  %v817_v13 = vadd.f32 %v2621_v35, %v3315_v24 }
 0x1f1   : > { %944 = vmax.xlane.f32.xlu0 %v943_v16  ;;  %v952_v22 = vsel %vm930_vm2, %v3302_v14, -inf }
 0x1f2   : > { %v946_v18 = vsel %vm930_vm2, %v3304_v15, -inf  ;;  %v3363_v16 = vpack.c.bf16 %v817_v13, %v814_v12 }
 0x1f3   : > { %947 = vmax.xlane.f32.xlu1 %v946_v18 }
 0x1f5   : > { %950 = vmax.xlane.f32.xlu0 %v949_v19 }
 0x1f7   : > { %953 = vmax.xlane.f32.xlu1 %v952_v22 }
 0x275   : > { %v939_v42 = vpop.xlane.xlu1 %938 }
 0x276   : > { %v957_v43 = vsub.f32 %v924_v4, %v939_v42  ;;  %v933_v44 = vpop.xlane.xlu0 %932 }
 0x277   : > { %v955_v46 = vsub.f32 %v922_v6, %v933_v44 }
 0x278   : > { %v967_v47 = vmul.f32 1.442695, %v957_v43 }
 0x279   : > { %v963_v49 = vmul.f32 1.442695, %v955_v46  ;;  %v942_v50 = vpop.xlane.xlu1 %941 }
 0x27a   : > { %2852 = vpow2.f32 %v967_v47  ;;  %v958_v51 = vsub.f32 %v925_v8, %v942_v50  ;;  %v936_v52 = vpop.xlane.xlu0 %935 }
 0x27b   : > { %v956_v53 = vsub.f32 %v923_v21, %v936_v52  ;;  %2854 = vpow2.f32 %v963_v49 }
 0x27c   : > { %v969_v54 = vmul.f32 1.442695, %v958_v51 }
 0x27d   : > { %v965_v57 = vmul.f32 1.442695, %v956_v53 }
 0x27e   : > { %2856 = vpow2.f32 %v969_v54  ;;  %v945_v58 = vpop.xlane.xlu0 %944 }
 0x27f   : > { %2858 = vpow2.f32 %v965_v57  ;;  %v959_v59 = vsub.f32 %v926_v11, %v945_v58 }
 0x280   : > { %v948_v18 = vpop.xlane.xlu1 %947 }
 0x281   : > { %v971_v63 = vmul.f32 1.442695, %v959_v59  ;;  %v960_v23 = vsub.f32 %v3304_v15, %v948_v18 }
 0x282   : > { %v951_v60 = vpop.xlane.xlu0 %950 }
 0x283   : > { %v961_v61 = vsub.f32 %v928_v10, %v951_v60  ;;  %v809_v10 = vadd.f32 %v3315_v24, %v808_v9  ;;  %v973_v25 = vmul.f32 1.442695, %v960_v23 }
 0x284   : > { %v3329_v62 = vpop.eup %2852  ;;  %v954_v19 = vpop.xlane.xlu1 %953 }
 0x285   : > { %v975_v0 = vmul.f32 1.442695, %v961_v61  ;;  %v985_v1 = vsel %vm930_vm2, %v3329_v62, 0.0  ;;  %v3333_v2 = vpop.eup %2854  ;;  %v3355_v11 = vpack.c.bf16 %v809_v10, %v806_v36  ;;  %v962_v22 = vsub.f32 %v3302_v14, %v954_v19 }
 0x286   : > { %986 = vadd.xlane.f32.xlu0 %v985_v1  ;;  %v979_v4 = vsel %vm930_vm2, %v3333_v2, 0.0 }
 0x287   : > { %2860 = vpow2.f32 %v975_v0  ;;  %2642 = vmatprep.subr.bf16.mxu0 %v3355_v11  ;;  %v977_v24 = vmul.f32 1.442695, %v962_v22 }
 0x288   : > { %v3335_v3 = vpop.eup %2856  ;;  %2862 = vpow2.f32 %v971_v63  ;;  %2643 = vmatpush3.bf16.msra.mxu0 %v3355_v11 }
 0x289   : > { %v988_v5 = vsel %vm930_vm2, %v3335_v3, 0.0  ;;  %v3341_v6 = vpop.eup %2858  ;;  %2644 = vmatprep.subr.bf16.mxu0 %v3363_v16  ;;  %2864 = vpow2.f32 %v977_v24 }
 0x28a   : > { %980 = vadd.xlane.f32.xlu0 %v979_v4  ;;  %989 = vadd.xlane.f32.xlu1 %v988_v5  ;;  %v982_v7 = vsel %vm930_vm2, %v3341_v6, 0.0  ;;  %2866 = vpow2.f32 %v973_v25 }
 0x28c   : > { %2645 = vmatpush3.bf16.msra.mxu0 %v3363_v16 }
 0x28e   : > { %983 = vadd.xlane.f32.xlu1 %v982_v7 }
 0x291   : > { %v3345_v8 = vpop.eup %2860 }
 0x292   : > { %v997_v28 = vsel %vm930_vm2, %v3345_v8, 0.0  ;;  %v3349_v29 = vpop.eup %2862 }
 0x293   : > { %998 = vadd.xlane.f32.xlu0 %v997_v28  ;;  %v991_v21 = vsel %vm930_vm2, %v3349_v29, 0.0  ;;  %v2865_v27 = vpop.eup %2864 }
 0x294   : > { %v1000_v30 = vsel %vm930_vm2, %v2865_v27, 0.0  ;;  %v2867_v31 = vpop.eup %2866 }
 0x295   : > { %v994_v33 = vsel %vm930_vm2, %v2867_v31, 0.0 }
 0x297   : > { %992 = vadd.xlane.f32.xlu0 %v991_v21 }
 0x29f   : > { %1118 = vrot.lane.b32.xlu1 %v3236_v17, %s3012_s16 }
 0x2a3   : > { %1120 = vrot.lane.b32.xlu1 %v3254_v48, %s3012_s16 }
 0x2ad   : > { %1116 = vrot.lane.b32.xlu0 %v3238_v20, %s3012_s16 }
 0x2b1   : > { %1104 = vrot.lane.b32.xlu0 %v3248_v40, %s3012_s16 }
 0x2b5   : > { %1108 = vrot.lane.b32.xlu0 %v3262_v56, %s3012_s16 }
 0x2c7   : > { %1001 = vadd.xlane.f32.xlu1 %v1000_v30 }
 0x2cb   : > { %995 = vadd.xlane.f32.xlu1 %v994_v33 }
 0x2dc   : > { %1122 = vrot.lane.b32.xlu1 %v3252_v45, %s3012_s16 }
 0x2e0   : > { %1106 = vrot.lane.b32.xlu1 %v3244_v37, %s3012_s16 }
 0x2e4   : > { %1110 = vrot.lane.b32.xlu1 %v3258_v55, %s3012_s16 }
 0x313   : > { %v987_v14 = vpop.xlane.xlu0 %986 }
 0x317   : > { %v981_v15 = vpop.xlane.xlu0 %980  ;;  %v990_v34 = vpop.xlane.xlu1 %989 }
 0x318   : > { %2868 = vrcp.f32 %v990_v34 }
 0x319   : > { %2870 = vrcp.f32 %v981_v15 }
 0x31a   : > { %2872 = vrcp.f32 %v987_v14 }
 0x31b   : > { %v984_v38 = vpop.xlane.xlu1 %983 }
 0x31c   : > { %2874 = vrcp.f32 %v984_v38 }
 0x31f   : > { %v1119_v60 = vpop.permute.xlu1 %1118 }
 0x320   : > { %v999_v42 = vpop.xlane.xlu0 %998  ;;  %v1140_v61 = vsel %vm832_vm1, %v1119_v60, 0 }
 0x322   : > { %v2869_v43 = vpop.eup %2868 }
 0x323   : > { %v2871_v44 = vpop.eup %2870  ;;  %v1014_v50 = vmul.f32 %v2869_v43, %v3335_v3  ;;  %v1121_v63 = vpop.permute.xlu1 %1120 }
 0x324   : > { %v993_v46 = vpop.xlane.xlu0 %992  ;;  %v2873_v47 = vpop.eup %2872  ;;  %v1011_v51 = vmul.f32 %v2871_v44, %v3333_v2 }
 0x325   : > { %v1013_v53 = vmul.f32 %v2873_v47, %v3329_v62  ;;  %v1143_v62 = vsel %vm832_vm1, %v1121_v63, 0 }
 0x326   : > { %v2875_v49 = vpop.eup %2874 }
 0x327   : > { %v1012_v52 = vmul.f32 %v2875_v49, %v3341_v6  ;;  %v1020_v58 = vpack.c.bf16 %v1014_v50, %v1013_v53 }
 0x328   : > { %v1117_v54 = vpop.permute.xlu0 %1116 }
 0x329   : > { %2766 = vmatprep.subr.msk.bf16.mxu0 %vm832_vm1, %v1117_v54  ;;  %v1019_v57 = vpack.c.bf16 %v1012_v52, %v1011_v51  ;;  %v1137_v59 = vsel %vm832_vm1, %v1117_v54, 0 }
 0x32b   : > { %2646 = vmatprep.mubr.msk.bf16.mxu0 %vm930_vm2, %v1019_v57 }
 0x32c   : > { %2647 = vmatmul.mubr.msk.bf16.vlgmr.msra.gmra.mrb[16].mxu0 %vm930_vm2, %v1020_v58  ;;  %v1105_v9 = vpop.permute.xlu0 %1104 }
 0x32d   : > { %2655 = vmatpush3.bf16.xpose.msra.mxu0 %v1137_v59 }
 0x32e   : > { %2767 = vmatprep.subr.msk.bf16.mxu0 %vm832_vm1, %v1119_v60 }
 0x330   : > { %v1109_v12 = vpop.permute.xlu0 %1108 }
 0x335   : > { %2657 = vmatpush3.bf16.xpose.msra.mxu0 %v1140_v61 }
 0x336   : > { %2768 = vmatprep.subr.msk.bf16.mxu0 %vm832_vm1, %v1121_v63 }
 0x33d   : > { %2659 = vmatpush3.bf16.xpose.msra.mxu0 %v1143_v62 }
 0x354   : > { %v1002_v0 = vpop.xlane.xlu1 %1001 }
 0x355   : > { %2876 = vrcp.f32 %v1002_v0 }
 0x356   : > { %2878 = vrcp.f32 %v993_v46 }
 0x357   : > { %2880 = vrcp.f32 %v999_v42 }
 0x358   : > { %v996_v1 = vpop.xlane.xlu1 %995 }
 0x359   : > { %2882 = vrcp.f32 %v996_v1 }
 0x35c   : > { %v1123_v2 = vpop.permute.xlu1 %1122 }
 0x35d   : > { %2769 = vmatprep.subr.msk.bf16.mxu0 %vm832_vm1, %v1123_v2  ;;  %v1146_v3 = vsel %vm832_vm1, %v1123_v2, 0 }
 0x35e   : > { %2661 = vmatpush3.bf16.xpose.msra.mxu0 %v1146_v3 }
 0x35f   : > { %v2877_v4 = vpop.eup %2876 }
 0x360   : > { %v2879_v5 = vpop.eup %2878  ;;  %v1018_v28 = vmul.f32 %v2877_v4, %v2865_v27  ;;  %v1107_v10 = vpop.permute.xlu1 %1106 }
 0x361   : > { %v2881_v6 = vpop.eup %2880  ;;  %v1015_v21 = vmul.f32 %v2879_v5, %v3349_v29 }
 0x362   : > { %v1017_v32 = vmul.f32 %v2881_v6, %v3345_v8 }
 0x363   : > { %v2883_v7 = vpop.eup %2882 }
 0x364   : > { %v1016_v26 = vmul.f32 %v2883_v7, %v2867_v31  ;;  %v1022_v36 = vpack.c.bf16 %v1018_v28, %v1017_v32  ;;  %v1111_v13 = vpop.permute.xlu1 %1110 }
 0x366   : > { %v1021_v35 = vpack.c.bf16 %v1016_v26, %v1015_v21 }
 0x368   : > { %2650 = vmatprep.mubr.msk.bf16.mxu0 %vm930_vm2, %v1021_v35 }
 0x369   : > { %2651 = vmatmul.mubr.msk.bf16.gmra.mrb[20].mxu0 %vm930_vm2, %v1022_v36 }
 0x36a   : > { %2662 = vmatprep.mubr.msk.bf16.mxu0 %vm832_vm1, %v1105_v9 }
 0x371   : > { %2663 = vmatmul.mubr.msk.bf16.vlgmr.msra.gmra.mrb[24].mxu0 %vm832_vm1, %v1107_v10 }
 0x372   : > { %2666 = vmatprep.mubr.msk.bf16.mxu0 %vm832_vm1, %v1109_v12 }
 0x379   : > { %2667 = vmatmul.mubr.msk.bf16.gmra.mrb[28].mxu0 %vm832_vm1, %v1111_v13 }
 0x3ff   : > { %v3407_v29 = vpop.f32.mrb[16].mxu0 }
 0x400   : > { %v3409_v8 = vpop.f32.mrb[17].mxu0 }
 0x401   : > { %v3411_v18 = vpop.f32.mrb[18].mxu0 }
 0x402   : > { %v3413_v19 = vpop.f32.mrb[19].mxu0 }
 0x43c   : > { %v3415_v22 = vpop.f32.mrb[20].mxu0 }
 0x43d   : > { %v3417_v23 = vpop.f32.mrb[21].mxu0 }
 0x43e   : > { %v3419_v24 = vpop.f32.mrb[22].mxu0 }
 0x43f   : > { %v3421_v25 = vpop.f32.mrb[23].mxu0 }
 0x444   : > { %v2664_v27 = vpop.f32.mrb[24].mxu0 }
 0x445   : > { %v1215_v30 = vmul.f32 0.35355338, %v2664_v27  ;;  %v1182_v31 = vpop.f32.mrb[25].mxu0 }
 0x446   : > { %v2665_v33 = vpop.f32.mrb[26].mxu0  ;;  %v1213_v14 = vmul.f32 0.35355338, %v1182_v31 }
 0x447   : > { %v1185_v15 = vpop.f32.mrb[27].mxu0  ;;  %v1227_v34 = vsel %vm930_vm2, %v1215_v30, -inf  ;;  %v1216_v43 = vmul.f32 0.35355338, %v2665_v33 }
 0x448   : > { %v1214_v38 = vmul.f32 0.35355338, %v1185_v15  ;;  %1228 = vmax.xlane.f32.xlu0 %v1227_v34  ;;  %v1221_v44 = vsel %vm930_vm2, %v1213_v14, -inf }
 0x449   : > { %v1230_v52 = vsel %vm930_vm2, %v1216_v43, -inf }
 0x44a   : > { %v1224_v42 = vsel %vm930_vm2, %v1214_v38, -inf }
 0x44b   : > { %1225 = vmax.xlane.f32.xlu1 %v1224_v42 }
 0x44c   : > { %1222 = vmax.xlane.f32.xlu0 %v1221_v44  ;;  %v2668_v46 = vpop.f32.mrb[28].mxu0 }
 0x44d   : > { %v1198_v47 = vpop.f32.mrb[29].mxu0  ;;  %v1219_v50 = vmul.f32 0.35355338, %v2668_v46 }
 0x44e   : > { %v2669_v49 = vpop.f32.mrb[30].mxu0  ;;  %v1217_v53 = vmul.f32 0.35355338, %v1198_v47 }
 0x44f   : > { %v1201_v51 = vpop.f32.mrb[31].mxu0  ;;  %v1239_v54 = vsel %vm930_vm2, %v1219_v50, -inf  ;;  %v3435_v58 = vmul.f32 0.35355338, %v2669_v49 }
 0x450   : > { %1231 = vmax.xlane.f32.xlu0 %v1230_v52  ;;  %v1233_v57 = vsel %vm930_vm2, %v1217_v53, -inf  ;;  %v3437_v59 = vmul.f32 0.35355338, %v1201_v51 }
 0x451   : > { %v1242_v60 = vsel %vm930_vm2, %v3435_v58, -inf }
 0x452   : > { %v1236_v61 = vsel %vm930_vm2, %v3437_v59, -inf }
 0x454   : > { %1240 = vmax.xlane.f32.xlu0 %v1239_v54 }
 0x458   : > { %1234 = vmax.xlane.f32.xlu0 %v1233_v57 }
 0x45c   : > { %1319 = vrot.lane.b32.xlu1 %v3321_v39, %s3012_s16 }
 0x460   : > { %1321 = vrot.lane.b32.xlu1 %v3355_v11, %s3012_s16 }
 0x46e   : > { %1317 = vrot.lane.b32.xlu0 %v3323_v41, %s3012_s16 }
 0x484   : > { %1243 = vmax.xlane.f32.xlu1 %v1242_v60 }
 0x488   : > { %1237 = vmax.xlane.f32.xlu1 %v1236_v61 }
 0x499   : > { %1323 = vrot.lane.b32.xlu1 %v3363_v16, %s3012_s16  ;;  %s3017_s16 = smov 24  }
 0x4d5   : > { %v1229_v63 = vpop.xlane.xlu0 %1228 }
 0x4d6   : > { %v1247_v62 = vsub.f32 %v1215_v30, %v1229_v63 }
 0x4d8   : > { %v1257_v0 = vmul.f32 1.442695, %v1247_v62  ;;  %v1226_v1 = vpop.xlane.xlu1 %1225 }
 0x4d9   : > { %v1223_v2 = vpop.xlane.xlu0 %1222  ;;  %v1246_v4 = vsub.f32 %v1214_v38, %v1226_v1 }
 0x4da   : > { %2884 = vpow2.f32 %v1257_v0  ;;  %v1245_v3 = vsub.f32 %v1213_v14, %v1223_v2 }
 0x4db   : > { %v1255_v28 = vmul.f32 1.442695, %v1246_v4 }
 0x4dc   : > { %v1253_v5 = vmul.f32 1.442695, %v1245_v3  ;;  %v1320_v30 = vpop.permute.xlu1 %1319 }
 0x4dd   : > { %v1232_v6 = vpop.xlane.xlu0 %1231 }
 0x4de   : > { %2886 = vpow2.f32 %v1253_v5  ;;  %v1248_v7 = vsub.f32 %v1216_v43, %v1232_v6 }
 0x4e0   : > { %v1259_v21 = vmul.f32 1.442695, %v1248_v7  ;;  %v1322_v38 = vpop.permute.xlu1 %1321 }
 0x4e1   : > { %v1241_v26 = vpop.xlane.xlu0 %1240 }
 0x4e2   : > { %2888 = vpow2.f32 %v1259_v21  ;;  %v1251_v32 = vsub.f32 %v1219_v50, %v1241_v26 }
 0x4e3   : > { %2890 = vpow2.f32 %v1255_v28 }
 0x4e4   : > { %v3445_v35 = vpop.eup %2884  ;;  %v1265_v36 = vmul.f32 1.442695, %v1251_v32 }
 0x4e5   : > { %v1235_v9 = vpop.xlane.xlu0 %1234  ;;  %v1275_v10 = vsel %vm930_vm2, %v3445_v35, 0.0 }
 0x4e6   : > { %2892 = vpow2.f32 %v1265_v36  ;;  %v1249_v12 = vsub.f32 %v1217_v53, %v1235_v9  ;;  %1276 = vadd.xlane.f32.xlu0 %v1275_v10 }
 0x4e8   : > { %v3449_v13 = vpop.eup %2886  ;;  %v1261_v27 = vmul.f32 1.442695, %v1249_v12 }
 0x4e9   : > { %v1318_v31 = vpop.permute.xlu0 %1317  ;;  %v1269_v33 = vsel %vm930_vm2, %v3449_v13, 0.0 }
 0x4ea   : > { %2894 = vpow2.f32 %v1261_v27  ;;  %1270 = vadd.xlane.f32.xlu0 %v1269_v33  ;;  %2670 = vmatprep.subr.bf16.mxu1 %v1318_v31 }
 0x4eb   : > { %2671 = vmatpush3.bf16.msra.mxu1 %v1318_v31 }
 0x4ec   : > { %v2889_v14 = vpop.eup %2888  ;;  %2672 = vmatprep.subr.bf16.mxu1 %v1320_v30 }
 0x4ed   : > { %v1278_v15 = vsel %vm930_vm2, %v2889_v14, 0.0  ;;  %v2891_v34 = vpop.eup %2890 }
 0x4ee   : > { %1279 = vadd.xlane.f32.xlu1 %v1278_v15  ;;  %v1272_v44 = vsel %vm930_vm2, %v2891_v34, 0.0 }
 0x4ef   : > { %2673 = vmatpush3.bf16.msra.mxu1 %v1320_v30 }
 0x4f0   : > { %v3454_v42 = vpop.eup %2892  ;;  %2674 = vmatprep.subr.bf16.mxu1 %v1322_v38 }
 0x4f1   : > { %v1287_v43 = vsel %vm930_vm2, %v3454_v42, 0.0 }
 0x4f2   : > { %1288 = vadd.xlane.f32.xlu0 %v1287_v43  ;;  %1273 = vadd.xlane.f32.xlu1 %v1272_v44 }
 0x4f3   : > { %2675 = vmatpush3.bf16.msra.mxu1 %v1322_v38 }
 0x4f4   : > { %v3459_v46 = vpop.eup %2894 }
 0x4f5   : > { %v1281_v47 = vsel %vm930_vm2, %v3459_v46, 0.0 }
 0x4f6   : > { %1282 = vadd.xlane.f32.xlu0 %v1281_v47 }
 0x503   : > { %1416 = vrot.lane.b32.xlu1 %v3236_v17, %s3013_s17 }
 0x507   : > { %1418 = vrot.lane.b32.xlu1 %v3254_v48, %s3013_s17 }
 0x511   : > { %v1244_v49 = vpop.xlane.xlu1 %1243 }
 0x512   : > { %v1252_v50 = vsub.f32 %v3435_v58, %v1244_v49 }
 0x514   : > { %v1267_v51 = vmul.f32 1.442695, %v1252_v50 }
 0x515   : > { %v1238_v52 = vpop.xlane.xlu1 %1237 }
 0x516   : > { %2896 = vpow2.f32 %v1267_v51  ;;  %v1250_v53 = vsub.f32 %v3437_v59, %v1238_v52 }
 0x518   : > { %v1263_v54 = vmul.f32 1.442695, %v1250_v53 }
 0x519   : > { %v1324_v57 = vpop.permute.xlu1 %1323 }
 0x51a   : > { %2676 = vmatprep.subr.bf16.mxu1 %v1324_v57  ;;  %2898 = vpow2.f32 %v1263_v54 }
 0x51b   : > { %2677 = vmatpush3.bf16.msra.mxu1 %v1324_v57 }
 0x520   : > { %v2897_v60 = vpop.eup %2896 }
 0x521   : > { %v1290_v61 = vsel %vm930_vm2, %v2897_v60, 0.0 }
 0x522   : > { %1291 = vadd.xlane.f32.xlu0 %v1290_v61 }
 0x524   : > { %v2899_v63 = vpop.eup %2898 }
 0x525   : > { %v1284_v62 = vsel %vm930_vm2, %v2899_v63, 0.0 }
 0x52b   : > { %1285 = vadd.xlane.f32.xlu1 %v1284_v62 }
 0x538   : > { %1414 = vrot.lane.b32.xlu0 %v3238_v20, %s3013_s17 }
 0x53c   : > { %1406 = vrot.lane.b32.xlu0 %v3248_v40, %s3013_s17  ;;  %1420 = vrot.lane.b32.xlu1 %v3252_v45, %s3013_s17 }
 0x540   : > { %1410 = vrot.lane.b32.xlu0 %v3262_v56, %s3013_s17  ;;  %1408 = vrot.lane.b32.xlu1 %v3244_v37, %s3013_s17 }
 0x544   : > { %1412 = vrot.lane.b32.xlu1 %v3258_v55, %s3013_s17 }
 0x573   : > { %v1277_v58 = vpop.xlane.xlu0 %1276 }
 0x577   : > { %v1271_v0 = vpop.xlane.xlu0 %1270 }
 0x57b   : > { %v1280_v59 = vpop.xlane.xlu1 %1279 }
 0x57c   : > { %2900 = vrcp.f32 %v1280_v59 }
 0x57d   : > { %2902 = vrcp.f32 %v1271_v0 }
 0x57e   : > { %2904 = vrcp.f32 %v1277_v58 }
 0x57f   : > { %v1274_v1 = vpop.xlane.xlu1 %1273  ;;  %v1289_v36 = vpop.xlane.xlu0 %1288 }
 0x580   : > { %2906 = vrcp.f32 %v1274_v1 }
 0x583   : > { %v1283_v9 = vpop.xlane.xlu0 %1282  ;;  %v1417_v10 = vpop.permute.xlu1 %1416 }
 0x586   : > { %v2901_v2 = vpop.eup %2900 }
 0x587   : > { %v2903_v3 = vpop.eup %2902  ;;  %v1304_v6 = vmul.f32 %v2901_v2, %v2889_v14  ;;  %v1419_v30 = vpop.permute.xlu1 %1418 }
 0x588   : > { %v2905_v4 = vpop.eup %2904  ;;  %v1301_v7 = vmul.f32 %v2903_v3, %v3449_v13  ;;  %v1438_v13 = vsel %vm832_vm1, %v1417_v10, 0  ;;  %v1441_v43 = vsel %vm832_vm1, %v1419_v30, 0 }
 0x589   : > { %v1303_v21 = vmul.f32 %v2905_v4, %v3445_v35 }
 0x58a   : > { %v2907_v5 = vpop.eup %2906 }
 0x58b   : > { %v1302_v28 = vmul.f32 %v2907_v5, %v2891_v34  ;;  %v1310_v32 = vpack.c.bf16 %v1304_v6, %v1303_v21 }
 0x58d   : > { %v1309_v26 = vpack.c.bf16 %v1302_v28, %v1301_v7 }
 0x58f   : > { %2678 = vmatprep.mubr.msk.bf16.mxu1 %vm930_vm2, %v1309_v26 }
 0x590   : > { %2679 = vmatmul.mubr.msk.bf16.vlgmr.msra.gmra.mrb[16].mxu1 %vm930_vm2, %v1310_v32 }
 0x5af   : > { %v1292_v12 = vpop.xlane.xlu0 %1291 }
 0x5b0   : > { %2908 = vrcp.f32 %v1292_v12 }
 0x5b1   : > { %2910 = vrcp.f32 %v1283_v9 }
 0x5b2   : > { %2912 = vrcp.f32 %v1289_v36 }
 0x5b3   : > { %v1415_v27 = vpop.permute.xlu0 %1414 }
 0x5b4   : > { %v1435_v31 = vsel %vm832_vm1, %v1415_v27, 0  ;;  %2770 = vmatprep.subr.msk.bf16.mxu1 %vm832_vm1, %v1415_v27 }
 0x5b5   : > { %2687 = vmatpush3.bf16.xpose.msra.mxu1 %v1435_v31 }
 0x5b6   : > { %2771 = vmatprep.subr.msk.bf16.mxu1 %vm832_vm1, %v1417_v10 }
 0x5b7   : > { %v1407_v53 = vpop.permute.xlu0 %1406 }
 0x5b8   : > { %v1286_v35 = vpop.xlane.xlu1 %1285 }
 0x5b9   : > { %2914 = vrcp.f32 %v1286_v35 }
 0x5ba   : > { %v2909_v33 = vpop.eup %2908 }
 0x5bb   : > { %v2911_v14 = vpop.eup %2910  ;;  %v1308_v38 = vmul.f32 %v2909_v33, %v2897_v60  ;;  %v1411_v57 = vpop.permute.xlu0 %1410 }
 0x5bc   : > { %v2913_v15 = vpop.eup %2912  ;;  %v1305_v44 = vmul.f32 %v2911_v14, %v3459_v46  ;;  %v1421_v49 = vpop.permute.xlu1 %1420 }
 0x5bd   : > { %2689 = vmatpush3.bf16.xpose.msra.mxu1 %v1438_v13  ;;  %v1307_v50 = vmul.f32 %v2913_v15, %v3454_v42  ;;  %v1444_v54 = vsel %vm832_vm1, %v1421_v49, 0 }
 0x5be   : > { %2772 = vmatprep.subr.msk.bf16.mxu1 %vm832_vm1, %v1419_v30 }
 0x5bf   : > { %v1312_v52 = vpack.c.bf16 %v1308_v38, %v1307_v50 }
 0x5c0   : > { %v1409_v46 = vpop.permute.xlu1 %1408 }
 0x5c3   : > { %v2915_v34 = vpop.eup %2914 }
 0x5c4   : > { %v1306_v47 = vmul.f32 %v2915_v34, %v2899_v63  ;;  %v1413_v42 = vpop.permute.xlu1 %1412 }
 0x5c5   : > { %2691 = vmatpush3.bf16.xpose.msra.mxu1 %v1441_v43 }
 0x5c6   : > { %2773 = vmatprep.subr.msk.bf16.mxu1 %vm832_vm1, %v1421_v49  ;;  %v1311_v51 = vpack.c.bf16 %v1306_v47, %v1305_v44 }
 0x5c8   : > { %2682 = vmatprep.mubr.msk.bf16.mxu1 %vm930_vm2, %v1311_v51 }
 0x5c9   : > { %2683 = vmatmul.mubr.msk.bf16.gmra.mrb[20].mxu1 %vm930_vm2, %v1312_v52 }
 0x5ca   : > { %2694 = vmatprep.mubr.msk.bf16.mxu1 %vm832_vm1, %v1407_v53 }
 0x5cd   : > { %2693 = vmatpush3.bf16.xpose.msra.mxu1 %v1444_v54 }
 0x5d4   : > { %2695 = vmatmul.mubr.msk.bf16.vlgmr.msra.gmra.mrb[24].mxu1 %vm832_vm1, %v1409_v46 }
 0x5d5   : > { %2698 = vmatprep.mubr.msk.bf16.mxu1 %vm832_vm1, %v1411_v57 }
 0x5dc   : > { %2699 = vmatmul.mubr.msk.bf16.gmra.mrb[28].mxu1 %vm832_vm1, %v1413_v42 }
 0x663   : > { %v3503_v60 = vpop.f32.mrb[16].mxu1 }
 0x664   : > { %v3505_v61 = vpop.f32.mrb[17].mxu1 }
 0x665   : > { %v3507_v63 = vpop.f32.mrb[18].mxu1 }
 0x666   : > { %v2797_v62 = vpack.i.bf16 %v3507_v63, %v3503_v60  ;;  %v3511_v58 = vpop.f32.mrb[19].mxu1 }
 0x667   : > { %v2792_v59 = vpack.i.bf16 %v3511_v58, %v3505_v61 }
 0x69c   : > { %v3515_v0 = vpop.f32.mrb[20].mxu1 }
 0x69d   : > { %v3517_v1 = vpop.f32.mrb[21].mxu1 }
 0x69e   : > { %v3519_v2 = vpop.f32.mrb[22].mxu1 }
 0x69f   : > { %v2817_v3 = vpack.i.bf16 %v3519_v2, %v3515_v0  ;;  %v3523_v4 = vpop.f32.mrb[23].mxu1 }
 0x6a0   : > { %v2812_v5 = vpack.i.bf16 %v3523_v4, %v3517_v1 }
 0x6a7   : > { %v2696_v6 = vpop.f32.mrb[24].mxu1 }
 0x6a8   : > { %v1513_v7 = vmul.f32 0.35355338, %v2696_v6  ;;  %v1480_v28 = vpop.f32.mrb[25].mxu1 }
 0x6a9   : > { %v2697_v21 = vpop.f32.mrb[26].mxu1  ;;  %v1511_v26 = vmul.f32 0.35355338, %v1480_v28 }
 0x6aa   : > { %v1483_v32 = vpop.f32.mrb[27].mxu1  ;;  %v1525_v36 = vsel %vm930_vm2, %v1513_v7, -inf  ;;  %v1514_v12 = vmul.f32 0.35355338, %v2697_v21 }
 0x6ab   : > { %v1512_v9 = vmul.f32 0.35355338, %v1483_v32  ;;  %1526 = vmax.xlane.f32.xlu0 %v1525_v36  ;;  %v1519_v27 = vsel %vm930_vm2, %v1511_v26, -inf }
 0x6ac   : > { %v1528_v14 = vsel %vm930_vm2, %v1514_v12, -inf }
 0x6ad   : > { %v1522_v10 = vsel %vm930_vm2, %v1512_v9, -inf }
 0x6ae   : > { %1523 = vmax.xlane.f32.xlu1 %v1522_v10 }
 0x6af   : > { %1520 = vmax.xlane.f32.xlu0 %v1519_v27  ;;  %v2700_v30 = vpop.f32.mrb[28].mxu1 }
 0x6b0   : > { %v1496_v31 = vpop.f32.mrb[29].mxu1  ;;  %v1517_v13 = vmul.f32 0.35355338, %v2700_v30 }
 0x6b1   : > { %v2701_v35 = vpop.f32.mrb[30].mxu1  ;;  %v1515_v15 = vmul.f32 0.35355338, %v1496_v31 }
 0x6b2   : > { %v1499_v33 = vpop.f32.mrb[31].mxu1  ;;  %v1537_v34 = vsel %vm930_vm2, %v1517_v13, -inf  ;;  %v3539_v43 = vmul.f32 0.35355338, %v2701_v35 }
 0x6b3   : > { %1529 = vmax.xlane.f32.xlu0 %v1528_v14  ;;  %v1531_v38 = vsel %vm930_vm2, %v1515_v15, -inf  ;;  %v3541_v44 = vmul.f32 0.35355338, %v1499_v33 }
 0x6b4   : > { %v1540_v47 = vsel %vm930_vm2, %v3539_v43, -inf }
 0x6b5   : > { %v1534_v49 = vsel %vm930_vm2, %v3541_v44, -inf }
 0x6b7   : > { %1538 = vmax.xlane.f32.xlu0 %v1537_v34 }
 0x6bb   : > { %1532 = vmax.xlane.f32.xlu0 %v1531_v38 }
 0x6bf   : > { %1613 = vrot.lane.b32.xlu1 %v3321_v39, %s3013_s17 }
 0x6c3   : > { %1615 = vrot.lane.b32.xlu1 %v3355_v11, %s3013_s17 }
 0x6d1   : > { %1611 = vrot.lane.b32.xlu0 %v3323_v41, %s3013_s17 }
 0x6e7   : > { %1541 = vmax.xlane.f32.xlu1 %v1540_v47 }
 0x6eb   : > { %1535 = vmax.xlane.f32.xlu1 %v1534_v49 }
 0x6fc   : > { %1617 = vrot.lane.b32.xlu1 %v3363_v16, %s3013_s17 }
 0x738   : > { %v1527_v50 = vpop.xlane.xlu0 %1526 }
 0x739   : > { %v1545_v51 = vsub.f32 %v1513_v7, %v1527_v50 }
 0x73b   : > { %v1555_v52 = vmul.f32 1.442695, %v1545_v51  ;;  %v1524_v53 = vpop.xlane.xlu1 %1523 }
 0x73c   : > { %v1521_v54 = vpop.xlane.xlu0 %1520  ;;  %v1544_v57 = vsub.f32 %v1512_v9, %v1524_v53 }
 0x73d   : > { %2916 = vpow2.f32 %v1555_v52  ;;  %v1543_v46 = vsub.f32 %v1511_v26, %v1521_v54 }
 0x73e   : > { %v1553_v21 = vmul.f32 1.442695, %v1544_v57 }
 0x73f   : > { %v1551_v42 = vmul.f32 1.442695, %v1543_v46 }
 0x740   : > { %v1530_v6 = vpop.xlane.xlu0 %1529 }
 0x741   : > { %2918 = vpow2.f32 %v1551_v42  ;;  %v1546_v28 = vsub.f32 %v1514_v12, %v1530_v6  ;;  %v1614_v12 = vpop.permute.xlu1 %1613 }
 0x743   : > { %v1557_v32 = vmul.f32 1.442695, %v1546_v28 }
 0x744   : > { %v1539_v36 = vpop.xlane.xlu0 %1538 }
 0x745   : > { %2920 = vpow2.f32 %v1557_v32  ;;  %v1549_v10 = vsub.f32 %v1517_v13, %v1539_v36 }
 0x746   : > { %2922 = vpow2.f32 %v1553_v21 }
 0x747   : > { %v3549_v27 = vpop.eup %2916  ;;  %v1563_v30 = vmul.f32 1.442695, %v1549_v10 }
 0x748   : > { %v1533_v7 = vpop.xlane.xlu0 %1532  ;;  %v1573_v31 = vsel %vm930_vm2, %v3549_v27, 0.0 }
 0x749   : > { %2924 = vpow2.f32 %v1563_v30  ;;  %v1547_v26 = vsub.f32 %v1515_v15, %v1533_v7  ;;  %1574 = vadd.xlane.f32.xlu0 %v1573_v31  ;;  %v1616_v15 = vpop.permute.xlu1 %1615 }
 0x74b   : > { %v3553_v9 = vpop.eup %2918  ;;  %v1559_v35 = vmul.f32 1.442695, %v1547_v26 }
 0x74c   : > { %v1612_v33 = vpop.permute.xlu0 %1611  ;;  %v1567_v14 = vsel %vm930_vm2, %v3553_v9, 0.0 }
 0x74d   : > { %2926 = vpow2.f32 %v1559_v35  ;;  %1568 = vadd.xlane.f32.xlu0 %v1567_v14  ;;  %2702 = vmatprep.subr.bf16.mxu0 %v1612_v33 }
 0x74e   : > { %2703 = vmatpush3.bf16.msra.mxu0 %v1612_v33 }
 0x74f   : > { %v2921_v13 = vpop.eup %2920  ;;  %2704 = vmatprep.subr.bf16.mxu0 %v1614_v12 }
 0x750   : > { %v1576_v34 = vsel %vm930_vm2, %v2921_v13, 0.0  ;;  %v2923_v38 = vpop.eup %2922 }
 0x751   : > { %1577 = vadd.xlane.f32.xlu1 %v1576_v34  ;;  %v1570_v50 = vsel %vm930_vm2, %v2923_v38, 0.0 }
 0x752   : > { %2705 = vmatpush3.bf16.msra.mxu0 %v1614_v12 }
 0x753   : > { %v3558_v47 = vpop.eup %2924  ;;  %2706 = vmatprep.subr.bf16.mxu0 %v1616_v15 }
 0x754   : > { %v1585_v49 = vsel %vm930_vm2, %v3558_v47, 0.0 }
 0x755   : > { %1586 = vadd.xlane.f32.xlu0 %v1585_v49  ;;  %1571 = vadd.xlane.f32.xlu1 %v1570_v50 }
 0x756   : > { %2707 = vmatpush3.bf16.msra.mxu0 %v1616_v15 }
 0x757   : > { %v3563_v51 = vpop.eup %2926 }
 0x758   : > { %v1579_v52 = vsel %vm930_vm2, %v3563_v51, 0.0 }
 0x759   : > { %1580 = vadd.xlane.f32.xlu0 %v1579_v52 }
 0x766   : > { %1710 = vrot.lane.b32.xlu1 %v3236_v17, %s3014_s18 }
 0x76a   : > { %1712 = vrot.lane.b32.xlu1 %v3254_v48, %s3014_s18 }
 0x774   : > { %v1542_v53 = vpop.xlane.xlu1 %1541 }
 0x775   : > { %v1550_v54 = vsub.f32 %v3539_v43, %v1542_v53 }
 0x777   : > { %v1565_v46 = vmul.f32 1.442695, %v1550_v54 }
 0x778   : > { %v1536_v57 = vpop.xlane.xlu1 %1535 }
 0x779   : > { %2928 = vpow2.f32 %v1565_v46  ;;  %v1548_v42 = vsub.f32 %v3541_v44, %v1536_v57 }
 0x77b   : > { %v1561_v6 = vmul.f32 1.442695, %v1548_v42 }
 0x77c   : > { %v1618_v28 = vpop.permute.xlu1 %1617 }
 0x77d   : > { %2708 = vmatprep.subr.bf16.mxu0 %v1618_v28  ;;  %2930 = vpow2.f32 %v1561_v6 }
 0x77e   : > { %2709 = vmatpush3.bf16.msra.mxu0 %v1618_v28 }
 0x783   : > { %v2929_v21 = vpop.eup %2928 }
 0x784   : > { %v1588_v32 = vsel %vm930_vm2, %v2929_v21, 0.0 }
 0x785   : > { %1589 = vadd.xlane.f32.xlu0 %v1588_v32 }
 0x787   : > { %v2931_v17 = vpop.eup %2930 }
 0x788   : > { %v1582_v48 = vsel %vm930_vm2, %v2931_v17, 0.0 }
 0x78e   : > { %1583 = vadd.xlane.f32.xlu1 %v1582_v48 }
 0x79b   : > { %1708 = vrot.lane.b32.xlu0 %v3238_v20, %s3014_s18 }
 0x79f   : > { %1700 = vrot.lane.b32.xlu0 %v3248_v40, %s3014_s18  ;;  %1714 = vrot.lane.b32.xlu1 %v3252_v45, %s3014_s18 }
 0x7a3   : > { %1704 = vrot.lane.b32.xlu0 %v3262_v56, %s3014_s18  ;;  %1702 = vrot.lane.b32.xlu1 %v3244_v37, %s3014_s18 }
 0x7a7   : > { %1706 = vrot.lane.b32.xlu1 %v3258_v55, %s3014_s18 }
 0x7d6   : > { %v1575_v43 = vpop.xlane.xlu0 %1574 }
 0x7da   : > { %v1569_v36 = vpop.xlane.xlu0 %1568 }
 0x7de   : > { %v1578_v44 = vpop.xlane.xlu1 %1577 }
 0x7df   : > { %2932 = vrcp.f32 %v1578_v44 }
 0x7e0   : > { %2934 = vrcp.f32 %v1569_v36 }
 0x7e1   : > { %2936 = vrcp.f32 %v1575_v43 }
 0x7e2   : > { %v1572_v20 = vpop.xlane.xlu1 %1571  ;;  %v1587_v35 = vpop.xlane.xlu0 %1586 }
 0x7e3   : > { %2938 = vrcp.f32 %v1572_v20 }
 0x7e6   : > { %v1581_v12 = vpop.xlane.xlu0 %1580  ;;  %v1711_v33 = vpop.permute.xlu1 %1710 }
 0x7e9   : > { %v2933_v40 = vpop.eup %2932 }
 0x7ea   : > { %v2935_v10 = vpop.eup %2934  ;;  %v1602_v7 = vmul.f32 %v2933_v40, %v2921_v13  ;;  %v1713_v15 = vpop.permute.xlu1 %1712 }
 0x7eb   : > { %v2937_v45 = vpop.eup %2936  ;;  %v1599_v56 = vmul.f32 %v2935_v10, %v3553_v9  ;;  %v1732_v9 = vsel %vm832_vm1, %v1711_v33, 0  ;;  %v1735_v54 = vsel %vm832_vm1, %v1713_v15, 0 }
 0x7ec   : > { %v1601_v37 = vmul.f32 %v2937_v45, %v3549_v27 }
 0x7ed   : > { %v2939_v30 = vpop.eup %2938 }
 0x7ee   : > { %v1600_v31 = vmul.f32 %v2939_v30, %v2923_v38  ;;  %v1608_v55 = vpack.c.bf16 %v1602_v7, %v1601_v37 }
 0x7f0   : > { %v1607_v26 = vpack.c.bf16 %v1600_v31, %v1599_v56 }
 0x7f2   : > { %2710 = vmatprep.mubr.msk.bf16.mxu0 %vm930_vm2, %v1607_v26 }
 0x7f3   : > { %2711 = vmatmul.mubr.msk.bf16.vlgmr.msra.gmra.mrb[32].mxu0 %vm930_vm2, %v1608_v55 }
 0x812   : > { %v1590_v14 = vpop.xlane.xlu0 %1589 }
 0x813   : > { %2940 = vrcp.f32 %v1590_v14 }
 0x814   : > { %2942 = vrcp.f32 %v1581_v12 }
 0x815   : > { %2944 = vrcp.f32 %v1587_v35 }
 0x816   : > { %v1709_v34 = vpop.permute.xlu0 %1708 }
 0x817   : > { %v1729_v49 = vsel %vm832_vm1, %v1709_v34, 0  ;;  %2774 = vmatprep.subr.msk.bf16.mxu0 %vm832_vm1, %v1709_v34 }
 0x818   : > { %2719 = vmatpush3.bf16.xpose.msra.mxu0 %v1729_v49 }
 0x819   : > { %2775 = vmatprep.subr.msk.bf16.mxu0 %vm832_vm1, %v1711_v33 }
 0x81a   : > { %v1701_v48 = vpop.permute.xlu0 %1700 }
 0x81b   : > { %v1584_v27 = vpop.xlane.xlu1 %1583 }
 0x81c   : > { %2946 = vrcp.f32 %v1584_v27 }
 0x81d   : > { %v2941_v13 = vpop.eup %2940 }
 0x81e   : > { %v2943_v38 = vpop.eup %2942  ;;  %v1606_v53 = vmul.f32 %v2941_v13, %v2929_v21 }
 0x81f   : > { %v2945_v50 = vpop.eup %2944  ;;  %v1603_v46 = vmul.f32 %v2943_v38, %v3563_v51  ;;  %v1715_v42 = vpop.permute.xlu1 %1714 }
 0x820   : > { %2721 = vmatpush3.bf16.xpose.msra.mxu0 %v1732_v9  ;;  %v1605_v6 = vmul.f32 %v2945_v50, %v3558_v47  ;;  %v1738_v21 = vsel %vm832_vm1, %v1715_v42, 0 }
 0x821   : > { %2776 = vmatprep.subr.msk.bf16.mxu0 %vm832_vm1, %v1713_v15 }
 0x822   : > { %v1610_v32 = vpack.c.bf16 %v1606_v53, %v1605_v6 }
 0x823   : > { %v1703_v51 = vpop.permute.xlu1 %1702 }
 0x826   : > { %v2947_v52 = vpop.eup %2946 }
 0x827   : > { %v1604_v57 = vmul.f32 %v2947_v52, %v2931_v17  ;;  %v1705_v17 = vpop.permute.xlu0 %1704  ;;  %v1707_v47 = vpop.permute.xlu1 %1706 }
 0x828   : > { %2723 = vmatpush3.bf16.xpose.msra.mxu0 %v1735_v54 }
 0x829   : > { %2777 = vmatprep.subr.msk.bf16.mxu0 %vm832_vm1, %v1715_v42  ;;  %v1609_v28 = vpack.c.bf16 %v1604_v57, %v1603_v46 }
 0x82b   : > { %2714 = vmatprep.mubr.msk.bf16.mxu0 %vm930_vm2, %v1609_v28 }
 0x82c   : > { %2715 = vmatmul.mubr.msk.bf16.gmra.mrb[36].mxu0 %vm930_vm2, %v1610_v32 }
 0x82d   : > { %2726 = vmatprep.mubr.msk.bf16.mxu0 %vm832_vm1, %v1701_v48 }
 0x830   : > { %2725 = vmatpush3.bf16.xpose.msra.mxu0 %v1738_v21 }
 0x837   : > { %2727 = vmatmul.mubr.msk.bf16.vlgmr.msra.gmra.mrb[40].mxu0 %vm832_vm1, %v1703_v51 }
 0x838   : > { %2730 = vmatprep.mubr.msk.bf16.mxu0 %vm832_vm1, %v1705_v17 }
 0x83f   : > { %2731 = vmatmul.mubr.msk.bf16.gmra.mrb[44].mxu0 %vm832_vm1, %v1707_v47 }
 0x8c6   : > { %v3607_v43 = vpop.f32.mrb[32].mxu0 }
 0x8c7   : > { %v3609_v44 = vpop.f32.mrb[33].mxu0 }
 0x8c8   : > { %v3611_v36 = vpop.f32.mrb[34].mxu0 }
 0x8c9   : > { %v2807_v20 = vpack.i.bf16 %v3611_v36, %v3607_v43  ;;  %v3615_v40 = vpop.f32.mrb[35].mxu0 }
 0x8ca   : > { %v2802_v10 = vpack.i.bf16 %v3615_v40, %v3609_v44 }
 0x8ff   : > { %v3619_v45 = vpop.f32.mrb[36].mxu0 }
 0x900   : > { %v3621_v30 = vpop.f32.mrb[37].mxu0 }
 0x901   : > { %v3623_v7 = vpop.f32.mrb[38].mxu0 }
 0x902   : > { %v2837_v56 = vpack.i.bf16 %v3623_v7, %v3619_v45  ;;  %v3627_v31 = vpop.f32.mrb[39].mxu0 }
 0x903   : > { %v2832_v37 = vpack.i.bf16 %v3627_v31, %v3621_v30 }
 0x90a   : > { %v2728_v26 = vpop.f32.mrb[40].mxu0 }
 0x90b   : > { %v1774_v55 = vpop.f32.mrb[41].mxu0  ;;  %v1807_v14 = vmul.f32 0.35355338, %v2728_v26 }
 0x90c   : > { %v1805_v35 = vmul.f32 0.35355338, %v1774_v55  ;;  %v2729_v12 = vpop.f32.mrb[42].mxu0 }
 0x90d   : > { %v1777_v33 = vpop.f32.mrb[43].mxu0  ;;  %v1808_v27 = vmul.f32 0.35355338, %v2729_v12  ;;  %v1819_v13 = vsel %vm930_vm2, %v1807_v14, -inf }
 0x90e   : > { %v1806_v34 = vmul.f32 0.35355338, %v1777_v33  ;;  %v1813_v15 = vsel %vm930_vm2, %v1805_v35, -inf }
 0x90f   : > { %1814 = vmax.xlane.f32.xlu0 %v1813_v15  ;;  %v1822_v46 = vsel %vm930_vm2, %v1808_v27, -inf }
 0x910   : > { %v1816_v49 = vsel %vm930_vm2, %v1806_v34, -inf }
 0x911   : > { %1817 = vmax.xlane.f32.xlu1 %v1816_v49 }
 0x912   : > { %v2732_v9 = vpop.f32.mrb[44].mxu0 }
 0x913   : > { %1820 = vmax.xlane.f32.xlu0 %v1819_v13  ;;  %v1790_v38 = vpop.f32.mrb[45].mxu0  ;;  %v1811_v6 = vmul.f32 0.35355338, %v2732_v9 }
 0x914   : > { %v2733_v50 = vpop.f32.mrb[46].mxu0  ;;  %v1809_v53 = vmul.f32 0.35355338, %v1790_v38 }
 0x915   : > { %v1793_v52 = vpop.f32.mrb[47].mxu0  ;;  %v3637_v57 = vmul.f32 0.35355338, %v2733_v50  ;;  %v1831_v48 = vsel %vm930_vm2, %v1811_v6, -inf }
 0x916   : > { %v3634_v54 = vmul.f32 0.35355338, %v1793_v52  ;;  %v1825_v28 = vsel %vm930_vm2, %v1809_v53, -inf }
 0x917   : > { %1823 = vmax.xlane.f32.xlu0 %v1822_v46  ;;  %v1834_v32 = vsel %vm930_vm2, %v3637_v57, -inf }
 0x918   : > { %v1828_v42 = vsel %vm930_vm2, %v3634_v54, -inf }
 0x919   : > { %1829 = vmax.xlane.f32.xlu1 %v1828_v42 }
 0x91b   : > { %1826 = vmax.xlane.f32.xlu0 %v1825_v28 }
 0x91d   : > { %1835 = vmax.xlane.f32.xlu1 %v1834_v32 }
 0x91f   : > { %1832 = vmax.xlane.f32.xlu0 %v1831_v48 }
 0x99c   : > { %v1815_v21 = vpop.xlane.xlu0 %1814 }
 0x99d   : > { %v1837_v51 = vsub.f32 %v1805_v35, %v1815_v21 }
 0x99e   : > { %v1818_v17 = vpop.xlane.xlu1 %1817 }
 0x99f   : > { %v1845_v55 = vmul.f32 1.442695, %v1837_v51  ;;  %v1838_v12 = vsub.f32 %v1806_v34, %v1818_v17 }
 0x9a0   : > { %v1821_v47 = vpop.xlane.xlu0 %1820 }
 0x9a1   : > { %v1839_v26 = vsub.f32 %v1807_v14, %v1821_v47  ;;  %v1847_v9 = vmul.f32 1.442695, %v1838_v12 }
 0x9a3   : > { %v1849_v33 = vmul.f32 1.442695, %v1839_v26 }
 0x9a4   : > { %v1824_v15 = vpop.xlane.xlu0 %1823 }
 0x9a5   : > { %2948 = vpow2.f32 %v1849_v33  ;;  %v1840_v49 = vsub.f32 %v1808_v27, %v1824_v15 }
 0x9a6   : > { %2950 = vpow2.f32 %v1845_v55  ;;  %v1830_v26 = vpop.xlane.xlu1 %1829 }
 0x9a7   : > { %v1851_v13 = vmul.f32 1.442695, %v1840_v49 }
 0x9a8   : > { %v1827_v38 = vpop.xlane.xlu0 %1826 }
 0x9a9   : > { %2952 = vpow2.f32 %v1851_v13  ;;  %v1841_v50 = vsub.f32 %v1809_v53, %v1827_v38 }
 0x9aa   : > { %2954 = vpow2.f32 %v1847_v9  ;;  %v1836_v55 = vpop.xlane.xlu1 %1835 }
 0x9ab   : > { %v1853_v35 = vmul.f32 1.442695, %v1841_v50  ;;  %v1844_v12 = vsub.f32 %v3637_v57, %v1836_v55 }
 0x9ac   : > { %v1833_v52 = vpop.xlane.xlu0 %1832 }
 0x9ad   : > { %v1843_v46 = vsub.f32 %v1811_v6, %v1833_v52 }
 0x9af   : > { %v3645_v42 = vpop.eup %2948  ;;  %v1857_v28 = vmul.f32 1.442695, %v1843_v46 }
 0x9b0   : > { %v1867_v14 = vsel %vm930_vm2, %v3645_v42, 0.0  ;;  %v2951_v34 = vpop.eup %2950 }
 0x9b1   : > { %2956 = vpow2.f32 %v1857_v28  ;;  %1868 = vadd.xlane.f32.xlu0 %v1867_v14  ;;  %v1861_v32 = vsel %vm930_vm2, %v2951_v34, 0.0 }
 0x9b2   : > { %2958 = vpow2.f32 %v1853_v35 }
 0x9b3   : > { %v3649_v27 = vpop.eup %2952 }
 0x9b4   : > { %v1870_v53 = vsel %vm930_vm2, %v3649_v27, 0.0  ;;  %v2955_v48 = vpop.eup %2954 }
 0x9b5   : > { %1862 = vadd.xlane.f32.xlu0 %v1861_v32  ;;  %1871 = vadd.xlane.f32.xlu1 %v1870_v53  ;;  %v1864_v6 = vsel %vm930_vm2, %v2955_v48, 0.0  ;;  %v2121_v53 = vld [vmem:[%s3864_s7 + $0x8] sm:$0xff] }
 0x9b9   : > { %1865 = vadd.xlane.f32.xlu1 %v1864_v6 }
 0x9bb   : > { %v3655_v21 = vpop.eup %2956 }
 0x9bc   : > { %v1879_v51 = vsel %vm930_vm2, %v3655_v21, 0.0  ;;  %v3659_v17 = vpop.eup %2958 }
 0x9bd   : > { %1880 = vadd.xlane.f32.xlu0 %v1879_v51  ;;  %v1873_v47 = vsel %vm930_vm2, %v3659_v17, 0.0 }
 0x9c1   : > { %1874 = vadd.xlane.f32.xlu0 %v1873_v47 }
 0x9ca   : > { %1907 = vrot.lane.b32.xlu1 %v3321_v39, %s3014_s18  ;;  %v1842_v39 = vsub.f32 %v3634_v54, %v1830_v26 }
 0x9ce   : > { %1909 = vrot.lane.b32.xlu1 %v3355_v11, %s3014_s18  ;;  %v1859_v11 = vmul.f32 1.442695, %v1844_v12 }
 0x9d0   : > { %2960 = vpow2.f32 %v1859_v11 }
 0x9d7   : > { %1905 = vrot.lane.b32.xlu0 %v3323_v41, %s3014_s18  ;;  %v1855_v41 = vmul.f32 1.442695, %v1842_v39 }
 0x9d9   : > { %2962 = vpow2.f32 %v1855_v41 }
 0x9da   : > { %v2961_v61 = vpop.eup %2960 }
 0x9db   : > { %2793 = vrot.lane.b32.xlu0 %v2792_v59, %s3015_s30  ;;  %v1882_v58 = vsel %vm930_vm2, %v2961_v61, 0.0 }
 0x9df   : > { %2803 = vrot.lane.b32.xlu0 %v2802_v10, %s3016_s19 }
 0x9e3   : > { %2813 = vrot.lane.b32.xlu0 %v2812_v5, %s3015_s30  ;;  %v2963_v59 = vpop.eup %2962 }
 0x9e4   : > { %v1876_v57 = vsel %vm930_vm2, %v2963_v59, 0.0 }
 0x9f2   : > { %1883 = vadd.xlane.f32.xlu1 %v1882_v58 }
 0x9f6   : > { %1877 = vadd.xlane.f32.xlu1 %v1876_v57 }
 0xa07   : > { %1911 = vrot.lane.b32.xlu1 %v3363_v16, %s3014_s18 }
 0xa0b   : > { %2798 = vrot.lane.b32.xlu1 %v2797_v62, %s3015_s30 }
 0xa0f   : > { %2808 = vrot.lane.b32.xlu1 %v2807_v20, %s3016_s19 }
 0xa13   : > { %2818 = vrot.lane.b32.xlu1 %v2817_v3, %s3015_s30 }
 0xa3e   : > { %v1869_v1 = vpop.xlane.xlu0 %1868 }
 0xa42   : > { %v1863_v4 = vpop.xlane.xlu0 %1862  ;;  %v1872_v5 = vpop.xlane.xlu1 %1871 }
 0xa43   : > { %2964 = vrcp.f32 %v1863_v4 }
 0xa46   : > { %v1866_v44 = vpop.xlane.xlu1 %1865 }
 0xa47   : > { %2966 = vrcp.f32 %v1866_v44 }
 0xa48   : > { %2968 = vrcp.f32 %v1872_v5 }
 0xa49   : > { %2970 = vrcp.f32 %v1869_v1 }
 0xa4a   : > { %v1881_v16 = vpop.xlane.xlu0 %1880  ;;  %v1908_v63 = vpop.permute.xlu1 %1907 }
 0xa4d   : > { %v2965_v10 = vpop.eup %2964 }
 0xa4e   : > { %v1875_v40 = vpop.xlane.xlu0 %1874  ;;  %v1893_v54 = vmul.f32 %v2965_v10, %v2951_v34  ;;  %v1910_v0 = vpop.permute.xlu1 %1909 }
 0xa51   : > { %v2967_v60 = vpop.eup %2966 }
 0xa52   : > { %v1906_v62 = vpop.permute.xlu0 %1905  ;;  %v1894_v33 = vmul.f32 %v2967_v60, %v2955_v48  ;;  %v2969_v3 = vpop.eup %2968  ;;  %v2122_v48 = vld [vmem:[%s3864_s7 + $0x10] sm:$0xff] }
 0xa53   : > { %2734 = vmatprep.subr.bf16.mxu1 %v1906_v62  ;;  %v2971_v20 = vpop.eup %2970  ;;  %v1896_v15 = vmul.f32 %v2969_v3, %v3649_v27 }
 0xa54   : > { %2735 = vmatpush3.bf16.msra.mxu1 %v1906_v62  ;;  %v1901_v43 = vpack.c.bf16 %v1894_v33, %v1893_v54  ;;  %v1895_v9 = vmul.f32 %v2971_v20, %v3645_v42  ;;  %v2120_v42 = vld [vmem:[%s3864_s7] sm:$0xff] }
 0xa55   : > { %2736 = vmatprep.subr.bf16.mxu1 %v1908_v63  ;;  %v2124_v6 = vpack.c.bf16 %v2121_v53, %v2120_v42 }
 0xa56   : > { %2742 = vmatprep.mubr.msk.bf16.mxu1 %vm930_vm2, %v1901_v43  ;;  %v1902_v13 = vpack.c.bf16 %v1896_v15, %v1895_v9  ;;  %v2794_v4 = vpop.permute.xlu0 %2793 }
 0xa58   : > { %2737 = vmatpush3.bf16.msra.mxu1 %v1908_v63 }
 0xa59   : > { %2738 = vmatprep.subr.bf16.mxu1 %v1910_v0 }
 0xa5a   : > { %v2804_v44 = vpop.permute.xlu0 %2803 }
 0xa5b   : > { %v2805_v45 = vunpack.i.l.bf16 %v2804_v44  ;;  %v2806_v63 = vunpack.i.h.bf16 %v2804_v44 }
 0xa5c   : > { %2739 = vmatpush3.bf16.msra.mxu1 %v1910_v0 }
 0xa7f   : > { %v1884_v2 = vpop.xlane.xlu1 %1883 }
 0xa80   : > { %2972 = vrcp.f32 %v1884_v2 }
 0xa81   : > { %2974 = vrcp.f32 %v1875_v40  ;;  %v2796_v40 = vunpack.i.h.bf16 %v2794_v4 }
 0xa82   : > { %2976 = vrcp.f32 %v1881_v16  ;;  %v2795_v16 = vunpack.i.l.bf16 %v2794_v4 }
 0xa83   : > { %v1878_v36 = vpop.xlane.xlu1 %1877  ;;  %v2091_v62 = vsel %vm832_vm1, %v3413_v19, %v2796_v40 }
 0xa84   : > { %2978 = vrcp.f32 %v1878_v36  ;;  %v2100_v19 = vsel %vm2098_vm3, %v2091_v62, %v2806_v63  ;;  %v2998_v63 = vld [vmem:[%s3168_s27 + $0x8] sm:$0xff] }
 0xa87   : > { %v1912_v49 = vpop.permute.xlu1 %1911 }
 0xa88   : > { %2740 = vmatprep.subr.bf16.mxu1 %v1912_v49 }
 0xa89   : > { %2741 = vmatpush3.bf16.msra.mxu1 %v1912_v49 }
 0xa8a   : > { %v2973_v38 = vpop.eup %2972  ;;  %2750 = vmatprep.subr.bf16.mxu1 %v2124_v6 }
 0xa8b   : > { %v2975_v50 = vpop.eup %2974  ;;  %v1900_v35 = vmul.f32 %v2973_v38, %v2961_v61  ;;  %v2799_v1 = vpop.permute.xlu1 %2798 }
 0xa8c   : > { %2743 = vmatmul.mubr.msk.bf16.vlgmr.msra.gmra.mrb[32].mxu1 %vm930_vm2, %v1902_v13  ;;  %v2977_v52 = vpop.eup %2976  ;;  %v1897_v28 = vmul.f32 %v2975_v50, %v3659_v17  ;;  %v2801_v10 = vunpack.i.h.bf16 %v2799_v1  ;;  %v2800_v60 = vunpack.i.l.bf16 %v2799_v1  ;;  %v2486_v1 = vld [vmem:[%s3868_s11] ss:$0 sm:$0xff] }
 0xa8d   : > { %v1899_v34 = vmul.f32 %v2977_v52, %v3655_v21  ;;  %v2123_v21 = vld [vmem:[%s3864_s7 + $0x18] sm:$0xff]  ;;  %2751 = vmatpush3.bf16.msra.mxu1 %v2124_v6 }
 0xa8e   : > { %v2979_v46 = vpop.eup %2978  ;;  %v2125_v51 = vpack.c.bf16 %v2123_v21, %v2122_v48  ;;  %v2093_v43 = vsel %vm832_vm1, %v3411_v18, %v2801_v10  ;;  %v2092_v0 = vsel %vm832_vm1, %v3407_v29, %v2800_v60  ;;  %v2997_v60 = vld [vmem:[%s3168_s27] sm:$0xff] }
 0xa8f   : > { %v1898_v14 = vmul.f32 %v2979_v46, %v2963_v59  ;;  %v1904_v27 = vpack.c.bf16 %v1900_v35, %v1899_v34  ;;  %v2809_v5 = vpop.permute.xlu1 %2808 }
 0xa90   : > { %2752 = vmatprep.subr.bf16.mxu1 %v2125_v51  ;;  %v2811_v30 = vunpack.i.h.bf16 %v2809_v5  ;;  %v2810_v31 = vunpack.i.l.bf16 %v2809_v5 }
 0xa91   : > { %v1903_v32 = vpack.c.bf16 %v1898_v14, %v1897_v28  ;;  %2753 = vmatpush3.bf16.msra.mxu1 %v2125_v51 }
 0xa92   : > { %v2101_v20 = vsel %vm2098_vm3, %v2092_v0, %v2810_v31 }
 0xa93   : > { %2746 = vmatprep.mubr.msk.bf16.mxu1 %vm930_vm2, %v1903_v32  ;;  %v2819_v7 = vpop.permute.xlu1 %2818 }
 0xa94   : > { %2747 = vmatmul.mubr.msk.bf16.gmra.mrb[36].mxu1 %vm930_vm2, %v1904_v27  ;;  %v2821_v35 = vunpack.i.h.bf16 %v2819_v7  ;;  %v2820_v28 = vunpack.i.l.bf16 %v2819_v7 }
 0xa96   : > { %v2097_v51 = vsel %vm832_vm1, %v3419_v24, %v2821_v35  ;;  %v3003_v35 = vld [vmem:[%s3168_s27 + $0x30] sm:$0xff] }
 0xb5f   : > { %v2744_v17 = vpop.f32.mrb[32].mxu1 }
 0xb60   : > { %v1963_v47 = vpop.f32.mrb[33].mxu1 }
 0xb61   : > { %v2745_v26 = vpop.f32.mrb[34].mxu1 }
 0xb62   : > { %v2822_v55 = vpack.i.bf16 %v2745_v26, %v2744_v17  ;;  %v1966_v12 = vpop.f32.mrb[35].mxu1  ;;  %v2096_v17 = vsel %vm832_vm1, %v3415_v22, %v2820_v28 }
 0xb63   : > { %v2827_v39 = vpack.i.bf16 %v1966_v12, %v1963_v47 }
 0xb64   : > { %2823 = vrot.lane.b32.xlu1 %v2822_v55, %s3017_s16 }
 0xb65   : > { %2828 = vrot.lane.b32.xlu0 %v2827_v39, %s3017_s16 }
 0xb67   : > { %v2748_v11 = vpop.f32.mrb[36].mxu1 }
 0xb68   : > { %2838 = vrot.lane.b32.xlu1 %v2837_v56, %s3016_s19  ;;  %v1979_v41 = vpop.f32.mrb[37].mxu1  ;;  %v2814_v56 = vpop.permute.xlu0 %2813 }
 0xb69   : > { %2833 = vrot.lane.b32.xlu0 %v2832_v37, %s3016_s19  ;;  %v2749_v61 = vpop.f32.mrb[38].mxu1  ;;  %v2090_v37 = vsel %vm832_vm1, %v3409_v8, %v2795_v16  ;;  %v2102_v8 = vsel %vm2098_vm3, %v2093_v43, %v2811_v30  ;;  %v2816_v9 = vunpack.i.h.bf16 %v2814_v56  ;;  %v2815_v18 = vunpack.i.l.bf16 %v2814_v56  ;;  %v2999_v43 = vld [vmem:[%s3168_s27 + $0x18] sm:$0xff] }
 0xb6a   : > { %v2847_v58 = vpack.i.bf16 %v2749_v61, %v2748_v11  ;;  %v1982_v59 = vpop.f32.mrb[39].mxu1  ;;  %v2099_v54 = vsel %vm2098_vm3, %v2090_v37, %v2805_v45  ;;  %v2996_v45 = vld [vmem:[%s3168_s27 + $0x10] sm:$0xff] }
 0xb6b   : > { %v2842_v57 = vpack.i.bf16 %v1982_v59, %v1979_v41  ;;  %v2095_v48 = vsel %vm832_vm1, %v3421_v25, %v2816_v9  ;;  %v2094_v6 = vsel %vm832_vm1, %v3417_v23, %v2815_v18  ;;  %v3000_v9 = vld [vmem:[%s3168_s27 + $0x20] sm:$0xff]  ;;  %v3001_v18 = vld [vmem:[%s3168_s27 + $0x28] sm:$0xff] }
 0xb6c   : > { %2848 = vrot.lane.b32.xlu1 %v2847_v58, %s3017_s16 }
 0xb6d   : > { %2843 = vrot.lane.b32.xlu0 %v2842_v57, %s3017_s16 }
 0xbd6   : > { %v2824_v33 = vpop.permute.xlu1 %2823 }
 0xbd7   : > { %v2826_v2 = vunpack.i.h.bf16 %v2824_v33  ;;  %v2825_v3 = vunpack.i.l.bf16 %v2824_v33  ;;  %v2829_v36 = vpop.permute.xlu0 %2828 }
 0xbd8   : > { %v2831_v15 = vunpack.i.h.bf16 %v2829_v36  ;;  %v2830_v49 = vunpack.i.l.bf16 %v2829_v36 }
 0xbd9   : > { %v2110_v13 = vsel %vm2107_vm4, %v2101_v20, %v2825_v3  ;;  %v2111_v38 = vsel %vm2107_vm4, %v2102_v8, %v2826_v2 }
 0xbda   : > { %v2117_v50 = vpack.c.bf16 %v2111_v38, %v2110_v13  ;;  %v2109_v29 = vsel %vm2107_vm4, %v2100_v19, %v2831_v15  ;;  %v2108_v52 = vsel %vm2107_vm4, %v2099_v54, %v2830_v49  ;;  %v2839_v46 = vpop.permute.xlu1 %2838 }
 0xbdb   : > { %v2116_v14 = vpack.c.bf16 %v2109_v29, %v2108_v52  ;;  %v2834_v34 = vpop.permute.xlu0 %2833  ;;  %v2841_v32 = vunpack.i.h.bf16 %v2839_v46  ;;  %v2840_v27 = vunpack.i.l.bf16 %v2839_v46  ;;  %v3002_v29 = vld [vmem:[%s3168_s27 + $0x38] sm:$0xff] }
 0xbdc   : > { %v2836_v42 = vunpack.i.h.bf16 %v2834_v34  ;;  %v2835_v53 = vunpack.i.l.bf16 %v2834_v34 }
 0xbdd   : > { %2754 = vmatprep.mubr.msk.bf16.mxu1 %vm562_vm0, %v2116_v14  ;;  %v2105_v12 = vsel %vm2098_vm3, %v2096_v17, %v2840_v27  ;;  %v2106_v39 = vsel %vm2098_vm3, %v2097_v51, %v2841_v32 }
 0xbde   : > { %v2849_v21 = vpop.permute.xlu1 %2848  ;;  %2755 = vmatmul.mubr.msk.bf16.vlgmr.msra.gmra.mrb[40].mxu1 %vm562_vm0, %v2117_v50  ;;  %v2104_v23 = vsel %vm2098_vm3, %v2095_v48, %v2836_v42  ;;  %v2103_v41 = vsel %vm2098_vm3, %v2094_v6, %v2835_v53 }
 0xbdf   : > { %v2851_v47 = vunpack.i.h.bf16 %v2849_v21  ;;  %v2850_v26 = vunpack.i.l.bf16 %v2849_v21  ;;  %v2844_v55 = vpop.permute.xlu0 %2843 }
 0xbe0   : > { %v2846_v25 = vunpack.i.h.bf16 %v2844_v55  ;;  %v2845_v11 = vunpack.i.l.bf16 %v2844_v55 }
 0xbe1   : > { %v2114_v61 = vsel %vm2107_vm4, %v2105_v12, %v2850_v26  ;;  %v2115_v24 = vsel %vm2107_vm4, %v2106_v39, %v2851_v47 }
 0xbe2   : > { %v2119_v58 = vpack.c.bf16 %v2115_v24, %v2114_v61  ;;  %v2113_v22 = vsel %vm2107_vm4, %v2104_v23, %v2846_v25  ;;  %v2112_v59 = vsel %vm2107_vm4, %v2103_v41, %v2845_v11 }
 0xbe3   : > { %v2118_v57 = vpack.c.bf16 %v2113_v22, %v2112_v59 }
 0xbe5   : > { %2758 = vmatprep.mubr.msk.bf16.mxu1 %vm562_vm0, %v2118_v57 }
 0xbe6   : > { %2759 = vmatmul.mubr.msk.bf16.gmra.mrb[44].mxu1 %vm562_vm0, %v2119_v58 }
 0xcb1   : > { %v2756_v4 = vpop.f32.mrb[40].mxu1 }
 0xcb2   : > { %v2188_v5 = vadd.f32 %v2756_v4, %v2486_v1  ;;  %v2179_v44 = vpop.f32.mrb[41].mxu1 }
 0xcb3   : > { %v2180_v16 = vadd.f32 %v2486_v1, %v2179_v44  ;;  %v2757_v40 = vpop.f32.mrb[42].mxu1 }
 0xcb4   : > { %v2212_v7 = vadd.f32 %v2996_v45, %v2188_v5  ;;  %v2182_v56 = vpop.f32.mrb[43].mxu1  ;;  %v2191_v31 = vadd.f32 %v2757_v40, %v2486_v1 }
 0xcb5   : > { %v2183_v10 = vadd.f32 %v2486_v1, %v2182_v56  ;;  %v2210_v30 = vadd.f32 %v2997_v60, %v2180_v16 }
 0xcb6   : > { %v2224_v37 = vsel %vm562_vm0, %v2212_v7, 0.0  ;;  %v2213_v0 = vadd.f32 %v2999_v43, %v2191_v31 }
 0xcb7   : > { %v2211_v62 = vadd.f32 %v2998_v63, %v2183_v10  ;;  %2225 = vadd.xlane.f32.xlu0 %v2224_v37  ;;  %v2218_v3 = vsel %vm562_vm0, %v2210_v30, 0.0 }
 0xcb8   : > { %v2227_v38 = vsel %vm562_vm0, %v2213_v0, 0.0 }
 0xcb9   : > { %v2760_v54 = vpop.f32.mrb[44].mxu1  ;;  %v2221_v33 = vsel %vm562_vm0, %v2211_v62, 0.0 }
 0xcba   : > { %v2195_v2 = vpop.f32.mrb[45].mxu1  ;;  %2222 = vadd.xlane.f32.xlu1 %v2221_v33  ;;  %v2204_v19 = vadd.f32 %v2760_v54, %v2486_v1 }
 0xcbb   : > { %v2196_v36 = vadd.f32 %v2486_v1, %v2195_v2  ;;  %v2761_v20 = vpop.f32.mrb[46].mxu1  ;;  %2219 = vadd.xlane.f32.xlu0 %v2218_v3 }
 0xcbc   : > { %v2198_v8 = vpop.f32.mrb[47].mxu1  ;;  %v2207_v15 = vadd.f32 %v2761_v20, %v2486_v1  ;;  %v2216_v28 = vadd.f32 %v3003_v35, %v2204_v19 }
 0xcbd   : > { %v2199_v49 = vadd.f32 %v2486_v1, %v2198_v8  ;;  %v2214_v13 = vadd.f32 %v3000_v9, %v2196_v36 }
 0xcbe   : > { %v2217_v52 = vadd.f32 %v3002_v29, %v2207_v15  ;;  %v2236_v32 = vsel %vm562_vm0, %v2216_v28, 0.0 }
 0xcbf   : > { %v2215_v50 = vadd.f32 %v3001_v18, %v2199_v49  ;;  %2228 = vadd.xlane.f32.xlu0 %v2227_v38  ;;  %v2230_v14 = vsel %vm562_vm0, %v2214_v13, 0.0  ;;  %v2491_v18 = vld [vmem:[%s3869_s12] ss:$0 sm:$0xff] }
 0xcc0   : > { %v2239_v34 = vsel %vm562_vm0, %v2217_v52, 0.0 }
 0xcc1   : > { %v2233_v46 = vsel %vm562_vm0, %v2215_v50, 0.0 }
 0xcc2   : > { %2234 = vadd.xlane.f32.xlu1 %v2233_v46 }
 0xcc3   : > { %2231 = vadd.xlane.f32.xlu0 %v2230_v14 }
 0xcc6   : > { %2240 = vadd.xlane.f32.xlu1 %v2239_v34 }
 0xcc7   : > { %2237 = vadd.xlane.f32.xlu0 %v2236_v32 }
 0xd44   : > { %v2226_v27 = vpop.xlane.xlu0 %2225 }
 0xd45   : > { %v2245_v42 = vmul.f32 0.03125, %v2226_v27 }
 0xd47   : > { %v3778_v53 = vsub.f32 %v2212_v7, %v2245_v42  ;;  %v2223_v48 = vpop.xlane.xlu1 %2222 }
 0xd48   : > { %v2220_v6 = vpop.xlane.xlu0 %2219  ;;  %v2244_v17 = vmul.f32 0.03125, %v2223_v48 }
 0xd49   : > { %v2243_v21 = vmul.f32 0.03125, %v2220_v6  ;;  %v2261_v51 = vmul.f32 %v3778_v53, %v3778_v53 }
 0xd4a   : > { %v3787_v25 = vsub.f32 %v2211_v62, %v2244_v17 }
 0xd4b   : > { %v3782_v47 = vsub.f32 %v2210_v30, %v2243_v21  ;;  %v2273_v26 = vsel %vm562_vm0, %v2261_v51, 0.0 }
 0xd4c   : > { %2274 = vadd.xlane.f32.xlu0 %v2273_v26  ;;  %v2229_v55 = vpop.xlane.xlu0 %2228  ;;  %v2260_v59 = vmul.f32 %v3787_v25, %v3787_v25 }
 0xd4d   : > { %v2246_v12 = vmul.f32 0.03125, %v2229_v55  ;;  %v2259_v39 = vmul.f32 %v3782_v47, %v3782_v47 }
 0xd4e   : > { %v2270_v7 = vsel %vm562_vm0, %v2260_v59, 0.0 }
 0xd4f   : > { %v3789_v11 = vsub.f32 %v2213_v0, %v2246_v12  ;;  %v2235_v23 = vpop.xlane.xlu1 %2234  ;;  %v2267_v41 = vsel %vm562_vm0, %v2259_v39, 0.0 }
 0xd50   : > { %v2248_v61 = vmul.f32 0.03125, %v2235_v23  ;;  %2268 = vadd.xlane.f32.xlu0 %v2267_v41  ;;  %v2232_v24 = vpop.xlane.xlu0 %2231 }
 0xd51   : > { %v2247_v58 = vmul.f32 0.03125, %v2232_v24  ;;  %v2262_v22 = vmul.f32 %v3789_v11, %v3789_v11 }
 0xd52   : > { %v3796_v57 = vsub.f32 %v2215_v50, %v2248_v61 }
 0xd53   : > { %v3798_v1 = vsub.f32 %v2214_v13, %v2247_v58  ;;  %v2241_v4 = vpop.xlane.xlu1 %2240  ;;  %v2276_v5 = vsel %vm562_vm0, %v2262_v22, 0.0 }
 0xd54   : > { %v2250_v44 = vmul.f32 0.03125, %v2241_v4  ;;  %2277 = vadd.xlane.f32.xlu1 %v2276_v5  ;;  %v2238_v16 = vpop.xlane.xlu0 %2237  ;;  %v2264_v30 = vmul.f32 %v3796_v57, %v3796_v57 }
 0xd55   : > { %v2249_v40 = vmul.f32 0.03125, %v2238_v16  ;;  %v2263_v45 = vmul.f32 %v3798_v1, %v3798_v1 }
 0xd56   : > { %v3804_v56 = vsub.f32 %v2217_v52, %v2250_v44  ;;  %v2282_v37 = vsel %vm562_vm0, %v2264_v30, 0.0 }
 0xd57   : > { %v3806_v10 = vsub.f32 %v2216_v28, %v2249_v40  ;;  %v2279_v60 = vsel %vm562_vm0, %v2263_v45, 0.0  ;;  %v2492_v28 = vld [vmem:[%s3870_s13] ss:$0 sm:$0xff] }
 0xd58   : > { %2271 = vadd.xlane.f32.xlu1 %v2270_v7  ;;  %2280 = vadd.xlane.f32.xlu0 %v2279_v60  ;;  %v2266_v62 = vmul.f32 %v3804_v56, %v3804_v56 }
 0xd59   : > { %v2265_v31 = vmul.f32 %v3806_v10, %v3806_v10 }
 0xd5a   : > { %v2288_v54 = vsel %vm562_vm0, %v2266_v62, 0.0 }
 0xd5b   : > { %v2285_v63 = vsel %vm562_vm0, %v2265_v31, 0.0 }
 0xd5c   : > { %2283 = vadd.xlane.f32.xlu1 %v2282_v37  ;;  %2286 = vadd.xlane.f32.xlu0 %v2285_v63 }
 0xd60   : > { %2289 = vadd.xlane.f32.xlu1 %v2288_v54 }
 0xdd9   : > { %v2275_v33 = vpop.xlane.xlu0 %2274 }
 0xdda   : > { %v2293_v43 = vmul.f32 0.03125, %v2275_v33 }
 0xddc   : > { %v2301_v0 = vadd.f32 1e-05, %v2293_v43 }
 0xddd   : > { %v2269_v2 = vpop.xlane.xlu0 %2268 }
 0xdde   : > { %2980 = vrsqrt.f32 %v2301_v0  ;;  %v2291_v3 = vmul.f32 0.03125, %v2269_v2 }
 0xde0   : > { %v2299_v36 = vadd.f32 1e-05, %v2291_v3 }
 0xde1   : > { %v2278_v20 = vpop.xlane.xlu1 %2277 }
 0xde2   : > { %2982 = vrsqrt.f32 %v2299_v36  ;;  %v2294_v8 = vmul.f32 0.03125, %v2278_v20 }
 0xde4   : > { %v2302_v15 = vadd.f32 1e-05, %v2294_v8 }
 0xde5   : > { %v2272_v49 = vpop.xlane.xlu1 %2271  ;;  %v2281_v19 = vpop.xlane.xlu0 %2280 }
 0xde6   : > { %2984 = vrsqrt.f32 %v2302_v15  ;;  %v2292_v9 = vmul.f32 0.03125, %v2272_v49  ;;  %v2295_v13 = vmul.f32 0.03125, %v2281_v19 }
 0xde8   : > { %v2981_v38 = vpop.eup %2980  ;;  %v2300_v50 = vadd.f32 1e-05, %v2292_v9  ;;  %v2303_v29 = vadd.f32 1e-05, %v2295_v13 }
 0xde9   : > { %v2317_v52 = vmul.f32 %v2981_v38, %v3778_v53  ;;  %v2284_v46 = vpop.xlane.xlu1 %2283  ;;  %v2287_v35 = vpop.xlane.xlu0 %2286 }
 0xdea   : > { %2986 = vrsqrt.f32 %v2300_v50  ;;  %v2296_v14 = vmul.f32 0.03125, %v2284_v46  ;;  %v2297_v34 = vmul.f32 0.03125, %v2287_v35 }
 0xdeb   : > { %v2332_v32 = vmul.f32 %v2491_v18, %v2317_v52  ;;  %2988 = vrsqrt.f32 %v2303_v29 }
 0xdec   : > { %v2983_v27 = vpop.eup %2982  ;;  %v2304_v42 = vadd.f32 1e-05, %v2296_v14  ;;  %v2305_v53 = vadd.f32 1e-05, %v2297_v34 }
 0xded   : > { %v2347_v48 = vadd.f32 %v2492_v28, %v2332_v32  ;;  %v2315_v6 = vmul.f32 %v2983_v27, %v3782_v47  ;;  %v2290_v21 = vpop.xlane.xlu1 %2289 }
 0xdee   : > { %2990 = vrsqrt.f32 %v2304_v42  ;;  %v2298_v51 = vmul.f32 0.03125, %v2290_v21 }
 0xdef   : > { %2355 = vst.msk [vmem:[%s3829_s24 + $0x10] sm:$0xff] %vm562_vm0, %v2347_v48  ;;  %v2330_v17 = vmul.f32 %v2491_v18, %v2315_v6  ;;  %2992 = vrsqrt.f32 %v2305_v53 }
 0xdf0   : > { %v2985_v26 = vpop.eup %2984  ;;  %v2306_v55 = vadd.f32 1e-05, %v2298_v51 }
 0xdf1   : > { %v2345_v12 = vadd.f32 %v2492_v28, %v2330_v17  ;;  %v2318_v39 = vmul.f32 %v2985_v26, %v3789_v11 }
 0xdf2   : > { %2994 = vrsqrt.f32 %v2306_v55 }
 0xdf3   : > { %2353 = vst.msk [vmem:[%s3829_s24] sm:$0xff] %vm562_vm0, %v2345_v12  ;;  %v2333_v23 = vmul.f32 %v2491_v18, %v2318_v39 }
 0xdf4   : > { %v2987_v41 = vpop.eup %2986 }
 0xdf5   : > { %v2989_v47 = vpop.eup %2988  ;;  %v2348_v61 = vadd.f32 %v2492_v28, %v2333_v23  ;;  %v2316_v24 = vmul.f32 %v2987_v41, %v3787_v25 }
 0xdf6   : > { %v2319_v58 = vmul.f32 %v2989_v47, %v3798_v1 }
 0xdf7   : > { %2356 = vst.msk [vmem:[%s3829_s24 + $0x18] sm:$0xff] %vm562_vm0, %v2348_v61  ;;  %v2331_v22 = vmul.f32 %v2491_v18, %v2316_v24 }
 0xdf8   : > { %v2991_v59 = vpop.eup %2990  ;;  %v2334_v4 = vmul.f32 %v2491_v18, %v2319_v58 }
 0xdf9   : > { %v2993_v11 = vpop.eup %2992  ;;  %v2346_v5 = vadd.f32 %v2492_v28, %v2331_v22  ;;  %v2320_v44 = vmul.f32 %v2991_v59, %v3796_v57 }
 0xdfa   : > { %v2349_v16 = vadd.f32 %v2492_v28, %v2334_v4  ;;  %v2321_v40 = vmul.f32 %v2993_v11, %v3806_v10 }
 0xdfb   : > { %2354 = vst.msk [vmem:[%s3829_s24 + $0x8] sm:$0xff] %vm562_vm0, %v2346_v5  ;;  %v2335_v25 = vmul.f32 %v2491_v18, %v2320_v44 }
 0xdfc   : > { %v2995_v45 = vpop.eup %2994  ;;  %2357 = vst.msk [vmem:[%s3829_s24 + $0x20] sm:$0xff] %vm562_vm0, %v2349_v16  ;;  %v2336_v1 = vmul.f32 %v2491_v18, %v2321_v40 }
 0xdfd   : > { %v2350_v7 = vadd.f32 %v2492_v28, %v2335_v25  ;;  %v2322_v60 = vmul.f32 %v2995_v45, %v3804_v56 }
 0xdfe   : > { %v2351_v30 = vadd.f32 %v2492_v28, %v2336_v1 }
 0xdff   : > { %2358 = vst.msk [vmem:[%s3829_s24 + $0x28] sm:$0xff] %vm562_vm0, %v2350_v7  ;;  %v2337_v31 = vmul.f32 %v2491_v18, %v2322_v60 }
 0xe00   : > { %2359 = vst.msk [vmem:[%s3829_s24 + $0x30] sm:$0xff] %vm562_vm0, %v2351_v30 }
 0xe01   : > { %v2352_v57 = vadd.f32 %v2492_v28, %v2337_v31 }
 0xe03   : > { %2360 = vst.msk [vmem:[%s3829_s24 + $0x38] sm:$0xff] %vm562_vm0, %v2352_v57 }
 0xe04 PF: > { %s24_s29 = sadd.s32 1, %s3010_s29  }
 0xe05   : > { %p21_p4 = scmp.ge.s32.totalorder %s24_s29, 4  }
 0xe07   :  { %23 = sbr.rel (!%p21_p4) target bundleno = 1 (0x1), region = 109 }

// kernel: detr_forward.28
= control target key start
LH: loop header
LB: loop body
LE: loop exit
PB: predicated region body
PF: predicated region fallthrough
CT: control target
= control target key end

     0   :  { %vm16_vm0 = vcmask 261120   ;;  %s118_s0 = inlined_call_operand.vmem [shape: f32[16,32], index: 0, kind: input, shape index: {}]   ;;  %s119_s1 = inlined_call_operand.vmem [shape: f32[1,32], index: 1, kind: input, shape index: {}]   ;;  %s120_s2 = inlined_call_operand.vmem [shape: f32[1,32], index: 2, kind: input, shape index: {}]   ;;  %s121_s3 = inlined_call_operand.vmem [shape: f32[16,32], index: 3, kind: output, shape index: {}]  }
   0x1   :  { %v14_v0 = vld [vmem:[%s118_s0] sm:$0xff]  ;;  %v15_v1 = vld [vmem:[%s118_s0 + $0x8] sm:$0xff] }
   0x2   :  { %v17_v2 = vsel %vm16_vm0, %v14_v0, 0.0  ;;  %v20_v3 = vsel %vm16_vm0, %v15_v1, 0.0  ;;  %v68_v21 = vld [vmem:[%s119_s1] ss:$0 sm:$0xff] }
   0x3   :  { %18 = vadd.xlane.f32.xlu0 %v17_v2  ;;  %v69_v23 = vld [vmem:[%s120_s2] ss:$0 sm:$0xff] }
   0x7   :  { %21 = vadd.xlane.f32.xlu0 %v20_v3 }
  0x90   :  { %v19_v4 = vpop.xlane.xlu0 %18 }
  0x91   :  { %v24_v5 = vmul.f32 0.03125, %v19_v4 }
  0x93   :  { %v26_v6 = vsub.f32 %v14_v0, %v24_v5 }
  0x94   :  { %v22_v7 = vpop.xlane.xlu0 %21 }
  0x95   :  { %v25_v8 = vmul.f32 0.03125, %v22_v7  ;;  %v28_v9 = vmul.f32 %v26_v6, %v26_v6 }
  0x97   :  { %v27_v10 = vsub.f32 %v15_v1, %v25_v8  ;;  %v30_v11 = vsel %vm16_vm0, %v28_v9, 0.0 }
  0x98   :  { %31 = vadd.xlane.f32.xlu1 %v30_v11 }
  0x99   :  { %v29_v12 = vmul.f32 %v27_v10, %v27_v10 }
  0x9b   :  { %v33_v13 = vsel %vm16_vm0, %v29_v12, 0.0 }
  0x9c   :  { %34 = vadd.xlane.f32.xlu1 %v33_v13 }
 0x125   :  { %v32_v14 = vpop.xlane.xlu1 %31 }
 0x126   :  { %v36_v15 = vmul.f32 0.03125, %v32_v14 }
 0x128   :  { %v38_v16 = vadd.f32 1e-05, %v36_v15 }
 0x129   :  { %v35_v17 = vpop.xlane.xlu1 %34 }
 0x12a   :  { %70 = vrsqrt.f32 %v38_v16  ;;  %v37_v18 = vmul.f32 0.03125, %v35_v17 }
 0x12c   :  { %v39_v19 = vadd.f32 1e-05, %v37_v18 }
 0x12e   :  { %72 = vrsqrt.f32 %v39_v19 }
 0x134   :  { %v71_v20 = vpop.eup %70 }
 0x135   :  { %v42_v22 = vmul.f32 %v71_v20, %v26_v6 }
 0x137   :  { %v51_v24 = vmul.f32 %v68_v21, %v42_v22 }
 0x138   :  { %v73_v25 = vpop.eup %72 }
 0x139   :  { %v60_v26 = vadd.f32 %v69_v23, %v51_v24  ;;  %v43_v27 = vmul.f32 %v73_v25, %v27_v10 }
 0x13b   :  { %62 = vst.msk [vmem:[%s121_s3] sm:$0xff] %vm16_vm0, %v60_v26  ;;  %v52_v28 = vmul.f32 %v68_v21, %v43_v27 }
 0x13d   :  { %v61_v29 = vadd.f32 %v69_v23, %v52_v28 }
 0x13f   :  { %63 = vst.msk [vmem:[%s121_s3 + $0x8] sm:$0xff] %vm16_vm0, %v61_v29 }

// kernel: detr_forward.29
= control target key start
LH: loop header
LB: loop body
LE: loop exit
PB: predicated region body
PF: predicated region fallthrough
CT: control target
= control target key end

     0   :  { %v348_v0 = vmov 0.0   ;;  %vm349_vm0 = vmmov 0   ;;  %vm46_vm1 = vcmask 261120   ;;  %s472_s1 = inlined_call_operand.vmem [shape: f32[32,32], index: 1, kind: input, shape index: {}]   ;;  %s473_s0 = inlined_call_operand.vmem [shape: f32[16,32], index: 0, kind: input, shape index: {}]   ;;  %s474_s3 = inlined_call_operand.vmem [shape: f32[32,32], index: 3, kind: input, shape index: {}]   ;;  %s475_s2 = inlined_call_operand.vmem [shape: f32[1,32], index: 2, kind: input, shape index: {}]   ;;  %s476_s5 = inlined_call_operand.vmem [shape: f32[32,128], index: 5, kind: input, shape index: {}]   ;;  %s477_s6 = inlined_call_operand.vmem [shape: f32[32,128], index: 6, kind: input, shape index: {}]   ;;  %s478_s4 = inlined_call_operand.vmem [shape: f32[1,32], index: 4, kind: input, shape index: {}]   ;;  %s479_s7 = inlined_call_operand.vmem [shape: f32[1,128], index: 7, kind: input, shape index: {}]   ;;  %s480_s8 = inlined_call_operand.vmem [shape: f32[16,128], index: 8, kind: output, shape index: {}]  }
   0x1   :  { %306 = vmatprep.subr.bf16.mxu0 %v348_v0  ;;  %v33_v1 = vld [vmem:[%s472_s1] sm:$0xff]  ;;  %v34_v2 = vld [vmem:[%s472_s1 + $0x8] sm:$0xff]  ;;  %v35_v3 = vld [vmem:[%s472_s1 + $0x10] sm:$0xff]  ;;  %310 = vmatprep.mubr.msk.bf16.mxu0 %vm349_vm0, %v348_v0 }
   0x2   :  { %v37_v4 = vpack.c.bf16 %v34_v2, %v33_v1  ;;  %v36_v5 = vld [vmem:[%s472_s1 + $0x18] sm:$0xff]  ;;  %314 = vmatprep.subr.bf16.mxu1 %v348_v0  ;;  %318 = vmatprep.mubr.msk.bf16.mxu1 %vm349_vm0, %v348_v0  ;;  %v30_v7 = vld [vmem:[%s473_s0] sm:$0xff]  ;;  %v31_v8 = vld [vmem:[%s473_s0 + $0x8] sm:$0xff] }
   0x3   :  { %v38_v6 = vpack.c.bf16 %v36_v5, %v35_v3  ;;  %v32_v9 = vpack.c.bf16 %v31_v8, %v30_v7  ;;  %v94_v10 = vld [vmem:[%s474_s3] sm:$0xff]  ;;  %v95_v11 = vld [vmem:[%s474_s3 + $0x8] sm:$0xff]  ;;  %v96_v13 = vld [vmem:[%s474_s3 + $0x10] sm:$0xff] }
   0x4   :  { %307 = vmatpush3.bf16.msra.mxu0 %v37_v4  ;;  %v98_v12 = vpack.c.bf16 %v95_v11, %v94_v10  ;;  %v97_v14 = vld [vmem:[%s474_s3 + $0x18] sm:$0xff]  ;;  %v285_v16 = vld [vmem:[%s475_s2] ss:$0 sm:$0xff]  ;;  %v154_v24 = vld [vmem:[%s476_s5 + $0x8] sm:$0xff] }
   0x5   :  { %308 = vmatprep.subr.bf16.mxu0 %v348_v0  ;;  %v99_v15 = vpack.c.bf16 %v97_v14, %v96_v13  ;;  %v153_v23 = vld [vmem:[%s476_s5] sm:$0xff]  ;;  %v161_v30 = vld [vmem:[%s477_s6 + $0x8] sm:$0xff]  ;;  %v155_v32 = vld [vmem:[%s476_s5 + $0x10] sm:$0xff] }
   0x6   :  { %315 = vmatpush3.bf16.msra.mxu1 %v98_v12  ;;  %v157_v27 = vpack.c.bf16 %v154_v24, %v153_v23  ;;  %v160_v29 = vld [vmem:[%s477_s6] sm:$0xff]  ;;  %v156_v33 = vld [vmem:[%s476_s5 + $0x18] sm:$0xff]  ;;  %v162_v35 = vld [vmem:[%s477_s6 + $0x10] sm:$0xff] }
   0x7   :  { %316 = vmatprep.subr.bf16.mxu1 %v348_v0  ;;  %v164_v31 = vpack.c.bf16 %v161_v30, %v160_v29  ;;  %v158_v34 = vpack.c.bf16 %v156_v33, %v155_v32  ;;  %v163_v36 = vld [vmem:[%s477_s6 + $0x18] sm:$0xff]  ;;  %v287_v38 = vld [vmem:[%s478_s4] ss:$0 sm:$0xff] }
   0x8   :  { %309 = vmatpush3.bf16.msra.mxu0 %v38_v6  ;;  %v165_v37 = vpack.c.bf16 %v163_v36, %v162_v35  ;;  %v291_v53 = vld [vmem:[%s479_s7] ss:$0 sm:$0xff] }
   0x9   :  { %322 = vmatprep.subr.bf16.mxu0 %v348_v0 }
   0xa   :  { %317 = vmatpush3.bf16.msra.mxu1 %v99_v15 }
   0xb   :  { %311 = vmatmul.mubr.msk.bf16.vlgmr.msra.gmra.mrb[0].mxu0 %vm46_vm1, %v32_v9  ;;  %330 = vmatprep.subr.bf16.mxu1 %v348_v0 }
   0xc   :  { %326 = vmatprep.mubr.msk.bf16.mxu0 %vm349_vm0, %v348_v0  ;;  %323 = vmatpush3.bf16.msra.mxu0 %v164_v31 }
   0xd   :  { %324 = vmatprep.subr.bf16.mxu0 %v348_v0 }
  0x10   :  { %325 = vmatpush3.bf16.msra.mxu0 %v165_v37 }
  0xde   :  { %v84_v17 = vpop.f32.mrb[0].mxu0 }
  0xdf   :  { %v85_v18 = vadd.f32 %v285_v16, %v84_v17  ;;  %v312_v19 = vpop.f32.mrb[1].mxu0 }
  0xe0   :  { %v87_v20 = vpop.f32.mrb[2].mxu0 }
  0xe1   :  { %v88_v21 = vadd.f32 %v285_v16, %v87_v20  ;;  %v313_v22 = vpop.f32.mrb[3].mxu0  ;;  %v91_v25 = vmax.f32 %v85_v18, 0.0 }
  0xe3   :  { %v92_v26 = vmax.f32 %v88_v21, 0.0 }
  0xe5   :  { %v93_v28 = vpack.c.bf16 %v92_v26, %v91_v25 }
  0xe7   :  { %319 = vmatmul.mubr.msk.bf16.vlgmr.msra.gmra.mrb[0].mxu1 %vm46_vm1, %v93_v28 }
  0xe8   :  { %331 = vmatpush3.bf16.msra.mxu1 %v157_v27  ;;  %334 = vmatprep.mubr.msk.bf16.mxu1 %vm349_vm0, %v348_v0 }
  0xe9   :  { %332 = vmatprep.subr.bf16.mxu1 %v348_v0  ;;  %v260_v0 = vlaneseq }
  0xeb   :  { %v261_v4 = vand.u32 127, %v260_v0 }
  0xec   :  { %333 = vmatpush3.bf16.msra.mxu1 %v158_v34 }
  0xed   :  { %vm262_vm2 = vcmp.ge.s32.totalorder %v261_v4, 6  ;;  %vm263_vm3 = vcmp.lt.s32.totalorder %v261_v4, 10 }
  0xee   :  { %vm264_vm4 = vmand %vm262_vm2, %vm263_vm3 }
  0xef   :  { %335 = vmatmul.mubr.msk.bf16.vlgmr.msra.gmra.mrb[4].mxu1 %vm46_vm1, %v32_v9 }
 0x1ba   :  { %v144_v39 = vpop.f32.mrb[0].mxu1 }
 0x1bb   :  { %v145_v40 = vadd.f32 %v287_v38, %v144_v39  ;;  %v320_v41 = vpop.f32.mrb[1].mxu1 }
 0x1bc   :  { %v147_v42 = vpop.f32.mrb[2].mxu1 }
 0x1bd   :  { %v148_v43 = vadd.f32 %v287_v38, %v147_v42  ;;  %v321_v44 = vpop.f32.mrb[3].mxu1  ;;  %v151_v45 = vmax.f32 %v145_v40, 0.0 }
 0x1bf   :  { %v152_v46 = vmax.f32 %v148_v43, 0.0 }
 0x1c1   :  { %v159_v47 = vpack.c.bf16 %v152_v46, %v151_v45 }
 0x1c2   :  { %v244_v48 = vpop.f32.mrb[4].mxu1 }
 0x1c3   :  { %327 = vmatmul.mubr.msk.bf16.vlgmr.msra.gmra.mrb[4].mxu0 %vm46_vm1, %v159_v47  ;;  %v336_v49 = vpop.f32.mrb[5].mxu1 }
 0x1c4   :  { %v247_v50 = vpop.f32.mrb[6].mxu1 }
 0x1c5   :  { %v337_v51 = vpop.f32.mrb[7].mxu1 }
 0x296   :  { %v203_v52 = vpop.f32.mrb[4].mxu0 }
 0x297   :  { %v245_v54 = vadd.f32 %v244_v48, %v203_v52  ;;  %v328_v55 = vpop.f32.mrb[5].mxu0 }
 0x298   :  { %v206_v56 = vpop.f32.mrb[6].mxu0 }
 0x299   :  { %v258_v57 = vadd.f32 %v291_v53, %v245_v54  ;;  %v248_v58 = vadd.f32 %v247_v50, %v206_v56  ;;  %v329_v59 = vpop.f32.mrb[7].mxu0 }
 0x29b   :  { %v292_v60 = vmul.f32 -1.442695, %v258_v57  ;;  %v259_v61 = vadd.f32 %v291_v53, %v248_v58 }
 0x29d   :  { %340 = vpow2.f32 %v292_v60  ;;  %v293_v62 = vmul.f32 -1.442695, %v259_v61 }
 0x29f   :  { %342 = vpow2.f32 %v293_v62 }
 0x2a7   :  { %v341_v63 = vpop.eup %340 }
 0x2a8   :  { %v271_v1 = vadd.f32 1.0, %v341_v63 }
 0x2a9   :  { %v343_v2 = vpop.eup %342 }
 0x2aa   :  { %344 = vrcp.f32 %v271_v1  ;;  %v272_v3 = vadd.f32 1.0, %v343_v2 }
 0x2ac   :  { %346 = vrcp.f32 %v272_v3 }
 0x2b4   :  { %v345_v5 = vpop.eup %344 }
 0x2b5   :  { %v277_v6 = vsel %vm264_vm4, %v345_v5, %v258_v57 }
 0x2b6   :  { %v347_v7 = vpop.eup %346  ;;  %279 = vst [vmem:[%s480_s8] sm:$0xff] %v277_v6 }
 0x2b7   :  { %v278_v8 = vsel %vm264_vm4, %v347_v7, %v259_v61 }
 0x2b8   :  { %280 = vst [vmem:[%s480_s8 + $0x8] sm:$0xff] %v278_v8 }

</bundles_post_ra>
